<compile_context>
chip_gen: v7x
topology: tpu7x:2x2x1
jax: 0.10.0
libtpu: 0.0.40
codegen_flags: <defaults>
</compile_context>

<pallas_src>
import functools
import math

import jax
import jax.numpy as jnp
from jax.experimental import pallas as pl
from jax.experimental.pallas import tpu as pltpu

LANE = 128


def _round_up(x, m):
    return ((x + m - 1) // m) * m


def _pick_tm(M):
    # Prefer a tile that divides M exactly (no padded grid steps); otherwise
    # pad.  128/256 keep the grid length >= 2 for v7x's two TensorCores.
    for tm in (256, 128):
        if M % tm == 0:
            return tm
    return 128 if M <= 256 else 256


# ---------------------------------------------------------------------------
# Pallas kernel 1: fused GEMM  (patches @ W) * scale + shift, LeakyReLU
# ---------------------------------------------------------------------------
def _gemm_kernel(p_ref, w_ref, scale_ref, shift_ref, o_ref, *,
                 neg_slope, apply_act):
    acc = jnp.dot(p_ref[...], w_ref[...], preferred_element_type=jnp.float32)
    y = acc * scale_ref[...] + shift_ref[...]
    if apply_act:
        y = jnp.where(y >= 0.0, y, neg_slope * y)
    o_ref[...] = y.astype(o_ref.dtype)


def _gemm_affine_act(patches, wm, scale, shift, act_slope, out_dtype):
    """patches (M, K) @ wm (K, cout), fused affine + optional LeakyReLU.
    Pads K and cout to multiples of 128 (lane-dense loads/stores), pads M to
    the tile size, runs a 1-D grid over M, returns the (M, cout) result."""
    M, K = patches.shape
    cout = wm.shape[1]
    Kp = _round_up(K, LANE)
    coutp = _round_up(cout, LANE)

    if Kp != K:
        patches = jnp.pad(patches, ((0, 0), (0, Kp - K)))
        wm = jnp.pad(wm, ((0, Kp - K), (0, 0)))
    if coutp != cout:
        wm = jnp.pad(wm, ((0, 0), (0, coutp - cout)))
        scale = jnp.pad(scale, ((0, 0), (0, coutp - cout)), constant_values=1.0)
        shift = jnp.pad(shift, ((0, 0), (0, coutp - cout)))

    tm = _pick_tm(M)
    Mp = _round_up(M, tm)
    if Mp != M:
        patches = jnp.pad(patches, ((0, Mp - M), (0, 0)))

    kern = functools.partial(
        _gemm_kernel,
        neg_slope=float(act_slope) if act_slope is not None else 0.0,
        apply_act=act_slope is not None)

    out = pl.pallas_call(
        kern,
        out_shape=jax.ShapeDtypeStruct((Mp, coutp), out_dtype),
        grid=(Mp // tm,),
        in_specs=[
            pl.BlockSpec((tm, Kp), lambda i: (i, 0)),
            pl.BlockSpec((Kp, coutp), lambda i: (0, 0)),
            pl.BlockSpec((1, coutp), lambda i: (0, 0)),
            pl.BlockSpec((1, coutp), lambda i: (0, 0)),
        ],
        out_specs=pl.BlockSpec((tm, coutp), lambda i: (i, 0)),
        compiler_params=pltpu.CompilerParams(
            dimension_semantics=("parallel",),
            vmem_limit_bytes=32 * 1024 * 1024),
    )(patches.astype(jnp.bfloat16), wm.astype(jnp.bfloat16),
      scale.astype(jnp.float32), shift.astype(jnp.float32))
    return out[:M, :cout]


def _im2col(x, kh, kw, stride, pad):
    """x: (N, H, W, C) -> (N*Ho*Wo, kh*kw*C) with K ordered (kh, kw, C)."""
    if pad:
        x = jnp.pad(x, ((0, 0), (pad, pad), (pad, pad), (0, 0)))
    N, H, W, C = x.shape
    Ho = (H - kh) // stride + 1
    Wo = (W - kw) // stride + 1
    cols = []
    for i in range(kh):
        for j in range(kw):
            cols.append(x[:, i:i + stride * Ho:stride,
                          j:j + stride * Wo:stride, :])       # (N, Ho, Wo, C)
    patches = jnp.stack(cols, axis=3)                           # (N,Ho,Wo,kh*kw,C)
    return patches.reshape(N * Ho * Wo, kh * kw * C), (N, Ho, Wo)


def _affine_from(bias, bn, cout):
    scale = jnp.ones((1, cout), jnp.float32)
    shift = jnp.zeros((1, cout), jnp.float32)
    if bias is not None:
        shift = shift + bias.reshape(1, cout).astype(jnp.float32)
    if bn is not None:
        gamma, beta, mean, var, eps = bn
        s = (gamma / jnp.sqrt(var + eps)).reshape(1, cout)
        shift = (shift - mean.reshape(1, cout)) * s + beta.reshape(1, cout)
        scale = scale * s
    return scale, shift


def conv2d_pallas(x, w, *, stride, pad, bias=None, bn=None, act_slope=None,
                  out_dtype=jnp.float32):
    """Conv2d (PyTorch weight layout (Cout, Cin, kh, kw)) on NHWC input,
    fused with bias, eval-mode BatchNorm and LeakyReLU via the GEMM kernel."""
    cout, cin, kh, kw = w.shape
    patches, (N, Ho, Wo) = _im2col(x, kh, kw, stride, pad)
    K = patches.shape[1]
    wm = jnp.transpose(w, (2, 3, 1, 0)).reshape(K, cout)   # (kh,kw,Cin) ordering
    scale, shift = _affine_from(bias, bn, cout)
    out = _gemm_affine_act(patches, wm, scale, shift, act_slope, out_dtype)
    return out.reshape(N, Ho, Wo, cout)


def fused_final_convs(h0, f1, w0, w1):
    """The two cout=1, 4x4, stride-1, no-pad 'logit' convs (on different
    inputs) fused into one lane-padded GEMM via a block-diagonal weight.
    h0: (N, 8, 8, 512), f1: (N, 8, 8, 16)  ->  (N, 50) concat(l0, l1)."""
    p0, (N, Ho, Wo) = _im2col(h0, 4, 4, 1, 0)               # (N*25, 8192)
    p1, _ = _im2col(f1, 4, 4, 1, 0)                         # (N*25, 256)
    K0, K1 = p0.shape[1], p1.shape[1]
    patches = jnp.concatenate([p0.astype(jnp.bfloat16),
                               p1.astype(jnp.bfloat16)], axis=1)   # (N*25, 8448)
    w0m = jnp.transpose(w0, (2, 3, 1, 0)).reshape(K0, 1)
    w1m = jnp.transpose(w1, (2, 3, 1, 0)).reshape(K1, 1)
    wm = jnp.concatenate([
        jnp.concatenate([w0m, jnp.zeros((K0, 1), w0m.dtype)], axis=1),
        jnp.concatenate([jnp.zeros((K1, 1), w1m.dtype), w1m], axis=1)], axis=0)
    scale = jnp.ones((1, 2), jnp.float32)
    shift = jnp.zeros((1, 2), jnp.float32)
    out = _gemm_affine_act(patches, wm, scale, shift, None, jnp.float32)
    out = out.reshape(N, Ho * Wo, 2)
    # matches torch.cat([l0.view(B,-1), l1.view(B,-1)], dim=1)
    return jnp.concatenate([out[..., 0], out[..., 1]], axis=1)  # (N, 50)


# ---------------------------------------------------------------------------
# Pallas kernel 2: LSTM over the frame axis (PyTorch gate order i, f, g, o),
# gates fused into two matmuls per step, lane-padded to 128 per gate.
# ---------------------------------------------------------------------------
def _lstm_kernel(x_ref, wih_ref, whh_ref, b_ref, o_ref, h_sc, c_sc, *,
                 seq_len, hp):
    h_sc[...] = jnp.zeros_like(h_sc)
    c_sc[...] = jnp.zeros_like(c_sc)
    b = b_ref[...]                               # hoisted out of the time loop
    for t in range(seq_len):                     # static unroll (small T)
        x_t = x_ref[t]                           # (B, Lp)
        h = h_sc[...]
        g = (jnp.dot(x_t, wih_ref[...], preferred_element_type=jnp.float32)
             + jnp.dot(h, whh_ref[...], preferred_element_type=jnp.float32)
             + b)                                # (B, 4*Hp)
        i_g = jax.nn.sigmoid(g[:, 0 * hp:1 * hp])
        f_g = jax.nn.sigmoid(g[:, 1 * hp:2 * hp])
        g_g = jnp.tanh(g[:, 2 * hp:3 * hp])
        o_g = jax.nn.sigmoid(g[:, 3 * hp:4 * hp])
        c = f_g * c_sc[...] + i_g * g_g
        h_new = o_g * jnp.tanh(c)
        c_sc[...] = c
        h_sc[...] = h_new
        o_ref[t] = h_new


def lstm_pallas(x_btl, w_ih, w_hh, b_ih, b_hh):
    """x_btl: (B, T, L); weights in PyTorch layout (4H, L)/(4H, H), H == L.
    Lanes are padded per gate (L,H -> 128); padded lanes stay exactly zero."""
    B, T, L = x_btl.shape
    H = L
    Lp = _round_up(L, LANE)
    Hp = _round_up(H, LANE)

    def pack(w, rows, rows_p):
        blocks = []
        for k in range(4):                       # gate order i, f, g, o
            wk = jnp.transpose(w[k * H:(k + 1) * H]).astype(jnp.float32)
            wk = jnp.pad(wk, ((0, rows_p - rows), (0, Hp - H)))
            blocks.append(wk)
        return jnp.concatenate(blocks, axis=1)   # (rows_p, 4*Hp)

    wih = pack(w_ih, L, Lp)
    whh = pack(w_hh, H, Hp)
    b = (b_ih + b_hh).astype(jnp.float32)
    bias = jnp.concatenate(
        [jnp.pad(b[k * H:(k + 1) * H], (0, Hp - H)) for k in range(4)]
    ).reshape(1, 4 * Hp)

    x_tbl = jnp.transpose(x_btl, (1, 0, 2)).astype(jnp.float32)   # (T, B, L)
    x_tbl = jnp.pad(x_tbl, ((0, 0), (0, 0), (0, Lp - L)))

    out = pl.pallas_call(
        functools.partial(_lstm_kernel, seq_len=T, hp=Hp),
        out_shape=jax.ShapeDtypeStruct((T, B, Hp), jnp.float32),
        grid=(1,),
        in_specs=[
            pl.BlockSpec((T, B, Lp), lambda i: (0, 0, 0)),
            pl.BlockSpec((Lp, 4 * Hp), lambda i: (0, 0)),
            pl.BlockSpec((Hp, 4 * Hp), lambda i: (0, 0)),
            pl.BlockSpec((1, 4 * Hp), lambda i: (0, 0)),
        ],
        out_specs=pl.BlockSpec((T, B, Hp), lambda i: (0, 0, 0)),
        scratch_shapes=[pltpu.VMEM((B, Hp), jnp.float32),
                        pltpu.VMEM((B, Hp), jnp.float32)],
        compiler_params=pltpu.CompilerParams(
            vmem_limit_bytes=32 * 1024 * 1024),
    )(x_tbl, wih, whh, bias)
    return jnp.transpose(out, (1, 0, 2))[:, :, :H]            # (B, T, H)


# ---------------------------------------------------------------------------
# Model: synthetic frozen feature pyramid + MultiScaleD(SingleDisc x2) + LSTM
# Config: CHANNELS=[8,16], RESOLUTIONS=[16,8], num_discs=2, end_sz=8,
#         channel_dict => nfc[8]=512 for the DownBlock; final conv 4x4 -> 5x5.
# ---------------------------------------------------------------------------
def _uniform(key, shape, bound):
    return jax.random.uniform(key, shape, jnp.float32, -bound, bound)


def init_params(key):
    ks = jax.random.split(key, 16)

    def conv_w(k, cout, cin, kh, kw):
        b = 1.0 / math.sqrt(cin * kh * kw)
        return _uniform(k, (cout, cin, kh, kw), b)

    p = {}
    # frozen synthetic feature network (stands in for Proj backbone)
    p["feat_w0"] = conv_w(ks[0], 8, 3, 3, 3)     # 32x32x3  -> 16x16x8
    p["feat_w1"] = conv_w(ks[1], 16, 8, 3, 3)    # 16x16x8  ->  8x8x16
    # SingleDisc "0": nc=8, start_sz=16 -> DownBlock(8, 512) + conv(512,1,4)
    p["d0_down_w"] = conv_w(ks[2], 512, 8, 4, 4)
    p["d0_down_b"] = _uniform(ks[3], (512,), 1.0 / math.sqrt(8 * 16))
    gamma = 0.5 + jax.random.uniform(ks[4], (512,), jnp.float32)
    beta = 0.1 * jax.random.normal(ks[5], (512,), jnp.float32)
    mean = 0.1 * jax.random.normal(ks[6], (512,), jnp.float32)
    var = 0.5 + jax.random.uniform(ks[7], (512,), jnp.float32)
    p["d0_bn"] = (gamma, beta, mean, var, 1e-5)
    p["d0_final_w"] = conv_w(ks[8], 1, 512, 4, 4)
    # SingleDisc "1": nc=16, start_sz=8 == end_sz -> only conv(16,1,4)
    p["d1_final_w"] = conv_w(ks[9], 1, 16, 4, 4)
    # LSTM: input_size == hidden_size == 2 discs * 5*5 = 50
    L = 50
    kb = 1.0 / math.sqrt(L)
    p["lstm_w_ih"] = _uniform(ks[10], (4 * L, L), kb)
    p["lstm_w_hh"] = _uniform(ks[11], (4 * L, L), kb)
    p["lstm_b_ih"] = _uniform(ks[12], (4 * L,), kb)
    p["lstm_b_hh"] = _uniform(ks[13], (4 * L,), kb)
    return p


def temporal_projected_discriminator(images, params):
    """images: (B, T, 3, H, W) float32 (NCHW frames, like PyTorch).
    Returns LSTM outputs (B, T, 50) — the `logits` of the reference forward."""
    B, T, C, H, W = images.shape
    # Fold the frame axis into the batch: every conv stage runs exactly once.
    x = jnp.transpose(images.reshape(B * T, C, H, W), (0, 2, 3, 1))   # NHWC
    # frozen feature network (synthetic, multi-scale); intermediates in bf16
    f0 = conv2d_pallas(x, params["feat_w0"], stride=2, pad=1, act_slope=0.2,
                       out_dtype=jnp.bfloat16)
    f1 = conv2d_pallas(f0, params["feat_w1"], stride=2, pad=1, act_slope=0.2,
                       out_dtype=jnp.bfloat16)
    # MultiScaleD: SingleDisc "0" DownBlock, then both final convs fused
    h0 = conv2d_pallas(f0, params["d0_down_w"], stride=2, pad=1,
                       bias=params["d0_down_b"], bn=params["d0_bn"],
                       act_slope=0.2, out_dtype=jnp.bfloat16)         # 8x8x512
    logit = fused_final_convs(h0, f1,
                              params["d0_final_w"], params["d1_final_w"])
    logits_frames = logit.reshape(B, T, -1)                           # (B,T,50)
    logits = lstm_pallas(logits_frames,
                         params["lstm_w_ih"], params["lstm_w_hh"],
                         params["lstm_b_ih"], params["lstm_b_hh"])
    return logits


if __name__ == "__main__":
    B, T, C, H, W = 2, 3, 3, 32, 32                 # D_temporal_number_frames=3
    images = jax.random.normal(jax.random.PRNGKey(0), (B, T, C, H, W),
                               jnp.float32)
    params = init_params(jax.random.PRNGKey(1))
    fwd = jax.jit(temporal_projected_discriminator)
    out = fwd(images, params)
    out = jax.block_until_ready(out)
    assert out.shape == (B, T, 50), out.shape
    assert bool(jnp.all(jnp.isfinite(out)))
    print("KERNEL_OK")
</pallas_src>

<mosaic_0001>
module attributes {stable_mosaic.version = 11 : i64} {
  func.func @_gemm_kernel(%arg0: i32, %arg1: memref<256x128xbf16, #tpu.memory_space<vmem>>, %arg2: memref<128x128xbf16, #tpu.memory_space<vmem>>, %arg3: memref<1x128xf32, #tpu.memory_space<vmem>>, %arg4: memref<1x128xf32, #tpu.memory_space<vmem>>, %arg5: memref<256x128xbf16, #tpu.memory_space<vmem>>) attributes {dimension_semantics = [#tpu.dimension_semantics<parallel>], iteration_bounds = array<i64: 6>, scalar_prefetch = 0 : i64, scratch_operands = 0 : i64, tpu.core_type = #tpu.core_type<tc>, window_params = [{transform_indices = @transform_0, window_bounds = array<i64: 256, 128>}, {pipeline_mode = #tpu.pipeline_mode<synchronous>, transform_indices = @transform_1, window_bounds = array<i64: 128, 128>}, {pipeline_mode = #tpu.pipeline_mode<synchronous>, transform_indices = @transform_2, window_bounds = array<i64: 1, 128>}, {pipeline_mode = #tpu.pipeline_mode<synchronous>, transform_indices = @transform_3, window_bounds = array<i64: 1, 128>}, {transform_indices = @transform_4, window_bounds = array<i64: 256, 128>}]} {
    %c0 = arith.constant 0 : index
    %c0_0 = arith.constant 0 : index
    %0 = vector.load %arg1[%c0, %c0_0] : memref<256x128xbf16, #tpu.memory_space<vmem>>, vector<256x128xbf16>
    %c0_1 = arith.constant 0 : index
    %c0_2 = arith.constant 0 : index
    %1 = vector.load %arg2[%c0_1, %c0_2] : memref<128x128xbf16, #tpu.memory_space<vmem>>, vector<128x128xbf16>
    %cst = arith.constant dense<0.000000e+00> : vector<256x128xf32>
    %2 = tpu.matmul %0, %1, %cst {dimension_numbers = #tpu.dot_dimension_numbers<[1], [0], [0], [1], [0, 0, 1, 1], [], []>} : vector<256x128xbf16>, vector<128x128xbf16>, vector<256x128xf32> -> vector<256x128xf32>
    %c0_3 = arith.constant 0 : index
    %c0_4 = arith.constant 0 : index
    %3 = vector.load %arg3[%c0_3, %c0_4] : memref<1x128xf32, #tpu.memory_space<vmem>>, vector<1x128xf32>
    %4 = vector.broadcast %3 : vector<1x128xf32> to vector<256x128xf32>
    %5 = arith.mulf %2, %4 : vector<256x128xf32>
    %c0_5 = arith.constant 0 : index
    %c0_6 = arith.constant 0 : index
    %6 = vector.load %arg4[%c0_5, %c0_6] : memref<1x128xf32, #tpu.memory_space<vmem>>, vector<1x128xf32>
    %7 = vector.broadcast %6 : vector<1x128xf32> to vector<256x128xf32>
    %8 = arith.addf %5, %7 : vector<256x128xf32>
    %cst_7 = arith.constant 0.000000e+00 : f32
    %9 = vector.broadcast %cst_7 : f32 to vector<256x128xf32>
    %10 = arith.cmpf oge, %8, %9 : vector<256x128xf32>
    %cst_8 = arith.constant 2.000000e-01 : f32
    %11 = vector.broadcast %cst_8 : f32 to vector<256x128xf32>
    %12 = arith.mulf %11, %8 : vector<256x128xf32>
    %13 = arith.select %10, %8, %12 : vector<256x128xi1>, vector<256x128xf32>
    %14 = arith.truncf %13 : vector<256x128xf32> to vector<256x128xbf16>
    %c0_9 = arith.constant 0 : index
    %c0_10 = arith.constant 0 : index
    %15 = vector.load %arg5[%c0_9, %c0_10] : memref<256x128xbf16, #tpu.memory_space<vmem>>, vector<256x128xbf16>
    tpu.vector_store %arg5[%c0_9, %c0_10], %14 {strides = array<i32>} : memref<256x128xbf16, #tpu.memory_space<vmem>>, vector<256x128xbf16>,
    return
  }
  func.func @transform_0(%arg0: i32) -> (i32, i32) {
    %c0_i32 = arith.constant 0 : i32
    %c0_i32_0 = arith.constant 0 : i32
    return %arg0, %c0_i32 : i32, i32
  }
  func.func @transform_1(%arg0: i32) -> (i32, i32) {
    %c0_i32 = arith.constant 0 : i32
    %c0_i32_0 = arith.constant 0 : i32
    %c0_i32_1 = arith.constant 0 : i32
    return %c0_i32, %c0_i32_0 : i32, i32
  }
  func.func @transform_2(%arg0: i32) -> (i32, i32) {
    %c0_i32 = arith.constant 0 : i32
    %c0_i32_0 = arith.constant 0 : i32
    %c0_i32_1 = arith.constant 0 : i32
    return %c0_i32, %c0_i32_0 : i32, i32
  }
  func.func @transform_3(%arg0: i32) -> (i32, i32) {
    %c0_i32 = arith.constant 0 : i32
    %c0_i32_0 = arith.constant 0 : i32
    %c0_i32_1 = arith.constant 0 : i32
    return %c0_i32, %c0_i32_0 : i32, i32
  }
  func.func @transform_4(%arg0: i32) -> (i32, i32) {
    %c0_i32 = arith.constant 0 : i32
    %c0_i32_0 = arith.constant 0 : i32
    return %arg0, %c0_i32 : i32, i32
  }
}

module attributes {stable_mosaic.version = 11 : i64} {
  func.func @_gemm_kernel(%arg0: i32, %arg1: memref<128x128xbf16, #tpu.memory_space<vmem>>, %arg2: memref<128x128xbf16, #tpu.memory_space<vmem>>, %arg3: memref<1x128xf32, #tpu.memory_space<vmem>>, %arg4: memref<1x128xf32, #tpu.memory_space<vmem>>, %arg5: memref<128x128xbf16, #tpu.memory_space<vmem>>) attributes {dimension_semantics = [#tpu.dimension_semantics<parallel>], iteration_bounds = array<i64: 3>, scalar_prefetch = 0 : i64, scratch_operands = 0 : i64, tpu.core_type = #tpu.core_type<tc>, window_params = [{transform_indices = @transform_0, window_bounds = array<i64: 128, 128>}, {pipeline_mode = #tpu.pipeline_mode<synchronous>, transform_indices = @transform_1, window_bounds = array<i64: 128, 128>}, {pipeline_mode = #tpu.pipeline_mode<synchronous>, transform_indices = @transform_2, window_bounds = array<i64: 1, 128>}, {pipeline_mode = #tpu.pipeline_mode<synchronous>, transform_indices = @transform_3, window_bounds = array<i64: 1, 128>}, {transform_indices = @transform_4, window_bounds = array<i64: 128, 128>}]} {
    %c0 = arith.constant 0 : index
    %c0_0 = arith.constant 0 : index
    %0 = vector.load %arg1[%c0, %c0_0] : memref<128x128xbf16, #tpu.memory_space<vmem>>, vector<128x128xbf16>
    %c0_1 = arith.constant 0 : index
    %c0_2 = arith.constant 0 : index
    %1 = vector.load %arg2[%c0_1, %c0_2] : memref<128x128xbf16, #tpu.memory_space<vmem>>, vector<128x128xbf16>
    %cst = arith.constant dense<0.000000e+00> : vector<128x128xf32>
    %2 = tpu.matmul %0, %1, %cst {dimension_numbers = #tpu.dot_dimension_numbers<[1], [0], [0], [1], [0, 0, 1, 1], [], []>} : vector<128x128xbf16>, vector<128x128xbf16>, vector<128x128xf32> -> vector<128x128xf32>
    %c0_3 = arith.constant 0 : index
    %c0_4 = arith.constant 0 : index
    %3 = vector.load %arg3[%c0_3, %c0_4] : memref<1x128xf32, #tpu.memory_space<vmem>>, vector<1x128xf32>
    %4 = vector.broadcast %3 : vector<1x128xf32> to vector<128x128xf32>
    %5 = arith.mulf %2, %4 : vector<128x128xf32>
    %c0_5 = arith.constant 0 : index
    %c0_6 = arith.constant 0 : index
    %6 = vector.load %arg4[%c0_5, %c0_6] : memref<1x128xf32, #tpu.memory_space<vmem>>, vector<1x128xf32>
    %7 = vector.broadcast %6 : vector<1x128xf32> to vector<128x128xf32>
    %8 = arith.addf %5, %7 : vector<128x128xf32>
    %cst_7 = arith.constant 0.000000e+00 : f32
    %9 = vector.broadcast %cst_7 : f32 to vector<128x128xf32>
    %10 = arith.cmpf oge, %8, %9 : vector<128x128xf32>
    %cst_8 = arith.constant 2.000000e-01 : f32
    %11 = vector.broadcast %cst_8 : f32 to vector<128x128xf32>
    %12 = arith.mulf %11, %8 : vector<128x128xf32>
    %13 = arith.select %10, %8, %12 : vector<128x128xi1>, vector<128x128xf32>
    %14 = arith.truncf %13 : vector<128x128xf32> to vector<128x128xbf16>
    %c0_9 = arith.constant 0 : index
    %c0_10 = arith.constant 0 : index
    %15 = vector.load %arg5[%c0_9, %c0_10] : memref<128x128xbf16, #tpu.memory_space<vmem>>, vector<128x128xbf16>
    tpu.vector_store %arg5[%c0_9, %c0_10], %14 {strides = array<i32>} : memref<128x128xbf16, #tpu.memory_space<vmem>>, vector<128x128xbf16>,
    return
  }
  func.func @transform_0(%arg0: i32) -> (i32, i32) {
    %c0_i32 = arith.constant 0 : i32
    %c0_i32_0 = arith.constant 0 : i32
    return %arg0, %c0_i32 : i32, i32
  }
  func.func @transform_1(%arg0: i32) -> (i32, i32) {
    %c0_i32 = arith.constant 0 : i32
    %c0_i32_0 = arith.constant 0 : i32
    %c0_i32_1 = arith.constant 0 : i32
    return %c0_i32, %c0_i32_0 : i32, i32
  }
  func.func @transform_2(%arg0: i32) -> (i32, i32) {
    %c0_i32 = arith.constant 0 : i32
    %c0_i32_0 = arith.constant 0 : i32
    %c0_i32_1 = arith.constant 0 : i32
    return %c0_i32, %c0_i32_0 : i32, i32
  }
  func.func @transform_3(%arg0: i32) -> (i32, i32) {
    %c0_i32 = arith.constant 0 : i32
    %c0_i32_0 = arith.constant 0 : i32
    %c0_i32_1 = arith.constant 0 : i32
    return %c0_i32, %c0_i32_0 : i32, i32
  }
  func.func @transform_4(%arg0: i32) -> (i32, i32) {
    %c0_i32 = arith.constant 0 : i32
    %c0_i32_0 = arith.constant 0 : i32
    return %arg0, %c0_i32 : i32, i32
  }
}

module attributes {stable_mosaic.version = 11 : i64} {
  func.func @_gemm_kernel(%arg0: i32, %arg1: memref<128x128xbf16, #tpu.memory_space<vmem>>, %arg2: memref<128x512xbf16, #tpu.memory_space<vmem>>, %arg3: memref<1x512xf32, #tpu.memory_space<vmem>>, %arg4: memref<1x512xf32, #tpu.memory_space<vmem>>, %arg5: memref<128x512xbf16, #tpu.memory_space<vmem>>) attributes {dimension_semantics = [#tpu.dimension_semantics<parallel>], iteration_bounds = array<i64: 3>, scalar_prefetch = 0 : i64, scratch_operands = 0 : i64, tpu.core_type = #tpu.core_type<tc>, window_params = [{transform_indices = @transform_0, window_bounds = array<i64: 128, 128>}, {pipeline_mode = #tpu.pipeline_mode<synchronous>, transform_indices = @transform_1, window_bounds = array<i64: 128, 512>}, {pipeline_mode = #tpu.pipeline_mode<synchronous>, transform_indices = @transform_2, window_bounds = array<i64: 1, 512>}, {pipeline_mode = #tpu.pipeline_mode<synchronous>, transform_indices = @transform_3, window_bounds = array<i64: 1, 512>}, {transform_indices = @transform_4, window_bounds = array<i64: 128, 512>}]} {
    %c0 = arith.constant 0 : index
    %c0_0 = arith.constant 0 : index
    %0 = vector.load %arg1[%c0, %c0_0] : memref<128x128xbf16, #tpu.memory_space<vmem>>, vector<128x128xbf16>
    %c0_1 = arith.constant 0 : index
    %c0_2 = arith.constant 0 : index
    %1 = vector.load %arg2[%c0_1, %c0_2] : memref<128x512xbf16, #tpu.memory_space<vmem>>, vector<128x512xbf16>
    %cst = arith.constant dense<0.000000e+00> : vector<128x512xf32>
    %2 = tpu.matmul %0, %1, %cst {dimension_numbers = #tpu.dot_dimension_numbers<[1], [0], [0], [1], [0, 0, 1, 1], [], []>} : vector<128x128xbf16>, vector<128x512xbf16>, vector<128x512xf32> -> vector<128x512xf32>
    %c0_3 = arith.constant 0 : index
    %c0_4 = arith.constant 0 : index
    %3 = vector.load %arg3[%c0_3, %c0_4] : memref<1x512xf32, #tpu.memory_space<vmem>>, vector<1x512xf32>
    %4 = vector.broadcast %3 : vector<1x512xf32> to vector<128x512xf32>
    %5 = arith.mulf %2, %4 : vector<128x512xf32>
    %c0_5 = arith.constant 0 : index
    %c0_6 = arith.constant 0 : index
    %6 = vector.load %arg4[%c0_5, %c0_6] : memref<1x512xf32, #tpu.memory_space<vmem>>, vector<1x512xf32>
    %7 = vector.broadcast %6 : vector<1x512xf32> to vector<128x512xf32>
    %8 = arith.addf %5, %7 : vector<128x512xf32>
    %cst_7 = arith.constant 0.000000e+00 : f32
    %9 = vector.broadcast %cst_7 : f32 to vector<128x512xf32>
    %10 = arith.cmpf oge, %8, %9 : vector<128x512xf32>
    %cst_8 = arith.constant 2.000000e-01 : f32
    %11 = vector.broadcast %cst_8 : f32 to vector<128x512xf32>
    %12 = arith.mulf %11, %8 : vector<128x512xf32>
    %13 = arith.select %10, %8, %12 : vector<128x512xi1>, vector<128x512xf32>
    %14 = arith.truncf %13 : vector<128x512xf32> to vector<128x512xbf16>
    %c0_9 = arith.constant 0 : index
    %c0_10 = arith.constant 0 : index
    %15 = vector.load %arg5[%c0_9, %c0_10] : memref<128x512xbf16, #tpu.memory_space<vmem>>, vector<128x512xbf16>
    tpu.vector_store %arg5[%c0_9, %c0_10], %14 {strides = array<i32>} : memref<128x512xbf16, #tpu.memory_space<vmem>>, vector<128x512xbf16>,
    return
  }
  func.func @transform_0(%arg0: i32) -> (i32, i32) {
    %c0_i32 = arith.constant 0 : i32
    %c0_i32_0 = arith.constant 0 : i32
    return %arg0, %c0_i32 : i32, i32
  }
  func.func @transform_1(%arg0: i32) -> (i32, i32) {
    %c0_i32 = arith.constant 0 : i32
    %c0_i32_0 = arith.constant 0 : i32
    %c0_i32_1 = arith.constant 0 : i32
    return %c0_i32, %c0_i32_0 : i32, i32
  }
  func.func @transform_2(%arg0: i32) -> (i32, i32) {
    %c0_i32 = arith.constant 0 : i32
    %c0_i32_0 = arith.constant 0 : i32
    %c0_i32_1 = arith.constant 0 : i32
    return %c0_i32, %c0_i32_0 : i32, i32
  }
  func.func @transform_3(%arg0: i32) -> (i32, i32) {
    %c0_i32 = arith.constant 0 : i32
    %c0_i32_0 = arith.constant 0 : i32
    %c0_i32_1 = arith.constant 0 : i32
    return %c0_i32, %c0_i32_0 : i32, i32
  }
  func.func @transform_4(%arg0: i32) -> (i32, i32) {
    %c0_i32 = arith.constant 0 : i32
    %c0_i32_0 = arith.constant 0 : i32
    return %arg0, %c0_i32 : i32, i32
  }
}

module attributes {stable_mosaic.version = 11 : i64} {
  func.func @_gemm_kernel(%arg0: i32, %arg1: memref<128x8448xbf16, #tpu.memory_space<vmem>>, %arg2: memref<8448x128xbf16, #tpu.memory_space<vmem>>, %arg3: memref<1x128xf32, #tpu.memory_space<vmem>>, %arg4: memref<1x128xf32, #tpu.memory_space<vmem>>, %arg5: memref<128x128xf32, #tpu.memory_space<vmem>>) attributes {dimension_semantics = [#tpu.dimension_semantics<parallel>], iteration_bounds = array<i64: 2>, scalar_prefetch = 0 : i64, scratch_operands = 0 : i64, tpu.core_type = #tpu.core_type<tc>, window_params = [{transform_indices = @transform_0, window_bounds = array<i64: 128, 8448>}, {pipeline_mode = #tpu.pipeline_mode<synchronous>, transform_indices = @transform_1, window_bounds = array<i64: 8448, 128>}, {pipeline_mode = #tpu.pipeline_mode<synchronous>, transform_indices = @transform_2, window_bounds = array<i64: 1, 128>}, {pipeline_mode = #tpu.pipeline_mode<synchronous>, transform_indices = @transform_3, window_bounds = array<i64: 1, 128>}, {transform_indices = @transform_4, window_bounds = array<i64: 128, 128>}]} {
    %c0 = arith.constant 0 : index
    %c0_0 = arith.constant 0 : index
    %0 = vector.load %arg1[%c0, %c0_0] : memref<128x8448xbf16, #tpu.memory_space<vmem>>, vector<128x8448xbf16>
    %c0_1 = arith.constant 0 : index
    %c0_2 = arith.constant 0 : index
    %1 = vector.load %arg2[%c0_1, %c0_2] : memref<8448x128xbf16, #tpu.memory_space<vmem>>, vector<8448x128xbf16>
    %cst = arith.constant dense<0.000000e+00> : vector<128x128xf32>
    %2 = tpu.matmul %0, %1, %cst {dimension_numbers = #tpu.dot_dimension_numbers<[1], [0], [0], [1], [0, 0, 1, 1], [], []>} : vector<128x8448xbf16>, vector<8448x128xbf16>, vector<128x128xf32> -> vector<128x128xf32>
    %c0_3 = arith.constant 0 : index
    %c0_4 = arith.constant 0 : index
    %3 = vector.load %arg3[%c0_3, %c0_4] : memref<1x128xf32, #tpu.memory_space<vmem>>, vector<1x128xf32>
    %4 = vector.broadcast %3 : vector<1x128xf32> to vector<128x128xf32>
    %5 = arith.mulf %2, %4 : vector<128x128xf32>
    %c0_5 = arith.constant 0 : index
    %c0_6 = arith.constant 0 : index
    %6 = vector.load %arg4[%c0_5, %c0_6] : memref<1x128xf32, #tpu.memory_space<vmem>>, vector<1x128xf32>
    %7 = vector.broadcast %6 : vector<1x128xf32> to vector<128x128xf32>
    %8 = arith.addf %5, %7 : vector<128x128xf32>
    %c0_7 = arith.constant 0 : index
    %c0_8 = arith.constant 0 : index
    %9 = vector.load %arg5[%c0_7, %c0_8] : memref<128x128xf32, #tpu.memory_space<vmem>>, vector<128x128xf32>
    tpu.vector_store %arg5[%c0_7, %c0_8], %8 {strides = array<i32>} : memref<128x128xf32, #tpu.memory_space<vmem>>, vector<128x128xf32>,
    return
  }
  func.func @transform_0(%arg0: i32) -> (i32, i32) {
    %c0_i32 = arith.constant 0 : i32
    %c0_i32_0 = arith.constant 0 : i32
    return %arg0, %c0_i32 : i32, i32
  }
  func.func @transform_1(%arg0: i32) -> (i32, i32) {
    %c0_i32 = arith.constant 0 : i32
    %c0_i32_0 = arith.constant 0 : i32
    %c0_i32_1 = arith.constant 0 : i32
    return %c0_i32, %c0_i32_0 : i32, i32
  }
  func.func @transform_2(%arg0: i32) -> (i32, i32) {
    %c0_i32 = arith.constant 0 : i32
    %c0_i32_0 = arith.constant 0 : i32
    %c0_i32_1 = arith.constant 0 : i32
    return %c0_i32, %c0_i32_0 : i32, i32
  }
  func.func @transform_3(%arg0: i32) -> (i32, i32) {
    %c0_i32 = arith.constant 0 : i32
    %c0_i32_0 = arith.constant 0 : i32
    %c0_i32_1 = arith.constant 0 : i32
    return %c0_i32, %c0_i32_0 : i32, i32
  }
  func.func @transform_4(%arg0: i32) -> (i32, i32) {
    %c0_i32 = arith.constant 0 : i32
    %c0_i32_0 = arith.constant 0 : i32
    return %arg0, %c0_i32 : i32, i32
  }
}

module attributes {stable_mosaic.version = 11 : i64} {
  func.func @_lstm_kernel(%arg0: i32, %arg1: memref<3x2x128xf32, #tpu.memory_space<vmem>>, %arg2: memref<128x512xf32, #tpu.memory_space<vmem>>, %arg3: memref<128x512xf32, #tpu.memory_space<vmem>>, %arg4: memref<1x512xf32, #tpu.memory_space<vmem>>, %arg5: memref<3x2x128xf32, #tpu.memory_space<vmem>>, %arg6: memref<2x128xf32, #tpu.memory_space<vmem>>, %arg7: memref<2x128xf32, #tpu.memory_space<vmem>>) attributes {dimension_semantics = [#tpu.dimension_semantics<arbitrary>], iteration_bounds = array<i64: 1>, scalar_prefetch = 0 : i64, scratch_operands = 2 : i64, tpu.core_type = #tpu.core_type<tc>, window_params = [{pipeline_mode = #tpu.pipeline_mode<synchronous>, transform_indices = @transform_0, window_bounds = array<i64: 3, 2, 128>}, {pipeline_mode = #tpu.pipeline_mode<synchronous>, transform_indices = @transform_1, window_bounds = array<i64: 128, 512>}, {pipeline_mode = #tpu.pipeline_mode<synchronous>, transform_indices = @transform_2, window_bounds = array<i64: 128, 512>}, {pipeline_mode = #tpu.pipeline_mode<synchronous>, transform_indices = @transform_3, window_bounds = array<i64: 1, 512>}, {pipeline_mode = #tpu.pipeline_mode<synchronous>, transform_indices = @transform_4, window_bounds = array<i64: 3, 2, 128>}]} {
    %cst = arith.constant 0.000000e+00 : f32
    %0 = vector.broadcast %cst : f32 to vector<2x128xf32>
    %c0 = arith.constant 0 : index
    %c0_0 = arith.constant 0 : index
    %1 = vector.load %arg6[%c0, %c0_0] : memref<2x128xf32, #tpu.memory_space<vmem>>, vector<2x128xf32>
    tpu.vector_store %arg6[%c0, %c0_0], %0 {strides = array<i32>} : memref<2x128xf32, #tpu.memory_space<vmem>>, vector<2x128xf32>,
    %cst_1 = arith.constant 0.000000e+00 : f32
    %2 = vector.broadcast %cst_1 : f32 to vector<2x128xf32>
    %c0_2 = arith.constant 0 : index
    %c0_3 = arith.constant 0 : index
    %3 = vector.load %arg7[%c0_2, %c0_3] : memref<2x128xf32, #tpu.memory_space<vmem>>, vector<2x128xf32>
    tpu.vector_store %arg7[%c0_2, %c0_3], %2 {strides = array<i32>} : memref<2x128xf32, #tpu.memory_space<vmem>>, vector<2x128xf32>,
    %c0_4 = arith.constant 0 : index
    %c0_5 = arith.constant 0 : index
    %4 = vector.load %arg4[%c0_4, %c0_5] : memref<1x512xf32, #tpu.memory_space<vmem>>, vector<1x512xf32>
    %c0_6 = arith.constant 0 : index
    %c0_7 = arith.constant 0 : index
    %c0_8 = arith.constant 0 : index
    %5 = vector.load %arg1[%c0_6, %c0_7, %c0_8] : memref<3x2x128xf32, #tpu.memory_space<vmem>>, vector<1x2x128xf32>
    %6 = vector.shape_cast %5 : vector<1x2x128xf32> to vector<2x128xf32>
    %c0_9 = arith.constant 0 : index
    %c0_10 = arith.constant 0 : index
    %7 = vector.load %arg6[%c0_9, %c0_10] : memref<2x128xf32, #tpu.memory_space<vmem>>, vector<2x128xf32>
    %c0_11 = arith.constant 0 : index
    %c0_12 = arith.constant 0 : index
    %8 = vector.load %arg2[%c0_11, %c0_12] : memref<128x512xf32, #tpu.memory_space<vmem>>, vector<128x512xf32>
    %cst_13 = arith.constant dense<0.000000e+00> : vector<2x512xf32>
    %9 = tpu.matmul %6, %8, %cst_13 {dimension_numbers = #tpu.dot_dimension_numbers<[1], [0], [0], [1], [0, 0, 1, 1], [], []>} : vector<2x128xf32>, vector<128x512xf32>, vector<2x512xf32> -> vector<2x512xf32>
    %c0_14 = arith.constant 0 : index
    %c0_15 = arith.constant 0 : index
    %10 = vector.load %arg3[%c0_14, %c0_15] : memref<128x512xf32, #tpu.memory_space<vmem>>, vector<128x512xf32>
    %cst_16 = arith.constant dense<0.000000e+00> : vector<2x512xf32>
    %11 = tpu.matmul %7, %10, %cst_16 {dimension_numbers = #tpu.dot_dimension_numbers<[1], [0], [0], [1], [0, 0, 1, 1], [], []>} : vector<2x128xf32>, vector<128x512xf32>, vector<2x512xf32> -> vector<2x512xf32>
    %12 = arith.addf %9, %11 : vector<2x512xf32>
    %13 = vector.broadcast %4 : vector<1x512xf32> to vector<2x512xf32>
    %14 = arith.addf %12, %13 : vector<2x512xf32>
    %15 = vector.extract_strided_slice %14 {offsets = [0, 0], sizes = [2, 128], strides = [1, 1]} : vector<2x512xf32> to vector<2x128xf32>
    %16 = arith.negf %15 : vector<2x128xf32>
    %17 = math.exp %16 : vector<2x128xf32>
    %cst_17 = arith.constant 1.000000e+00 : f32
    %18 = vector.broadcast %cst_17 : f32 to vector<2x128xf32>
    %19 = arith.addf %18, %17 : vector<2x128xf32>
    %20 = arith.divf %18, %19 : vector<2x128xf32>
    %21 = vector.extract_strided_slice %14 {offsets = [0, 128], sizes = [2, 128], strides = [1, 1]} : vector<2x512xf32> to vector<2x128xf32>
    %22 = arith.negf %21 : vector<2x128xf32>
    %23 = math.exp %22 : vector<2x128xf32>
    %cst_18 = arith.constant 1.000000e+00 : f32
    %24 = vector.broadcast %cst_18 : f32 to vector<2x128xf32>
    %25 = arith.addf %24, %23 : vector<2x128xf32>
    %26 = arith.divf %24, %25 : vector<2x128xf32>
    %27 = vector.extract_strided_slice %14 {offsets = [0, 256], sizes = [2, 128], strides = [1, 1]} : vector<2x512xf32> to vector<2x128xf32>
    %28 = math.tanh %27 : vector<2x128xf32>
    %29 = vector.extract_strided_slice %14 {offsets = [0, 384], sizes = [2, 128], strides = [1, 1]} : vector<2x512xf32> to vector<2x128xf32>
    %30 = arith.negf %29 : vector<2x128xf32>
    %31 = math.exp %30 : vector<2x128xf32>
    %cst_19 = arith.constant 1.000000e+00 : f32
    %32 = vector.broadcast %cst_19 : f32 to vector<2x128xf32>
    %33 = arith.addf %32, %31 : vector<2x128xf32>
    %34 = arith.divf %32, %33 : vector<2x128xf32>
    %c0_20 = arith.constant 0 : index
    %c0_21 = arith.constant 0 : index
    %35 = vector.load %arg7[%c0_20, %c0_21] : memref<2x128xf32, #tpu.memory_space<vmem>>, vector<2x128xf32>
    %36 = arith.mulf %26, %35 : vector<2x128xf32>
    %37 = arith.mulf %20, %28 : vector<2x128xf32>
    %38 = arith.addf %36, %37 : vector<2x128xf32>
    %39 = math.tanh %38 : vector<2x128xf32>
    %40 = arith.mulf %34, %39 : vector<2x128xf32>
    %c0_22 = arith.constant 0 : index
    %c0_23 = arith.constant 0 : index
    %41 = vector.load %arg7[%c0_22, %c0_23] : memref<2x128xf32, #tpu.memory_space<vmem>>, vector<2x128xf32>
    tpu.vector_store %arg7[%c0_22, %c0_23], %38 {strides = array<i32>} : memref<2x128xf32, #tpu.memory_space<vmem>>, vector<2x128xf32>,
    %c0_24 = arith.constant 0 : index
    %c0_25 = arith.constant 0 : index
    %42 = vector.load %arg6[%c0_24, %c0_25] : memref<2x128xf32, #tpu.memory_space<vmem>>, vector<2x128xf32>
    tpu.vector_store %arg6[%c0_24, %c0_25], %40 {strides = array<i32>} : memref<2x128xf32, #tpu.memory_space<vmem>>, vector<2x128xf32>,
    %c0_26 = arith.constant 0 : index
    %c0_27 = arith.constant 0 : index
    %c0_28 = arith.constant 0 : index
    %43 = vector.load %arg5[%c0_26, %c0_27, %c0_28] : memref<3x2x128xf32, #tpu.memory_space<vmem>>, vector<1x2x128xf32>
    %44 = vector.shape_cast %43 : vector<1x2x128xf32> to vector<2x128xf32>
    %45 = vector.shape_cast %40 : vector<2x128xf32> to vector<1x2x128xf32>
    tpu.vector_store %arg5[%c0_26, %c0_27, %c0_28], %45 {strides = array<i32>} : memref<3x2x128xf32, #tpu.memory_space<vmem>>, vector<1x2x128xf32>,
    %c1 = arith.constant 1 : index
    %c0_29 = arith.constant 0 : index
    %c0_30 = arith.constant 0 : index
    %46 = vector.load %arg1[%c1, %c0_29, %c0_30] : memref<3x2x128xf32, #tpu.memory_space<vmem>>, vector<1x2x128xf32>
    %47 = vector.shape_cast %46 : vector<1x2x128xf32> to vector<2x128xf32>
    %c0_31 = arith.constant 0 : index
    %c0_32 = arith.constant 0 : index
    %48 = vector.load %arg6[%c0_31, %c0_32] : memref<2x128xf32, #tpu.memory_space<vmem>>, vector<2x128xf32>
    %c0_33 = arith.constant 0 : index
    %c0_34 = arith.constant 0 : index
    %49 = vector.load %arg2[%c0_33, %c0_34] : memref<128x512xf32, #tpu.memory_space<vmem>>, vector<128x512xf32>
    %cst_35 = arith.constant dense<0.000000e+00> : vector<2x512xf32>
    %50 = tpu.matmul %47, %49, %cst_35 {dimension_numbers = #tpu.dot_dimension_numbers<[1], [0], [0], [1], [0, 0, 1, 1], [], []>} : vector<2x128xf32>, vector<128x512xf32>, vector<2x512xf32> -> vector<2x512xf32>
    %c0_36 = arith.constant 0 : index
    %c0_37 = arith.constant 0 : index
    %51 = vector.load %arg3[%c0_36, %c0_37] : memref<128x512xf32, #tpu.memory_space<vmem>>, vector<128x512xf32>
    %cst_38 = arith.constant dense<0.000000e+00> : vector<2x512xf32>
    %52 = tpu.matmul %48, %51, %cst_38 {dimension_numbers = #tpu.dot_dimension_numbers<[1], [0], [0], [1], [0, 0, 1, 1], [], []>} : vector<2x128xf32>, vector<128x512xf32>, vector<2x512xf32> -> vector<2x512xf32>
    %53 = arith.addf %50, %52 : vector<2x512xf32>
    %54 = vector.broadcast %4 : vector<1x512xf32> to vector<2x512xf32>
    %55 = arith.addf %53, %54 : vector<2x512xf32>
    %56 = vector.extract_strided_slice %55 {offsets = [0, 0], sizes = [2, 128], strides = [1, 1]} : vector<2x512xf32> to vector<2x128xf32>
    %57 = arith.negf %56 : vector<2x128xf32>
    %58 = math.exp %57 : vector<2x128xf32>
    %cst_39 = arith.constant 1.000000e+00 : f32
    %59 = vector.broadcast %cst_39 : f32 to vector<2x128xf32>
    %60 = arith.addf %59, %58 : vector<2x128xf32>
    %61 = arith.divf %59, %60 : vector<2x128xf32>
    %62 = vector.extract_strided_slice %55 {offsets = [0, 128], sizes = [2, 128], strides = [1, 1]} : vector<2x512xf32> to vector<2x128xf32>
    %63 = arith.negf %62 : vector<2x128xf32>
    %64 = math.exp %63 : vector<2x128xf32>
    %cst_40 = arith.constant 1.000000e+00 : f32
    %65 = vector.broadcast %cst_40 : f32 to vector<2x128xf32>
    %66 = arith.addf %65, %64 : vector<2x128xf32>
    %67 = arith.divf %65, %66 : vector<2x128xf32>
    %68 = vector.extract_strided_slice %55 {offsets = [0, 256], sizes = [2, 128], strides = [1, 1]} : vector<2x512xf32> to vector<2x128xf32>
    %69 = math.tanh %68 : vector<2x128xf32>
    %70 = vector.extract_strided_slice %55 {offsets = [0, 384], sizes = [2, 128], strides = [1, 1]} : vector<2x512xf32> to vector<2x128xf32>
    %71 = arith.negf %70 : vector<2x128xf32>
    %72 = math.exp %71 : vector<2x128xf32>
    %cst_41 = arith.constant 1.000000e+00 : f32
    %73 = vector.broadcast %cst_41 : f32 to vector<2x128xf32>
    %74 = arith.addf %73, %72 : vector<2x128xf32>
    %75 = arith.divf %73, %74 : vector<2x128xf32>
    %c0_42 = arith.constant 0 : index
    %c0_43 = arith.constant 0 : index
    %76 = vector.load %arg7[%c0_42, %c0_43] : memref<2x128xf32, #tpu.memory_space<vmem>>, vector<2x128xf32>
    %77 = arith.mulf %67, %76 : vector<2x128xf32>
    %78 = arith.mulf %61, %69 : vector<2x128xf32>
    %79 = arith.addf %77, %78 : vector<2x128xf32>
    %80 = math.tanh %79 : vector<2x128xf32>
    %81 = arith.mulf %75, %80 : vector<2x128xf32>
    %c0_44 = arith.constant 0 : index
    %c0_45 = arith.constant 0 : index
    %82 = vector.load %arg7[%c0_44, %c0_45] : memref<2x128xf32, #tpu.memory_space<vmem>>, vector<2x128xf32>
    tpu.vector_store %arg7[%c0_44, %c0_45], %79 {strides = array<i32>} : memref<2x128xf32, #tpu.memory_space<vmem>>, vector<2x128xf32>,
    %c0_46 = arith.constant 0 : index
    %c0_47 = arith.constant 0 : index
    %83 = vector.load %arg6[%c0_46, %c0_47] : memref<2x128xf32, #tpu.memory_space<vmem>>, vector<2x128xf32>
    tpu.vector_store %arg6[%c0_46, %c0_47], %81 {strides = array<i32>} : memref<2x128xf32, #tpu.memory_space<vmem>>, vector<2x128xf32>,
    %c1_48 = arith.constant 1 : index
    %c0_49 = arith.constant 0 : index
    %c0_50 = arith.constant 0 : index
    %84 = vector.load %arg5[%c1_48, %c0_49, %c0_50] : memref<3x2x128xf32, #tpu.memory_space<vmem>>, vector<1x2x128xf32>
    %85 = vector.shape_cast %84 : vector<1x2x128xf32> to vector<2x128xf32>
    %86 = vector.shape_cast %81 : vector<2x128xf32> to vector<1x2x128xf32>
    tpu.vector_store %arg5[%c1_48, %c0_49, %c0_50], %86 {strides = array<i32>} : memref<3x2x128xf32, #tpu.memory_space<vmem>>, vector<1x2x128xf32>,
    %c2 = arith.constant 2 : index
    %c0_51 = arith.constant 0 : index
    %c0_52 = arith.constant 0 : index
    %87 = vector.load %arg1[%c2, %c0_51, %c0_52] : memref<3x2x128xf32, #tpu.memory_space<vmem>>, vector<1x2x128xf32>
    %88 = vector.shape_cast %87 : vector<1x2x128xf32> to vector<2x128xf32>
    %c0_53 = arith.constant 0 : index
    %c0_54 = arith.constant 0 : index
    %89 = vector.load %arg6[%c0_53, %c0_54] : memref<2x128xf32, #tpu.memory_space<vmem>>, vector<2x128xf32>
    %c0_55 = arith.constant 0 : index
    %c0_56 = arith.constant 0 : index
    %90 = vector.load %arg2[%c0_55, %c0_56] : memref<128x512xf32, #tpu.memory_space<vmem>>, vector<128x512xf32>
    %cst_57 = arith.constant dense<0.000000e+00> : vector<2x512xf32>
    %91 = tpu.matmul %88, %90, %cst_57 {dimension_numbers = #tpu.dot_dimension_numbers<[1], [0], [0], [1], [0, 0, 1, 1], [], []>} : vector<2x128xf32>, vector<128x512xf32>, vector<2x512xf32> -> vector<2x512xf32>
    %c0_58 = arith.constant 0 : index
    %c0_59 = arith.constant 0 : index
    %92 = vector.load %arg3[%c0_58, %c0_59] : memref<128x512xf32, #tpu.memory_space<vmem>>, vector<128x512xf32>
    %cst_60 = arith.constant dense<0.000000e+00> : vector<2x512xf32>
    %93 = tpu.matmul %89, %92, %cst_60 {dimension_numbers = #tpu.dot_dimension_numbers<[1], [0], [0], [1], [0, 0, 1, 1], [], []>} : vector<2x128xf32>, vector<128x512xf32>, vector<2x512xf32> -> vector<2x512xf32>
    %94 = arith.addf %91, %93 : vector<2x512xf32>
    %95 = vector.broadcast %4 : vector<1x512xf32> to vector<2x512xf32>
    %96 = arith.addf %94, %95 : vector<2x512xf32>
    %97 = vector.extract_strided_slice %96 {offsets = [0, 0], sizes = [2, 128], strides = [1, 1]} : vector<2x512xf32> to vector<2x128xf32>
    %98 = arith.negf %97 : vector<2x128xf32>
    %99 = math.exp %98 : vector<2x128xf32>
    %cst_61 = arith.constant 1.000000e+00 : f32
    %100 = vector.broadcast %cst_61 : f32 to vector<2x128xf32>
    %101 = arith.addf %100, %99 : vector<2x128xf32>
    %102 = arith.divf %100, %101 : vector<2x128xf32>
    %103 = vector.extract_strided_slice %96 {offsets = [0, 128], sizes = [2, 128], strides = [1, 1]} : vector<2x512xf32> to vector<2x128xf32>
    %104 = arith.negf %103 : vector<2x128xf32>
    %105 = math.exp %104 : vector<2x128xf32>
    %cst_62 = arith.constant 1.000000e+00 : f32
    %106 = vector.broadcast %cst_62 : f32 to vector<2x128xf32>
    %107 = arith.addf %106, %105 : vector<2x128xf32>
    %108 = arith.divf %106, %107 : vector<2x128xf32>
    %109 = vector.extract_strided_slice %96 {offsets = [0, 256], sizes = [2, 128], strides = [1, 1]} : vector<2x512xf32> to vector<2x128xf32>
    %110 = math.tanh %109 : vector<2x128xf32>
    %111 = vector.extract_strided_slice %96 {offsets = [0, 384], sizes = [2, 128], strides = [1, 1]} : vector<2x512xf32> to vector<2x128xf32>
    %112 = arith.negf %111 : vector<2x128xf32>
    %113 = math.exp %112 : vector<2x128xf32>
    %cst_63 = arith.constant 1.000000e+00 : f32
    %114 = vector.broadcast %cst_63 : f32 to vector<2x128xf32>
    %115 = arith.addf %114, %113 : vector<2x128xf32>
    %116 = arith.divf %114, %115 : vector<2x128xf32>
    %c0_64 = arith.constant 0 : index
    %c0_65 = arith.constant 0 : index
    %117 = vector.load %arg7[%c0_64, %c0_65] : memref<2x128xf32, #tpu.memory_space<vmem>>, vector<2x128xf32>
    %118 = arith.mulf %108, %117 : vector<2x128xf32>
    %119 = arith.mulf %102, %110 : vector<2x128xf32>
    %120 = arith.addf %118, %119 : vector<2x128xf32>
    %121 = math.tanh %120 : vector<2x128xf32>
    %122 = arith.mulf %116, %121 : vector<2x128xf32>
    %c0_66 = arith.constant 0 : index
    %c0_67 = arith.constant 0 : index
    %123 = vector.load %arg7[%c0_66, %c0_67] : memref<2x128xf32, #tpu.memory_space<vmem>>, vector<2x128xf32>
    tpu.vector_store %arg7[%c0_66, %c0_67], %120 {strides = array<i32>} : memref<2x128xf32, #tpu.memory_space<vmem>>, vector<2x128xf32>,
    %c0_68 = arith.constant 0 : index
    %c0_69 = arith.constant 0 : index
    %124 = vector.load %arg6[%c0_68, %c0_69] : memref<2x128xf32, #tpu.memory_space<vmem>>, vector<2x128xf32>
    tpu.vector_store %arg6[%c0_68, %c0_69], %122 {strides = array<i32>} : memref<2x128xf32, #tpu.memory_space<vmem>>, vector<2x128xf32>,
    %c2_70 = arith.constant 2 : index
    %c0_71 = arith.constant 0 : index
    %c0_72 = arith.constant 0 : index
    %125 = vector.load %arg5[%c2_70, %c0_71, %c0_72] : memref<3x2x128xf32, #tpu.memory_space<vmem>>, vector<1x2x128xf32>
    %126 = vector.shape_cast %125 : vector<1x2x128xf32> to vector<2x128xf32>
    %127 = vector.shape_cast %122 : vector<2x128xf32> to vector<1x2x128xf32>
    tpu.vector_store %arg5[%c2_70, %c0_71, %c0_72], %127 {strides = array<i32>} : memref<3x2x128xf32, #tpu.memory_space<vmem>>, vector<1x2x128xf32>,
    return
  }
  func.func @transform_0(%arg0: i32) -> (i32, i32, i32) {
    %c0_i32 = arith.constant 0 : i32
    %c0_i32_0 = arith.constant 0 : i32
    %c0_i32_1 = arith.constant 0 : i32
    %c0_i32_2 = arith.constant 0 : i32
    return %c0_i32, %c0_i32_0, %c0_i32_1 : i32, i32, i32
  }
  func.func @transform_1(%arg0: i32) -> (i32, i32) {
    %c0_i32 = arith.constant 0 : i32
    %c0_i32_0 = arith.constant 0 : i32
    %c0_i32_1 = arith.constant 0 : i32
    return %c0_i32, %c0_i32_0 : i32, i32
  }
  func.func @transform_2(%arg0: i32) -> (i32, i32) {
    %c0_i32 = arith.constant 0 : i32
    %c0_i32_0 = arith.constant 0 : i32
    %c0_i32_1 = arith.constant 0 : i32
    return %c0_i32, %c0_i32_0 : i32, i32
  }
  func.func @transform_3(%arg0: i32) -> (i32, i32) {
    %c0_i32 = arith.constant 0 : i32
    %c0_i32_0 = arith.constant 0 : i32
    %c0_i32_1 = arith.constant 0 : i32
    return %c0_i32, %c0_i32_0 : i32, i32
  }
  func.func @transform_4(%arg0: i32) -> (i32, i32, i32) {
    %c0_i32 = arith.constant 0 : i32
    %c0_i32_0 = arith.constant 0 : i32
    %c0_i32_1 = arith.constant 0 : i32
    %c0_i32_2 = arith.constant 0 : i32
    return %c0_i32, %c0_i32_0, %c0_i32_1 : i32, i32, i32
  }
}

</mosaic_0001>

<bundles_post_ra>
// kernel: temporal_projected_discriminator.5
= control target key start
LH: loop header
LB: loop body
LE: loop exit
PB: predicated region body
PF: predicated region fallthrough
CT: control target
= control target key end

     0   :  { %s1294_s15 = smov 0   ;;  %s1455_s0 = inlined_call_operand.vmem [shape: bf16[1536,128], index: 0, kind: input, shape index: {}]   ;;  %s1456_s1 = inlined_call_operand.vmem [shape: bf16[128,128], index: 1, kind: input, shape index: {}]   ;;  %s1457_s2 = inlined_call_operand.vmem [shape: f32[1,128], index: 2, kind: input, shape index: {}]   ;;  %s1458_s3 = inlined_call_operand.vmem [shape: f32[1,128], index: 3, kind: input, shape index: {}]   ;;  %s1459_s4 = inlined_call_operand.vmem [shape: bf16[1536,128], index: 4, kind: output, shape index: {}]  }
   0x1 LB: > { %s945_s16 = sadd.s32 4294967295, %s1267_s15   ;;  %p949_p0 = scmp.ge.s32.totalorder %s1267_s15, 1  ;;  %s1267_s15 = sphi %s1294_s15, %s14_s15  }
   0x2   : > { %p163_p1 = scmp.lt.s32.totalorder %s1267_s15, 7 }
   0x4   : > { %p164_p2 = pnand %p949_p0, %p163_p1 }
   0x5   : > { %v1237_v0 = vld [vmem:[%s1456_s1] sm:$0xff] (!%p164_p2)   ;;  %s950_s19 = sshll.u32 (!%p164_p2), %s945_s16, 5  ;;  %v1238_v1 = vld [vmem:[%s1456_s1 + $0x8] sm:$0xff] (!%p164_p2)   ;;  %v1239_v2 = vld [vmem:[%s1456_s1 + $0x10] sm:$0xff] (!%p164_p2)  }
   0x6   : > { %167 = sbr.rel (%p164_p2) target bundleno = 300 (0x12c), region = 36  ;;  %p190_p3 = scmp.lt.s32.totalorder (!%p164_p2), %s950_s19, 191  ;;  %1165 = vmatprep.subr.bf16.mxu0 (!%p164_p2), %v1237_v0  ;;  %1213 = vmatprep.subr.bf16.mxu1 (!%p164_p2), %v1237_v0  ;;  %v1240_v3 = vld [vmem:[%s1456_s1 + $0x18] sm:$0xff] (!%p164_p2)   ;;  %v1241_v6 = vld [vmem:[%s1456_s1 + $0x20] sm:$0xff] (!%p164_p2)   ;;  %v1242_v7 = vld [vmem:[%s1456_s1 + $0x28] sm:$0xff] (!%p164_p2)  }
   0x7   : > { %1166 = vmatpush3.bf16.msra.mxu0 (!%p164_p2), %v1237_v0  ;;  %1221 = vmatpush3.bf16.msra.mxu1 (!%p164_p2), %v1237_v0  ;;  %v1243_v8 = vld [vmem:[%s1456_s1 + $0x30] sm:$0xff] (!%p164_p2)   ;;  %v1244_v9 = vld [vmem:[%s1456_s1 + $0x38] sm:$0xff] (!%p164_p2)   ;;  %v1355_v24 = vld [vmem:[%s1457_s2] ss:$0 sm:$0xff] (!%p164_p2) }
   0x8   : > { %1167 = vmatprep.subr.bf16.mxu0 (!%p164_p2), %v1238_v1  ;;  %1214 = vmatprep.subr.bf16.mxu1 (!%p164_p2), %v1238_v1  ;;  %v1360_v26 = vld [vmem:[%s1458_s3] ss:$0 sm:$0xff] (!%p164_p2) }
   0xb   : > { %1168 = vmatpush3.bf16.msra.mxu0 (!%p164_p2), %v1238_v1  ;;  %1222 = vmatpush3.bf16.msra.mxu1 (!%p164_p2), %v1238_v1 }
   0xc   : > { %1169 = vmatprep.subr.bf16.mxu0 (!%p164_p2), %v1239_v2  ;;  %1215 = vmatprep.subr.bf16.mxu1 (!%p164_p2), %v1239_v2 }
   0xd   : > { %s1461_s19 = smov (!%p190_p3, %s950_s19), 191 }
   0xe   : > { %s951_s24 = sshll.u32 %s1461_s19, 2 }
   0xf   : > { %s1319_s27 = scalar_lea.vmem %s1455_s0, %s951_s24  ;;  %1170 = vmatpush3.bf16.msra.mxu0 %v1239_v2  ;;  %1223 = vmatpush3.bf16.msra.mxu1 %v1239_v2  ;;  %s1383_s20 = scalar_lea.vmem %s1459_s4, %s951_s24 }
  0x10   : > { %v1245_v4 = vld [vmem:[%s1319_s27] sm:$0xff]   ;;  %1171 = vmatprep.subr.bf16.mxu0 %v1240_v3  ;;  %1216 = vmatprep.subr.bf16.mxu1 %v1240_v3  ;;  %v1247_v10 = vld [vmem:[%s1319_s27 + $0x8] sm:$0xff]   ;;  %v1249_v12 = vld [vmem:[%s1319_s27 + $0x10] sm:$0xff]  }
  0x11   : > { %v1246_v5 = vld [vmem:[%s1319_s27 + $0x40] sm:$0xff]   ;;  %1181 = vmatprep.mubr.bf16.mxu0 %v1245_v4  ;;  %v1248_v11 = vld [vmem:[%s1319_s27 + $0x48] sm:$0xff]   ;;  %v1250_v13 = vld [vmem:[%s1319_s27 + $0x50] sm:$0xff]  }
  0x12   : > { %1197 = vmatprep.mubr.bf16.mxu1 %v1246_v5  ;;  %v1251_v14 = vld [vmem:[%s1319_s27 + $0x18] sm:$0xff]   ;;  %v1253_v16 = vld [vmem:[%s1319_s27 + $0x20] sm:$0xff]   ;;  %v1255_v18 = vld [vmem:[%s1319_s27 + $0x28] sm:$0xff]  }
  0x13   : > { %1172 = vmatpush3.bf16.msra.mxu0 %v1240_v3  ;;  %1224 = vmatpush3.bf16.msra.mxu1 %v1240_v3  ;;  %v1252_v15 = vld [vmem:[%s1319_s27 + $0x58] sm:$0xff]   ;;  %v1254_v17 = vld [vmem:[%s1319_s27 + $0x60] sm:$0xff]   ;;  %v1256_v19 = vld [vmem:[%s1319_s27 + $0x68] sm:$0xff]  }
  0x14   : > { %1173 = vmatprep.subr.bf16.mxu0 %v1241_v6  ;;  %1217 = vmatprep.subr.bf16.mxu1 %v1241_v6  ;;  %v1257_v20 = vld [vmem:[%s1319_s27 + $0x30] sm:$0xff]   ;;  %v1259_v22 = vld [vmem:[%s1319_s27 + $0x38] sm:$0xff]  }
  0x15   : > { %v1258_v21 = vld [vmem:[%s1319_s27 + $0x70] sm:$0xff]   ;;  %v1260_v23 = vld [vmem:[%s1319_s27 + $0x78] sm:$0xff]  }
  0x17   : > { %1174 = vmatpush3.bf16.msra.mxu0 %v1241_v6  ;;  %1225 = vmatpush3.bf16.msra.mxu1 %v1241_v6 }
  0x18   : > { %1175 = vmatprep.subr.bf16.mxu0 %v1242_v7  ;;  %1218 = vmatprep.subr.bf16.mxu1 %v1242_v7 }
  0x1b   : > { %1176 = vmatpush3.bf16.msra.mxu0 %v1242_v7  ;;  %1226 = vmatpush3.bf16.msra.mxu1 %v1242_v7 }
  0x1c   : > { %1177 = vmatprep.subr.bf16.mxu0 %v1243_v8  ;;  %1219 = vmatprep.subr.bf16.mxu1 %v1243_v8 }
  0x1f   : > { %1178 = vmatpush3.bf16.msra.mxu0 %v1243_v8  ;;  %1227 = vmatpush3.bf16.msra.mxu1 %v1243_v8 }
  0x20   : > { %1179 = vmatprep.subr.bf16.mxu0 %v1244_v9  ;;  %1220 = vmatprep.subr.bf16.mxu1 %v1244_v9 }
  0x23   : > { %1180 = vmatpush3.bf16.msra.mxu0 %v1244_v9  ;;  %1228 = vmatpush3.bf16.msra.mxu1 %v1244_v9 }
  0x26   : > { %1182 = vmatmul.mubr.bf16.vlgmr.msra.gmra.mrb[0].mxu0 %v1247_v10  ;;  %1198 = vmatmul.mubr.bf16.vlgmr.msra.gmra.mrb[0].mxu1 %v1248_v11 }
  0x27   : > { %1185 = vmatprep.mubr.bf16.mxu0 %v1249_v12  ;;  %1201 = vmatprep.mubr.bf16.mxu1 %v1250_v13 }
  0x2e   : > { %1186 = vmatmul.mubr.bf16.gmra.mrb[4].mxu0 %v1251_v14  ;;  %1202 = vmatmul.mubr.bf16.gmra.mrb[4].mxu1 %v1252_v15 }
  0x2f   : > { %1189 = vmatprep.mubr.bf16.mxu0 %v1253_v16  ;;  %1205 = vmatprep.mubr.bf16.mxu1 %v1254_v17 }
  0x36   : > { %1190 = vmatmul.mubr.bf16.gmra.mrb[8].mxu0 %v1255_v18  ;;  %1206 = vmatmul.mubr.bf16.gmra.mrb[8].mxu1 %v1256_v19 }
  0x37   : > { %1193 = vmatprep.mubr.bf16.mxu0 %v1257_v20  ;;  %1209 = vmatprep.mubr.bf16.mxu1 %v1258_v21 }
  0x3e   : > { %1194 = vmatmul.mubr.bf16.gmra.mrb[12].mxu0 %v1259_v22  ;;  %1210 = vmatmul.mubr.bf16.gmra.mrb[12].mxu1 %v1260_v23 }
  0xf9   : > { %v1183_v25 = vpop.f32.mrb[0].mxu0  ;;  %v1199_v27 = vpop.f32.mrb[0].mxu1 }
  0xfa   : > { %v564_v28 = vmul.f32 %v1183_v25, %v1355_v24  ;;  %v580_v29 = vmul.f32 %v1199_v27, %v1355_v24  ;;  %v428_v30 = vpop.f32.mrb[1].mxu0  ;;  %v492_v31 = vpop.f32.mrb[1].mxu1 }
  0xfb   : > { %v562_v32 = vmul.f32 %v1355_v24, %v428_v30  ;;  %v578_v33 = vmul.f32 %v1355_v24, %v492_v31  ;;  %v1184_v34 = vpop.f32.mrb[2].mxu0  ;;  %v1200_v35 = vpop.f32.mrb[2].mxu1 }
  0xfc   : > { %v603_v36 = vadd.f32 %v1360_v26, %v564_v28  ;;  %v619_v37 = vadd.f32 %v1360_v26, %v580_v29  ;;  %v565_v38 = vmul.f32 %v1184_v34, %v1355_v24  ;;  %v581_v39 = vmul.f32 %v1200_v35, %v1355_v24  ;;  %v431_v40 = vpop.f32.mrb[3].mxu0  ;;  %v495_v41 = vpop.f32.mrb[3].mxu1 }
  0xfd   : > { %v601_v42 = vadd.f32 %v1360_v26, %v562_v32  ;;  %v617_v43 = vadd.f32 %v1360_v26, %v578_v33  ;;  %v563_v44 = vmul.f32 %v1355_v24, %v431_v40  ;;  %v579_v45 = vmul.f32 %v1355_v24, %v495_v41 }
  0xfe   : > { %vm635_vm0 = vcmp.ge.f32.partialorder %v603_v36, 0.0  ;;  %v667_v46 = vmul.f32 0.2, %v603_v36  ;;  %vm651_vm1 = vcmp.ge.f32.partialorder %v619_v37, 0.0  ;;  %v683_v47 = vmul.f32 0.2, %v619_v37 }
  0xff   : > { %vm633_vm2 = vcmp.ge.f32.partialorder %v601_v42, 0.0  ;;  %v665_v48 = vmul.f32 0.2, %v601_v42  ;;  %vm649_vm3 = vcmp.ge.f32.partialorder %v617_v43, 0.0  ;;  %v681_v49 = vmul.f32 0.2, %v617_v43 }
 0x100   : > { %v699_v50 = vsel %vm635_vm0, %v603_v36, %v667_v46  ;;  %v715_v51 = vsel %vm651_vm1, %v619_v37, %v683_v47  ;;  %v604_v52 = vadd.f32 %v1360_v26, %v565_v38  ;;  %v620_v53 = vadd.f32 %v1360_v26, %v581_v39 }
 0x101   : > { %v697_v54 = vsel %vm633_vm2, %v601_v42, %v665_v48  ;;  %v713_v55 = vsel %vm649_vm3, %v617_v43, %v681_v49  ;;  %v602_v56 = vadd.f32 %v1360_v26, %v563_v44  ;;  %v618_v57 = vadd.f32 %v1360_v26, %v579_v45  ;;  %v1187_v58 = vpop.f32.mrb[4].mxu0  ;;  %v1203_v59 = vpop.f32.mrb[4].mxu1 }
 0x102   : > { %vm636_vm4 = vcmp.ge.f32.partialorder %v604_v52, 0.0  ;;  %v668_v60 = vmul.f32 0.2, %v604_v52  ;;  %vm652_vm5 = vcmp.ge.f32.partialorder %v620_v53, 0.0  ;;  %v684_v61 = vmul.f32 0.2, %v620_v53 }
 0x103   : > { %vm634_vm6 = vcmp.ge.f32.partialorder %v602_v56, 0.0  ;;  %v666_v62 = vmul.f32 0.2, %v602_v56  ;;  %vm650_vm7 = vcmp.ge.f32.partialorder %v618_v57, 0.0  ;;  %v682_v63 = vmul.f32 0.2, %v618_v57 }
 0x104   : > { %v700_v0 = vsel %vm636_vm4, %v604_v52, %v668_v60  ;;  %v716_v1 = vsel %vm652_vm5, %v620_v53, %v684_v61  ;;  %v568_v2 = vmul.f32 %v1187_v58, %v1355_v24  ;;  %v584_v3 = vmul.f32 %v1203_v59, %v1355_v24  ;;  %v444_v4 = vpop.f32.mrb[5].mxu0  ;;  %v508_v5 = vpop.f32.mrb[5].mxu1 }
 0x105   : > { %v1054_v6 = vpack.c.bf16 %v700_v0, %v699_v50  ;;  %v1094_v7 = vpack.c.bf16 %v716_v1, %v715_v51  ;;  %v698_v8 = vsel %vm634_vm6, %v602_v56, %v666_v62  ;;  %v714_v9 = vsel %vm650_vm7, %v618_v57, %v682_v63  ;;  %v1188_v10 = vpop.f32.mrb[6].mxu0  ;;  %v1204_v11 = vpop.f32.mrb[6].mxu1 }
 0x106   : > { %v1049_v12 = vpack.c.bf16 %v698_v8, %v697_v54  ;;  %v1089_v13 = vpack.c.bf16 %v714_v9, %v713_v55  ;;  %v607_v14 = vadd.f32 %v1360_v26, %v568_v2  ;;  %v623_v15 = vadd.f32 %v1360_v26, %v584_v3  ;;  %v447_v16 = vpop.f32.mrb[7].mxu0  ;;  %v511_v17 = vpop.f32.mrb[7].mxu1 }
 0x107   : > { %1126 = vst [vmem:[%s1383_s20 + $0x8] sm:$0xff] %v1054_v6   ;;  %1134 = vst [vmem:[%s1383_s20 + $0x48] sm:$0xff] %v1094_v7   ;;  %v566_v18 = vmul.f32 %v1355_v24, %v444_v4  ;;  %v582_v19 = vmul.f32 %v1355_v24, %v508_v5  ;;  %v569_v20 = vmul.f32 %v1188_v10, %v1355_v24 }
 0x108   : > { %v585_v21 = vmul.f32 %v1204_v11, %v1355_v24  ;;  %1050 = vst [vmem:[%s1383_s20] sm:$0xff] %v1049_v12   ;;  %1133 = vst [vmem:[%s1383_s20 + $0x40] sm:$0xff] %v1089_v13   ;;  %vm639_vm8 = vcmp.ge.f32.partialorder %v607_v14, 0.0  ;;  %v671_v22 = vmul.f32 0.2, %v607_v14  ;;  %vm655_vm9 = vcmp.ge.f32.partialorder %v623_v15, 0.0 }
 0x109   : > { %v687_v23 = vmul.f32 0.2, %v623_v15  ;;  %v605_v25 = vadd.f32 %v1360_v26, %v566_v18  ;;  %v621_v27 = vadd.f32 %v1360_v26, %v582_v19  ;;  %v608_v28 = vadd.f32 %v1360_v26, %v569_v20  ;;  %v1191_v30 = vpop.f32.mrb[8].mxu0  ;;  %v1207_v31 = vpop.f32.mrb[8].mxu1 }
 0x10a   : > { %v624_v29 = vadd.f32 %v1360_v26, %v585_v21  ;;  %v703_v32 = vsel %vm639_vm8, %v607_v14, %v671_v22  ;;  %v567_v34 = vmul.f32 %v1355_v24, %v447_v16  ;;  %v583_v35 = vmul.f32 %v1355_v24, %v511_v17  ;;  %v460_v36 = vpop.f32.mrb[9].mxu0  ;;  %v524_v37 = vpop.f32.mrb[9].mxu1 }
 0x10b   : > { %v719_v33 = vsel %vm655_vm9, %v623_v15, %v687_v23  ;;  %vm637_vm10 = vcmp.ge.f32.partialorder %v605_v25, 0.0  ;;  %v669_v38 = vmul.f32 0.2, %v605_v25  ;;  %vm653_vm11 = vcmp.ge.f32.partialorder %v621_v27, 0.0  ;;  %v1192_v46 = vpop.f32.mrb[10].mxu0  ;;  %v1208_v47 = vpop.f32.mrb[10].mxu1 }
 0x10c   : > { %v685_v39 = vmul.f32 0.2, %v621_v27  ;;  %vm640_vm12 = vcmp.ge.f32.partialorder %v608_v28, 0.0  ;;  %v672_v40 = vmul.f32 0.2, %v608_v28  ;;  %vm656_vm13 = vcmp.ge.f32.partialorder %v624_v29, 0.0 }
 0x10d   : > { %v688_v41 = vmul.f32 0.2, %v624_v29  ;;  %v701_v42 = vsel %vm637_vm10, %v605_v25, %v669_v38  ;;  %v606_v44 = vadd.f32 %v1360_v26, %v567_v34  ;;  %v622_v45 = vadd.f32 %v1360_v26, %v583_v35  ;;  %v463_v52 = vpop.f32.mrb[11].mxu0  ;;  %v527_v53 = vpop.f32.mrb[11].mxu1 }
 0x10e   : > { %v717_v43 = vsel %vm653_vm11, %v621_v27, %v685_v39  ;;  %v704_v48 = vsel %vm640_vm12, %v608_v28, %v672_v40  ;;  %v572_v50 = vmul.f32 %v1191_v30, %v1355_v24  ;;  %v588_v51 = vmul.f32 %v1207_v31, %v1355_v24 }
 0x10f   : > { %v720_v49 = vsel %vm656_vm13, %v624_v29, %v688_v41  ;;  %v1064_v54 = vpack.c.bf16 %v704_v48, %v703_v32  ;;  %vm638_vm14 = vcmp.ge.f32.partialorder %v606_v44, 0.0  ;;  %v670_v56 = vmul.f32 0.2, %v606_v44 }
 0x110   : > { %v1104_v55 = vpack.c.bf16 %v720_v49, %v719_v33  ;;  %vm654_vm15 = vcmp.ge.f32.partialorder %v622_v45, 0.0  ;;  %v686_v57 = vmul.f32 0.2, %v622_v45  ;;  %v611_v58 = vadd.f32 %v1360_v26, %v572_v50 }
 0x111   : > { %v627_v59 = vadd.f32 %v1360_v26, %v588_v51  ;;  %1128 = vst [vmem:[%s1383_s20 + $0x18] sm:$0xff] %v1064_v54   ;;  %v702_v60 = vsel %vm638_vm14, %v606_v44, %v670_v56  ;;  %v570_v61 = vmul.f32 %v1355_v24, %v460_v36  ;;  %v586_v62 = vmul.f32 %v1355_v24, %v524_v37  ;;  %v1195_v0 = vpop.f32.mrb[12].mxu0  ;;  %v1211_v1 = vpop.f32.mrb[12].mxu1 }
 0x112   : > { %1136 = vst [vmem:[%s1383_s20 + $0x58] sm:$0xff] %v1104_v55   ;;  %v573_v63 = vmul.f32 %v1192_v46, %v1355_v24  ;;  %v1059_v2 = vpack.c.bf16 %v702_v60, %v701_v42  ;;  %v718_v3 = vsel %vm654_vm15, %v622_v45, %v686_v57  ;;  %vm643_vm0 = vcmp.ge.f32.partialorder %v611_v58, 0.0  ;;  %v476_v5 = vpop.f32.mrb[13].mxu0  ;;  %v540_v6 = vpop.f32.mrb[13].mxu1 }
 0x113   : > { %v675_v4 = vmul.f32 0.2, %v611_v58  ;;  %v1099_v7 = vpack.c.bf16 %v718_v3, %v717_v43  ;;  %vm659_vm1 = vcmp.ge.f32.partialorder %v627_v59, 0.0  ;;  %v691_v8 = vmul.f32 0.2, %v627_v59  ;;  %v1196_v10 = vpop.f32.mrb[14].mxu0 }
 0x114   : > { %v609_v9 = vadd.f32 %v1360_v26, %v570_v61  ;;  %v1212_v11 = vpop.f32.mrb[14].mxu1  ;;  %1127 = vst [vmem:[%s1383_s20 + $0x10] sm:$0xff] %v1059_v2   ;;  %v625_v12 = vadd.f32 %v1360_v26, %v586_v62  ;;  %v612_v13 = vadd.f32 %v1360_v26, %v573_v63  ;;  %v589_v14 = vmul.f32 %v1208_v47, %v1355_v24  ;;  %v479_v15 = vpop.f32.mrb[15].mxu0 }
 0x115   : > { %v543_v16 = vpop.f32.mrb[15].mxu1  ;;  %1135 = vst [vmem:[%s1383_s20 + $0x50] sm:$0xff] %v1099_v7   ;;  %v707_v17 = vsel %vm643_vm0, %v611_v58, %v675_v4  ;;  %v723_v18 = vsel %vm659_vm1, %v627_v59, %v691_v8  ;;  %v571_v19 = vmul.f32 %v1355_v24, %v463_v52  ;;  %v587_v25 = vmul.f32 %v1355_v24, %v527_v53 }
 0x116   : > { %vm641_vm2 = vcmp.ge.f32.partialorder %v609_v9, 0.0  ;;  %v673_v20 = vmul.f32 0.2, %v609_v9  ;;  %vm644_vm3 = vcmp.ge.f32.partialorder %v612_v13, 0.0  ;;  %v676_v21 = vmul.f32 0.2, %v612_v13 }
 0x117   : > { %vm657_vm4 = vcmp.ge.f32.partialorder %v625_v12, 0.0  ;;  %v628_v22 = vadd.f32 %v1360_v26, %v589_v14  ;;  %v610_v23 = vadd.f32 %v1360_v26, %v571_v19  ;;  %v689_v27 = vmul.f32 0.2, %v625_v12 }
 0x118   : > { %v708_v28 = vsel %vm644_vm3, %v612_v13, %v676_v21  ;;  %v576_v29 = vmul.f32 %v1195_v0, %v1355_v24  ;;  %v592_v30 = vmul.f32 %v1211_v1, %v1355_v24  ;;  %v705_v33 = vsel %vm641_vm2, %v609_v9, %v673_v20 }
 0x119   : > { %v1074_v31 = vpack.c.bf16 %v708_v28, %v707_v17  ;;  %vm660_vm5 = vcmp.ge.f32.partialorder %v628_v22, 0.0  ;;  %v692_v32 = vmul.f32 0.2, %v628_v22  ;;  %vm642_vm6 = vcmp.ge.f32.partialorder %v610_v23, 0.0 }
 0x11a   : > { %v674_v34 = vmul.f32 0.2, %v610_v23  ;;  %v626_v35 = vadd.f32 %v1360_v26, %v587_v25  ;;  %v615_v36 = vadd.f32 %v1360_v26, %v576_v29  ;;  %v631_v38 = vadd.f32 %v1360_v26, %v592_v30 }
 0x11b   : > { %1130 = vst [vmem:[%s1383_s20 + $0x28] sm:$0xff] %v1074_v31   ;;  %v724_v37 = vsel %vm660_vm5, %v628_v22, %v692_v32  ;;  %v574_v39 = vmul.f32 %v1355_v24, %v476_v5  ;;  %v577_v40 = vmul.f32 %v1196_v10, %v1355_v24  ;;  %v590_v45 = vmul.f32 %v1355_v24, %v540_v6 }
 0x11c   : > { %v1114_v41 = vpack.c.bf16 %v724_v37, %v723_v18  ;;  %v706_v42 = vsel %vm642_vm6, %v610_v23, %v674_v34  ;;  %vm658_vm7 = vcmp.ge.f32.partialorder %v626_v35, 0.0  ;;  %v690_v43 = vmul.f32 0.2, %v626_v35 }
 0x11d   : > { %v1069_v44 = vpack.c.bf16 %v706_v42, %v705_v33  ;;  %v721_v46 = vsel %vm657_vm4, %v625_v12, %v689_v27  ;;  %vm647_vm8 = vcmp.ge.f32.partialorder %v615_v36, 0.0  ;;  %v679_v48 = vmul.f32 0.2, %v615_v36 }
 0x11e   : > { %1138 = vst [vmem:[%s1383_s20 + $0x68] sm:$0xff] %v1114_v41   ;;  %v722_v47 = vsel %vm658_vm7, %v626_v35, %v690_v43  ;;  %v695_v50 = vmul.f32 0.2, %v631_v38  ;;  %v616_v51 = vadd.f32 %v1360_v26, %v577_v40  ;;  %v593_v52 = vmul.f32 %v1212_v11, %v1355_v24 }
 0x11f   : > { %1129 = vst [vmem:[%s1383_s20 + $0x20] sm:$0xff] %v1069_v44   ;;  %v1109_v49 = vpack.c.bf16 %v722_v47, %v721_v46  ;;  %vm663_vm9 = vcmp.ge.f32.partialorder %v631_v38, 0.0  ;;  %v613_v53 = vadd.f32 %v1360_v26, %v574_v39  ;;  %v629_v54 = vadd.f32 %v1360_v26, %v590_v45 }
 0x120   : > { %vm648_vm10 = vcmp.ge.f32.partialorder %v616_v51, 0.0  ;;  %v680_v55 = vmul.f32 0.2, %v616_v51  ;;  %v632_v56 = vadd.f32 %v1360_v26, %v593_v52  ;;  %v711_v57 = vsel %vm647_vm8, %v615_v36, %v679_v48 }
 0x121   : > { %1137 = vst [vmem:[%s1383_s20 + $0x60] sm:$0xff] %v1109_v49   ;;  %v575_v58 = vmul.f32 %v1355_v24, %v479_v15  ;;  %v591_v59 = vmul.f32 %v1355_v24, %v543_v16  ;;  %v727_v60 = vsel %vm663_vm9, %v631_v38, %v695_v50  ;;  %v677_v63 = vmul.f32 0.2, %v613_v53 }
 0x122   : > { %v712_v61 = vsel %vm648_vm10, %v616_v51, %v680_v55  ;;  %vm664_vm11 = vcmp.ge.f32.partialorder %v632_v56, 0.0  ;;  %v696_v62 = vmul.f32 0.2, %v632_v56  ;;  %vm645_vm12 = vcmp.ge.f32.partialorder %v613_v53, 0.0 }
 0x123   : > { %v1084_v0 = vpack.c.bf16 %v712_v61, %v711_v57  ;;  %v614_v1 = vadd.f32 %v1360_v26, %v575_v58  ;;  %v630_v2 = vadd.f32 %v1360_v26, %v591_v59  ;;  %vm661_vm13 = vcmp.ge.f32.partialorder %v629_v54, 0.0 }
 0x124   : > { %v693_v3 = vmul.f32 0.2, %v629_v54  ;;  %v728_v4 = vsel %vm664_vm11, %v632_v56, %v696_v62  ;;  %v709_v7 = vsel %vm645_vm12, %v613_v53, %v677_v63 }
 0x125   : > { %1132 = vst [vmem:[%s1383_s20 + $0x38] sm:$0xff] %v1084_v0   ;;  %v1124_v5 = vpack.c.bf16 %v728_v4, %v727_v60  ;;  %vm646_vm14 = vcmp.ge.f32.partialorder %v614_v1, 0.0  ;;  %v678_v24 = vmul.f32 0.2, %v614_v1  ;;  %vm662_vm15 = vcmp.ge.f32.partialorder %v630_v2, 0.0 }
 0x126   : > { %v694_v6 = vmul.f32 0.2, %v630_v2  ;;  %v725_v9 = vsel %vm661_vm13, %v629_v54, %v693_v3 }
 0x127   : > { %1140 = vst [vmem:[%s1383_s20 + $0x78] sm:$0xff] %v1124_v5   ;;  %v710_v8 = vsel %vm646_vm14, %v614_v1, %v678_v24 }
 0x128   : > { %v1079_v10 = vpack.c.bf16 %v710_v8, %v709_v7  ;;  %v726_v11 = vsel %vm662_vm15, %v630_v2, %v694_v6 }
 0x129   : > { %v1119_v12 = vpack.c.bf16 %v726_v11, %v725_v9 }
 0x12a   : > { %1131 = vst [vmem:[%s1383_s20 + $0x30] sm:$0xff] %v1079_v10  }
 0x12b   : > { %1139 = vst [vmem:[%s1383_s20 + $0x70] sm:$0xff] %v1119_v12  }
 0x12c PF: > { %s14_s15 = sadd.s32 1, %s1267_s15  }
 0x12d   : > { %p11_p4 = scmp.ge.s32.totalorder %s14_s15, 8  }
 0x12f   :  { %13 = sbr.rel (!%p11_p4) target bundleno = 1 (0x1), region = 66 }

// kernel: temporal_projected_discriminator.6
= control target key start
LH: loop header
LB: loop body
LE: loop exit
PB: predicated region body
PF: predicated region fallthrough
CT: control target
= control target key end

     0   :  { %s886_s15 = smov 0   ;;  %s996_s0 = inlined_call_operand.vmem [shape: bf16[384,128], index: 0, kind: input, shape index: {}]   ;;  %s997_s1 = inlined_call_operand.vmem [shape: bf16[128,128], index: 1, kind: input, shape index: {}]   ;;  %s998_s2 = inlined_call_operand.vmem [shape: f32[1,128], index: 2, kind: input, shape index: {}]   ;;  %s999_s3 = inlined_call_operand.vmem [shape: f32[1,128], index: 3, kind: input, shape index: {}]   ;;  %s1000_s4 = inlined_call_operand.vmem [shape: bf16[384,128], index: 4, kind: output, shape index: {}]  }
   0x1 LB: > { %s657_s16 = sadd.s32 4294967295, %s859_s15   ;;  %p661_p0 = scmp.ge.s32.totalorder %s859_s15, 1  ;;  %s859_s15 = sphi %s886_s15, %s14_s15  }
   0x2   : > { %p163_p1 = scmp.lt.s32.totalorder %s859_s15, 4 }
   0x4   : > { %p164_p2 = pnand %p661_p0, %p163_p1 }
   0x5   : > { %v837_v0 = vld [vmem:[%s997_s1] sm:$0xff] (!%p164_p2)   ;;  %s662_s19 = sshll.u32 (!%p164_p2), %s657_s16, 4  ;;  %v838_v1 = vld [vmem:[%s997_s1 + $0x8] sm:$0xff] (!%p164_p2)   ;;  %v839_v2 = vld [vmem:[%s997_s1 + $0x10] sm:$0xff] (!%p164_p2)  }
   0x6   : > { %167 = sbr.rel (%p164_p2) target bundleno = 277 (0x115), region = 36  ;;  %p190_p3 = scmp.lt.s32.totalorder (!%p164_p2), %s662_s19, 47  ;;  %781 = vmatprep.subr.bf16.mxu0 (!%p164_p2), %v837_v0  ;;  %813 = vmatprep.subr.bf16.mxu1 (!%p164_p2), %v837_v0  ;;  %v840_v3 = vld [vmem:[%s997_s1 + $0x18] sm:$0xff] (!%p164_p2)   ;;  %v841_v6 = vld [vmem:[%s997_s1 + $0x20] sm:$0xff] (!%p164_p2)   ;;  %v842_v7 = vld [vmem:[%s997_s1 + $0x28] sm:$0xff] (!%p164_p2)  }
   0x7   : > { %782 = vmatpush3.bf16.msra.mxu0 (!%p164_p2), %v837_v0  ;;  %821 = vmatpush3.bf16.msra.mxu1 (!%p164_p2), %v837_v0  ;;  %v843_v8 = vld [vmem:[%s997_s1 + $0x30] sm:$0xff] (!%p164_p2)   ;;  %v844_v9 = vld [vmem:[%s997_s1 + $0x38] sm:$0xff] (!%p164_p2)   ;;  %v939_v16 = vld [vmem:[%s998_s2] ss:$0 sm:$0xff] (!%p164_p2) }
   0x8   : > { %783 = vmatprep.subr.bf16.mxu0 (!%p164_p2), %v838_v1  ;;  %814 = vmatprep.subr.bf16.mxu1 (!%p164_p2), %v838_v1  ;;  %v944_v18 = vld [vmem:[%s999_s3] ss:$0 sm:$0xff] (!%p164_p2) }
   0xb   : > { %784 = vmatpush3.bf16.msra.mxu0 (!%p164_p2), %v838_v1  ;;  %822 = vmatpush3.bf16.msra.mxu1 (!%p164_p2), %v838_v1 }
   0xc   : > { %785 = vmatprep.subr.bf16.mxu0 (!%p164_p2), %v839_v2  ;;  %815 = vmatprep.subr.bf16.mxu1 (!%p164_p2), %v839_v2 }
   0xd   : > { %s1002_s19 = smov (!%p190_p3, %s662_s19), 47 }
   0xe   : > { %s663_s24 = sshll.u32 %s1002_s19, 2 }
   0xf   : > { %s911_s27 = scalar_lea.vmem %s996_s0, %s663_s24  ;;  %786 = vmatpush3.bf16.msra.mxu0 %v839_v2  ;;  %823 = vmatpush3.bf16.msra.mxu1 %v839_v2  ;;  %s967_s20 = scalar_lea.vmem %s1000_s4, %s663_s24 }
  0x10   : > { %v845_v4 = vld [vmem:[%s911_s27] sm:$0xff]   ;;  %787 = vmatprep.subr.bf16.mxu0 %v840_v3  ;;  %816 = vmatprep.subr.bf16.mxu1 %v840_v3  ;;  %v847_v10 = vld [vmem:[%s911_s27 + $0x8] sm:$0xff]   ;;  %v849_v12 = vld [vmem:[%s911_s27 + $0x10] sm:$0xff]  }
  0x11   : > { %v846_v5 = vld [vmem:[%s911_s27 + $0x20] sm:$0xff]   ;;  %797 = vmatprep.mubr.bf16.mxu0 %v845_v4  ;;  %v848_v11 = vld [vmem:[%s911_s27 + $0x28] sm:$0xff]   ;;  %v850_v13 = vld [vmem:[%s911_s27 + $0x30] sm:$0xff]  }
  0x12   : > { %805 = vmatprep.mubr.bf16.mxu1 %v846_v5  ;;  %v851_v14 = vld [vmem:[%s911_s27 + $0x18] sm:$0xff]  }
  0x13   : > { %788 = vmatpush3.bf16.msra.mxu0 %v840_v3  ;;  %824 = vmatpush3.bf16.msra.mxu1 %v840_v3  ;;  %v852_v15 = vld [vmem:[%s911_s27 + $0x38] sm:$0xff]  }
  0x14   : > { %789 = vmatprep.subr.bf16.mxu0 %v841_v6  ;;  %817 = vmatprep.subr.bf16.mxu1 %v841_v6 }
  0x17   : > { %790 = vmatpush3.bf16.msra.mxu0 %v841_v6  ;;  %825 = vmatpush3.bf16.msra.mxu1 %v841_v6 }
  0x18   : > { %791 = vmatprep.subr.bf16.mxu0 %v842_v7  ;;  %818 = vmatprep.subr.bf16.mxu1 %v842_v7 }
  0x1b   : > { %792 = vmatpush3.bf16.msra.mxu0 %v842_v7  ;;  %826 = vmatpush3.bf16.msra.mxu1 %v842_v7 }
  0x1c   : > { %793 = vmatprep.subr.bf16.mxu0 %v843_v8  ;;  %819 = vmatprep.subr.bf16.mxu1 %v843_v8 }
  0x1f   : > { %794 = vmatpush3.bf16.msra.mxu0 %v843_v8  ;;  %827 = vmatpush3.bf16.msra.mxu1 %v843_v8 }
  0x20   : > { %795 = vmatprep.subr.bf16.mxu0 %v844_v9  ;;  %820 = vmatprep.subr.bf16.mxu1 %v844_v9 }
  0x23   : > { %796 = vmatpush3.bf16.msra.mxu0 %v844_v9  ;;  %828 = vmatpush3.bf16.msra.mxu1 %v844_v9 }
  0x26   : > { %798 = vmatmul.mubr.bf16.vlgmr.msra.gmra.mrb[0].mxu0 %v847_v10  ;;  %806 = vmatmul.mubr.bf16.vlgmr.msra.gmra.mrb[0].mxu1 %v848_v11 }
  0x27   : > { %801 = vmatprep.mubr.bf16.mxu0 %v849_v12  ;;  %809 = vmatprep.mubr.bf16.mxu1 %v850_v13 }
  0x2e   : > { %802 = vmatmul.mubr.bf16.gmra.mrb[4].mxu0 %v851_v14  ;;  %810 = vmatmul.mubr.bf16.gmra.mrb[4].mxu1 %v852_v15 }
  0xf9   : > { %v799_v17 = vpop.f32.mrb[0].mxu0  ;;  %v807_v19 = vpop.f32.mrb[0].mxu1 }
  0xfa   : > { %v436_v20 = vmul.f32 %v799_v17, %v939_v16  ;;  %v444_v21 = vmul.f32 %v807_v19, %v939_v16  ;;  %v364_v22 = vpop.f32.mrb[1].mxu0  ;;  %v396_v23 = vpop.f32.mrb[1].mxu1 }
  0xfb   : > { %v434_v24 = vmul.f32 %v939_v16, %v364_v22  ;;  %v442_v25 = vmul.f32 %v939_v16, %v396_v23  ;;  %v800_v26 = vpop.f32.mrb[2].mxu0  ;;  %v808_v27 = vpop.f32.mrb[2].mxu1 }
  0xfc   : > { %v459_v28 = vadd.f32 %v944_v18, %v436_v20  ;;  %v467_v29 = vadd.f32 %v944_v18, %v444_v21  ;;  %v437_v30 = vmul.f32 %v800_v26, %v939_v16  ;;  %v445_v31 = vmul.f32 %v808_v27, %v939_v16  ;;  %v367_v32 = vpop.f32.mrb[3].mxu0  ;;  %v399_v33 = vpop.f32.mrb[3].mxu1 }
  0xfd   : > { %v457_v34 = vadd.f32 %v944_v18, %v434_v24  ;;  %v465_v35 = vadd.f32 %v944_v18, %v442_v25  ;;  %v435_v36 = vmul.f32 %v939_v16, %v367_v32  ;;  %v443_v37 = vmul.f32 %v939_v16, %v399_v33 }
  0xfe   : > { %vm475_vm0 = vcmp.ge.f32.partialorder %v459_v28, 0.0  ;;  %v491_v38 = vmul.f32 0.2, %v459_v28  ;;  %vm483_vm1 = vcmp.ge.f32.partialorder %v467_v29, 0.0  ;;  %v499_v39 = vmul.f32 0.2, %v467_v29 }
  0xff   : > { %vm473_vm2 = vcmp.ge.f32.partialorder %v457_v34, 0.0  ;;  %v489_v40 = vmul.f32 0.2, %v457_v34  ;;  %vm481_vm3 = vcmp.ge.f32.partialorder %v465_v35, 0.0  ;;  %v497_v41 = vmul.f32 0.2, %v465_v35 }
 0x100   : > { %v507_v42 = vsel %vm475_vm0, %v459_v28, %v491_v38  ;;  %v515_v43 = vsel %vm483_vm1, %v467_v29, %v499_v39  ;;  %v460_v44 = vadd.f32 %v944_v18, %v437_v30  ;;  %v468_v45 = vadd.f32 %v944_v18, %v445_v31 }
 0x101   : > { %v505_v46 = vsel %vm473_vm2, %v457_v34, %v489_v40  ;;  %v513_v47 = vsel %vm481_vm3, %v465_v35, %v497_v41  ;;  %v458_v48 = vadd.f32 %v944_v18, %v435_v36  ;;  %v466_v49 = vadd.f32 %v944_v18, %v443_v37  ;;  %v803_v50 = vpop.f32.mrb[4].mxu0  ;;  %v811_v51 = vpop.f32.mrb[4].mxu1 }
 0x102   : > { %vm476_vm4 = vcmp.ge.f32.partialorder %v460_v44, 0.0  ;;  %v492_v52 = vmul.f32 0.2, %v460_v44  ;;  %vm484_vm5 = vcmp.ge.f32.partialorder %v468_v45, 0.0  ;;  %v500_v53 = vmul.f32 0.2, %v468_v45 }
 0x103   : > { %vm474_vm6 = vcmp.ge.f32.partialorder %v458_v48, 0.0  ;;  %v490_v54 = vmul.f32 0.2, %v458_v48  ;;  %vm482_vm7 = vcmp.ge.f32.partialorder %v466_v49, 0.0  ;;  %v498_v55 = vmul.f32 0.2, %v466_v49 }
 0x104   : > { %v508_v56 = vsel %vm476_vm4, %v460_v44, %v492_v52  ;;  %v516_v57 = vsel %vm484_vm5, %v468_v45, %v500_v53  ;;  %v440_v58 = vmul.f32 %v803_v50, %v939_v16  ;;  %v448_v59 = vmul.f32 %v811_v51, %v939_v16  ;;  %v380_v60 = vpop.f32.mrb[5].mxu0  ;;  %v412_v61 = vpop.f32.mrb[5].mxu1 }
 0x105   : > { %v726_v62 = vpack.c.bf16 %v508_v56, %v507_v42  ;;  %v746_v63 = vpack.c.bf16 %v516_v57, %v515_v43  ;;  %v506_v0 = vsel %vm474_vm6, %v458_v48, %v490_v54  ;;  %v514_v1 = vsel %vm482_vm7, %v466_v49, %v498_v55  ;;  %v804_v2 = vpop.f32.mrb[6].mxu0  ;;  %v812_v3 = vpop.f32.mrb[6].mxu1 }
 0x106   : > { %v721_v4 = vpack.c.bf16 %v506_v0, %v505_v46  ;;  %v741_v5 = vpack.c.bf16 %v514_v1, %v513_v47  ;;  %v463_v6 = vadd.f32 %v944_v18, %v440_v58  ;;  %v471_v7 = vadd.f32 %v944_v18, %v448_v59  ;;  %v383_v8 = vpop.f32.mrb[7].mxu0  ;;  %v415_v9 = vpop.f32.mrb[7].mxu1 }
 0x107   : > { %758 = vst [vmem:[%s967_s20 + $0x8] sm:$0xff] %v726_v62   ;;  %762 = vst [vmem:[%s967_s20 + $0x28] sm:$0xff] %v746_v63   ;;  %v438_v10 = vmul.f32 %v939_v16, %v380_v60  ;;  %v446_v11 = vmul.f32 %v939_v16, %v412_v61  ;;  %v441_v12 = vmul.f32 %v804_v2, %v939_v16 }
 0x108   : > { %v449_v13 = vmul.f32 %v812_v3, %v939_v16  ;;  %722 = vst [vmem:[%s967_s20] sm:$0xff] %v721_v4   ;;  %761 = vst [vmem:[%s967_s20 + $0x20] sm:$0xff] %v741_v5   ;;  %vm479_vm8 = vcmp.ge.f32.partialorder %v463_v6, 0.0  ;;  %v495_v14 = vmul.f32 0.2, %v463_v6  ;;  %vm487_vm9 = vcmp.ge.f32.partialorder %v471_v7, 0.0 }
 0x109   : > { %v503_v15 = vmul.f32 0.2, %v471_v7  ;;  %v461_v17 = vadd.f32 %v944_v18, %v438_v10  ;;  %v464_v19 = vadd.f32 %v944_v18, %v441_v12  ;;  %v469_v21 = vadd.f32 %v944_v18, %v446_v11 }
 0x10a   : > { %v472_v20 = vadd.f32 %v944_v18, %v449_v13  ;;  %v439_v22 = vmul.f32 %v939_v16, %v383_v8  ;;  %v447_v23 = vmul.f32 %v939_v16, %v415_v9  ;;  %v511_v24 = vsel %vm479_vm8, %v463_v6, %v495_v14 }
 0x10b   : > { %v519_v25 = vsel %vm487_vm9, %v471_v7, %v503_v15  ;;  %vm480_vm10 = vcmp.ge.f32.partialorder %v464_v19, 0.0  ;;  %v496_v26 = vmul.f32 0.2, %v464_v19  ;;  %vm477_vm12 = vcmp.ge.f32.partialorder %v461_v17, 0.0 }
 0x10c   : > { %vm488_vm11 = vcmp.ge.f32.partialorder %v472_v20, 0.0  ;;  %v504_v27 = vmul.f32 0.2, %v472_v20  ;;  %v493_v28 = vmul.f32 0.2, %v461_v17  ;;  %v462_v29 = vadd.f32 %v944_v18, %v439_v22 }
 0x10d   : > { %v470_v30 = vadd.f32 %v944_v18, %v447_v23  ;;  %vm485_vm13 = vcmp.ge.f32.partialorder %v469_v21, 0.0  ;;  %v501_v31 = vmul.f32 0.2, %v469_v21  ;;  %v512_v32 = vsel %vm480_vm10, %v464_v19, %v496_v26 }
 0x10e   : > { %v520_v33 = vsel %vm488_vm11, %v472_v20, %v504_v27  ;;  %v736_v16 = vpack.c.bf16 %v512_v32, %v511_v24  ;;  %vm478_vm14 = vcmp.ge.f32.partialorder %v462_v29, 0.0  ;;  %v494_v35 = vmul.f32 0.2, %v462_v29 }
 0x10f   : > { %v756_v34 = vpack.c.bf16 %v520_v33, %v519_v25  ;;  %vm486_vm15 = vcmp.ge.f32.partialorder %v470_v30, 0.0  ;;  %v502_v36 = vmul.f32 0.2, %v470_v30  ;;  %v509_v37 = vsel %vm477_vm12, %v461_v17, %v493_v28 }
 0x110   : > { %760 = vst [vmem:[%s967_s20 + $0x18] sm:$0xff] %v736_v16   ;;  %v510_v38 = vsel %vm478_vm14, %v462_v29, %v494_v35  ;;  %v517_v39 = vsel %vm485_vm13, %v469_v21, %v501_v31 }
 0x111   : > { %764 = vst [vmem:[%s967_s20 + $0x38] sm:$0xff] %v756_v34   ;;  %v731_v40 = vpack.c.bf16 %v510_v38, %v509_v37  ;;  %v518_v41 = vsel %vm486_vm15, %v470_v30, %v502_v36 }
 0x112   : > { %v751_v18 = vpack.c.bf16 %v518_v41, %v517_v39 }
 0x113   : > { %759 = vst [vmem:[%s967_s20 + $0x10] sm:$0xff] %v731_v40  }
 0x114   : > { %763 = vst [vmem:[%s967_s20 + $0x30] sm:$0xff] %v751_v18  }
 0x115 PF: > { %s14_s15 = sadd.s32 1, %s859_s15  }
 0x116   : > { %p11_p4 = scmp.ge.s32.totalorder %s14_s15, 5  }
 0x118   :  { %13 = sbr.rel (!%p11_p4) target bundleno = 1 (0x1), region = 66 }

// kernel: temporal_projected_discriminator.7
= control target key start
LH: loop header
LB: loop body
LE: loop exit
PB: predicated region body
PF: predicated region fallthrough
CT: control target
= control target key end

     0   :  { %s1548_s15 = smov 0   ;;  %s1956_s0 = inlined_call_operand.vmem [shape: bf16[384,128], index: 0, kind: input, shape index: {}]   ;;  %s1957_s1 = inlined_call_operand.vmem [shape: bf16[128,512], index: 1, kind: input, shape index: {}]   ;;  %s1958_s2 = inlined_call_operand.vmem [shape: f32[1,512], index: 2, kind: input, shape index: {}]   ;;  %s1959_s3 = inlined_call_operand.vmem [shape: f32[1,512], index: 3, kind: input, shape index: {}]   ;;  %s1960_s4 = inlined_call_operand.vmem [shape: bf16[384,512], index: 4, kind: output, shape index: {}]  }
   0x1 LB: > { %s1332_s16 = sadd.s32 4294967295, %s1520_s15   ;;  %p1336_p0 = scmp.ge.s32.totalorder %s1520_s15, 1  ;;  %s1520_s15 = sphi %s1548_s15, %s14_s15  }
   0x2   : > { %p163_p1 = scmp.lt.s32.totalorder %s1520_s15, 4 }
   0x4   : > { %p164_p2 = pnand %p1336_p0, %p163_p1 }
   0x5   : > { %v1458_v0 = vld [vmem:[%s1957_s1 + $0x4] ss:$16 sps:$4 sm:$0xff] (!%p164_p2)   ;;  %v1460_v1 = vld [vmem:[%s1957_s1 + $0xc] ss:$16 sps:$4 sm:$0xff] (!%p164_p2)   ;;  %v1522_v2 = vmov (!%p164_p2), 0   ;;  %s1337_s9 = sshll.u32 (!%p164_p2), %s1332_s16, 4  ;;  %v688_v41 = vlaneseq (!%p164_p2) }
   0x6   : > { %167 = sbr.rel (%p164_p2) target bundleno = 346 (0x15a), region = 36  ;;  %492 = vmatprep.mubr.bf16.mxu0 (!%p164_p2), %v1522_v2  ;;  %605 = vmatprep.mubr.bf16.mxu1 (!%p164_p2), %v1522_v2  ;;  %v1462_v3 = vld [vmem:[%s1957_s1] ss:$16 sps:$4 sm:$0xff] (!%p164_p2)   ;;  %v1463_v4 = vld [vmem:[%s1957_s1 + $0x8] ss:$16 sps:$4 sm:$0xff] (!%p164_p2)   ;;  %p191_p3 = scmp.lt.s32.totalorder (!%p164_p2), %s1337_s9, 47 }
   0x7   : > { %460 = vmatprep.subr.bf16.mxu0 (!%p164_p2), %v1458_v0  ;;  %573 = vmatprep.subr.bf16.mxu1 (!%p164_p2), %v1460_v1  ;;  %v1464_v5 = vld [vmem:[%s1957_s1 + $0x24] ss:$16 sps:$4 sm:$0xff] (!%p164_p2)   ;;  %v1466_v6 = vld [vmem:[%s1957_s1 + $0x2c] ss:$16 sps:$4 sm:$0xff] (!%p164_p2)   ;;  %v1468_v7 = vld [vmem:[%s1957_s1 + $0x20] ss:$16 sps:$4 sm:$0xff] (!%p164_p2)  }
   0x8   : > { %461 = vmatpush1.bf16.msra.mxu0 (!%p164_p2), %v1462_v3  ;;  %574 = vmatpush1.bf16.msra.mxu1 (!%p164_p2), %v1463_v4  ;;  %v1469_v8 = vld [vmem:[%s1957_s1 + $0x28] ss:$16 sps:$4 sm:$0xff] (!%p164_p2)   ;;  %v1470_v9 = vld [vmem:[%s1957_s1 + $0x44] ss:$16 sps:$4 sm:$0xff] (!%p164_p2)   ;;  %v1472_v10 = vld [vmem:[%s1957_s1 + $0x4c] ss:$16 sps:$4 sm:$0xff] (!%p164_p2)  }
   0x9   : > { %462 = vmatprep.subr.bf16.mxu0 (!%p164_p2), %v1464_v5  ;;  %575 = vmatprep.subr.bf16.mxu1 (!%p164_p2), %v1466_v6  ;;  %v1474_v11 = vld [vmem:[%s1957_s1 + $0x40] ss:$16 sps:$4 sm:$0xff] (!%p164_p2)   ;;  %v1475_v12 = vld [vmem:[%s1957_s1 + $0x48] ss:$16 sps:$4 sm:$0xff] (!%p164_p2)   ;;  %v1476_v13 = vld [vmem:[%s1957_s1 + $0x64] ss:$16 sps:$4 sm:$0xff] (!%p164_p2)  }
   0xa   : > { %v1478_v14 = vld [vmem:[%s1957_s1 + $0x6c] ss:$16 sps:$4 sm:$0xff] (!%p164_p2)   ;;  %v1480_v15 = vld [vmem:[%s1957_s1 + $0x60] ss:$16 sps:$4 sm:$0xff] (!%p164_p2)   ;;  %v1481_v16 = vld [vmem:[%s1957_s1 + $0x68] ss:$16 sps:$4 sm:$0xff] (!%p164_p2)  }
   0xb   : > { %v1482_v17 = vld [vmem:[%s1957_s1 + $0x84] ss:$16 sps:$4 sm:$0xff] (!%p164_p2)   ;;  %v1484_v18 = vld [vmem:[%s1957_s1 + $0x8c] ss:$16 sps:$4 sm:$0xff] (!%p164_p2)   ;;  %v1486_v19 = vld [vmem:[%s1957_s1 + $0x80] ss:$16 sps:$4 sm:$0xff] (!%p164_p2)  }
   0xc   : > { %463 = vmatpush1.bf16.msra.mxu0 (!%p164_p2), %v1468_v7  ;;  %576 = vmatpush1.bf16.msra.mxu1 (!%p164_p2), %v1469_v8  ;;  %v1487_v20 = vld [vmem:[%s1957_s1 + $0x88] ss:$16 sps:$4 sm:$0xff] (!%p164_p2)   ;;  %v1488_v21 = vld [vmem:[%s1957_s1 + $0xa4] ss:$16 sps:$4 sm:$0xff] (!%p164_p2)   ;;  %v1490_v22 = vld [vmem:[%s1957_s1 + $0xac] ss:$16 sps:$4 sm:$0xff] (!%p164_p2)  }
   0xd   : > { %464 = vmatprep.subr.bf16.mxu0 %v1470_v9  ;;  %577 = vmatprep.subr.bf16.mxu1 %v1472_v10  ;;  %s1962_s9 = smov (!%p191_p3, %s1337_s9), 47  ;;  %v1492_v23 = vld [vmem:[%s1957_s1 + $0xa0] ss:$16 sps:$4 sm:$0xff]   ;;  %v1493_v24 = vld [vmem:[%s1957_s1 + $0xa8] ss:$16 sps:$4 sm:$0xff]   ;;  %v689_v42 = vshrl.u32 %v688_v41, 7 }
   0xe   : > { %s1338_s12 = sshll.u32 %s1962_s9, 2  ;;  %v1494_v25 = vld [vmem:[%s1957_s1 + $0xc4] ss:$16 sps:$4 sm:$0xff]   ;;  %v1496_v26 = vld [vmem:[%s1957_s1 + $0xcc] ss:$16 sps:$4 sm:$0xff]   ;;  %s1416_s18 = sshll.u32 %s1962_s9, 4 }
   0xf   : > { %s1639_s22 = scalar_lea.vmem %s1956_s0, %s1338_s12  ;;  %v1498_v27 = vld [vmem:[%s1957_s1 + $0xc0] ss:$16 sps:$4 sm:$0xff]   ;;  %v1499_v28 = vld [vmem:[%s1957_s1 + $0xc8] ss:$16 sps:$4 sm:$0xff]   ;;  %v1500_v29 = vld [vmem:[%s1957_s1 + $0xe4] ss:$16 sps:$4 sm:$0xff]   ;;  %s1724_s16 = scalar_lea.vmem %s1960_s4, %s1416_s18 }
  0x10   : > { %465 = vmatpush1.bf16.msra.mxu0 %v1474_v11  ;;  %578 = vmatpush1.bf16.msra.mxu1 %v1475_v12  ;;  %v1502_v30 = vld [vmem:[%s1957_s1 + $0xec] ss:$16 sps:$4 sm:$0xff]   ;;  %v1504_v31 = vld [vmem:[%s1957_s1 + $0xe0] ss:$16 sps:$4 sm:$0xff]   ;;  %v1505_v32 = vld [vmem:[%s1957_s1 + $0xe8] ss:$16 sps:$4 sm:$0xff]  }
  0x11   : > { %466 = vmatprep.subr.bf16.mxu0 %v1476_v13  ;;  %579 = vmatprep.subr.bf16.mxu1 %v1478_v14  ;;  %v1506_v33 = vld [vmem:[%s1639_s22] sm:$0xff]   ;;  %v1507_v34 = vld [vmem:[%s1639_s22 + $0x8] sm:$0xff]   ;;  %v1508_v35 = vld [vmem:[%s1639_s22 + $0x10] sm:$0xff]   ;;  %v690_v43 = vsub.s32 0, %v689_v42  ;;  %v698_v44 = vsub.s32 2, %v689_v42  ;;  %v694_v46 = vsub.s32 1, %v689_v42 }
  0x12   : > { %v1509_v36 = vld [vmem:[%s1639_s22 + $0x18] sm:$0xff]   ;;  %v1510_v37 = vld [vmem:[%s1639_s22 + $0x20] sm:$0xff]   ;;  %v1511_v38 = vld [vmem:[%s1639_s22 + $0x28] sm:$0xff]   ;;  %v702_v47 = vsub.s32 3, %v689_v42 }
  0x13   : > { %v1512_v39 = vld [vmem:[%s1639_s22 + $0x30] sm:$0xff]   ;;  %v1513_v40 = vld [vmem:[%s1639_s22 + $0x38] sm:$0xff]   ;;  %v686_v45 = vld [vmem:[%s1958_s2] sm:$0xf] }
  0x14   : > { %467 = vmatpush1.bf16.msra.mxu0 %v1480_v15  ;;  %580 = vmatpush1.bf16.msra.mxu1 %v1481_v16  ;;  %v772_v48 = vld [vmem:[%s1959_s3] sm:$0xf]  ;;  %v1690_v49 = vrot.slane %v686_v45, %v690_v43  ;;  %v1692_v50 = vrot.slane %v686_v45, %v698_v44  ;;  %v1694_v51 = vrot.slane %v686_v45, %v694_v46 }
  0x15   : > { %468 = vmatprep.subr.bf16.mxu0 %v1482_v17  ;;  %581 = vmatprep.subr.bf16.mxu1 %v1484_v18  ;;  %v1696_v52 = vrot.slane %v686_v45, %v702_v47  ;;  %v1698_v53 = vrot.slane %v772_v48, %v690_v43  ;;  %v1700_v54 = vrot.slane %v772_v48, %v698_v44 }
  0x16   : > { %v1702_v57 = vrot.slane %v772_v48, %v694_v46  ;;  %v1704_v58 = vrot.slane %v772_v48, %v702_v47 }
  0x18   : > { %469 = vmatpush1.bf16.msra.mxu0 %v1486_v19  ;;  %582 = vmatpush1.bf16.msra.mxu1 %v1487_v20 }
  0x19   : > { %470 = vmatprep.subr.bf16.mxu0 %v1488_v21  ;;  %583 = vmatprep.subr.bf16.mxu1 %v1490_v22 }
  0x1c   : > { %471 = vmatpush1.bf16.msra.mxu0 %v1492_v23  ;;  %584 = vmatpush1.bf16.msra.mxu1 %v1493_v24 }
  0x1d   : > { %472 = vmatprep.subr.bf16.mxu0 %v1494_v25  ;;  %585 = vmatprep.subr.bf16.mxu1 %v1496_v26 }
  0x20   : > { %473 = vmatpush1.bf16.msra.mxu0 %v1498_v27  ;;  %586 = vmatpush1.bf16.msra.mxu1 %v1499_v28 }
  0x21   : > { %474 = vmatprep.subr.bf16.mxu0 %v1500_v29  ;;  %587 = vmatprep.subr.bf16.mxu1 %v1502_v30 }
  0x24   : > { %475 = vmatpush1.bf16.msra.mxu0 %v1504_v31  ;;  %588 = vmatpush1.bf16.msra.mxu1 %v1505_v32 }
  0x27   : > { %493 = vmatmul.mubr.bf16.vlgmr.msra.gmra.mrb[0].mxu0 %v1506_v33  ;;  %606 = vmatmul.mubr.bf16.vlgmr.msra.gmra.mrb[0].mxu1 %v1506_v33 }
  0x28   : > { %502 = vmatprep.mubr.bf16.mxu0 %v1522_v2  ;;  %615 = vmatprep.mubr.bf16.mxu1 %v1522_v2 }
  0x2f   : > { %503 = vmatmul.mubr.bf16.gmra.mrb[4].mxu0 %v1507_v34  ;;  %616 = vmatmul.mubr.bf16.gmra.mrb[4].mxu1 %v1507_v34 }
  0x30   : > { %512 = vmatprep.mubr.bf16.mxu0 %v1522_v2  ;;  %625 = vmatprep.mubr.bf16.mxu1 %v1522_v2 }
  0x37   : > { %513 = vmatmul.mubr.bf16.gmra.mrb[8].mxu0 %v1508_v35  ;;  %626 = vmatmul.mubr.bf16.gmra.mrb[8].mxu1 %v1508_v35 }
  0x38   : > { %522 = vmatprep.mubr.bf16.mxu0 %v1522_v2  ;;  %635 = vmatprep.mubr.bf16.mxu1 %v1522_v2 }
  0x3f   : > { %523 = vmatmul.mubr.bf16.gmra.mrb[12].mxu0 %v1509_v36  ;;  %636 = vmatmul.mubr.bf16.gmra.mrb[12].mxu1 %v1509_v36 }
  0x40   : > { %532 = vmatprep.mubr.bf16.mxu0 %v1522_v2  ;;  %645 = vmatprep.mubr.bf16.mxu1 %v1522_v2 }
  0x47   : > { %533 = vmatmul.mubr.bf16.gmra.mrb[16].mxu0 %v1510_v37  ;;  %646 = vmatmul.mubr.bf16.gmra.mrb[16].mxu1 %v1510_v37 }
  0x48   : > { %542 = vmatprep.mubr.bf16.mxu0 %v1522_v2  ;;  %655 = vmatprep.mubr.bf16.mxu1 %v1522_v2 }
  0x4f   : > { %543 = vmatmul.mubr.bf16.gmra.mrb[20].mxu0 %v1511_v38  ;;  %656 = vmatmul.mubr.bf16.gmra.mrb[20].mxu1 %v1511_v38 }
  0x50   : > { %552 = vmatprep.mubr.bf16.mxu0 %v1522_v2  ;;  %665 = vmatprep.mubr.bf16.mxu1 %v1522_v2 }
  0x57   : > { %553 = vmatmul.mubr.bf16.gmra.mrb[24].mxu0 %v1512_v39  ;;  %666 = vmatmul.mubr.bf16.gmra.mrb[24].mxu1 %v1512_v39 }
  0x58   : > { %562 = vmatprep.mubr.bf16.mxu0 %v1522_v2  ;;  %675 = vmatprep.mubr.bf16.mxu1 %v1522_v2 }
  0x5f   : > { %563 = vmatmul.mubr.bf16.gmra.mrb[28].mxu0 %v1513_v40  ;;  %676 = vmatmul.mubr.bf16.gmra.mrb[28].mxu1 %v1513_v40 }
  0xfa   : > { %v494_v55 = vpop.f32.mrb[0].mxu0  ;;  %v607_v56 = vpop.f32.mrb[0].mxu1 }
  0xfb   : > { %v708_v59 = vmul.f32 %v1690_v49, %v494_v55  ;;  %v710_v60 = vmul.f32 %v1692_v50, %v607_v56  ;;  %v496_v61 = vpop.f32.mrb[1].mxu0  ;;  %v609_v62 = vpop.f32.mrb[1].mxu1 }
  0xfc   : > { %v709_v63 = vmul.f32 %v1694_v51, %v496_v61  ;;  %v711_v0 = vmul.f32 %v1696_v52, %v609_v62  ;;  %v498_v1 = vpop.f32.mrb[2].mxu0  ;;  %v611_v2 = vpop.f32.mrb[2].mxu1 }
  0xfd   : > { %v794_v3 = vadd.f32 %v1698_v53, %v708_v59  ;;  %v796_v4 = vadd.f32 %v1700_v54, %v710_v60  ;;  %v712_v5 = vmul.f32 %v1690_v49, %v498_v1  ;;  %v714_v6 = vmul.f32 %v1692_v50, %v611_v2  ;;  %v500_v7 = vpop.f32.mrb[3].mxu0  ;;  %v613_v8 = vpop.f32.mrb[3].mxu1 }
  0xfe   : > { %v795_v9 = vadd.f32 %v1702_v57, %v709_v63  ;;  %v797_v10 = vadd.f32 %v1704_v58, %v711_v0  ;;  %v713_v11 = vmul.f32 %v1694_v51, %v500_v7  ;;  %v715_v12 = vmul.f32 %v1696_v52, %v613_v8 }
  0xff   : > { %vm858_vm0 = vcmp.ge.f32.partialorder %v794_v3, 0.0  ;;  %v922_v13 = vmul.f32 0.2, %v794_v3  ;;  %vm860_vm1 = vcmp.ge.f32.partialorder %v796_v4, 0.0  ;;  %v924_v14 = vmul.f32 0.2, %v796_v4 }
 0x100   : > { %vm859_vm2 = vcmp.ge.f32.partialorder %v795_v9, 0.0  ;;  %v923_v15 = vmul.f32 0.2, %v795_v9  ;;  %vm861_vm3 = vcmp.ge.f32.partialorder %v797_v10, 0.0  ;;  %v925_v16 = vmul.f32 0.2, %v797_v10 }
 0x101   : > { %v986_v17 = vsel %vm858_vm0, %v794_v3, %v922_v13  ;;  %v988_v18 = vsel %vm860_vm1, %v796_v4, %v924_v14  ;;  %v798_v19 = vadd.f32 %v1698_v53, %v712_v5  ;;  %v800_v20 = vadd.f32 %v1700_v54, %v714_v6 }
 0x102   : > { %v987_v21 = vsel %vm859_vm2, %v795_v9, %v923_v15  ;;  %v989_v22 = vsel %vm861_vm3, %v797_v10, %v925_v16  ;;  %v799_v23 = vadd.f32 %v1702_v57, %v713_v11  ;;  %v801_v24 = vadd.f32 %v1704_v58, %v715_v12  ;;  %v504_v25 = vpop.f32.mrb[4].mxu0  ;;  %v617_v26 = vpop.f32.mrb[4].mxu1 }
 0x103   : > { %v1417_v27 = vpack.c.bf16 %v987_v21, %v986_v17  ;;  %v1418_v28 = vpack.c.bf16 %v989_v22, %v988_v18  ;;  %vm862_vm4 = vcmp.ge.f32.partialorder %v798_v19, 0.0  ;;  %v926_v29 = vmul.f32 0.2, %v798_v19  ;;  %v506_v30 = vpop.f32.mrb[5].mxu0  ;;  %v619_v31 = vpop.f32.mrb[5].mxu1 }
 0x104   : > { %vm864_vm5 = vcmp.ge.f32.partialorder %v800_v20, 0.0  ;;  %v928_v32 = vmul.f32 0.2, %v800_v20  ;;  %vm863_vm6 = vcmp.ge.f32.partialorder %v799_v23, 0.0  ;;  %v927_v33 = vmul.f32 0.2, %v799_v23 }
 0x105   : > { %1242 = vst [vmem:[%s1724_s16] sm:$0xff] %v1417_v27  ;;  %1243 = vst [vmem:[%s1724_s16 + $0x8] sm:$0xff] %v1418_v28  ;;  %v990_v34 = vsel %vm862_vm4, %v798_v19, %v926_v29  ;;  %vm865_vm7 = vcmp.ge.f32.partialorder %v801_v24, 0.0  ;;  %v929_v35 = vmul.f32 0.2, %v801_v24  ;;  %v716_v36 = vmul.f32 %v1690_v49, %v504_v25  ;;  %v508_v37 = vpop.f32.mrb[6].mxu0  ;;  %v621_v38 = vpop.f32.mrb[6].mxu1 }
 0x106   : > { %v992_v39 = vsel %vm864_vm5, %v800_v20, %v928_v32  ;;  %v991_v40 = vsel %vm863_vm6, %v799_v23, %v927_v33  ;;  %v718_v41 = vmul.f32 %v1692_v50, %v617_v26  ;;  %v717_v42 = vmul.f32 %v1694_v51, %v506_v30  ;;  %v510_v43 = vpop.f32.mrb[7].mxu0  ;;  %v623_v44 = vpop.f32.mrb[7].mxu1 }
 0x107   : > { %v1419_v45 = vpack.c.bf16 %v991_v40, %v990_v34  ;;  %v993_v46 = vsel %vm865_vm7, %v801_v24, %v929_v35  ;;  %v802_v47 = vadd.f32 %v1698_v53, %v716_v36  ;;  %v719_v48 = vmul.f32 %v1696_v52, %v619_v31 }
 0x108   : > { %v1420_v55 = vpack.c.bf16 %v993_v46, %v992_v39  ;;  %v804_v56 = vadd.f32 %v1700_v54, %v718_v41  ;;  %v803_v59 = vadd.f32 %v1702_v57, %v717_v42  ;;  %v720_v60 = vmul.f32 %v1690_v49, %v508_v37 }
 0x109   : > { %1244 = vst [vmem:[%s1724_s16 + $0x10] sm:$0xff] %v1419_v45  ;;  %vm866_vm8 = vcmp.ge.f32.partialorder %v802_v47, 0.0  ;;  %v930_v61 = vmul.f32 0.2, %v802_v47  ;;  %v805_v62 = vadd.f32 %v1704_v58, %v719_v48  ;;  %v722_v63 = vmul.f32 %v1692_v50, %v621_v38 }
 0x10a   : > { %1245 = vst [vmem:[%s1724_s16 + $0x18] sm:$0xff] %v1420_v55  ;;  %vm868_vm9 = vcmp.ge.f32.partialorder %v804_v56, 0.0  ;;  %v932_v0 = vmul.f32 0.2, %v804_v56  ;;  %vm867_vm10 = vcmp.ge.f32.partialorder %v803_v59, 0.0  ;;  %v806_v4 = vadd.f32 %v1698_v53, %v720_v60  ;;  %v514_v5 = vpop.f32.mrb[8].mxu0 }
 0x10b   : > { %v931_v1 = vmul.f32 0.2, %v803_v59  ;;  %v994_v2 = vsel %vm866_vm8, %v802_v47, %v930_v61  ;;  %vm869_vm11 = vcmp.ge.f32.partialorder %v805_v62, 0.0  ;;  %v933_v3 = vmul.f32 0.2, %v805_v62  ;;  %v627_v6 = vpop.f32.mrb[8].mxu1 }
 0x10c   : > { %v996_v7 = vsel %vm868_vm9, %v804_v56, %v932_v0  ;;  %v808_v9 = vadd.f32 %v1700_v54, %v722_v63  ;;  %v721_v10 = vmul.f32 %v1694_v51, %v510_v43  ;;  %v516_v11 = vpop.f32.mrb[9].mxu0  ;;  %v629_v12 = vpop.f32.mrb[9].mxu1  ;;  %vm870_vm12 = vcmp.ge.f32.partialorder %v806_v4, 0.0 }
 0x10d   : > { %v995_v8 = vsel %vm867_vm10, %v803_v59, %v931_v1  ;;  %v997_v14 = vsel %vm869_vm11, %v805_v62, %v933_v3  ;;  %v934_v15 = vmul.f32 0.2, %v806_v4  ;;  %v518_v16 = vpop.f32.mrb[10].mxu0  ;;  %v631_v17 = vpop.f32.mrb[10].mxu1  ;;  %v723_v24 = vmul.f32 %v1696_v52, %v623_v44 }
 0x10e   : > { %v1421_v13 = vpack.c.bf16 %v995_v8, %v994_v2  ;;  %v1422_v18 = vpack.c.bf16 %v997_v14, %v996_v7  ;;  %vm872_vm13 = vcmp.ge.f32.partialorder %v808_v9, 0.0  ;;  %v936_v19 = vmul.f32 0.2, %v808_v9  ;;  %v520_v21 = vpop.f32.mrb[11].mxu0  ;;  %v633_v22 = vpop.f32.mrb[11].mxu1 }
 0x10f   : > { %v807_v20 = vadd.f32 %v1702_v57, %v721_v10  ;;  %v998_v23 = vsel %vm870_vm12, %v806_v4, %v934_v15  ;;  %v724_v25 = vmul.f32 %v1690_v49, %v514_v5  ;;  %v726_v26 = vmul.f32 %v1692_v50, %v627_v6 }
 0x110   : > { %1246 = vst [vmem:[%s1724_s16 + $0x20] sm:$0xff] %v1421_v13  ;;  %1247 = vst [vmem:[%s1724_s16 + $0x28] sm:$0xff] %v1422_v18  ;;  %v1000_v27 = vsel %vm872_vm13, %v808_v9, %v936_v19  ;;  %v725_v29 = vmul.f32 %v1694_v51, %v516_v11  ;;  %v809_v30 = vadd.f32 %v1704_v58, %v723_v24 }
 0x111   : > { %vm871_vm14 = vcmp.ge.f32.partialorder %v807_v20, 0.0  ;;  %v935_v28 = vmul.f32 0.2, %v807_v20  ;;  %v810_v31 = vadd.f32 %v1698_v53, %v724_v25  ;;  %v812_v32 = vadd.f32 %v1700_v54, %v726_v26 }
 0x112   : > { %v727_v33 = vmul.f32 %v1696_v52, %v629_v12  ;;  %v811_v35 = vadd.f32 %v1702_v57, %v725_v29  ;;  %v728_v36 = vmul.f32 %v1690_v49, %v518_v16  ;;  %v730_v37 = vmul.f32 %v1692_v50, %v631_v17  ;;  %v524_v38 = vpop.f32.mrb[12].mxu0  ;;  %v637_v39 = vpop.f32.mrb[12].mxu1 }
 0x113   : > { %v999_v34 = vsel %vm871_vm14, %v807_v20, %v935_v28  ;;  %vm873_vm15 = vcmp.ge.f32.partialorder %v809_v30, 0.0  ;;  %v937_v41 = vmul.f32 0.2, %v809_v30  ;;  %vm874_vm0 = vcmp.ge.f32.partialorder %v810_v31, 0.0  ;;  %v526_v42 = vpop.f32.mrb[13].mxu0  ;;  %v639_v43 = vpop.f32.mrb[13].mxu1 }
 0x114   : > { %v1423_v40 = vpack.c.bf16 %v999_v34, %v998_v23  ;;  %v938_v44 = vmul.f32 0.2, %v810_v31  ;;  %vm876_vm1 = vcmp.ge.f32.partialorder %v812_v32, 0.0  ;;  %v940_v45 = vmul.f32 0.2, %v812_v32  ;;  %v528_v56 = vpop.f32.mrb[14].mxu0 }
 0x115   : > { %vm875_vm2 = vcmp.ge.f32.partialorder %v811_v35, 0.0  ;;  %v1001_v46 = vsel %vm873_vm15, %v809_v30, %v937_v41  ;;  %v939_v47 = vmul.f32 0.2, %v811_v35  ;;  %v813_v48 = vadd.f32 %v1704_v58, %v727_v33  ;;  %v641_v59 = vpop.f32.mrb[14].mxu1  ;;  %v530_v0 = vpop.f32.mrb[15].mxu0 }
 0x116   : > { %1248 = vst [vmem:[%s1724_s16 + $0x30] sm:$0xff] %v1423_v40  ;;  %v814_v55 = vadd.f32 %v1698_v53, %v728_v36  ;;  %v1424_v60 = vpack.c.bf16 %v1001_v46, %v1000_v27  ;;  %v1002_v61 = vsel %vm874_vm0, %v810_v31, %v938_v44  ;;  %v1004_v62 = vsel %vm876_vm1, %v812_v32, %v940_v45  ;;  %v643_v1 = vpop.f32.mrb[15].mxu1 }
 0x117   : > { %v816_v63 = vadd.f32 %v1700_v54, %v730_v37  ;;  %v1003_v2 = vsel %vm875_vm2, %v811_v35, %v939_v47  ;;  %vm877_vm3 = vcmp.ge.f32.partialorder %v813_v48, 0.0  ;;  %v941_v3 = vmul.f32 0.2, %v813_v48 }
 0x118   : > { %vm878_vm4 = vcmp.ge.f32.partialorder %v814_v55, 0.0  ;;  %1249 = vst [vmem:[%s1724_s16 + $0x38] sm:$0xff] %v1424_v60  ;;  %v1425_v4 = vpack.c.bf16 %v1003_v2, %v1002_v61  ;;  %v942_v5 = vmul.f32 0.2, %v814_v55  ;;  %v729_v8 = vmul.f32 %v1694_v51, %v520_v21 }
 0x119   : > { %vm880_vm5 = vcmp.ge.f32.partialorder %v816_v63, 0.0  ;;  %v944_v6 = vmul.f32 0.2, %v816_v63  ;;  %v1005_v7 = vsel %vm877_vm3, %v813_v48, %v941_v3  ;;  %v731_v9 = vmul.f32 %v1696_v52, %v633_v22 }
 0x11a   : > { %v732_v10 = vmul.f32 %v1690_v49, %v524_v38  ;;  %1250 = vst [vmem:[%s1724_s16 + $0x40] sm:$0xff] %v1425_v4  ;;  %v1426_v11 = vpack.c.bf16 %v1005_v7, %v1004_v62  ;;  %v1006_v12 = vsel %vm878_vm4, %v814_v55, %v942_v5  ;;  %v734_v14 = vmul.f32 %v1692_v50, %v637_v39  ;;  %v534_v15 = vpop.f32.mrb[16].mxu0  ;;  %v647_v16 = vpop.f32.mrb[16].mxu1 }
 0x11b   : > { %v1008_v13 = vsel %vm880_vm5, %v816_v63, %v944_v6  ;;  %v815_v17 = vadd.f32 %v1702_v57, %v729_v8  ;;  %v817_v18 = vadd.f32 %v1704_v58, %v731_v9  ;;  %v733_v20 = vmul.f32 %v1694_v51, %v526_v42  ;;  %v536_v21 = vpop.f32.mrb[17].mxu0  ;;  %v1773_v22 = vpop.f32.mrb[17].mxu1 }
 0x11c   : > { %v818_v19 = vadd.f32 %v1698_v53, %v732_v10  ;;  %1251 = vst [vmem:[%s1724_s16 + $0x48] sm:$0xff] %v1426_v11  ;;  %v820_v23 = vadd.f32 %v1700_v54, %v734_v14  ;;  %v735_v24 = vmul.f32 %v1696_v52, %v639_v43  ;;  %v736_v25 = vmul.f32 %v1690_v49, %v528_v56  ;;  %v1780_v27 = vpop.f32.mrb[18].mxu0  ;;  %v1782_v28 = vpop.f32.mrb[18].mxu1 }
 0x11d   : > { %v738_v26 = vmul.f32 %v1692_v50, %v641_v59  ;;  %vm879_vm6 = vcmp.ge.f32.partialorder %v815_v17, 0.0  ;;  %v943_v29 = vmul.f32 0.2, %v815_v17  ;;  %vm881_vm7 = vcmp.ge.f32.partialorder %v817_v18, 0.0  ;;  %v1786_v37 = vpop.f32.mrb[19].mxu0  ;;  %v1788_v38 = vpop.f32.mrb[19].mxu1 }
 0x11e   : > { %v945_v30 = vmul.f32 0.2, %v817_v18  ;;  %vm882_vm8 = vcmp.ge.f32.partialorder %v818_v19, 0.0  ;;  %v946_v31 = vmul.f32 0.2, %v818_v19  ;;  %vm884_vm9 = vcmp.ge.f32.partialorder %v820_v23, 0.0 }
 0x11f   : > { %v948_v32 = vmul.f32 0.2, %v820_v23  ;;  %v1007_v33 = vsel %vm879_vm6, %v815_v17, %v943_v29  ;;  %v819_v35 = vadd.f32 %v1702_v57, %v733_v20  ;;  %v821_v36 = vadd.f32 %v1704_v58, %v735_v24 }
 0x120   : > { %v1009_v34 = vsel %vm881_vm7, %v817_v18, %v945_v30  ;;  %v1427_v39 = vpack.c.bf16 %v1007_v33, %v1006_v12  ;;  %v1010_v41 = vsel %vm882_vm8, %v818_v19, %v946_v31  ;;  %v822_v45 = vadd.f32 %v1698_v53, %v736_v25 }
 0x121   : > { %v1428_v40 = vpack.c.bf16 %v1009_v34, %v1008_v13  ;;  %v1012_v42 = vsel %vm884_vm9, %v820_v23, %v948_v32  ;;  %vm883_vm10 = vcmp.ge.f32.partialorder %v819_v35, 0.0  ;;  %v947_v43 = vmul.f32 0.2, %v819_v35 }
 0x122   : > { %vm885_vm11 = vcmp.ge.f32.partialorder %v821_v36, 0.0  ;;  %v949_v44 = vmul.f32 0.2, %v821_v36  ;;  %1252 = vst [vmem:[%s1724_s16 + $0x50] sm:$0xff] %v1427_v39  ;;  %v824_v46 = vadd.f32 %v1700_v54, %v738_v26  ;;  %v737_v47 = vmul.f32 %v1694_v51, %v530_v0  ;;  %v544_v55 = vpop.f32.mrb[20].mxu0  ;;  %v657_v56 = vpop.f32.mrb[20].mxu1 }
 0x123   : > { %1253 = vst [vmem:[%s1724_s16 + $0x58] sm:$0xff] %v1428_v40  ;;  %v739_v48 = vmul.f32 %v1696_v52, %v643_v1  ;;  %v1011_v59 = vsel %vm883_vm10, %v819_v35, %v947_v43  ;;  %v740_v61 = vmul.f32 %v1690_v49, %v534_v15  ;;  %v742_v62 = vmul.f32 %v1692_v50, %v647_v16  ;;  %v1798_v63 = vpop.f32.mrb[21].mxu0  ;;  %v1800_v2 = vpop.f32.mrb[21].mxu1 }
 0x124   : > { %v1013_v60 = vsel %vm885_vm11, %v821_v36, %v949_v44  ;;  %v1429_v3 = vpack.c.bf16 %v1011_v59, %v1010_v41  ;;  %vm886_vm12 = vcmp.ge.f32.partialorder %v822_v45, 0.0  ;;  %v950_v0 = vmul.f32 0.2, %v822_v45  ;;  %v1802_v5 = vpop.f32.mrb[22].mxu0  ;;  %v1804_v1 = vpop.f32.mrb[22].mxu1 }
 0x125   : > { %v1430_v4 = vpack.c.bf16 %v1013_v60, %v1012_v42  ;;  %vm888_vm13 = vcmp.ge.f32.partialorder %v824_v46, 0.0  ;;  %v952_v6 = vmul.f32 0.2, %v824_v46  ;;  %v823_v7 = vadd.f32 %v1702_v57, %v737_v47  ;;  %v1808_v9 = vpop.f32.mrb[23].mxu0  ;;  %v1810_v10 = vpop.f32.mrb[23].mxu1 }
 0x126   : > { %v825_v8 = vadd.f32 %v1704_v58, %v739_v48  ;;  %1254 = vst [vmem:[%s1724_s16 + $0x60] sm:$0xff] %v1429_v3  ;;  %v1014_v11 = vsel %vm886_vm12, %v822_v45, %v950_v0  ;;  %v826_v12 = vadd.f32 %v1698_v53, %v740_v61  ;;  %v828_v13 = vadd.f32 %v1700_v54, %v742_v62 }
 0x127   : > { %1255 = vst [vmem:[%s1724_s16 + $0x68] sm:$0xff] %v1430_v4  ;;  %v741_v14 = vmul.f32 %v1694_v51, %v536_v21  ;;  %v1016_v15 = vsel %vm888_vm13, %v824_v46, %v952_v6  ;;  %vm887_vm14 = vcmp.ge.f32.partialorder %v823_v7, 0.0  ;;  %v951_v16 = vmul.f32 0.2, %v823_v7 }
 0x128   : > { %vm889_vm15 = vcmp.ge.f32.partialorder %v825_v8, 0.0  ;;  %v953_v17 = vmul.f32 0.2, %v825_v8  ;;  %vm890_vm0 = vcmp.ge.f32.partialorder %v826_v12, 0.0  ;;  %v954_v18 = vmul.f32 0.2, %v826_v12 }
 0x129   : > { %vm892_vm1 = vcmp.ge.f32.partialorder %v828_v13, 0.0  ;;  %v1015_v19 = vsel %vm887_vm14, %v823_v7, %v951_v16  ;;  %v956_v20 = vmul.f32 0.2, %v828_v13  ;;  %v827_v23 = vadd.f32 %v1702_v57, %v741_v14 }
 0x12a   : > { %v743_v24 = vmul.f32 %v1696_v52, %v1773_v22  ;;  %v1431_v25 = vpack.c.bf16 %v1015_v19, %v1014_v11  ;;  %v1017_v26 = vsel %vm889_vm15, %v825_v8, %v953_v17  ;;  %v1018_v29 = vsel %vm890_vm0, %v826_v12, %v954_v18  ;;  %v1822_v30 = vpop.f32.mrb[24].mxu0  ;;  %v1824_v31 = vpop.f32.mrb[24].mxu1 }
 0x12b   : > { %v744_v21 = vmul.f32 %v1690_v49, %v1780_v27  ;;  %v1432_v32 = vpack.c.bf16 %v1017_v26, %v1016_v15  ;;  %v1020_v33 = vsel %vm892_vm1, %v828_v13, %v956_v20  ;;  %vm891_vm2 = vcmp.ge.f32.partialorder %v827_v23, 0.0  ;;  %v1826_v35 = vpop.f32.mrb[25].mxu0  ;;  %v1828_v36 = vpop.f32.mrb[25].mxu1 }
 0x12c   : > { %v955_v34 = vmul.f32 0.2, %v827_v23  ;;  %1256 = vst [vmem:[%s1724_s16 + $0x70] sm:$0xff] %v1431_v25  ;;  %v829_v22 = vadd.f32 %v1704_v58, %v743_v24  ;;  %v746_v27 = vmul.f32 %v1692_v50, %v1782_v28  ;;  %v745_v40 = vmul.f32 %v1694_v51, %v1786_v37  ;;  %v1837_v41 = vpop.f32.mrb[26].mxu0  ;;  %v1839_v42 = vpop.f32.mrb[26].mxu1 }
 0x12d   : > { %v830_v39 = vadd.f32 %v1698_v53, %v744_v21  ;;  %1257 = vst [vmem:[%s1724_s16 + $0x78] sm:$0xff] %v1432_v32  ;;  %v747_v44 = vmul.f32 %v1696_v52, %v1788_v38  ;;  %v748_v45 = vmul.f32 %v1690_v49, %v544_v55  ;;  %v750_v46 = vmul.f32 %v1692_v50, %v657_v56  ;;  %v1846_v47 = vpop.f32.mrb[27].mxu0  ;;  %v1848_v28 = vpop.f32.mrb[27].mxu1 }
 0x12e   : > { %v1019_v43 = vsel %vm891_vm2, %v827_v23, %v955_v34  ;;  %vm893_vm3 = vcmp.ge.f32.partialorder %v829_v22, 0.0  ;;  %v957_v37 = vmul.f32 0.2, %v829_v22  ;;  %v832_v60 = vadd.f32 %v1700_v54, %v746_v27 }
 0x12f   : > { %v1433_v48 = vpack.c.bf16 %v1019_v43, %v1018_v29  ;;  %vm894_vm4 = vcmp.ge.f32.partialorder %v830_v39, 0.0  ;;  %v958_v59 = vmul.f32 0.2, %v830_v39  ;;  %v831_v61 = vadd.f32 %v1702_v57, %v745_v40 }
 0x130   : > { %v833_v38 = vadd.f32 %v1704_v58, %v747_v44  ;;  %v1021_v55 = vsel %vm893_vm3, %v829_v22, %v957_v37  ;;  %v834_v56 = vadd.f32 %v1698_v53, %v748_v45  ;;  %v836_v62 = vadd.f32 %v1700_v54, %v750_v46 }
 0x131   : > { %1258 = vst [vmem:[%s1724_s16 + $0x80] sm:$0xff] %v1433_v48  ;;  %v749_v3 = vmul.f32 %v1694_v51, %v1798_v63  ;;  %v1434_v4 = vpack.c.bf16 %v1021_v55, %v1020_v33  ;;  %v1022_v0 = vsel %vm894_vm4, %v830_v39, %v958_v59  ;;  %vm896_vm5 = vcmp.ge.f32.partialorder %v832_v60, 0.0 }
 0x132   : > { %v960_v6 = vmul.f32 0.2, %v832_v60  ;;  %vm895_vm6 = vcmp.ge.f32.partialorder %v831_v61, 0.0  ;;  %v959_v7 = vmul.f32 0.2, %v831_v61  ;;  %vm897_vm7 = vcmp.ge.f32.partialorder %v833_v38, 0.0 }
 0x133   : > { %v961_v8 = vmul.f32 0.2, %v833_v38  ;;  %1259 = vst [vmem:[%s1724_s16 + $0x88] sm:$0xff] %v1434_v4  ;;  %vm898_vm8 = vcmp.ge.f32.partialorder %v834_v56, 0.0  ;;  %v962_v12 = vmul.f32 0.2, %v834_v56  ;;  %v835_v17 = vadd.f32 %v1702_v57, %v749_v3 }
 0x134   : > { %v1024_v11 = vsel %vm896_vm5, %v832_v60, %v960_v6  ;;  %vm900_vm9 = vcmp.ge.f32.partialorder %v836_v62, 0.0  ;;  %v1859_v13 = vpop.f32.mrb[28].mxu0  ;;  %v1861_v14 = vpop.f32.mrb[28].mxu1  ;;  %v1023_v15 = vsel %vm895_vm6, %v831_v61, %v959_v7  ;;  %v964_v63 = vmul.f32 0.2, %v836_v62 }
 0x135   : > { %v1025_v16 = vsel %vm897_vm7, %v833_v38, %v961_v8  ;;  %v1864_v18 = vpop.f32.mrb[29].mxu0  ;;  %v1866_v19 = vpop.f32.mrb[29].mxu1  ;;  %v1435_v20 = vpack.c.bf16 %v1023_v15, %v1022_v0  ;;  %v1026_v24 = vsel %vm898_vm8, %v834_v56, %v962_v12  ;;  %v751_v25 = vmul.f32 %v1696_v52, %v1800_v2 }
 0x136   : > { %v1436_v23 = vpack.c.bf16 %v1025_v16, %v1024_v11  ;;  %v1870_v26 = vpop.f32.mrb[30].mxu0  ;;  %v1872_v29 = vpop.f32.mrb[30].mxu1  ;;  %v1028_v21 = vsel %vm900_vm9, %v836_v62, %v964_v63  ;;  %vm899_vm10 = vcmp.ge.f32.partialorder %v835_v17, 0.0  ;;  %v963_v32 = vmul.f32 0.2, %v835_v17 }
 0x137   : > { %v752_v33 = vmul.f32 %v1690_v49, %v1802_v5  ;;  %v1876_v34 = vpop.f32.mrb[31].mxu0  ;;  %v1878_v22 = vpop.f32.mrb[31].mxu1  ;;  %1260 = vst [vmem:[%s1724_s16 + $0x90] sm:$0xff] %v1435_v20  ;;  %v837_v39 = vadd.f32 %v1704_v58, %v751_v25  ;;  %v754_v2 = vmul.f32 %v1692_v50, %v1804_v1  ;;  %v753_v27 = vmul.f32 %v1694_v51, %v1808_v9 }
 0x138   : > { %1261 = vst [vmem:[%s1724_s16 + $0x98] sm:$0xff] %v1436_v23  ;;  %v755_v40 = vmul.f32 %v1696_v52, %v1810_v10  ;;  %v1027_v43 = vsel %vm899_vm10, %v835_v17, %v963_v32  ;;  %v756_v44 = vmul.f32 %v1690_v49, %v1822_v30  ;;  %v758_v45 = vmul.f32 %v1692_v50, %v1824_v31 }
 0x139   : > { %v838_v5 = vadd.f32 %v1698_v53, %v752_v33  ;;  %v1437_v46 = vpack.c.bf16 %v1027_v43, %v1026_v24  ;;  %vm901_vm11 = vcmp.ge.f32.partialorder %v837_v39, 0.0  ;;  %v965_v48 = vmul.f32 0.2, %v837_v39 }
 0x13a   : > { %v840_v1 = vadd.f32 %v1700_v54, %v754_v2  ;;  %v839_v9 = vadd.f32 %v1702_v57, %v753_v27  ;;  %v841_v10 = vadd.f32 %v1704_v58, %v755_v40  ;;  %v842_v30 = vadd.f32 %v1698_v53, %v756_v44 }
 0x13b   : > { %vm902_vm12 = vcmp.ge.f32.partialorder %v838_v5, 0.0  ;;  %v966_v37 = vmul.f32 0.2, %v838_v5  ;;  %1262 = vst [vmem:[%s1724_s16 + $0xa0] sm:$0xff] %v1437_v46  ;;  %v1029_v59 = vsel %vm901_vm11, %v837_v39, %v965_v48  ;;  %v844_v4 = vadd.f32 %v1700_v54, %v758_v45 }
 0x13c   : > { %vm904_vm13 = vcmp.ge.f32.partialorder %v840_v1, 0.0  ;;  %v968_v60 = vmul.f32 0.2, %v840_v1  ;;  %v1438_v61 = vpack.c.bf16 %v1029_v59, %v1028_v21  ;;  %vm903_vm14 = vcmp.ge.f32.partialorder %v839_v9, 0.0 }
 0x13d   : > { %v1030_v31 = vsel %vm902_vm12, %v838_v5, %v966_v37  ;;  %v967_v38 = vmul.f32 0.2, %v839_v9  ;;  %vm905_vm15 = vcmp.ge.f32.partialorder %v841_v10, 0.0  ;;  %v969_v56 = vmul.f32 0.2, %v841_v10 }
 0x13e   : > { %v1032_v55 = vsel %vm904_vm13, %v840_v1, %v968_v60  ;;  %vm906_vm0 = vcmp.ge.f32.partialorder %v842_v30, 0.0  ;;  %1263 = vst [vmem:[%s1724_s16 + $0xa8] sm:$0xff] %v1438_v61  ;;  %v970_v3 = vmul.f32 0.2, %v842_v30  ;;  %v757_v0 = vmul.f32 %v1694_v51, %v1826_v35 }
 0x13f   : > { %v1031_v62 = vsel %vm903_vm14, %v839_v9, %v967_v38  ;;  %v1033_v7 = vsel %vm905_vm15, %v841_v10, %v969_v56  ;;  %v759_v8 = vmul.f32 %v1696_v52, %v1828_v36  ;;  %v760_v11 = vmul.f32 %v1690_v49, %v1837_v41 }
 0x140   : > { %v1439_v6 = vpack.c.bf16 %v1031_v62, %v1030_v31  ;;  %v1440_v12 = vpack.c.bf16 %v1033_v7, %v1032_v55  ;;  %v1034_v15 = vsel %vm906_vm0, %v842_v30, %v970_v3  ;;  %vm908_vm1 = vcmp.ge.f32.partialorder %v844_v4, 0.0 }
 0x141   : > { %v972_v16 = vmul.f32 0.2, %v844_v4  ;;  %v843_v63 = vadd.f32 %v1702_v57, %v757_v0  ;;  %v845_v17 = vadd.f32 %v1704_v58, %v759_v8  ;;  %v846_v20 = vadd.f32 %v1698_v53, %v760_v11 }
 0x142   : > { %1264 = vst [vmem:[%s1724_s16 + $0xb0] sm:$0xff] %v1439_v6  ;;  %v762_v35 = vmul.f32 %v1692_v50, %v1839_v42  ;;  %1265 = vst [vmem:[%s1724_s16 + $0xb8] sm:$0xff] %v1440_v12  ;;  %v761_v36 = vmul.f32 %v1694_v51, %v1846_v47  ;;  %v763_v41 = vmul.f32 %v1696_v52, %v1848_v28 }
 0x143   : > { %v1036_v23 = vsel %vm908_vm1, %v844_v4, %v972_v16  ;;  %v764_v24 = vmul.f32 %v1690_v49, %v1859_v13  ;;  %vm907_vm2 = vcmp.ge.f32.partialorder %v843_v63, 0.0  ;;  %v971_v25 = vmul.f32 0.2, %v843_v63 }
 0x144   : > { %vm909_vm3 = vcmp.ge.f32.partialorder %v845_v17, 0.0  ;;  %v973_v21 = vmul.f32 0.2, %v845_v17  ;;  %vm910_vm4 = vcmp.ge.f32.partialorder %v846_v20, 0.0  ;;  %v974_v32 = vmul.f32 0.2, %v846_v20 }
 0x145   : > { %v848_v42 = vadd.f32 %v1700_v54, %v762_v35  ;;  %v847_v33 = vadd.f32 %v1702_v57, %v761_v36  ;;  %v1035_v39 = vsel %vm907_vm2, %v843_v63, %v971_v25  ;;  %v849_v2 = vadd.f32 %v1704_v58, %v763_v41 }
 0x146   : > { %v1037_v47 = vsel %vm909_vm3, %v845_v17, %v973_v21  ;;  %v850_v28 = vadd.f32 %v1698_v53, %v764_v24  ;;  %v1441_v27 = vpack.c.bf16 %v1035_v39, %v1034_v15  ;;  %v1038_v40 = vsel %vm910_vm4, %v846_v20, %v974_v32 }
 0x147   : > { %v1442_v13 = vpack.c.bf16 %v1037_v47, %v1036_v23  ;;  %vm912_vm5 = vcmp.ge.f32.partialorder %v848_v42, 0.0  ;;  %v976_v43 = vmul.f32 0.2, %v848_v42  ;;  %vm911_vm6 = vcmp.ge.f32.partialorder %v847_v33, 0.0 }
 0x148   : > { %v975_v5 = vmul.f32 0.2, %v847_v33  ;;  %vm913_vm7 = vcmp.ge.f32.partialorder %v849_v2, 0.0  ;;  %1266 = vst [vmem:[%s1724_s16 + $0xc0] sm:$0xff] %v1441_v27  ;;  %v977_v44 = vmul.f32 0.2, %v849_v2  ;;  %v766_v46 = vmul.f32 %v1692_v50, %v1861_v14 }
 0x149   : > { %1267 = vst [vmem:[%s1724_s16 + $0xc8] sm:$0xff] %v1442_v13  ;;  %vm914_vm8 = vcmp.ge.f32.partialorder %v850_v28, 0.0  ;;  %v978_v45 = vmul.f32 0.2, %v850_v28  ;;  %v1040_v48 = vsel %vm912_vm5, %v848_v42, %v976_v43  ;;  %v765_v37 = vmul.f32 %v1694_v51, %v1864_v18 }
 0x14a   : > { %v1039_v1 = vsel %vm911_vm6, %v847_v33, %v975_v5  ;;  %v767_v9 = vmul.f32 %v1696_v52, %v1866_v19  ;;  %v1041_v59 = vsel %vm913_vm7, %v849_v2, %v977_v44  ;;  %v852_v30 = vadd.f32 %v1700_v54, %v766_v46 }
 0x14b   : > { %v1443_v10 = vpack.c.bf16 %v1039_v1, %v1038_v40  ;;  %v1042_v60 = vsel %vm914_vm8, %v850_v28, %v978_v45  ;;  %v1444_v61 = vpack.c.bf16 %v1041_v59, %v1040_v48  ;;  %v851_v31 = vadd.f32 %v1702_v57, %v765_v37 }
 0x14c   : > { %v853_v38 = vadd.f32 %v1704_v58, %v767_v9  ;;  %v768_v14 = vmul.f32 %v1690_v49, %v1870_v26  ;;  %vm916_vm9 = vcmp.ge.f32.partialorder %v852_v30, 0.0  ;;  %v980_v55 = vmul.f32 0.2, %v852_v30 }
 0x14d   : > { %1268 = vst [vmem:[%s1724_s16 + $0xd0] sm:$0xff] %v1443_v10  ;;  %v770_v18 = vmul.f32 %v1692_v50, %v1872_v29  ;;  %v769_v19 = vmul.f32 %v1694_v51, %v1876_v34  ;;  %1269 = vst [vmem:[%s1724_s16 + $0xd8] sm:$0xff] %v1444_v61  ;;  %vm915_vm10 = vcmp.ge.f32.partialorder %v851_v31, 0.0  ;;  %v979_v56 = vmul.f32 0.2, %v851_v31 }
 0x14e   : > { %vm917_vm11 = vcmp.ge.f32.partialorder %v853_v38, 0.0  ;;  %v981_v62 = vmul.f32 0.2, %v853_v38  ;;  %v1044_v3 = vsel %vm916_vm9, %v852_v30, %v980_v55  ;;  %v854_v4 = vadd.f32 %v1698_v53, %v768_v14 }
 0x14f   : > { %v856_v49 = vadd.f32 %v1700_v54, %v770_v18  ;;  %v855_v26 = vadd.f32 %v1702_v57, %v769_v19  ;;  %v1043_v0 = vsel %vm915_vm10, %v851_v31, %v979_v56  ;;  %v771_v50 = vmul.f32 %v1696_v52, %v1878_v22 }
 0x150   : > { %v1045_v6 = vsel %vm917_vm11, %v853_v38, %v981_v62  ;;  %v1445_v51 = vpack.c.bf16 %v1043_v0, %v1042_v60  ;;  %vm918_vm12 = vcmp.ge.f32.partialorder %v854_v4, 0.0  ;;  %v982_v34 = vmul.f32 0.2, %v854_v4 }
 0x151   : > { %v1446_v29 = vpack.c.bf16 %v1045_v6, %v1044_v3  ;;  %vm920_vm13 = vcmp.ge.f32.partialorder %v856_v49, 0.0  ;;  %v984_v7 = vmul.f32 0.2, %v856_v49  ;;  %vm919_vm14 = vcmp.ge.f32.partialorder %v855_v26, 0.0 }
 0x152   : > { %v983_v8 = vmul.f32 0.2, %v855_v26  ;;  %1270 = vst [vmem:[%s1724_s16 + $0xe0] sm:$0xff] %v1445_v51  ;;  %v1046_v53 = vsel %vm918_vm12, %v854_v4, %v982_v34  ;;  %v857_v54 = vadd.f32 %v1704_v58, %v771_v50 }
 0x153   : > { %1271 = vst [vmem:[%s1724_s16 + $0xe8] sm:$0xff] %v1446_v29  ;;  %v1048_v11 = vsel %vm920_vm13, %v856_v49, %v984_v7 }
 0x154   : > { %v1047_v57 = vsel %vm919_vm14, %v855_v26, %v983_v8  ;;  %vm921_vm15 = vcmp.ge.f32.partialorder %v857_v54, 0.0  ;;  %v985_v52 = vmul.f32 0.2, %v857_v54 }
 0x155   : > { %v1447_v12 = vpack.c.bf16 %v1047_v57, %v1046_v53 }
 0x156   : > { %v1049_v22 = vsel %vm921_vm15, %v857_v54, %v985_v52 }
 0x157   : > { %1272 = vst [vmem:[%s1724_s16 + $0xf0] sm:$0xff] %v1447_v12  ;;  %v1448_v15 = vpack.c.bf16 %v1049_v22, %v1048_v11 }
 0x159   : > { %1273 = vst [vmem:[%s1724_s16 + $0xf8] sm:$0xff] %v1448_v15 }
 0x15a PF: > { %s14_s15 = sadd.s32 1, %s1520_s15  }
 0x15b   : > { %p11_p4 = scmp.ge.s32.totalorder %s14_s15, 5  }
 0x15d   :  { %13 = sbr.rel (!%p11_p4) target bundleno = 1 (0x1), region = 66 }

// kernel: temporal_projected_discriminator.9
= control target key start
LH: loop header
LB: loop body
LE: loop exit
PB: predicated region body
PF: predicated region fallthrough
CT: control target
= control target key end

     0   :  { %v2999_v7 = vmov 0.0   ;;  %s2994_s0 = inlined_call_operand.vmem [shape: f32[3,2,128], index: 0, kind: input, shape index: {}]   ;;  %s2995_s1 = inlined_call_operand.vmem [shape: f32[128,512], index: 1, kind: input, shape index: {}]   ;;  %s2996_s2 = inlined_call_operand.vmem [shape: f32[128,512], index: 2, kind: input, shape index: {}]   ;;  %s2997_s3 = inlined_call_operand.vmem [shape: f32[1,512], index: 3, kind: input, shape index: {}]   ;;  %s2998_s4 = inlined_call_operand.hbm [shape: f32[3,2,128], index: 4, kind: output, shape index: {}]  }
   0x1   :  { %v88_v0 = vld [vmem:[%s2996_s2 + $0x8] sm:$0xff]  ;;  %v90_v2 = vld [vmem:[%s2996_s2 + $0x18] sm:$0xff]  ;;  %v87_v5 = vld [vmem:[%s2996_s2] sm:$0xff]  ;;  %215 = vmatprep.mubr.f32.mxu0 %v2999_v7  ;;  %18 = vst [vmem:[#allocation2] sm:$0x3] %v2999_v7  ;;  %286 = vmatprep.mubr.f32.mxu1 %v2999_v7 }
   0x2   :  { %v92_v1 = vld [vmem:[%s2996_s2 + $0x28] sm:$0xff]  ;;  %v94_v4 = vld [vmem:[%s2996_s2 + $0x38] sm:$0xff]  ;;  %v91_v6 = vld [vmem:[%s2996_s2 + $0x20] sm:$0xff]  ;;  %19 = vst [vmem:[#allocation3] sm:$0x3] %v2999_v7 }
   0x3   :  { %v1921_v3 = vpack.c.bf16 %v92_v1, %v88_v0  ;;  %v1936_v8 = vpack.c.bf16 %v94_v4, %v90_v2  ;;  %v1938_v9 = vpack.c.bf16 %v91_v6, %v87_v5  ;;  %v89_v10 = vld [vmem:[%s2996_s2 + $0x10] sm:$0xff]  ;;  %v96_v12 = vld [vmem:[%s2996_s2 + $0x48] sm:$0xff]  ;;  %v98_v15 = vld [vmem:[%s2996_s2 + $0x58] sm:$0xff] }
   0x4   :  { %v93_v11 = vld [vmem:[%s2996_s2 + $0x30] sm:$0xff]  ;;  %v100_v14 = vld [vmem:[%s2996_s2 + $0x68] sm:$0xff]  ;;  %v102_v16 = vld [vmem:[%s2996_s2 + $0x78] sm:$0xff] }
   0x5   :  { %1412 = vmatprep.subr.bf16.mxu0 %v1921_v3  ;;  %v1950_v13 = vpack.c.bf16 %v93_v11, %v89_v10  ;;  %1444 = vmatprep.subr.bf16.mxu1 %v1936_v8  ;;  %v1963_v17 = vpack.c.bf16 %v100_v14, %v96_v12  ;;  %v1965_v18 = vpack.c.bf16 %v102_v16, %v98_v15  ;;  %v95_v19 = vld [vmem:[%s2996_s2 + $0x40] sm:$0xff]  ;;  %v97_v21 = vld [vmem:[%s2996_s2 + $0x50] sm:$0xff]  ;;  %v104_v24 = vld [vmem:[%s2996_s2 + $0x88] sm:$0xff] }
   0x6   :  { %1414 = vmatpush1.bf16.msra.mxu0 %v1938_v9  ;;  %v99_v20 = vld [vmem:[%s2996_s2 + $0x60] sm:$0xff]  ;;  %v101_v23 = vld [vmem:[%s2996_s2 + $0x70] sm:$0xff]  ;;  %v108_v25 = vld [vmem:[%s2996_s2 + $0xa8] sm:$0xff] }
   0x7   :  { %1446 = vmatpush1.bf16.msra.mxu1 %v1950_v13  ;;  %v1977_v22 = vpack.c.bf16 %v99_v20, %v95_v19  ;;  %1416 = vmatprep.subr.bf16.mxu0 %v1963_v17  ;;  %v1990_v26 = vpack.c.bf16 %v101_v23, %v97_v21  ;;  %v1992_v27 = vpack.c.bf16 %v108_v25, %v104_v24  ;;  %v106_v28 = vld [vmem:[%s2996_s2 + $0x98] sm:$0xff]  ;;  %v103_v30 = vld [vmem:[%s2996_s2 + $0x80] sm:$0xff]  ;;  %v105_v33 = vld [vmem:[%s2996_s2 + $0x90] sm:$0xff] }
   0x8   :  { %1448 = vmatprep.subr.bf16.mxu1 %v1965_v18  ;;  %v110_v29 = vld [vmem:[%s2996_s2 + $0xb8] sm:$0xff]  ;;  %v107_v32 = vld [vmem:[%s2996_s2 + $0xa0] sm:$0xff]  ;;  %v109_v34 = vld [vmem:[%s2996_s2 + $0xb0] sm:$0xff] }
   0x9   :  { %v2003_v31 = vpack.c.bf16 %v110_v29, %v106_v28  ;;  %v2015_v35 = vpack.c.bf16 %v107_v32, %v103_v30  ;;  %v112_v36 = vld [vmem:[%s2996_s2 + $0xc8] sm:$0xff]  ;;  %v114_v38 = vld [vmem:[%s2996_s2 + $0xd8] sm:$0xff]  ;;  %v2028_v39 = vpack.c.bf16 %v109_v34, %v105_v33  ;;  %v111_v42 = vld [vmem:[%s2996_s2 + $0xc0] sm:$0xff] }
   0xa   :  { %1418 = vmatpush1.bf16.msra.mxu0 %v1977_v22  ;;  %v116_v37 = vld [vmem:[%s2996_s2 + $0xe8] sm:$0xff]  ;;  %v118_v41 = vld [vmem:[%s2996_s2 + $0xf8] sm:$0xff]  ;;  %v115_v43 = vld [vmem:[%s2996_s2 + $0xe0] sm:$0xff] }
   0xb   :  { %1450 = vmatpush1.bf16.msra.mxu1 %v1990_v26  ;;  %1420 = vmatprep.subr.bf16.mxu0 %v1992_v27  ;;  %v2030_v40 = vpack.c.bf16 %v116_v37, %v112_v36  ;;  %v2042_v44 = vpack.c.bf16 %v118_v41, %v114_v38  ;;  %v113_v45 = vld [vmem:[%s2996_s2 + $0xd0] sm:$0xff]  ;;  %v120_v47 = vld [vmem:[%s2996_s2 + $0x108] sm:$0xff]  ;;  %v122_v49 = vld [vmem:[%s2996_s2 + $0x118] sm:$0xff]  ;;  %v2063_v51 = vpack.c.bf16 %v115_v43, %v111_v42 }
   0xc   :  { %1452 = vmatprep.subr.bf16.mxu1 %v2003_v31  ;;  %v117_v46 = vld [vmem:[%s2996_s2 + $0xf0] sm:$0xff]  ;;  %v124_v48 = vld [vmem:[%s2996_s2 + $0x128] sm:$0xff]  ;;  %v126_v50 = vld [vmem:[%s2996_s2 + $0x138] sm:$0xff] }
   0xd   :  { %v2067_v52 = vpack.c.bf16 %v117_v46, %v113_v45  ;;  %v2069_v53 = vpack.c.bf16 %v124_v48, %v120_v47  ;;  %v119_v54 = vld [vmem:[%s2996_s2 + $0x100] sm:$0xff]  ;;  %v121_v56 = vld [vmem:[%s2996_s2 + $0x110] sm:$0xff]  ;;  %v2081_v57 = vpack.c.bf16 %v126_v50, %v122_v49  ;;  %v128_v59 = vld [vmem:[%s2996_s2 + $0x148] sm:$0xff] }
   0xe   :  { %1422 = vmatpush1.bf16.msra.mxu0 %v2015_v35  ;;  %v123_v55 = vld [vmem:[%s2996_s2 + $0x120] sm:$0xff]  ;;  %v125_v58 = vld [vmem:[%s2996_s2 + $0x130] sm:$0xff]  ;;  %v132_v60 = vld [vmem:[%s2996_s2 + $0x168] sm:$0xff] }
   0xf   :  { %1454 = vmatpush1.bf16.msra.mxu1 %v2028_v39  ;;  %1424 = vmatprep.subr.bf16.mxu0 %v2030_v40  ;;  %v130_v61 = vld [vmem:[%s2996_s2 + $0x158] sm:$0xff]  ;;  %v2099_v63 = vpack.c.bf16 %v123_v55, %v119_v54  ;;  %v2103_v0 = vpack.c.bf16 %v125_v58, %v121_v56  ;;  %v2105_v1 = vpack.c.bf16 %v132_v60, %v128_v59  ;;  %v127_v2 = vld [vmem:[%s2996_s2 + $0x140] sm:$0xff]  ;;  %v129_v5 = vld [vmem:[%s2996_s2 + $0x150] sm:$0xff] }
  0x10   :  { %1456 = vmatprep.subr.bf16.mxu1 %v2042_v44  ;;  %v134_v62 = vld [vmem:[%s2996_s2 + $0x178] sm:$0xff]  ;;  %v131_v4 = vld [vmem:[%s2996_s2 + $0x160] sm:$0xff]  ;;  %v133_v10 = vld [vmem:[%s2996_s2 + $0x170] sm:$0xff] }
  0x11   :  { %v2117_v6 = vpack.c.bf16 %v134_v62, %v130_v61  ;;  %v136_v11 = vld [vmem:[%s2996_s2 + $0x188] sm:$0xff]  ;;  %v138_v14 = vld [vmem:[%s2996_s2 + $0x198] sm:$0xff]  ;;  %v2135_v16 = vpack.c.bf16 %v131_v4, %v127_v2  ;;  %v2139_v19 = vpack.c.bf16 %v133_v10, %v129_v5  ;;  %v135_v21 = vld [vmem:[%s2996_s2 + $0x180] sm:$0xff] }
  0x12   :  { %1426 = vmatpush1.bf16.msra.mxu0 %v2063_v51  ;;  %v140_v12 = vld [vmem:[%s2996_s2 + $0x1a8] sm:$0xff]  ;;  %v142_v15 = vld [vmem:[%s2996_s2 + $0x1b8] sm:$0xff]  ;;  %v139_v23 = vld [vmem:[%s2996_s2 + $0x1a0] sm:$0xff] }
  0x13   :  { %1458 = vmatpush1.bf16.msra.mxu1 %v2067_v52  ;;  %1428 = vmatprep.subr.bf16.mxu0 %v2069_v53  ;;  %v2141_v20 = vpack.c.bf16 %v140_v12, %v136_v11  ;;  %v137_v24 = vld [vmem:[%s2996_s2 + $0x190] sm:$0xff]  ;;  %v2153_v25 = vpack.c.bf16 %v142_v15, %v138_v14  ;;  %v144_v29 = vld [vmem:[%s2996_s2 + $0x1c8] sm:$0xff]  ;;  %v146_v32 = vld [vmem:[%s2996_s2 + $0x1d8] sm:$0xff]  ;;  %v2171_v34 = vpack.c.bf16 %v139_v23, %v135_v21 }
  0x14   :  { %1460 = vmatprep.subr.bf16.mxu1 %v2081_v57  ;;  %v141_v28 = vld [vmem:[%s2996_s2 + $0x1b0] sm:$0xff]  ;;  %v148_v30 = vld [vmem:[%s2996_s2 + $0x1e8] sm:$0xff]  ;;  %v150_v33 = vld [vmem:[%s2996_s2 + $0x1f8] sm:$0xff] }
  0x15   :  { %v2175_v36 = vpack.c.bf16 %v141_v28, %v137_v24  ;;  %v2177_v37 = vpack.c.bf16 %v148_v30, %v144_v29  ;;  %v143_v38 = vld [vmem:[%s2996_s2 + $0x1c0] sm:$0xff]  ;;  %v145_v42 = vld [vmem:[%s2996_s2 + $0x1d0] sm:$0xff]  ;;  %v2189_v43 = vpack.c.bf16 %v150_v33, %v146_v32  ;;  %v24_v46 = vld [vmem:[%s2995_s1 + $0x8] sm:$0xff] }
  0x16   :  { %1430 = vmatpush1.bf16.msra.mxu0 %v2099_v63  ;;  %v147_v41 = vld [vmem:[%s2996_s2 + $0x1e0] sm:$0xff]  ;;  %v149_v45 = vld [vmem:[%s2996_s2 + $0x1f0] sm:$0xff]  ;;  %v28_v47 = vld [vmem:[%s2995_s1 + $0x28] sm:$0xff] }
  0x17   :  { %1462 = vmatpush1.bf16.msra.mxu1 %v2103_v0  ;;  %1432 = vmatprep.subr.bf16.mxu0 %v2105_v1  ;;  %v26_v48 = vld [vmem:[%s2995_s1 + $0x18] sm:$0xff]  ;;  %v2207_v50 = vpack.c.bf16 %v147_v41, %v143_v38  ;;  %v2211_v54 = vpack.c.bf16 %v149_v45, %v145_v42  ;;  %v2213_v55 = vpack.c.bf16 %v28_v47, %v24_v46  ;;  %v23_v56 = vld [vmem:[%s2995_s1] sm:$0xff]  ;;  %v25_v59 = vld [vmem:[%s2995_s1 + $0x10] sm:$0xff] }
  0x18   :  { %1464 = vmatprep.subr.bf16.mxu1 %v2117_v6  ;;  %v30_v49 = vld [vmem:[%s2995_s1 + $0x38] sm:$0xff]  ;;  %v27_v58 = vld [vmem:[%s2995_s1 + $0x20] sm:$0xff]  ;;  %v29_v61 = vld [vmem:[%s2995_s1 + $0x30] sm:$0xff] }
  0x19   :  { %v2225_v60 = vpack.c.bf16 %v30_v49, %v26_v48  ;;  %v32_v62 = vld [vmem:[%s2995_s1 + $0x48] sm:$0xff]  ;;  %v34_v4 = vld [vmem:[%s2995_s1 + $0x58] sm:$0xff]  ;;  %v22_v10 = vld [vmem:[#allocation2] sm:$0x3]  ;;  %v2243_v11 = vpack.c.bf16 %v27_v58, %v23_v56  ;;  %v2247_v12 = vpack.c.bf16 %v29_v61, %v25_v59 }
  0x1a   :  { %1434 = vmatpush1.bf16.msra.mxu0 %v2135_v16  ;;  %v36_v2 = vld [vmem:[%s2995_s1 + $0x68] sm:$0xff]  ;;  %v38_v5 = vld [vmem:[%s2995_s1 + $0x78] sm:$0xff]  ;;  %v31_v15 = vld [vmem:[%s2995_s1 + $0x40] sm:$0xff] }
  0x1b   :  { %1466 = vmatpush1.bf16.msra.mxu1 %v2139_v19  ;;  %1436 = vmatprep.subr.bf16.mxu0 %v2141_v20  ;;  %v2249_v14 = vpack.c.bf16 %v36_v2, %v32_v62  ;;  %v35_v21 = vld [vmem:[%s2995_s1 + $0x60] sm:$0xff]  ;;  %v33_v23 = vld [vmem:[%s2995_s1 + $0x50] sm:$0xff]  ;;  %v2261_v24 = vpack.c.bf16 %v38_v5, %v34_v4  ;;  %v40_v29 = vld [vmem:[%s2995_s1 + $0x88] sm:$0xff] }
  0x1c   :  { %1468 = vmatprep.subr.bf16.mxu1 %v2153_v25  ;;  %v37_v28 = vld [vmem:[%s2995_s1 + $0x70] sm:$0xff]  ;;  %v44_v30 = vld [vmem:[%s2995_s1 + $0xa8] sm:$0xff]  ;;  %v42_v32 = vld [vmem:[%s2995_s1 + $0x98] sm:$0xff]  ;;  %v2279_v38 = vpack.c.bf16 %v35_v21, %v31_v15 }
  0x1d   :  { %v46_v33 = vld [vmem:[%s2995_s1 + $0xb8] sm:$0xff]  ;;  %v2283_v41 = vpack.c.bf16 %v37_v28, %v33_v23  ;;  %v2285_v42 = vpack.c.bf16 %v44_v30, %v40_v29  ;;  %v39_v45 = vld [vmem:[%s2995_s1 + $0x80] sm:$0xff]  ;;  %v41_v47 = vld [vmem:[%s2995_s1 + $0x90] sm:$0xff] }
  0x1e   :  { %1438 = vmatpush1.bf16.msra.mxu0 %v2171_v34  ;;  %v43_v46 = vld [vmem:[%s2995_s1 + $0xa0] sm:$0xff]  ;;  %v2297_v48 = vpack.c.bf16 %v46_v33, %v42_v32  ;;  %v45_v49 = vld [vmem:[%s2995_s1 + $0xb0] sm:$0xff]  ;;  %v48_v56 = vld [vmem:[%s2995_s1 + $0xc8] sm:$0xff] }
  0x1f   :  { %1470 = vmatpush1.bf16.msra.mxu1 %v2175_v36  ;;  %1440 = vmatprep.subr.bf16.mxu0 %v2177_v37  ;;  %v52_v58 = vld [vmem:[%s2995_s1 + $0xe8] sm:$0xff]  ;;  %v50_v59 = vld [vmem:[%s2995_s1 + $0xd8] sm:$0xff]  ;;  %v2317_v62 = vpack.c.bf16 %v43_v46, %v39_v45  ;;  %v2321_v2 = vpack.c.bf16 %v45_v49, %v41_v47  ;;  %v47_v5 = vld [vmem:[%s2995_s1 + $0xc0] sm:$0xff] }
  0x20   :  { %1472 = vmatprep.subr.bf16.mxu1 %v2189_v43  ;;  %v54_v61 = vld [vmem:[%s2995_s1 + $0xf8] sm:$0xff]  ;;  %v2323_v4 = vpack.c.bf16 %v52_v58, %v48_v56  ;;  %v49_v15 = vld [vmem:[%s2995_s1 + $0xd0] sm:$0xff]  ;;  %v56_v28 = vld [vmem:[%s2995_s1 + $0x108] sm:$0xff] }
  0x21   :  { %v2335_v21 = vpack.c.bf16 %v54_v61, %v50_v59  ;;  %v53_v23 = vld [vmem:[%s2995_s1 + $0xf0] sm:$0xff]  ;;  %v60_v29 = vld [vmem:[%s2995_s1 + $0x128] sm:$0xff]  ;;  %v58_v30 = vld [vmem:[%s2995_s1 + $0x118] sm:$0xff] }
  0x22   :  { %1442 = vmatpush1.bf16.msra.mxu0 %v2207_v50  ;;  %v62_v32 = vld [vmem:[%s2995_s1 + $0x138] sm:$0xff] }
  0x23   :  { %1474 = vmatpush1.bf16.msra.mxu1 %v2211_v54  ;;  %1476 = vmatprep.subr.bf16.mxu0 %v2213_v55 }
  0x24   :  { %1508 = vmatprep.subr.bf16.mxu1 %v2225_v60 }
  0x25   :  { %216 = vmatmul.mubr.f32.vlgmr.msra.gmra.mrb[0].mxu0 %v22_v10 }
  0x26   :  { %287 = vmatmul.mubr.f32.vlgmr.msra.gmra.mrb[0].mxu1 %v22_v10  ;;  %1478 = vmatpush1.bf16.msra.mxu0 %v2243_v11  ;;  %v51_v10 = vld [vmem:[%s2995_s1 + $0xe0] sm:$0xff] }
  0x27   :  { %1510 = vmatpush1.bf16.msra.mxu1 %v2247_v12  ;;  %1480 = vmatprep.subr.bf16.mxu0 %v2249_v14 }
  0x28   :  { %1512 = vmatprep.subr.bf16.mxu1 %v2261_v24  ;;  %357 = vmatprep.mubr.f32.mxu0 %v2999_v7 }
  0x29   :  { %428 = vmatprep.mubr.f32.mxu1 %v2999_v7 }
  0x2a   :  { %1482 = vmatpush1.bf16.msra.mxu0 %v2279_v38 }
  0x2b   :  { %1514 = vmatpush1.bf16.msra.mxu1 %v2283_v41  ;;  %1484 = vmatprep.subr.bf16.mxu0 %v2285_v42 }
  0x2c   :  { %1516 = vmatprep.subr.bf16.mxu1 %v2297_v48 }
  0x2d   :  { %9 = vsyncpa [#allocation5], 0  ;;  %v2353_v33 = vpack.c.bf16 %v51_v10, %v47_v5  ;;  %v2357_v45 = vpack.c.bf16 %v53_v23, %v49_v15  ;;  %v2359_v46 = vpack.c.bf16 %v60_v29, %v56_v28  ;;  %v55_v47 = vld [vmem:[%s2995_s1 + $0x100] sm:$0xff]  ;;  %v57_v56 = vld [vmem:[%s2995_s1 + $0x110] sm:$0xff]  ;;  %v2371_v58 = vpack.c.bf16 %v62_v32, %v58_v30 }
  0x2e   :  { %1486 = vmatpush1.bf16.msra.mxu0 %v2317_v62  ;;  %v59_v49 = vld [vmem:[%s2995_s1 + $0x120] sm:$0xff]  ;;  %v61_v59 = vld [vmem:[%s2995_s1 + $0x130] sm:$0xff]  ;;  %v64_v61 = vld [vmem:[%s2995_s1 + $0x148] sm:$0xff] }
  0x2f   :  { %1518 = vmatpush1.bf16.msra.mxu1 %v2321_v2  ;;  %1488 = vmatprep.subr.bf16.mxu0 %v2323_v4  ;;  %3008 = vst [vmem:[#allocation7_spill] sm:$0xff] %v2357_v45  ;;  %3009 = vst [vmem:[#allocation8_spill] sm:$0xff] %v2359_v46  ;;  %v68_v5 = vld [vmem:[%s2995_s1 + $0x168] sm:$0xff]  ;;  %v66_v10 = vld [vmem:[%s2995_s1 + $0x158] sm:$0xff]  ;;  %v2389_v23 = vpack.c.bf16 %v59_v49, %v55_v47  ;;  %v2393_v28 = vpack.c.bf16 %v61_v59, %v57_v56 }
  0x30   :  { %1520 = vmatprep.subr.bf16.mxu1 %v2335_v21  ;;  %3010 = vst [vmem:[#allocation9_spill] sm:$0xff] %v2371_v58  ;;  %v70_v15 = vld [vmem:[%s2995_s1 + $0x178] sm:$0xff]  ;;  %v2395_v29 = vpack.c.bf16 %v68_v5, %v64_v61  ;;  %v63_v30 = vld [vmem:[%s2995_s1 + $0x140] sm:$0xff]  ;;  %v65_v47 = vld [vmem:[%s2995_s1 + $0x150] sm:$0xff] }
  0x31   :  { %3011 = vst [vmem:[#allocation10_spill] sm:$0xff] %v2389_v23  ;;  %3012 = vst [vmem:[#allocation11_spill] sm:$0xff] %v2393_v28  ;;  %v67_v32 = vld [vmem:[%s2995_s1 + $0x160] sm:$0xff]  ;;  %v2407_v49 = vpack.c.bf16 %v70_v15, %v66_v10  ;;  %v69_v56 = vld [vmem:[%s2995_s1 + $0x170] sm:$0xff] }
  0x32   :  { %1490 = vmatpush1.bf16.msra.mxu0 %v2353_v33  ;;  %3013 = vst [vmem:[#allocation12_spill] sm:$0xff] %v2395_v29  ;;  %v72_v59 = vld [vmem:[%s2995_s1 + $0x188] sm:$0xff]  ;;  %v74_v5 = vld [vmem:[%s2995_s1 + $0x198] sm:$0xff]  ;;  %v2425_v15 = vpack.c.bf16 %v67_v32, %v63_v30  ;;  %v2429_v7 = vpack.c.bf16 %v69_v56, %v65_v47  ;;  %v73_v30 = vld [vmem:[%s2995_s1 + $0x190] sm:$0xff] }
  0x33   :  { %1522 = vmatpush1.bf16.msra.mxu1 %v2357_v45  ;;  %1492 = vmatprep.subr.bf16.mxu0 %v2359_v46  ;;  %3014 = vst [vmem:[#allocation13_spill] sm:$0xff] %v2407_v49  ;;  %v76_v61 = vld [vmem:[%s2995_s1 + $0x1a8] sm:$0xff]  ;;  %v78_v10 = vld [vmem:[%s2995_s1 + $0x1b8] sm:$0xff]  ;;  %v71_v46 = vld [vmem:[%s2995_s1 + $0x180] sm:$0xff] }
  0x34   :  { %1524 = vmatprep.subr.bf16.mxu1 %v2371_v58  ;;  %v2431_v58 = vpack.c.bf16 %v76_v61, %v72_v59  ;;  %v75_v45 = vld [vmem:[%s2995_s1 + $0x1a0] sm:$0xff]  ;;  %v2443_v32 = vpack.c.bf16 %v78_v10, %v74_v5  ;;  %v77_v47 = vld [vmem:[%s2995_s1 + $0x1b0] sm:$0xff]  ;;  %v80_v56 = vld [vmem:[%s2995_s1 + $0x1c8] sm:$0xff] }
  0x35   :  { %v84_v59 = vld [vmem:[%s2995_s1 + $0x1e8] sm:$0xff]  ;;  %v82_v61 = vld [vmem:[%s2995_s1 + $0x1d8] sm:$0xff]  ;;  %v2461_v10 = vpack.c.bf16 %v75_v45, %v71_v46  ;;  %v81_v46 = vld [vmem:[%s2995_s1 + $0x1d0] sm:$0xff] }
  0x36   :  { %1494 = vmatpush1.bf16.msra.mxu0 %v2389_v23  ;;  %v86_v5 = vld [vmem:[%s2995_s1 + $0x1f8] sm:$0xff]  ;;  %v83_v23 = vld [vmem:[%s2995_s1 + $0x1e0] sm:$0xff] }
  0x37   :  { %1526 = vmatpush1.bf16.msra.mxu1 %v2393_v28  ;;  %1496 = vmatprep.subr.bf16.mxu0 %v2395_v29  ;;  %v2467_v29 = vpack.c.bf16 %v84_v59, %v80_v56  ;;  %v79_v28 = vld [vmem:[%s2995_s1 + $0x1c0] sm:$0xff]  ;;  %v2476_v45 = vpack.c.bf16 %v86_v5, %v82_v61 }
  0x38   :  { %1528 = vmatprep.subr.bf16.mxu1 %v2407_v49  ;;  %v2465_v49 = vpack.c.bf16 %v77_v47, %v73_v30  ;;  %v85_v30 = vld [vmem:[%s2995_s1 + $0x1f0] sm:$0xff]  ;;  %v2485_v47 = vpack.c.bf16 %v83_v23, %v79_v28  ;;  %v21_v59 = vld [vmem:[%s2994_s0] sm:$0x3]  ;;  %v3015_v23 = vmov 0.0  }
  0x39   :  { %v2489_v56 = vpack.c.bf16 %v85_v30, %v81_v46 }
  0x3a   :  { %1498 = vmatpush1.bf16.msra.mxu0 %v2425_v15 }
  0x3b   :  { %1530 = vmatpush1.bf16.msra.mxu1 %v2429_v7  ;;  %1500 = vmatprep.subr.bf16.mxu0 %v2431_v58 }
  0x3c   :  { %1532 = vmatprep.subr.bf16.mxu1 %v2443_v32 }
  0x3e   :  { %1502 = vmatpush1.bf16.msra.mxu0 %v2461_v10 }
  0x3f   :  { %1534 = vmatpush1.bf16.msra.mxu1 %v2465_v49  ;;  %1504 = vmatprep.subr.bf16.mxu0 %v2467_v29 }
  0x40   :  { %1536 = vmatprep.subr.bf16.mxu1 %v2476_v45 }
  0x42   :  { %1506 = vmatpush1.bf16.msra.mxu0 %v2485_v47 }
  0x43   :  { %1538 = vmatpush1.bf16.msra.mxu1 %v2489_v56  ;;  %1540 = vmatprep.subr.bf16.mxu0 %v1921_v3  ;;  %v436_v3 = vlaneseq }
  0x44   :  { %1572 = vmatprep.subr.bf16.mxu1 %v1936_v8 }
  0x45   :  { %358 = vmatmul.mubr.f32.vlgmr.msra.gmra.mrb[0].mxu0 %v21_v59  ;;  %v437_v8 = vshrl.u32 %v436_v3, 7  ;;  %v1018_v3 = vld [vmem:[%s2996_s2 + $0x78] sm:$0xff] }
  0x46   :  { %429 = vmatmul.mubr.f32.vlgmr.msra.gmra.mrb[0].mxu1 %v21_v59  ;;  %1542 = vmatpush1.bf16.msra.mxu0 %v1938_v9 }
  0x47   :  { %1574 = vmatpush1.bf16.msra.mxu1 %v1950_v13  ;;  %1544 = vmatprep.subr.bf16.mxu0 %v1963_v17  ;;  %v438_v9 = vsub.s32 0, %v437_v8  ;;  %v20_v13 = vld [vmem:[%s2997_s3] sm:$0xf]  ;;  %v442_v17 = vsub.s32 1, %v437_v8 }
  0x48   :  { %1576 = vmatprep.subr.bf16.mxu1 %v1965_v18  ;;  %683 = vmatprep.mubr.f32.mxu0 %v3015_v23 }
  0x49   :  { %754 = vmatprep.mubr.f32.mxu1 %v3015_v23  ;;  %v2536_v18 = vrot.slane %v20_v13, %v438_v9  ;;  %v1015_v9 = vld [vmem:[%s2996_s2 + $0x60] sm:$0xff] }
  0x4a   :  { %1546 = vmatpush1.bf16.msra.mxu0 %v1977_v22  ;;  %v2538_v22 = vrot.slane %v20_v13, %v442_v17 }
  0x4b   :  { %1578 = vmatpush1.bf16.msra.mxu1 %v1990_v26  ;;  %1548 = vmatprep.subr.bf16.mxu0 %v1992_v27  ;;  %v450_v27 = vsub.s32 3, %v437_v8 }
  0x4c   :  { %1580 = vmatprep.subr.bf16.mxu1 %v2003_v31 }
  0x4e   :  { %1550 = vmatpush1.bf16.msra.mxu0 %v2015_v35 }
  0x4f   :  { %1582 = vmatpush1.bf16.msra.mxu1 %v2028_v39  ;;  %1552 = vmatprep.subr.bf16.mxu0 %v2030_v40 }
  0x50   :  { %1584 = vmatprep.subr.bf16.mxu1 %v2042_v44 }
  0x52   :  { %1554 = vmatpush1.bf16.msra.mxu0 %v2063_v51 }
  0x53   :  { %1586 = vmatpush1.bf16.msra.mxu1 %v2067_v52  ;;  %1556 = vmatprep.subr.bf16.mxu0 %v2069_v53  ;;  %v2542_v53 = vrot.slane %v20_v13, %v450_v27  ;;  %v1017_v27 = vld [vmem:[%s2996_s2 + $0x70] sm:$0xff] }
  0x54   :  { %1588 = vmatprep.subr.bf16.mxu1 %v2081_v57  ;;  %v446_v57 = vsub.s32 2, %v437_v8  ;;  %v1011_v8 = vld [vmem:[%s2996_s2 + $0x40] sm:$0xff] }
  0x55   :  { %v1673_v17 = vpack.c.bf16 %v1015_v9, %v1011_v8  ;;  %v1058_v8 = vld [vmem:[%s2996_s2 + $0x1b8] sm:$0xff]  ;;  %v1051_v9 = vld [vmem:[%s2996_s2 + $0x180] sm:$0xff] }
  0x56   :  { %1558 = vmatpush1.bf16.msra.mxu0 %v2099_v63 }
  0x57   :  { %1590 = vmatpush1.bf16.msra.mxu1 %v2103_v0  ;;  %1560 = vmatprep.subr.bf16.mxu0 %v2105_v1  ;;  %v2545_v0 = vrot.slane %v20_v13, %v446_v57  ;;  %v1023_v57 = vld [vmem:[%s2996_s2 + $0xa0] sm:$0xff] }
  0x58   :  { %1592 = vmatprep.subr.bf16.mxu1 %v2117_v6 }
  0x5a   :  { %1562 = vmatpush1.bf16.msra.mxu0 %v2135_v16 }
  0x5b   :  { %1594 = vmatpush1.bf16.msra.mxu1 %v2139_v19  ;;  %1564 = vmatprep.subr.bf16.mxu0 %v2141_v20 }
  0x5c   :  { %1596 = vmatprep.subr.bf16.mxu1 %v2153_v25 }
  0x5e   :  { %1566 = vmatpush1.bf16.msra.mxu0 %v2171_v34 }
  0x5f   :  { %1598 = vmatpush1.bf16.msra.mxu1 %v2175_v36  ;;  %1568 = vmatprep.subr.bf16.mxu0 %v2177_v37  ;;  %v479_v37 = vld [vmem:[#allocation3] sm:$0x3] }
  0x60   :  { %1600 = vmatprep.subr.bf16.mxu1 %v2189_v43 }
  0x62   :  { %1570 = vmatpush1.bf16.msra.mxu0 %v2207_v50 }
  0x63   :  { %1602 = vmatpush1.bf16.msra.mxu1 %v2211_v54  ;;  %1604 = vmatprep.subr.bf16.mxu0 %v2213_v55 }
  0x64   :  { %1636 = vmatprep.subr.bf16.mxu1 %v2225_v60 }
 0x118   :  { %v359_v26 = vpop.f32.mrb[0].mxu0 }
 0x119   :  { %v456_v31 = vadd.f32 %v2536_v18, %v359_v26  ;;  %v430_v35 = vpop.f32.mrb[0].mxu1  ;;  %v361_v39 = vpop.f32.mrb[1].mxu0  ;;  %v1013_v26 = vld [vmem:[%s2996_s2 + $0x50] sm:$0xff] }
 0x11a   :  { %v457_v40 = vadd.f32 %v2538_v22, %v361_v39  ;;  %v432_v44 = vpop.f32.mrb[1].mxu1  ;;  %v458_v6 = vadd.f32 %v2545_v0, %v430_v35  ;;  %v1020_v35 = vld [vmem:[%s2996_s2 + $0x88] sm:$0xff] }
 0x11b   :  { %v1400_v51 = vmul.f32 -1.442695, %v456_v31  ;;  %v459_v63 = vadd.f32 %v2542_v53, %v432_v44  ;;  %v1705_v31 = vpack.c.bf16 %v1017_v27, %v1013_v26  ;;  %v1024_v39 = vld [vmem:[%s2996_s2 + $0xa8] sm:$0xff]  ;;  %v1053_v27 = vld [vmem:[%s2996_s2 + $0x190] sm:$0xff] }
 0x11c   :  { %v1401_v52 = vmul.f32 -1.442695, %v457_v40  ;;  %v1022_v40 = vld [vmem:[%s2996_s2 + $0x98] sm:$0xff]  ;;  %v1675_v44 = vpack.c.bf16 %v1024_v39, %v1020_v35  ;;  %v1060_v39 = vld [vmem:[%s2996_s2 + $0x1c8] sm:$0xff] }
 0x11d   :  { %1811 = vpow2.f32 %v1400_v51  ;;  %v1402_v1 = vmul.f32 -1.442695, %v459_v63  ;;  %v1026_v51 = vld [vmem:[%s2996_s2 + $0xb8] sm:$0xff] }
 0x11e   :  { %1813 = vpow2.f32 %v1401_v52  ;;  %v1019_v52 = vld [vmem:[%s2996_s2 + $0x80] sm:$0xff]  ;;  %v1707_v63 = vpack.c.bf16 %v1026_v51, %v1022_v40  ;;  %v1064_v40 = vld [vmem:[%s2996_s2 + $0x1e8] sm:$0xff] }
 0x11f   :  { %1815 = vpow2.f32 %v1402_v1  ;;  %v1677_v1 = vpack.c.bf16 %v1023_v57, %v1019_v52  ;;  %v1695_v51 = vpack.c.bf16 %v1064_v40, %v1060_v39  ;;  %v1066_v52 = vld [vmem:[%s2996_s2 + $0x1f8] sm:$0xff]  ;;  %v1059_v57 = vld [vmem:[%s2996_s2 + $0x1c0] sm:$0xff]  ;;  %v953_v40 = vld [vmem:[%s2995_s1 + $0x70] sm:$0xff] }
 0x120   :  { %1817 = vtanh.f32 %v458_v6  ;;  %v1021_v6 = vld [vmem:[%s2996_s2 + $0x90] sm:$0xff] }
 0x127   :  { %v1812_v16 = vpop.eup %1811 }
 0x128   :  { %v1814_v19 = vpop.eup %1813  ;;  %v463_v20 = vadd.f32 1.0, %v1812_v16  ;;  %v1025_v16 = vld [vmem:[%s2996_s2 + $0xb0] sm:$0xff] }
 0x129   :  { %v469_v25 = vadd.f32 1.0, %v1814_v19  ;;  %v1816_v34 = vpop.eup %1815  ;;  %v1709_v19 = vpack.c.bf16 %v1025_v16, %v1021_v6  ;;  %v1061_v16 = vld [vmem:[%s2996_s2 + $0x1d0] sm:$0xff] }
 0x12a   :  { %1819 = vrcp.f32 %v463_v20  ;;  %v1818_v36 = vpop.eup %1817  ;;  %v476_v55 = vadd.f32 1.0, %v1816_v34  ;;  %v1028_v20 = vld [vmem:[%s2996_s2 + $0xc8] sm:$0xff]  ;;  %v1030_v34 = vld [vmem:[%s2996_s2 + $0xd8] sm:$0xff] }
 0x12b   :  { %1821 = vrcp.f32 %v469_v25  ;;  %v1032_v25 = vld [vmem:[%s2996_s2 + $0xe8] sm:$0xff] }
 0x12c   :  { %1823 = vrcp.f32 %v476_v55 }
 0x134   :  { %v1820_v43 = vpop.eup %1819 }
 0x135   :  { %v1822_v50 = vpop.eup %1821  ;;  %v481_v54 = vmul.f32 %v1820_v43, %v1818_v36  ;;  %v1679_v36 = vpack.c.bf16 %v1032_v25, %v1028_v20  ;;  %v1027_v43 = vld [vmem:[%s2996_s2 + $0xc0] sm:$0xff]  ;;  %v940_v20 = vld [vmem:[%s2995_s1 + $0x8] sm:$0xff] }
 0x136   :  { %v480_v60 = vmul.f32 %v1822_v50, %v479_v37  ;;  %v1824_v61 = vpop.eup %1823  ;;  %v1034_v37 = vld [vmem:[%s2996_s2 + $0xf8] sm:$0xff]  ;;  %v1031_v50 = vld [vmem:[%s2996_s2 + $0xe0] sm:$0xff] }
 0x137   :  { %v1681_v55 = vpack.c.bf16 %v1031_v50, %v1027_v43 }
 0x138   :  { %v482_v28 = vadd.f32 %v481_v54, %v480_v60  ;;  %v1711_v54 = vpack.c.bf16 %v1034_v37, %v1030_v34  ;;  %v1029_v60 = vld [vmem:[%s2996_s2 + $0xd0] sm:$0xff]  ;;  %v944_v34 = vld [vmem:[%s2995_s1 + $0x28] sm:$0xff]  ;;  %v946_v37 = vld [vmem:[%s2995_s1 + $0x38] sm:$0xff] }
 0x139   :  { %v1731_v43 = vpack.c.bf16 %v944_v34, %v940_v20  ;;  %v957_v34 = vld [vmem:[%s2995_s1 + $0x90] sm:$0xff] }
 0x13a   :  { %1825 = vtanh.f32 %v482_v28  ;;  %485 = vst [vmem:[#allocation3] sm:$0x3] %v482_v28  ;;  %v1033_v28 = vld [vmem:[%s2996_s2 + $0xf0] sm:$0xff] }
 0x144   :  { %v1826_v5 = vpop.eup %1825 }
 0x145   :  { %v484_v46 = vmul.f32 %v1826_v5, %v1824_v61  ;;  %v1713_v61 = vpack.c.bf16 %v1033_v28, %v1029_v60  ;;  %v1036_v5 = vld [vmem:[%s2996_s2 + $0x108] sm:$0xff] }
 0x147   :  { %486 = vst [vmem:[#allocation2] sm:$0x3] %v484_v46  ;;  %487 = vst [vmem:[#allocation4] sm:$0x3] %v484_v46  ;;  %v1040_v46 = vld [vmem:[%s2996_s2 + $0x128] sm:$0xff] }
 0x14e   :  { %v490_v30 = vld [vmem:[#allocation2] sm:$0x3] }
 0x14f   :  { %684 = vmatmul.mubr.f32.vlgmr.msra.gmra.mrb[2].mxu0 %v490_v30  ;;  %755 = vmatmul.mubr.f32.vlgmr.msra.gmra.mrb[2].mxu1 %v490_v30  ;;  %v1038_v30 = vld [vmem:[%s2996_s2 + $0x118] sm:$0xff] }
 0x150   :  { %1606 = vmatpush1.bf16.msra.mxu0 %v2243_v11  ;;  %1638 = vmatpush1.bf16.msra.mxu1 %v2247_v12  ;;  %v3016_v11 = vld [vmem:[#allocation7_spill] sm:$0xff]  ;;  %v3017_v12 = vld [vmem:[#allocation8_spill] sm:$0xff] }
 0x151   :  { %1608 = vmatprep.subr.bf16.mxu0 %v2249_v14  ;;  %1640 = vmatprep.subr.bf16.mxu1 %v2261_v24  ;;  %v3018_v14 = vld [vmem:[#allocation9_spill] sm:$0xff]  ;;  %v3019_v24 = vld [vmem:[#allocation10_spill] sm:$0xff] }
 0x152   :  { %825 = vmatprep.mubr.f32.mxu0 %v3015_v23  ;;  %896 = vmatprep.mubr.f32.mxu1 %v3015_v23 }
 0x154   :  { %1610 = vmatpush1.bf16.msra.mxu0 %v2279_v38  ;;  %1642 = vmatpush1.bf16.msra.mxu1 %v2283_v41  ;;  %v3020_v38 = vld [vmem:[#allocation11_spill] sm:$0xff]  ;;  %v3021_v41 = vld [vmem:[#allocation12_spill] sm:$0xff] }
 0x155   :  { %1612 = vmatprep.subr.bf16.mxu0 %v2285_v42  ;;  %1644 = vmatprep.subr.bf16.mxu1 %v2297_v48  ;;  %v3022_v42 = vld [vmem:[#allocation13_spill] sm:$0xff]  ;;  %v1004_v48 = vld [vmem:[%s2996_s2 + $0x8] sm:$0xff] }
 0x158   :  { %1614 = vmatpush1.bf16.msra.mxu0 %v2317_v62  ;;  %1646 = vmatpush1.bf16.msra.mxu1 %v2321_v2  ;;  %v1008_v62 = vld [vmem:[%s2996_s2 + $0x28] sm:$0xff]  ;;  %v1006_v2 = vld [vmem:[%s2996_s2 + $0x18] sm:$0xff] }
 0x159   :  { %1616 = vmatprep.subr.bf16.mxu0 %v2323_v4  ;;  %1648 = vmatprep.subr.bf16.mxu1 %v2335_v21  ;;  %v1667_v4 = vpack.c.bf16 %v1008_v62, %v1004_v48  ;;  %v1010_v21 = vld [vmem:[%s2996_s2 + $0x38] sm:$0xff]  ;;  %v1044_v62 = vld [vmem:[%s2996_s2 + $0x148] sm:$0xff] }
 0x15c   :  { %1618 = vmatpush1.bf16.msra.mxu0 %v2353_v33  ;;  %1650 = vmatpush1.bf16.msra.mxu1 %v3016_v11  ;;  %v1003_v33 = vld [vmem:[%s2996_s2] sm:$0xff]  ;;  %v1683_v11 = vpack.c.bf16 %v1040_v46, %v1036_v5 }
 0x15d   :  { %1620 = vmatprep.subr.bf16.mxu0 %v3017_v12  ;;  %1652 = vmatprep.subr.bf16.mxu1 %v3018_v14  ;;  %v1042_v12 = vld [vmem:[%s2996_s2 + $0x138] sm:$0xff]  ;;  %v1035_v14 = vld [vmem:[%s2996_s2 + $0x100] sm:$0xff] }
 0x160   :  { %1622 = vmatpush1.bf16.msra.mxu0 %v3019_v24  ;;  %1654 = vmatpush1.bf16.msra.mxu1 %v3020_v38  ;;  %v1039_v24 = vld [vmem:[%s2996_s2 + $0x120] sm:$0xff]  ;;  %v1715_v38 = vpack.c.bf16 %v1042_v12, %v1038_v30 }
 0x161   :  { %1624 = vmatprep.subr.bf16.mxu0 %v3021_v41  ;;  %1656 = vmatprep.subr.bf16.mxu1 %v3022_v42  ;;  %v1685_v41 = vpack.c.bf16 %v1039_v24, %v1035_v14  ;;  %v1037_v42 = vld [vmem:[%s2996_s2 + $0x110] sm:$0xff] }
 0x164   :  { %1626 = vmatpush1.bf16.msra.mxu0 %v2425_v15  ;;  %1658 = vmatpush1.bf16.msra.mxu1 %v2429_v7  ;;  %v1403_v7 = vld [vmem:[%s2994_s0 + $0x2] sm:$0x3]  ;;  %v1005_v15 = vld [vmem:[%s2996_s2 + $0x10] sm:$0xff] }
 0x165   :  { %1628 = vmatprep.subr.bf16.mxu0 %v2431_v58  ;;  %1660 = vmatprep.subr.bf16.mxu1 %v2443_v32  ;;  %v1007_v58 = vld [vmem:[%s2996_s2 + $0x20] sm:$0xff]  ;;  %v1009_v32 = vld [vmem:[%s2996_s2 + $0x30] sm:$0xff] }
 0x168   :  { %1630 = vmatpush1.bf16.msra.mxu0 %v2461_v10  ;;  %1662 = vmatpush1.bf16.msra.mxu1 %v2465_v49  ;;  %v1669_v49 = vpack.c.bf16 %v1007_v58, %v1003_v33  ;;  %v1701_v10 = vpack.c.bf16 %v1009_v32, %v1005_v15  ;;  %v1050_v33 = vld [vmem:[%s2996_s2 + $0x178] sm:$0xff]  ;;  %v1043_v58 = vld [vmem:[%s2996_s2 + $0x140] sm:$0xff]  ;;  %v1045_v32 = vld [vmem:[%s2996_s2 + $0x150] sm:$0xff] }
 0x169   :  { %1632 = vmatprep.subr.bf16.mxu0 %v2467_v29  ;;  %1664 = vmatprep.subr.bf16.mxu1 %v2476_v45  ;;  %v1699_v29 = vpack.c.bf16 %v1010_v21, %v1006_v2  ;;  %v1012_v45 = vld [vmem:[%s2996_s2 + $0x48] sm:$0xff] }
 0x16a   :  { %v1048_v2 = vld [vmem:[%s2996_s2 + $0x168] sm:$0xff] }
 0x16b   :  { %v1687_v21 = vpack.c.bf16 %v1048_v2, %v1044_v62 }
 0x16c   :  { %1634 = vmatpush1.bf16.msra.mxu0 %v2485_v47  ;;  %1666 = vmatpush1.bf16.msra.mxu1 %v2489_v56  ;;  %v1016_v47 = vld [vmem:[%s2996_s2 + $0x68] sm:$0xff]  ;;  %v1014_v56 = vld [vmem:[%s2996_s2 + $0x58] sm:$0xff] }
 0x16d   :  { %1668 = vmatprep.subr.bf16.mxu0 %v1667_v4  ;;  %1700 = vmatprep.subr.bf16.mxu1 %v1699_v29  ;;  %v1671_v59 = vpack.c.bf16 %v1016_v47, %v1012_v45  ;;  %v1703_v13 = vpack.c.bf16 %v1018_v3, %v1014_v56  ;;  %v1046_v4 = vld [vmem:[%s2996_s2 + $0x158] sm:$0xff]  ;;  %v1047_v29 = vld [vmem:[%s2996_s2 + $0x160] sm:$0xff]  ;;  %v1052_v47 = vld [vmem:[%s2996_s2 + $0x188] sm:$0xff] }
 0x16e   :  { %v1689_v15 = vpack.c.bf16 %v1047_v29, %v1043_v58  ;;  %v1056_v56 = vld [vmem:[%s2996_s2 + $0x1a8] sm:$0xff] }
 0x16f   :  { %826 = vmatmul.mubr.f32.vlgmr.msra.gmra.mrb[2].mxu0 %v1403_v7  ;;  %897 = vmatmul.mubr.f32.vlgmr.msra.gmra.mrb[2].mxu1 %v1403_v7  ;;  %v1041_v7 = vld [vmem:[%s2996_s2 + $0x130] sm:$0xff]  ;;  %v1691_v3 = vpack.c.bf16 %v1056_v56, %v1052_v47 }
 0x170   :  { %1131 = vmatprep.mubr.f32.mxu0 %v3015_v23  ;;  %1202 = vmatprep.mubr.f32.mxu1 %v3015_v23  ;;  %v1717_v48 = vpack.c.bf16 %v1041_v7, %v1037_v42  ;;  %v941_v47 = vld [vmem:[%s2995_s1 + $0x10] sm:$0xff] }
 0x171   :  { %1670 = vmatpush1.bf16.msra.mxu0 %v1669_v49  ;;  %1702 = vmatpush1.bf16.msra.mxu1 %v1701_v10  ;;  %v1719_v49 = vpack.c.bf16 %v1050_v33, %v1046_v4  ;;  %v1049_v10 = vld [vmem:[%s2996_s2 + $0x170] sm:$0xff] }
 0x172   :  { %1672 = vmatprep.subr.bf16.mxu0 %v1671_v59  ;;  %1704 = vmatprep.subr.bf16.mxu1 %v1703_v13  ;;  %v1721_v45 = vpack.c.bf16 %v1049_v10, %v1045_v32  ;;  %v1054_v59 = vld [vmem:[%s2996_s2 + $0x198] sm:$0xff]  ;;  %v1055_v13 = vld [vmem:[%s2996_s2 + $0x1a0] sm:$0xff]  ;;  %v945_v56 = vld [vmem:[%s2995_s1 + $0x30] sm:$0xff] }
 0x173   :  { %v1693_v26 = vpack.c.bf16 %v1055_v13, %v1051_v9  ;;  %v939_v10 = vld [vmem:[%s2995_s1] sm:$0xff]  ;;  %v954_v9 = vld [vmem:[%s2995_s1 + $0x78] sm:$0xff] }
 0x175   :  { %1674 = vmatpush1.bf16.msra.mxu0 %v1673_v17  ;;  %1706 = vmatpush1.bf16.msra.mxu1 %v1705_v31  ;;  %v1723_v17 = vpack.c.bf16 %v1058_v8, %v1054_v59  ;;  %v1057_v31 = vld [vmem:[%s2996_s2 + $0x1b0] sm:$0xff]  ;;  %v948_v59 = vld [vmem:[%s2995_s1 + $0x48] sm:$0xff]  ;;  %v950_v8 = vld [vmem:[%s2995_s1 + $0x58] sm:$0xff] }
 0x176   :  { %1676 = vmatprep.subr.bf16.mxu0 %v1675_v44  ;;  %1708 = vmatprep.subr.bf16.mxu1 %v1707_v63  ;;  %v1725_v35 = vpack.c.bf16 %v1057_v31, %v1053_v27  ;;  %v1062_v44 = vld [vmem:[%s2996_s2 + $0x1d8] sm:$0xff]  ;;  %v1063_v63 = vld [vmem:[%s2996_s2 + $0x1e0] sm:$0xff]  ;;  %v949_v31 = vld [vmem:[%s2995_s1 + $0x50] sm:$0xff]  ;;  %v1767_v39 = vpack.c.bf16 %v954_v9, %v950_v8 }
 0x177   :  { %v1697_v6 = vpack.c.bf16 %v1063_v63, %v1059_v57  ;;  %v951_v27 = vld [vmem:[%s2995_s1 + $0x60] sm:$0xff]  ;;  %v958_v57 = vld [vmem:[%s2995_s1 + $0x98] sm:$0xff]  ;;  %v992_v8 = vld [vmem:[%s2995_s1 + $0x1a8] sm:$0xff] }
 0x178   :  { %v962_v63 = vld [vmem:[%s2995_s1 + $0xb8] sm:$0xff] }
 0x179   :  { %1678 = vmatpush1.bf16.msra.mxu0 %v1677_v1  ;;  %1710 = vmatpush1.bf16.msra.mxu1 %v1709_v19  ;;  %v1727_v1 = vpack.c.bf16 %v1066_v52, %v1062_v44  ;;  %v1065_v19 = vld [vmem:[%s2996_s2 + $0x1f0] sm:$0xff]  ;;  %v956_v44 = vld [vmem:[%s2995_s1 + $0x88] sm:$0xff]  ;;  %v990_v9 = vld [vmem:[%s2995_s1 + $0x198] sm:$0xff] }
 0x17a   :  { %1680 = vmatprep.subr.bf16.mxu0 %v1679_v36  ;;  %1712 = vmatprep.subr.bf16.mxu1 %v1711_v54  ;;  %v1729_v25 = vpack.c.bf16 %v1065_v19, %v1061_v16  ;;  %v942_v36 = vld [vmem:[%s2995_s1 + $0x18] sm:$0xff]  ;;  %v955_v16 = vld [vmem:[%s2995_s1 + $0x80] sm:$0xff] }
 0x17b   :  { %v1763_v50 = vpack.c.bf16 %v946_v37, %v942_v36  ;;  %v959_v19 = vld [vmem:[%s2995_s1 + $0xa0] sm:$0xff]  ;;  %v961_v36 = vld [vmem:[%s2995_s1 + $0xb0] sm:$0xff]  ;;  %v964_v37 = vld [vmem:[%s2995_s1 + $0xc8] sm:$0xff] }
 0x17d   :  { %1682 = vmatpush1.bf16.msra.mxu0 %v1681_v55  ;;  %1714 = vmatpush1.bf16.msra.mxu1 %v1713_v61 }
 0x17e   :  { %1684 = vmatprep.subr.bf16.mxu0 %v1683_v11  ;;  %1716 = vmatprep.subr.bf16.mxu1 %v1715_v38 }
 0x181   :  { %1686 = vmatpush1.bf16.msra.mxu0 %v1685_v41  ;;  %1718 = vmatpush1.bf16.msra.mxu1 %v1717_v48 }
 0x182   :  { %1688 = vmatprep.subr.bf16.mxu0 %v1687_v21  ;;  %1720 = vmatprep.subr.bf16.mxu1 %v1719_v49  ;;  %v926_v21 = vld [vmem:[#allocation3] sm:$0x3] }
 0x185   :  { %1690 = vmatpush1.bf16.msra.mxu0 %v1689_v15  ;;  %1722 = vmatpush1.bf16.msra.mxu1 %v1721_v45  ;;  %v943_v45 = vld [vmem:[%s2995_s1 + $0x20] sm:$0xff] }
 0x186   :  { %1692 = vmatprep.subr.bf16.mxu0 %v1691_v3  ;;  %1724 = vmatprep.subr.bf16.mxu1 %v1723_v17  ;;  %v952_v3 = vld [vmem:[%s2995_s1 + $0x68] sm:$0xff]  ;;  %v1733_v13 = vpack.c.bf16 %v943_v45, %v939_v10  ;;  %v1765_v17 = vpack.c.bf16 %v945_v56, %v941_v47  ;;  %v983_v10 = vld [vmem:[%s2995_s1 + $0x160] sm:$0xff]  ;;  %v981_v56 = vld [vmem:[%s2995_s1 + $0x150] sm:$0xff] }
 0x189   :  { %1694 = vmatpush1.bf16.msra.mxu0 %v1693_v26  ;;  %1726 = vmatpush1.bf16.msra.mxu1 %v1725_v35  ;;  %v947_v26 = vld [vmem:[%s2995_s1 + $0x40] sm:$0xff]  ;;  %v1735_v35 = vpack.c.bf16 %v952_v3, %v948_v59  ;;  %v985_v59 = vld [vmem:[%s2995_s1 + $0x170] sm:$0xff]  ;;  %v988_v3 = vld [vmem:[%s2995_s1 + $0x188] sm:$0xff] }
 0x18a   :  { %1696 = vmatprep.subr.bf16.mxu0 %v1695_v51  ;;  %1728 = vmatprep.subr.bf16.mxu1 %v1727_v1  ;;  %v960_v51 = vld [vmem:[%s2995_s1 + $0xa8] sm:$0xff]  ;;  %v1737_v1 = vpack.c.bf16 %v951_v27, %v947_v26  ;;  %v1785_v26 = vpack.c.bf16 %v985_v59, %v981_v56  ;;  %v987_v27 = vld [vmem:[%s2995_s1 + $0x180] sm:$0xff] }
 0x18b   :  { %v1739_v20 = vpack.c.bf16 %v960_v51, %v956_v44  ;;  %v993_v44 = vld [vmem:[%s2995_s1 + $0x1b0] sm:$0xff]  ;;  %v996_v51 = vld [vmem:[%s2995_s1 + $0x1c8] sm:$0xff] }
 0x18d   :  { %1698 = vmatpush1.bf16.msra.mxu0 %v1697_v6  ;;  %1730 = vmatpush1.bf16.msra.mxu1 %v1729_v25  ;;  %v1769_v6 = vpack.c.bf16 %v953_v40, %v949_v31  ;;  %v1771_v25 = vpack.c.bf16 %v962_v63, %v958_v57  ;;  %v991_v31 = vld [vmem:[%s2995_s1 + $0x1a0] sm:$0xff]  ;;  %v989_v40 = vld [vmem:[%s2995_s1 + $0x190] sm:$0xff]  ;;  %v998_v57 = vld [vmem:[%s2995_s1 + $0x1d8] sm:$0xff] }
 0x18e   :  { %1732 = vmatprep.subr.bf16.mxu0 %v1731_v43  ;;  %1764 = vmatprep.subr.bf16.mxu1 %v1763_v50  ;;  %v968_v43 = vld [vmem:[%s2995_s1 + $0xe8] sm:$0xff]  ;;  %v966_v50 = vld [vmem:[%s2995_s1 + $0xd8] sm:$0xff] }
 0x18f   :  { %v1002_v63 = vld [vmem:[%s2995_s1 + $0x1f8] sm:$0xff] }
 0x242   :  { %v827_v54 = vpop.f32.mrb[2].mxu0  ;;  %v898_v55 = vpop.f32.mrb[2].mxu1 }
 0x243   :  { %v903_v60 = vadd.f32 %v827_v54, %v2536_v18  ;;  %v829_v28 = vpop.f32.mrb[3].mxu0  ;;  %v900_v61 = vpop.f32.mrb[3].mxu1  ;;  %v905_v14 = vadd.f32 %v898_v55, %v2545_v0  ;;  %v970_v54 = vld [vmem:[%s2995_s1 + $0xf8] sm:$0xff]  ;;  %v1741_v55 = vpack.c.bf16 %v959_v19, %v955_v16  ;;  %v995_v16 = vld [vmem:[%s2995_s1 + $0x1c0] sm:$0xff] }
 0x244   :  { %v904_v5 = vadd.f32 %v829_v28, %v2538_v22  ;;  %v906_v11 = vadd.f32 %v900_v61, %v2542_v53  ;;  %v963_v28 = vld [vmem:[%s2995_s1 + $0xc0] sm:$0xff] }
 0x245   :  { %v1404_v46 = vmul.f32 -1.442695, %v903_v60  ;;  %v1773_v60 = vpack.c.bf16 %v961_v36, %v957_v34  ;;  %v967_v61 = vld [vmem:[%s2995_s1 + $0xe0] sm:$0xff]  ;;  %v997_v34 = vld [vmem:[%s2995_s1 + $0x1d0] sm:$0xff] }
 0x246   :  { %v1405_v30 = vmul.f32 -1.442695, %v904_v5  ;;  %v1406_v12 = vmul.f32 -1.442695, %v906_v11  ;;  %v1743_v5 = vpack.c.bf16 %v968_v43, %v964_v37  ;;  %v972_v11 = vld [vmem:[%s2995_s1 + $0x108] sm:$0xff]  ;;  %v1001_v36 = vld [vmem:[%s2995_s1 + $0x1f0] sm:$0xff] }
 0x247   :  { %1827 = vpow2.f32 %v1404_v46  ;;  %v1775_v46 = vpack.c.bf16 %v970_v54, %v966_v50  ;;  %v1793_v43 = vpack.c.bf16 %v1001_v36, %v997_v34  ;;  %v1407_v50 = vld [vmem:[%s2994_s0 + $0x4] sm:$0x3]  ;;  %s1884_s0 = smov [#allocation4]  }
 0x248   :  { %1829 = vpow2.f32 %v1405_v30  ;;  %v969_v30 = vld [vmem:[%s2995_s1 + $0xf0] sm:$0xff] }
 0x249   :  { %1831 = vpow2.f32 %v1406_v12  ;;  %v976_v12 = vld [vmem:[%s2995_s1 + $0x128] sm:$0xff] }
 0x24a   :  { %1833 = vtanh.f32 %v905_v14  ;;  %v974_v14 = vld [vmem:[%s2995_s1 + $0x118] sm:$0xff] }
 0x251   :  { %v1828_v24 = vpop.eup %1827 }
 0x252   :  { %v1830_v38 = vpop.eup %1829  ;;  %v910_v41 = vadd.f32 1.0, %v1828_v24  ;;  %v978_v24 = vld [vmem:[%s2995_s1 + $0x138] sm:$0xff] }
 0x253   :  { %v916_v42 = vadd.f32 1.0, %v1830_v38  ;;  %v1832_v7 = vpop.eup %1831  ;;  %v1745_v38 = vpack.c.bf16 %v967_v61, %v963_v28 }
 0x254   :  { %1835 = vrcp.f32 %v910_v41  ;;  %v1834_v48 = vpop.eup %1833  ;;  %v923_v33 = vadd.f32 1.0, %v1832_v7  ;;  %v975_v7 = vld [vmem:[%s2995_s1 + $0x120] sm:$0xff] }
 0x255   :  { %1837 = vrcp.f32 %v916_v42  ;;  %v971_v42 = vld [vmem:[%s2995_s1 + $0x100] sm:$0xff] }
 0x256   :  { %1839 = vrcp.f32 %v923_v33  ;;  %v984_v33 = vld [vmem:[%s2995_s1 + $0x168] sm:$0xff] }
 0x25e   :  { %v1836_v62 = vpop.eup %1835 }
 0x25f   :  { %v1838_v2 = vpop.eup %1837  ;;  %v928_v4 = vmul.f32 %v1836_v62, %v1834_v48  ;;  %v1747_v48 = vpack.c.bf16 %v976_v12, %v972_v11  ;;  %v1779_v62 = vpack.c.bf16 %v978_v24, %v974_v14 }
 0x260   :  { %v927_v58 = vmul.f32 %v1838_v2, %v926_v21  ;;  %v1840_v49 = vpop.eup %1839  ;;  %v973_v2 = vld [vmem:[%s2995_s1 + $0x110] sm:$0xff]  ;;  %v980_v21 = vld [vmem:[%s2995_s1 + $0x148] sm:$0xff] }
 0x261   :  { %v1751_v45 = vpack.c.bf16 %v984_v33, %v980_v21 }
 0x262   :  { %v929_v29 = vadd.f32 %v928_v4, %v927_v58  ;;  %v977_v4 = vld [vmem:[%s2995_s1 + $0x130] sm:$0xff]  ;;  %v982_v58 = vld [vmem:[%s2995_s1 + $0x158] sm:$0xff] }
 0x264   :  { %1841 = vtanh.f32 %v929_v29  ;;  %932 = vst [vmem:[#allocation3] sm:$0x3] %v929_v29  ;;  %v986_v29 = vld [vmem:[%s2995_s1 + $0x178] sm:$0xff] }
 0x265   :  { %v1783_v47 = vpack.c.bf16 %v986_v29, %v982_v58 }
 0x26e   :  { %v1842_v15 = vpop.eup %1841 }
 0x26f   :  { %v931_v32 = vmul.f32 %v1842_v15, %v1840_v49  ;;  %v1749_v49 = vpack.c.bf16 %v975_v7, %v971_v42  ;;  %v1781_v15 = vpack.c.bf16 %v977_v4, %v973_v2 }
 0x271   :  { %933 = vst [vmem:[#allocation2] sm:$0x3] %v931_v32  ;;  %935 = vst [vmem:[#allocation4 + $0x2] sm:$0x3] %v931_v32  ;;  %v979_v32 = vld [vmem:[%s2995_s1 + $0x140] sm:$0xff] }
 0x278   :  { %v938_v52 = vld [vmem:[#allocation2] sm:$0x3] }
 0x279   :  { %1132 = vmatmul.mubr.f32.vlgmr.msra.gmra.mrb[4].mxu0 %v938_v52  ;;  %1203 = vmatmul.mubr.f32.vlgmr.msra.gmra.mrb[4].mxu1 %v938_v52  ;;  %v1000_v52 = vld [vmem:[%s2995_s1 + $0x1e8] sm:$0xff] }
 0x27a   :  { %1734 = vmatpush1.bf16.msra.mxu0 %v1733_v13  ;;  %1766 = vmatpush1.bf16.msra.mxu1 %v1765_v17  ;;  %v994_v13 = vld [vmem:[%s2995_s1 + $0x1b8] sm:$0xff]  ;;  %v1753_v17 = vpack.c.bf16 %v983_v10, %v979_v32  ;;  %v1759_v19 = vpack.c.bf16 %v1000_v52, %v996_v51 }
 0x27b   :  { %1736 = vmatprep.subr.bf16.mxu0 %v1735_v35  ;;  %1768 = vmatprep.subr.bf16.mxu1 %v1767_v39  ;;  %v1755_v35 = vpack.c.bf16 %v992_v8, %v988_v3  ;;  %v1787_v39 = vpack.c.bf16 %v994_v13, %v990_v9 }
 0x27c   :  { %1273 = vmatprep.mubr.f32.mxu0 %v3015_v23  ;;  %1344 = vmatprep.mubr.f32.mxu1 %v3015_v23  ;;  %v965_v23 = vld [vmem:[%s2995_s1 + $0xd0] sm:$0xff] }
 0x27d   :  { %v1777_v41 = vpack.c.bf16 %v969_v30, %v965_v23 }
 0x27e   :  { %1738 = vmatpush1.bf16.msra.mxu0 %v1737_v1  ;;  %1770 = vmatpush1.bf16.msra.mxu1 %v1769_v6  ;;  %v1757_v1 = vpack.c.bf16 %v991_v31, %v987_v27  ;;  %v1789_v6 = vpack.c.bf16 %v993_v44, %v989_v40 }
 0x27f   :  { %1740 = vmatprep.subr.bf16.mxu0 %v1739_v20  ;;  %1772 = vmatprep.subr.bf16.mxu1 %v1771_v25  ;;  %v1791_v20 = vpack.c.bf16 %v1002_v63, %v998_v57  ;;  %v999_v25 = vld [vmem:[%s2995_s1 + $0x1e0] sm:$0xff]  ;;  %s1389_s1 = sshll.u32 %s1884_s0, 4  ;;  %s1390_s1 = int_to_ptr.vmem [resolvable:$true] %s1389_s1 }
 0x280   :  { %v1761_v37 = vpack.c.bf16 %v999_v25, %v995_v16  ;;  %s1859_s26 = scalar_lea.vmem %s1390_s1, 96  ;;  %p1864_p1 = scmp.lt.s32.totalorder %s1390_s1, %s1390_s1 }
 0x281   :  { %p1860_p0 = scmp.ne.s32.totalorder %s1390_s1, %s1859_s26  ;;  %p1865_p2 = scmp.lt.s32.totalorder %s1859_s26, %s1859_s26 }
 0x282   :  { %1742 = vmatpush1.bf16.msra.mxu0 %v1741_v55  ;;  %1774 = vmatpush1.bf16.msra.mxu1 %v1773_v60 }
 0x283   :  { %1744 = vmatprep.subr.bf16.mxu0 %v1743_v5  ;;  %1776 = vmatprep.subr.bf16.mxu1 %v1775_v46  ;;  %p1866_p3 = por %p1865_p2, %p1864_p1 }
 0x285   :  { %p1867_p4 = pnand %p1866_p3, %p1860_p0 }
 0x286   :  { %1746 = vmatpush1.bf16.msra.mxu0 %v1745_v38  ;;  %1778 = vmatpush1.bf16.msra.mxu1 %v1777_v41 }
 0x287   :  { %1748 = vmatprep.subr.bf16.mxu0 %v1747_v48  ;;  %1780 = vmatprep.subr.bf16.mxu1 %v1779_v62  ;;  %v1374_v62 = vld [vmem:[#allocation3] sm:$0x3] }
 0x28a   :  { %1750 = vmatpush1.bf16.msra.mxu0 %v1749_v49  ;;  %1782 = vmatpush1.bf16.msra.mxu1 %v1781_v15 }
 0x28b   :  { %1752 = vmatprep.subr.bf16.mxu0 %v1751_v45  ;;  %1784 = vmatprep.subr.bf16.mxu1 %v1783_v47 }
 0x28e   :  { %1754 = vmatpush1.bf16.msra.mxu0 %v1753_v17  ;;  %1786 = vmatpush1.bf16.msra.mxu1 %v1785_v26 }
 0x28f   :  { %1756 = vmatprep.subr.bf16.mxu0 %v1755_v35  ;;  %1788 = vmatprep.subr.bf16.mxu1 %v1787_v39 }
 0x292   :  { %1758 = vmatpush1.bf16.msra.mxu0 %v1757_v1  ;;  %1790 = vmatpush1.bf16.msra.mxu1 %v1789_v6 }
 0x293   :  { %1760 = vmatprep.subr.bf16.mxu0 %v1759_v19  ;;  %1792 = vmatprep.subr.bf16.mxu1 %v1791_v20 }
 0x296   :  { %1762 = vmatpush1.bf16.msra.mxu0 %v1761_v37  ;;  %1794 = vmatpush1.bf16.msra.mxu1 %v1793_v43 }
 0x299   :  { %1274 = vmatmul.mubr.f32.vlgmr.msra.gmra.mrb[4].mxu0 %v1407_v50  ;;  %1345 = vmatmul.mubr.f32.vlgmr.msra.gmra.mrb[4].mxu1 %v1407_v50 }
 0x36c   :  { %v1275_v54 = vpop.f32.mrb[4].mxu0  ;;  %v1346_v55 = vpop.f32.mrb[4].mxu1 }
 0x36d   :  { %v1351_v60 = vadd.f32 %v1275_v54, %v2536_v18  ;;  %v1277_v28 = vpop.f32.mrb[5].mxu0  ;;  %v1348_v61 = vpop.f32.mrb[5].mxu1  ;;  %v1353_v12 = vadd.f32 %v1346_v55, %v2545_v0 }
 0x36e   :  { %v1352_v5 = vadd.f32 %v1277_v28, %v2538_v22  ;;  %v1354_v30 = vadd.f32 %v1348_v61, %v2542_v53 }
 0x36f   :  { %v1408_v46 = vmul.f32 -1.442695, %v1351_v60 }
 0x370   :  { %v1409_v23 = vmul.f32 -1.442695, %v1352_v5  ;;  %v1410_v11 = vmul.f32 -1.442695, %v1354_v30 }
 0x371   :  { %1843 = vpow2.f32 %v1408_v46 }
 0x372   :  { %1845 = vpow2.f32 %v1409_v23 }
 0x373   :  { %1847 = vpow2.f32 %v1410_v11 }
 0x374   :  { %1849 = vtanh.f32 %v1353_v12 }
 0x37b   :  { %v1844_v14 = vpop.eup %1843 }
 0x37c   :  { %v1846_v24 = vpop.eup %1845  ;;  %v1358_v38 = vadd.f32 1.0, %v1844_v14 }
 0x37d   :  { %v1364_v41 = vadd.f32 1.0, %v1846_v24  ;;  %v1848_v18 = vpop.eup %1847 }
 0x37e   :  { %1851 = vrcp.f32 %v1358_v38  ;;  %v1850_v42 = vpop.eup %1849  ;;  %v1371_v2 = vadd.f32 1.0, %v1848_v18 }
 0x37f   :  { %1853 = vrcp.f32 %v1364_v41 }
 0x380   :  { %1855 = vrcp.f32 %v1371_v2 }
 0x388   :  { %v1852_v22 = vpop.eup %1851 }
 0x389   :  { %v1854_v7 = vpop.eup %1853  ;;  %v1376_v48 = vmul.f32 %v1852_v22, %v1850_v42 }
 0x38a   :  { %v1375_v4 = vmul.f32 %v1854_v7, %v1374_v62  ;;  %v1856_v0 = vpop.eup %1855 }
 0x38c   :  { %v1377_v53 = vadd.f32 %v1376_v48, %v1375_v4 }
 0x38e   :  { %1857 = vtanh.f32 %v1377_v53  ;;  %1380 = vst [vmem:[#allocation3] sm:$0x3] %v1377_v53 }
 0x398   :  { %v1858_v21 = vpop.eup %1857 }
 0x399   :  { %v1379_v33 = vmul.f32 %v1858_v21, %v1856_v0 }
 0x39b   :  { %1381 = vst [vmem:[#allocation2] sm:$0x3] %v1379_v33  ;;  %1383 = vst [vmem:[#allocation4 + $0x4] sm:$0x3] %v1379_v33 }
 0x39c   :  { %1870 = shalt.err (!%p1867_p4)
}
 0x39d   :  { %s1871_s29 = scalar_lea.hbm %s2998_s4, 96 }
 0x39e   :  { %p1872_p5 = scmp.ne.s32.totalorder %s2998_s4, %s1871_s29  ;;  %p1875_p6 = scmp.lt.u32.totalorder %s1871_s29, %s2998_s4 }
 0x3a0   :  { %p1877_p7 = pnand %p1875_p6, %p1872_p5 }
 0x3a2   :  { %1880 = shalt.err (!%p1877_p7)
}
 0x3a3   :  { %s1885_s8 = smov 32   ;;  %s1886_s9 = smov 2  }
 0x3a4   :  { %1395 = dma.vmem_to_hbm [thread:$0]  %s1390_s1, 96, %s2998_s4, [#allocation5], %s1885_s8, %s1885_s8, %s1886_s9  }
 0x3a5   :  { %1881 = dma.done.wait [#allocation5], 96  }
 0x3a6   :  { %1882 = vsyncadd [#allocation5], 4294967200 }
 0x3a7   :  { %1399 = vsyncpa [#allocation5], 1 }

// kernel: temporal_projected_discriminator.8
= control target key start
LH: loop header
LB: loop body
LE: loop exit
PB: predicated region body
PF: predicated region fallthrough
CT: control target
= control target key end

     0   :  { %s15475_s15 = smov 0   ;;  %s18438_s0 = inlined_call_operand.vmem [shape: bf16[256,8448], index: 0, kind: input, shape index: {}]   ;;  %s18439_s1 = inlined_call_operand.vmem [shape: bf16[8448,128], index: 1, kind: input, shape index: {}]   ;;  %s18440_s2 = inlined_call_operand.vmem [shape: f32[1,128], index: 2, kind: input, shape index: {}]   ;;  %s18441_s3 = inlined_call_operand.vmem [shape: f32[1,128], index: 3, kind: input, shape index: {}]   ;;  %s18442_s4 = inlined_call_operand.vmem [shape: f32[256,128], index: 4, kind: output, shape index: {}]  }
   0x1 LB: > { %s10916_s16 = sadd.s32 4294967295, %s15448_s15   ;;  %p10920_p0 = scmp.ge.s32.totalorder %s15448_s15, 1  ;;  %s15448_s15 = sphi %s15475_s15, %s14_s15  }
   0x2   : > { %p164_p1 = scmp.lt.s32.totalorder %s15448_s15, 3 }
   0x4   : > { %p165_p2 = pnand %p10920_p0, %p164_p1 }
   0x5   : > { %v14122_v0 = vld [vmem:[%s18439_s1 + $0x40] sm:$0xff] (!%p165_p2)   ;;  %s10921_s19 = sshll.u32 (!%p165_p2), %s10916_s16, 4  ;;  %v14124_v2 = vld [vmem:[%s18439_s1 + $0x48] sm:$0xff] (!%p165_p2)   ;;  %v14126_v4 = vld [vmem:[%s18439_s1 + $0x50] sm:$0xff] (!%p165_p2)  }
   0x6   : > { %168 = sbr.rel (%p165_p2) target bundleno = 1312 (0x520), region = 36  ;;  %v14123_v1 = vld [vmem:[%s18439_s1] sm:$0xff] (!%p165_p2)   ;;  %11985 = vmatprep.subr.bf16.mxu0 (!%p165_p2), %v14122_v0  ;;  %14097 = vmatprep.subr.bf16.mxu1 (!%p165_p2), %v14122_v0  ;;  %p192_p3 = scmp.lt.s32.totalorder (!%p165_p2), %s10921_s19, 31  ;;  %v14125_v3 = vld [vmem:[%s18439_s1 + $0x8] sm:$0xff] (!%p165_p2)   ;;  %v14127_v5 = vld [vmem:[%s18439_s1 + $0x10] sm:$0xff] (!%p165_p2)  }
   0x7   : > { %11986 = vmatpush3.bf16.msra.mxu0 (!%p165_p2), %v14123_v1  ;;  %14105 = vmatpush3.bf16.msra.mxu1 (!%p165_p2), %v14123_v1  ;;  %v14128_v6 = vld [vmem:[%s18439_s1 + $0x58] sm:$0xff] (!%p165_p2)   ;;  %v14130_v8 = vld [vmem:[%s18439_s1 + $0x60] sm:$0xff] (!%p165_p2)   ;;  %v14132_v10 = vld [vmem:[%s18439_s1 + $0x68] sm:$0xff] (!%p165_p2)  }
   0x8   : > { %11987 = vmatprep.subr.bf16.mxu0 (!%p165_p2), %v14124_v2  ;;  %14098 = vmatprep.subr.bf16.mxu1 (!%p165_p2), %v14124_v2  ;;  %v14129_v7 = vld [vmem:[%s18439_s1 + $0x18] sm:$0xff] (!%p165_p2)   ;;  %v14131_v9 = vld [vmem:[%s18439_s1 + $0x20] sm:$0xff] (!%p165_p2)   ;;  %v14133_v13 = vld [vmem:[%s18439_s1 + $0x28] sm:$0xff] (!%p165_p2)  }
   0x9   : > { %v14134_v14 = vld [vmem:[%s18439_s1 + $0x70] sm:$0xff] (!%p165_p2)   ;;  %v14136_v16 = vld [vmem:[%s18439_s1 + $0x78] sm:$0xff] (!%p165_p2)   ;;  %v14144_v20 = vld [vmem:[%s18439_s1 + $0xc0] sm:$0xff] (!%p165_p2)  }
   0xa   : > { %v14135_v15 = vld [vmem:[%s18439_s1 + $0x30] sm:$0xff] (!%p165_p2)   ;;  %v14137_v17 = vld [vmem:[%s18439_s1 + $0x38] sm:$0xff] (!%p165_p2)   ;;  %v14145_v21 = vld [vmem:[%s18439_s1 + $0x140] sm:$0xff] (!%p165_p2)  }
   0xb   : > { %11988 = vmatpush3.bf16.msra.mxu0 (!%p165_p2), %v14125_v3  ;;  %14106 = vmatpush3.bf16.msra.mxu1 (!%p165_p2), %v14125_v3  ;;  %v14146_v22 = vld [vmem:[%s18439_s1 + $0x80] sm:$0xff] (!%p165_p2)   ;;  %v14148_v24 = vld [vmem:[%s18439_s1 + $0xc8] sm:$0xff] (!%p165_p2)   ;;  %v14158_v30 = vld [vmem:[%s18439_s1 + $0xd0] sm:$0xff] (!%p165_p2)  }
   0xc   : > { %11989 = vmatprep.subr.bf16.mxu0 (!%p165_p2), %v14126_v4  ;;  %14099 = vmatprep.subr.bf16.mxu1 (!%p165_p2), %v14126_v4  ;;  %v14147_v23 = vld [vmem:[%s18439_s1 + $0x100] sm:$0xff] (!%p165_p2)   ;;  %v14149_v25 = vld [vmem:[%s18439_s1 + $0x148] sm:$0xff] (!%p165_p2)   ;;  %v14159_v32 = vld [vmem:[%s18439_s1 + $0x150] sm:$0xff] (!%p165_p2)  }
   0xd   : > { %s18444_s19 = smov (!%p192_p3, %s10921_s19), 31  ;;  %v14150_v27 = vld [vmem:[%s18439_s1 + $0x88] sm:$0xff]   ;;  %v14160_v34 = vld [vmem:[%s18439_s1 + $0x90] sm:$0xff]   ;;  %v14162_v36 = vld [vmem:[%s18439_s1 + $0xd8] sm:$0xff]  }
   0xe   : > { %s14113_s6 = smul.u32 264, %s18444_s19  ;;  %v14151_v29 = vld [vmem:[%s18439_s1 + $0x108] sm:$0xff]   ;;  %v14161_v35 = vld [vmem:[%s18439_s1 + $0x110] sm:$0xff]   ;;  %v14163_v37 = vld [vmem:[%s18439_s1 + $0x158] sm:$0xff]   ;;  %s10924_s20 = sshll.u32 %s18444_s19, 3 }
   0xf   : > { %11990 = vmatpush3.bf16.msra.mxu0 %v14127_v5  ;;  %14107 = vmatpush3.bf16.msra.mxu1 %v14127_v5  ;;  %v14164_v39 = vld [vmem:[%s18439_s1 + $0x98] sm:$0xff]   ;;  %v14172_v42 = vld [vmem:[%s18439_s1 + $0xe0] sm:$0xff]   ;;  %v14176_v48 = vld [vmem:[%s18439_s1 + $0xe8] sm:$0xff]   ;;  %s18372_s25 = scalar_lea.vmem %s18442_s4, %s10924_s20 }
  0x10   : > { %11991 = vmatprep.subr.bf16.mxu0 %v14128_v6  ;;  %14100 = vmatprep.subr.bf16.mxu1 %v14128_v6  ;;  %s15516_s13 = scalar_lea.vmem %s18438_s0, %s14113_s6  ;;  %v14165_v41 = vld [vmem:[%s18439_s1 + $0x118] sm:$0xff]   ;;  %v14173_v45 = vld [vmem:[%s18439_s1 + $0x160] sm:$0xff]   ;;  %v14177_v49 = vld [vmem:[%s18439_s1 + $0x168] sm:$0xff]  }
  0x11   : > { %v14140_v11 = vld [vmem:[%s15516_s13 + $0x4] ss:$264 sps:$4 sm:$0xff]   ;;  %v14138_v18 = vld [vmem:[%s15516_s13] ss:$264 sps:$4 sm:$0xff]   ;;  %v14152_v26 = vld [vmem:[%s15516_s13 + $0x214] ss:$264 sps:$4 sm:$0xff]  }
  0x12   : > { %v14143_v12 = vld [vmem:[%s15516_s13 + $0x844] ss:$264 sps:$4 sm:$0xff]   ;;  %7629 = vmatprep.mubr.bf16.mxu0 %v14140_v11  ;;  %v14141_v19 = vld [vmem:[%s15516_s13 + $0x840] ss:$264 sps:$4 sm:$0xff]   ;;  %v14154_v28 = vld [vmem:[%s15516_s13 + $0xa54] ss:$264 sps:$4 sm:$0xff]  }
  0x13   : > { %11992 = vmatpush3.bf16.msra.mxu0 %v14129_v7  ;;  %14108 = vmatpush3.bf16.msra.mxu1 %v14129_v7  ;;  %v14156_v31 = vld [vmem:[%s15516_s13 + $0x210] ss:$264 sps:$4 sm:$0xff]   ;;  %v14166_v38 = vld [vmem:[%s15516_s13 + $0x424] ss:$264 sps:$4 sm:$0xff]   ;;  %v14170_v43 = vld [vmem:[%s15516_s13 + $0x420] ss:$264 sps:$4 sm:$0xff]  }
  0x14   : > { %11993 = vmatprep.subr.bf16.mxu0 %v14130_v8  ;;  %14101 = vmatprep.subr.bf16.mxu1 %v14130_v8  ;;  %v14157_v33 = vld [vmem:[%s15516_s13 + $0xa50] ss:$264 sps:$4 sm:$0xff]   ;;  %v14168_v40 = vld [vmem:[%s15516_s13 + $0xc64] ss:$264 sps:$4 sm:$0xff]   ;;  %v14171_v44 = vld [vmem:[%s15516_s13 + $0xc60] ss:$264 sps:$4 sm:$0xff]  }
  0x15   : > { %7661 = vmatprep.mubr.bf16.mxu1 %v14143_v12  ;;  %v14174_v46 = vld [vmem:[%s18439_s1 + $0xa0] sm:$0xff]   ;;  %v14180_v50 = vld [vmem:[%s15516_s13 + $0x634] ss:$264 sps:$4 sm:$0xff]   ;;  %v14178_v52 = vld [vmem:[%s18439_s1 + $0xa8] sm:$0xff]  }
  0x16   : > { %v14175_v47 = vld [vmem:[%s18439_s1 + $0x120] sm:$0xff]   ;;  %v14182_v51 = vld [vmem:[%s15516_s13 + $0xe74] ss:$264 sps:$4 sm:$0xff]   ;;  %v14179_v53 = vld [vmem:[%s18439_s1 + $0x128] sm:$0xff]  }
  0x17   : > { %11994 = vmatpush3.bf16.msra.mxu0 %v14131_v9  ;;  %14109 = vmatpush3.bf16.msra.mxu1 %v14131_v9  ;;  %v14186_v54 = vld [vmem:[%s18439_s1 + $0xf0] sm:$0xff]   ;;  %v14190_v60 = vld [vmem:[%s18439_s1 + $0xf8] sm:$0xff]   ;;  %v14200_v4 = vld [vmem:[%s18439_s1 + $0x1c0] sm:$0xff]  }
  0x18   : > { %11995 = vmatprep.subr.bf16.mxu0 %v14132_v10  ;;  %14102 = vmatprep.subr.bf16.mxu1 %v14132_v10  ;;  %v14184_v55 = vld [vmem:[%s15516_s13 + $0x630] ss:$264 sps:$4 sm:$0xff]   ;;  %v14196_v0 = vld [vmem:[%s15516_s13 + $0xc] ss:$264 sps:$4 sm:$0xff]   ;;  %v14201_v5 = vld [vmem:[%s18439_s1 + $0x180] sm:$0xff]  }
  0x19   : > { %v14185_v56 = vld [vmem:[%s15516_s13 + $0xe70] ss:$264 sps:$4 sm:$0xff]   ;;  %v14199_v3 = vld [vmem:[%s15516_s13 + $0x14] ss:$264 sps:$4 sm:$0xff]   ;;  %v14202_v6 = vld [vmem:[%s18439_s1 + $0x240] sm:$0xff]  }
  0x1a   : > { %v14187_v57 = vld [vmem:[%s18439_s1 + $0x170] sm:$0xff]   ;;  %v14191_v61 = vld [vmem:[%s18439_s1 + $0x178] sm:$0xff]   ;;  %v14203_v7 = vld [vmem:[%s18439_s1 + $0x200] sm:$0xff]  }
  0x1b   : > { %11996 = vmatpush3.bf16.msra.mxu0 %v14133_v13  ;;  %14110 = vmatpush3.bf16.msra.mxu1 %v14133_v13  ;;  %v14188_v58 = vld [vmem:[%s18439_s1 + $0xb0] sm:$0xff]   ;;  %v14192_v62 = vld [vmem:[%s18439_s1 + $0xb8] sm:$0xff]   ;;  %v14206_v9 = vld [vmem:[%s15516_s13 + $0x224] ss:$264 sps:$4 sm:$0xff]  }
  0x1c   : > { %11997 = vmatprep.subr.bf16.mxu0 %v14134_v14  ;;  %14103 = vmatprep.subr.bf16.mxu1 %v14134_v14  ;;  %v14189_v59 = vld [vmem:[%s18439_s1 + $0x130] sm:$0xff]   ;;  %v14193_v63 = vld [vmem:[%s18439_s1 + $0x138] sm:$0xff]   ;;  %v14209_v11 = vld [vmem:[%s15516_s13 + $0x220] ss:$264 sps:$4 sm:$0xff]  }
  0x1d   : > { %v14194_v1 = vld [vmem:[%s15516_s13 + $0x8] ss:$264 sps:$4 sm:$0xff]   ;;  %v14204_v8 = vld [vmem:[%s15516_s13 + $0x21c] ss:$264 sps:$4 sm:$0xff]   ;;  %v14208_v10 = vld [vmem:[%s15516_s13 + $0x218] ss:$264 sps:$4 sm:$0xff]  }
  0x1e   : > { %v14197_v2 = vld [vmem:[%s15516_s13 + $0x10] ss:$264 sps:$4 sm:$0xff]   ;;  %v14210_v12 = vld [vmem:[%s18439_s1 + $0x1c8] sm:$0xff]  }
  0x1f   : > { %11998 = vmatpush3.bf16.msra.mxu0 %v14135_v15  ;;  %14111 = vmatpush3.bf16.msra.mxu1 %v14135_v15  ;;  %v14211_v13 = vld [vmem:[%s18439_s1 + $0x188] sm:$0xff]  }
  0x20   : > { %11999 = vmatprep.subr.bf16.mxu0 %v14136_v16  ;;  %14104 = vmatprep.subr.bf16.mxu1 %v14136_v16  ;;  %v14212_v14 = vld [vmem:[%s18439_s1 + $0x248] sm:$0xff]  }
  0x21   : > { %v14213_v15 = vld [vmem:[%s18439_s1 + $0x208] sm:$0xff]  }
  0x22   : > { %v14214_v16 = vld [vmem:[%s15516_s13 + $0x42c] ss:$264 sps:$4 sm:$0xff]  }
  0x23   : > { %12000 = vmatpush3.bf16.msra.mxu0 %v14137_v17  ;;  %14112 = vmatpush3.bf16.msra.mxu1 %v14137_v17  ;;  %v14216_v17 = vld [vmem:[%s15516_s13 + $0x434] ss:$264 sps:$4 sm:$0xff]  }
  0x24   : > { %12049 = vmatprep.subr.bf16.mxu1 %v14144_v20  ;;  %12113 = vmatprep.subr.bf16.mxu0 %v14145_v21  ;;  %v14219_v20 = vld [vmem:[%s15516_s13 + $0x430] ss:$264 sps:$4 sm:$0xff]  }
  0x25   : > { %v14221_v21 = vld [vmem:[%s18439_s1 + $0x190] sm:$0xff]  }
  0x26   : > { %7630 = vmatmul.mubr.bf16.vlgmr.msra.gmra.mrb[0].mxu0 %v14138_v18  ;;  %7662 = vmatmul.mubr.bf16.vlgmr.msra.gmra.mrb[0].mxu1 %v14141_v19  ;;  %v14220_v18 = vld [vmem:[%s18439_s1 + $0x1d0] sm:$0xff]  }
  0x27   : > { %12050 = vmatpush3.bf16.msra.mxu1 %v14146_v22  ;;  %12114 = vmatpush3.bf16.msra.mxu0 %v14147_v23  ;;  %v14218_v19 = vld [vmem:[%s15516_s13 + $0x428] ss:$264 sps:$4 sm:$0xff]  }
  0x28   : > { %12051 = vmatprep.subr.bf16.mxu1 %v14148_v24  ;;  %12115 = vmatprep.subr.bf16.mxu0 %v14149_v25  ;;  %v14222_v22 = vld [vmem:[%s18439_s1 + $0x250] sm:$0xff]   ;;  %v14224_v24 = vld [vmem:[%s15516_s13 + $0x63c] ss:$264 sps:$4 sm:$0xff]  }
  0x29   : > { %7637 = vmatprep.mubr.bf16.mxu0 %v14152_v26  ;;  %7669 = vmatprep.mubr.bf16.mxu1 %v14154_v28  ;;  %v14223_v23 = vld [vmem:[%s18439_s1 + $0x210] sm:$0xff]   ;;  %v14226_v25 = vld [vmem:[%s15516_s13 + $0x644] ss:$264 sps:$4 sm:$0xff]   ;;  %v14230_v26 = vld [vmem:[%s18439_s1 + $0x1d8] sm:$0xff]  }
  0x2a   : > { %v14228_v28 = vld [vmem:[%s15516_s13 + $0x638] ss:$264 sps:$4 sm:$0xff]  }
  0x2b   : > { %12052 = vmatpush3.bf16.msra.mxu1 %v14150_v27  ;;  %12116 = vmatpush3.bf16.msra.mxu0 %v14151_v29  ;;  %v14231_v27 = vld [vmem:[%s18439_s1 + $0x198] sm:$0xff]  }
  0x2c   : > { %12053 = vmatprep.subr.bf16.mxu1 %v14158_v30  ;;  %12117 = vmatprep.subr.bf16.mxu0 %v14159_v32  ;;  %v14232_v29 = vld [vmem:[%s18439_s1 + $0x258] sm:$0xff]   ;;  %v14234_v32 = vld [vmem:[%s15516_s13 + $0x84c] ss:$264 sps:$4 sm:$0xff]  }
  0x2d   : > { %v14233_v30 = vld [vmem:[%s18439_s1 + $0x218] sm:$0xff]  }
  0x2e   : > { %7638 = vmatmul.mubr.bf16.gmra.mrb[4].mxu0 %v14156_v31  ;;  %7670 = vmatmul.mubr.bf16.gmra.mrb[4].mxu1 %v14157_v33  ;;  %v14229_v31 = vld [vmem:[%s15516_s13 + $0x640] ss:$264 sps:$4 sm:$0xff]   ;;  %v14236_v33 = vld [vmem:[%s15516_s13 + $0x854] ss:$264 sps:$4 sm:$0xff]  }
  0x2f   : > { %12054 = vmatpush3.bf16.msra.mxu1 %v14160_v34  ;;  %12118 = vmatpush3.bf16.msra.mxu0 %v14161_v35  ;;  %v14240_v34 = vld [vmem:[%s18439_s1 + $0x1e0] sm:$0xff]  }
  0x30   : > { %12055 = vmatprep.subr.bf16.mxu1 %v14162_v36  ;;  %12119 = vmatprep.subr.bf16.mxu0 %v14163_v37  ;;  %v14241_v35 = vld [vmem:[%s18439_s1 + $0x1a0] sm:$0xff]  }
  0x31   : > { %7645 = vmatprep.mubr.bf16.mxu0 %v14166_v38  ;;  %7677 = vmatprep.mubr.bf16.mxu1 %v14168_v40  ;;  %v14242_v36 = vld [vmem:[%s18439_s1 + $0x260] sm:$0xff]   ;;  %v14238_v38 = vld [vmem:[%s15516_s13 + $0x848] ss:$264 sps:$4 sm:$0xff]  }
  0x32   : > { %v14243_v37 = vld [vmem:[%s18439_s1 + $0x220] sm:$0xff]  }
  0x33   : > { %12056 = vmatpush3.bf16.msra.mxu1 %v14164_v39  ;;  %12120 = vmatpush3.bf16.msra.mxu0 %v14165_v41  ;;  %v14239_v39 = vld [vmem:[%s15516_s13 + $0x850] ss:$264 sps:$4 sm:$0xff]   ;;  %v14244_v40 = vld [vmem:[%s15516_s13 + $0xa5c] ss:$264 sps:$4 sm:$0xff]  }
  0x34   : > { %12057 = vmatprep.subr.bf16.mxu1 %v14172_v42  ;;  %12121 = vmatprep.subr.bf16.mxu0 %v14173_v45  ;;  %v14246_v41 = vld [vmem:[%s15516_s13 + $0xa64] ss:$264 sps:$4 sm:$0xff]  }
  0x35   : > { %v14250_v42 = vld [vmem:[%s18439_s1 + $0x1e8] sm:$0xff]  }
  0x36   : > { %7646 = vmatmul.mubr.bf16.gmra.mrb[8].mxu0 %v14170_v43  ;;  %7678 = vmatmul.mubr.bf16.gmra.mrb[8].mxu1 %v14171_v44  ;;  %v14251_v43 = vld [vmem:[%s18439_s1 + $0x1a8] sm:$0xff]  }
  0x37   : > { %12058 = vmatpush3.bf16.msra.mxu1 %v14174_v46  ;;  %12122 = vmatpush3.bf16.msra.mxu0 %v14175_v47  ;;  %v14252_v44 = vld [vmem:[%s18439_s1 + $0x268] sm:$0xff]   ;;  %v14248_v46 = vld [vmem:[%s15516_s13 + $0xa58] ss:$264 sps:$4 sm:$0xff]  }
  0x38   : > { %12059 = vmatprep.subr.bf16.mxu1 %v14176_v48  ;;  %12123 = vmatprep.subr.bf16.mxu0 %v14177_v49  ;;  %v14253_v45 = vld [vmem:[%s18439_s1 + $0x228] sm:$0xff]   ;;  %v14256_v49 = vld [vmem:[%s15516_s13 + $0xc74] ss:$264 sps:$4 sm:$0xff]  }
  0x39   : > { %7653 = vmatprep.mubr.bf16.mxu0 %v14180_v50  ;;  %7685 = vmatprep.mubr.bf16.mxu1 %v14182_v51  ;;  %v14249_v47 = vld [vmem:[%s15516_s13 + $0xa60] ss:$264 sps:$4 sm:$0xff]   ;;  %v14254_v48 = vld [vmem:[%s15516_s13 + $0xc6c] ss:$264 sps:$4 sm:$0xff]  }
  0x3a   : > { %v14260_v50 = vld [vmem:[%s18439_s1 + $0x1f0] sm:$0xff]  }
  0x3b   : > { %12060 = vmatpush3.bf16.msra.mxu1 %v14178_v52  ;;  %12124 = vmatpush3.bf16.msra.mxu0 %v14179_v53  ;;  %v14261_v51 = vld [vmem:[%s18439_s1 + $0x1b0] sm:$0xff]  }
  0x3c   : > { %12061 = vmatprep.subr.bf16.mxu1 %v14186_v54  ;;  %12125 = vmatprep.subr.bf16.mxu0 %v14187_v57  ;;  %v14262_v52 = vld [vmem:[%s18439_s1 + $0x270] sm:$0xff]   ;;  %v14264_v57 = vld [vmem:[%s15516_s13 + $0xe7c] ss:$264 sps:$4 sm:$0xff]  }
  0x3d   : > { %v14263_v53 = vld [vmem:[%s18439_s1 + $0x230] sm:$0xff]  }
  0x3e   : > { %7654 = vmatmul.mubr.bf16.gmra.mrb[12].mxu0 %v14184_v55  ;;  %7686 = vmatmul.mubr.bf16.gmra.mrb[12].mxu1 %v14185_v56  ;;  %v14258_v54 = vld [vmem:[%s15516_s13 + $0xc68] ss:$264 sps:$4 sm:$0xff]   ;;  %v14270_v56 = vld [vmem:[%s18439_s1 + $0x1f8] sm:$0xff]  }
  0x3f   : > { %12062 = vmatpush3.bf16.msra.mxu1 %v14188_v58  ;;  %12126 = vmatpush3.bf16.msra.mxu0 %v14189_v59  ;;  %v14259_v55 = vld [vmem:[%s15516_s13 + $0xc70] ss:$264 sps:$4 sm:$0xff]   ;;  %v14266_v58 = vld [vmem:[%s15516_s13 + $0xe84] ss:$264 sps:$4 sm:$0xff]  }
  0x40   : > { %12063 = vmatprep.subr.bf16.mxu1 %v14190_v60  ;;  %12127 = vmatprep.subr.bf16.mxu0 %v14191_v61  ;;  %v14271_v59 = vld [vmem:[%s18439_s1 + $0x1b8] sm:$0xff]  }
  0x41   : > { %7726 = vmatprep.mubr.bf16.mxu1 %v14196_v0  ;;  %7823 = vmatprep.mubr.bf16.mxu0 %v14199_v3  ;;  %v14272_v60 = vld [vmem:[%s18439_s1 + $0x278] sm:$0xff]   ;;  %v14269_v0 = vld [vmem:[%s15516_s13 + $0xe80] ss:$264 sps:$4 sm:$0xff]   ;;  %v14279_v3 = vld [vmem:[%s15516_s13 + $0x24] ss:$264 sps:$4 sm:$0xff]  }
  0x42   : > { %v14273_v61 = vld [vmem:[%s18439_s1 + $0x238] sm:$0xff]  }
  0x43   : > { %12064 = vmatpush3.bf16.msra.mxu1 %v14192_v62  ;;  %12128 = vmatpush3.bf16.msra.mxu0 %v14193_v63  ;;  %v14280_v62 = vld [vmem:[%s18439_s1 + $0x2c0] sm:$0xff]  }
  0x44   : > { %12177 = vmatprep.subr.bf16.mxu1 %v14200_v4  ;;  %12241 = vmatprep.subr.bf16.mxu0 %v14202_v6  ;;  %v14268_v63 = vld [vmem:[%s15516_s13 + $0xe78] ss:$264 sps:$4 sm:$0xff]  }
  0x45   : > { %v14274_v4 = vld [vmem:[%s15516_s13 + $0x18] ss:$264 sps:$4 sm:$0xff]  }
  0x46   : > { %7727 = vmatmul.mubr.bf16.vlgmr.msra.gmra.mrb[16].mxu1 %v14194_v1  ;;  %7824 = vmatmul.mubr.bf16.vlgmr.msra.gmra.mrb[16].mxu0 %v14197_v2  ;;  %v14282_v1 = vld [vmem:[%s18439_s1 + $0x340] sm:$0xff]  }
  0x47   : > { %12178 = vmatpush3.bf16.msra.mxu1 %v14201_v5  ;;  %12242 = vmatpush3.bf16.msra.mxu0 %v14203_v7  ;;  %v14276_v2 = vld [vmem:[%s15516_s13 + $0x1c] ss:$264 sps:$4 sm:$0xff]   ;;  %v14277_v5 = vld [vmem:[%s15516_s13 + $0x20] ss:$264 sps:$4 sm:$0xff]  }
  0x48   : > { %7734 = vmatprep.mubr.bf16.mxu1 %v14204_v8  ;;  %7831 = vmatprep.mubr.bf16.mxu0 %v14206_v9  ;;  %v14281_v6 = vld [vmem:[%s18439_s1 + $0x280] sm:$0xff]   ;;  %v14284_v8 = vld [vmem:[%s15516_s13 + $0x22c] ss:$264 sps:$4 sm:$0xff]  }
  0x49   : > { %12179 = vmatprep.subr.bf16.mxu1 %v14210_v12  ;;  %12243 = vmatprep.subr.bf16.mxu0 %v14212_v14  ;;  %v14283_v7 = vld [vmem:[%s18439_s1 + $0x300] sm:$0xff]   ;;  %v14286_v9 = vld [vmem:[%s15516_s13 + $0x234] ss:$264 sps:$4 sm:$0xff]   ;;  %v14292_v12 = vld [vmem:[%s18439_s1 + $0x348] sm:$0xff]  }
  0x4a   : > { %v14300_v14 = vld [vmem:[%s18439_s1 + $0x2d0] sm:$0xff]  }
  0x4b   : > { %12180 = vmatpush3.bf16.msra.mxu1 %v14211_v13  ;;  %12244 = vmatpush3.bf16.msra.mxu0 %v14213_v15  ;;  %v14293_v13 = vld [vmem:[%s18439_s1 + $0x308] sm:$0xff]  }
  0x4c   : > { %12181 = vmatprep.subr.bf16.mxu1 %v14220_v18  ;;  %12245 = vmatprep.subr.bf16.mxu0 %v14222_v22  ;;  %v14288_v15 = vld [vmem:[%s15516_s13 + $0x228] ss:$264 sps:$4 sm:$0xff]   ;;  %v14294_v18 = vld [vmem:[%s15516_s13 + $0x43c] ss:$264 sps:$4 sm:$0xff]  }
  0x4d   : > { %v14310_v22 = vld [vmem:[%s18439_s1 + $0x2d8] sm:$0xff]  }
  0x4e   : > { %7735 = vmatmul.mubr.bf16.gmra.mrb[20].mxu1 %v14208_v10  ;;  %7832 = vmatmul.mubr.bf16.gmra.mrb[20].mxu0 %v14209_v11  ;;  %v14290_v10 = vld [vmem:[%s18439_s1 + $0x2c8] sm:$0xff]  }
  0x4f   : > { %7742 = vmatprep.mubr.bf16.mxu1 %v14214_v16  ;;  %7839 = vmatprep.mubr.bf16.mxu0 %v14216_v17  ;;  %v14291_v11 = vld [vmem:[%s18439_s1 + $0x288] sm:$0xff]   ;;  %v14289_v16 = vld [vmem:[%s15516_s13 + $0x230] ss:$264 sps:$4 sm:$0xff]  }
  0x50   : > { %12182 = vmatpush3.bf16.msra.mxu1 %v14221_v21  ;;  %12246 = vmatpush3.bf16.msra.mxu0 %v14223_v23  ;;  %v14302_v17 = vld [vmem:[%s18439_s1 + $0x350] sm:$0xff]   ;;  %v14312_v23 = vld [vmem:[%s18439_s1 + $0x358] sm:$0xff]  }
  0x51   : > { %12183 = vmatprep.subr.bf16.mxu1 %v14230_v26  ;;  %12247 = vmatprep.subr.bf16.mxu0 %v14232_v29  ;;  %v14303_v21 = vld [vmem:[%s18439_s1 + $0x310] sm:$0xff]   ;;  %v14311_v26 = vld [vmem:[%s18439_s1 + $0x298] sm:$0xff]  }
  0x52   : > { %v14306_v29 = vld [vmem:[%s15516_s13 + $0x654] ss:$264 sps:$4 sm:$0xff]  }
  0x54   : > { %12184 = vmatpush3.bf16.msra.mxu1 %v14231_v27  ;;  %12248 = vmatpush3.bf16.msra.mxu0 %v14233_v30  ;;  %v14313_v27 = vld [vmem:[%s18439_s1 + $0x318] sm:$0xff]   ;;  %v14320_v30 = vld [vmem:[%s18439_s1 + $0x2e0] sm:$0xff]  }
  0x55   : > { %12185 = vmatprep.subr.bf16.mxu1 %v14240_v34  ;;  %12249 = vmatprep.subr.bf16.mxu0 %v14242_v36  ;;  %v14308_v34 = vld [vmem:[%s15516_s13 + $0x648] ss:$264 sps:$4 sm:$0xff]  }
  0x56   : > { %7743 = vmatmul.mubr.bf16.gmra.mrb[24].mxu1 %v14218_v19  ;;  %7840 = vmatmul.mubr.bf16.gmra.mrb[24].mxu0 %v14219_v20  ;;  %v14296_v19 = vld [vmem:[%s15516_s13 + $0x444] ss:$264 sps:$4 sm:$0xff]   ;;  %v14301_v20 = vld [vmem:[%s18439_s1 + $0x290] sm:$0xff]  }
  0x57   : > { %7750 = vmatprep.mubr.bf16.mxu1 %v14224_v24  ;;  %7847 = vmatprep.mubr.bf16.mxu0 %v14226_v25  ;;  %v14298_v24 = vld [vmem:[%s15516_s13 + $0x438] ss:$264 sps:$4 sm:$0xff]   ;;  %v14330_v36 = vld [vmem:[%s18439_s1 + $0x2e8] sm:$0xff]  }
  0x58   : > { %12186 = vmatpush3.bf16.msra.mxu1 %v14241_v35  ;;  %12250 = vmatpush3.bf16.msra.mxu0 %v14243_v37  ;;  %v14299_v25 = vld [vmem:[%s15516_s13 + $0x440] ss:$264 sps:$4 sm:$0xff]   ;;  %v14309_v35 = vld [vmem:[%s15516_s13 + $0x650] ss:$264 sps:$4 sm:$0xff]   ;;  %v14314_v37 = vld [vmem:[%s15516_s13 + $0x85c] ss:$264 sps:$4 sm:$0xff]  }
  0x59   : > { %12187 = vmatprep.subr.bf16.mxu1 %v14250_v42  ;;  %12251 = vmatprep.subr.bf16.mxu0 %v14252_v44  ;;  %v14340_v42 = vld [vmem:[%s18439_s1 + $0x2f0] sm:$0xff]   ;;  %v14319_v44 = vld [vmem:[%s15516_s13 + $0x860] ss:$264 sps:$4 sm:$0xff]  }
  0x5c   : > { %12188 = vmatpush3.bf16.msra.mxu1 %v14251_v43  ;;  %12252 = vmatpush3.bf16.msra.mxu0 %v14253_v45  ;;  %v14318_v43 = vld [vmem:[%s15516_s13 + $0x858] ss:$264 sps:$4 sm:$0xff]   ;;  %v14341_v45 = vld [vmem:[%s18439_s1 + $0x2b0] sm:$0xff]  }
  0x5d   : > { %12189 = vmatprep.subr.bf16.mxu1 %v14260_v50  ;;  %12253 = vmatprep.subr.bf16.mxu0 %v14262_v52  ;;  %v14350_v50 = vld [vmem:[%s18439_s1 + $0x2f8] sm:$0xff]  }
  0x5e   : > { %7751 = vmatmul.mubr.bf16.gmra.mrb[28].mxu1 %v14228_v28  ;;  %7848 = vmatmul.mubr.bf16.gmra.mrb[28].mxu0 %v14229_v31  ;;  %v14304_v28 = vld [vmem:[%s15516_s13 + $0x64c] ss:$264 sps:$4 sm:$0xff]   ;;  %v14321_v31 = vld [vmem:[%s18439_s1 + $0x2a0] sm:$0xff]   ;;  %v14352_v52 = vld [vmem:[%s18439_s1 + $0x378] sm:$0xff]  }
  0x5f   : > { %7758 = vmatprep.mubr.bf16.mxu1 %v14234_v32  ;;  %7855 = vmatprep.mubr.bf16.mxu0 %v14236_v33  ;;  %v14322_v32 = vld [vmem:[%s18439_s1 + $0x360] sm:$0xff]  }
  0x60   : > { %12190 = vmatpush3.bf16.msra.mxu1 %v14261_v51  ;;  %12254 = vmatpush3.bf16.msra.mxu0 %v14263_v53  ;;  %v14323_v33 = vld [vmem:[%s18439_s1 + $0x320] sm:$0xff]   ;;  %v14351_v51 = vld [vmem:[%s18439_s1 + $0x2b8] sm:$0xff]  }
  0x61   : > { %12191 = vmatprep.subr.bf16.mxu1 %v14270_v56  ;;  %12255 = vmatprep.subr.bf16.mxu0 %v14272_v60  ;;  %v14353_v53 = vld [vmem:[%s18439_s1 + $0x338] sm:$0xff]  }
  0x62   : > { %v14334_v56 = vld [vmem:[%s15516_s13 + $0xc7c] ss:$264 sps:$4 sm:$0xff]   ;;  %v14338_v60 = vld [vmem:[%s15516_s13 + $0xc78] ss:$264 sps:$4 sm:$0xff]  }
  0x64   : > { %12192 = vmatpush3.bf16.msra.mxu1 %v14271_v59  ;;  %12256 = vmatpush3.bf16.msra.mxu0 %v14273_v61  ;;  %v14362_v59 = vld [vmem:[%s18439_s1 + $0x440] sm:$0xff]  }
  0x65   : > { %12305 = vmatprep.subr.bf16.mxu1 %v14280_v62  ;;  %12369 = vmatprep.subr.bf16.mxu0 %v14282_v1  ;;  %v14339_v61 = vld [vmem:[%s15516_s13 + $0xc80] ss:$264 sps:$4 sm:$0xff]   ;;  %v14344_v62 = vld [vmem:[%s15516_s13 + $0xe8c] ss:$264 sps:$4 sm:$0xff]   ;;  %v14349_v1 = vld [vmem:[%s15516_s13 + $0xe90] ss:$264 sps:$4 sm:$0xff]  }
  0x66   : > { %7759 = vmatmul.mubr.bf16.gmra.mrb[32].mxu1 %v14238_v38  ;;  %7856 = vmatmul.mubr.bf16.gmra.mrb[32].mxu0 %v14239_v39  ;;  %v14316_v38 = vld [vmem:[%s15516_s13 + $0x864] ss:$264 sps:$4 sm:$0xff]  }
  0x67   : > { %7766 = vmatprep.mubr.bf16.mxu1 %v14244_v40  ;;  %7863 = vmatprep.mubr.bf16.mxu0 %v14246_v41  ;;  %v14331_v39 = vld [vmem:[%s18439_s1 + $0x2a8] sm:$0xff]  }
  0x68   : > { %v14332_v40 = vld [vmem:[%s18439_s1 + $0x368] sm:$0xff]  }
  0x69   : > { %v14333_v41 = vld [vmem:[%s18439_s1 + $0x328] sm:$0xff]  }
  0x6e   : > { %7767 = vmatmul.mubr.bf16.gmra.mrb[36].mxu1 %v14248_v46  ;;  %7864 = vmatmul.mubr.bf16.gmra.mrb[36].mxu0 %v14249_v47  ;;  %v14324_v46 = vld [vmem:[%s15516_s13 + $0xa6c] ss:$264 sps:$4 sm:$0xff]  }
  0x6f   : > { %7774 = vmatprep.mubr.bf16.mxu1 %v14254_v48  ;;  %7871 = vmatprep.mubr.bf16.mxu0 %v14256_v49  ;;  %v14342_v47 = vld [vmem:[%s18439_s1 + $0x370] sm:$0xff]  }
  0x70   : > { %v14343_v48 = vld [vmem:[%s18439_s1 + $0x330] sm:$0xff]  }
  0x71   : > { %v14326_v49 = vld [vmem:[%s15516_s13 + $0xa74] ss:$264 sps:$4 sm:$0xff]  }
  0x76   : > { %7775 = vmatmul.mubr.bf16.gmra.mrb[40].mxu1 %v14258_v54  ;;  %7872 = vmatmul.mubr.bf16.gmra.mrb[40].mxu0 %v14259_v55  ;;  %v14328_v54 = vld [vmem:[%s15516_s13 + $0xa68] ss:$264 sps:$4 sm:$0xff]  }
  0x77   : > { %7782 = vmatprep.mubr.bf16.mxu1 %v14264_v57  ;;  %7879 = vmatprep.mubr.bf16.mxu0 %v14266_v58  ;;  %v14329_v55 = vld [vmem:[%s15516_s13 + $0xa70] ss:$264 sps:$4 sm:$0xff]   ;;  %v14336_v57 = vld [vmem:[%s15516_s13 + $0xc84] ss:$264 sps:$4 sm:$0xff]  }
  0x78   : > { %v14360_v58 = vld [vmem:[%s18439_s1 + $0x3c0] sm:$0xff]  }
  0x7e   : > { %7783 = vmatmul.mubr.bf16.gmra.mrb[44].mxu1 %v14268_v63  ;;  %7880 = vmatmul.mubr.bf16.gmra.mrb[44].mxu0 %v14269_v0  ;;  %v14346_v63 = vld [vmem:[%s15516_s13 + $0xe94] ss:$264 sps:$4 sm:$0xff]   ;;  %v14348_v0 = vld [vmem:[%s15516_s13 + $0xe88] ss:$264 sps:$4 sm:$0xff]  }
  0x7f   : > { %7920 = vmatprep.mubr.bf16.mxu1 %v14276_v2  ;;  %8017 = vmatprep.mubr.bf16.mxu0 %v14279_v3  ;;  %v14356_v2 = vld [vmem:[%s15516_s13 + $0x2c] ss:$264 sps:$4 sm:$0xff]  }
  0x80   : > { %v14359_v3 = vld [vmem:[%s15516_s13 + $0x34] ss:$264 sps:$4 sm:$0xff]  }
  0x86   : > { %7921 = vmatmul.mubr.bf16.vlgmr.msra.gmra.mrb[48].mxu1 %v14274_v4  ;;  %8018 = vmatmul.mubr.bf16.vlgmr.msra.gmra.mrb[48].mxu0 %v14277_v5  ;;  %v14354_v4 = vld [vmem:[%s15516_s13 + $0x28] ss:$264 sps:$4 sm:$0xff]  }
  0x87   : > { %12306 = vmatpush3.bf16.msra.mxu1 %v14281_v6  ;;  %12370 = vmatpush3.bf16.msra.mxu0 %v14283_v7  ;;  %v14357_v5 = vld [vmem:[%s15516_s13 + $0x30] ss:$264 sps:$4 sm:$0xff]   ;;  %v14361_v6 = vld [vmem:[%s18439_s1 + $0x380] sm:$0xff]  }
  0x88   : > { %7928 = vmatprep.mubr.bf16.mxu1 %v14284_v8  ;;  %8025 = vmatprep.mubr.bf16.mxu0 %v14286_v9  ;;  %v14363_v7 = vld [vmem:[%s18439_s1 + $0x400] sm:$0xff]  }
  0x89   : > { %12307 = vmatprep.subr.bf16.mxu1 %v14290_v10  ;;  %12371 = vmatprep.subr.bf16.mxu0 %v14292_v12  ;;  %v14364_v8 = vld [vmem:[%s15516_s13 + $0x23c] ss:$264 sps:$4 sm:$0xff]   ;;  %v14370_v10 = vld [vmem:[%s18439_s1 + $0x3c8] sm:$0xff]  }
  0x8a   : > { %v14366_v9 = vld [vmem:[%s15516_s13 + $0x244] ss:$264 sps:$4 sm:$0xff]  }
  0x8b   : > { %12308 = vmatpush3.bf16.msra.mxu1 %v14291_v11  ;;  %12372 = vmatpush3.bf16.msra.mxu0 %v14293_v13  ;;  %v14372_v11 = vld [vmem:[%s18439_s1 + $0x448] sm:$0xff]  }
  0x8c   : > { %12309 = vmatprep.subr.bf16.mxu1 %v14300_v14  ;;  %12373 = vmatprep.subr.bf16.mxu0 %v14302_v17  ;;  %v14371_v12 = vld [vmem:[%s18439_s1 + $0x388] sm:$0xff]   ;;  %v14380_v14 = vld [vmem:[%s18439_s1 + $0x3d0] sm:$0xff]  }
  0x8d   : > { %v14373_v13 = vld [vmem:[%s18439_s1 + $0x408] sm:$0xff]   ;;  %v14382_v17 = vld [vmem:[%s18439_s1 + $0x450] sm:$0xff]  }
  0x8e   : > { %7929 = vmatmul.mubr.bf16.gmra.mrb[52].mxu1 %v14288_v15  ;;  %8026 = vmatmul.mubr.bf16.gmra.mrb[52].mxu0 %v14289_v16  ;;  %v14368_v15 = vld [vmem:[%s15516_s13 + $0x238] ss:$264 sps:$4 sm:$0xff]  }
  0x8f   : > { %7936 = vmatprep.mubr.bf16.mxu1 %v14294_v18  ;;  %8033 = vmatprep.mubr.bf16.mxu0 %v14296_v19  ;;  %v14369_v16 = vld [vmem:[%s15516_s13 + $0x240] ss:$264 sps:$4 sm:$0xff]   ;;  %v14374_v18 = vld [vmem:[%s15516_s13 + $0x44c] ss:$264 sps:$4 sm:$0xff]  }
  0x90   : > { %12310 = vmatpush3.bf16.msra.mxu1 %v14301_v20  ;;  %12374 = vmatpush3.bf16.msra.mxu0 %v14303_v21  ;;  %v14376_v19 = vld [vmem:[%s15516_s13 + $0x454] ss:$264 sps:$4 sm:$0xff]  }
  0x91   : > { %12311 = vmatprep.subr.bf16.mxu1 %v14310_v22  ;;  %12375 = vmatprep.subr.bf16.mxu0 %v14312_v23  ;;  %v14381_v20 = vld [vmem:[%s18439_s1 + $0x390] sm:$0xff]   ;;  %v14390_v22 = vld [vmem:[%s18439_s1 + $0x3d8] sm:$0xff]  }
  0x92   : > { %v14383_v21 = vld [vmem:[%s18439_s1 + $0x410] sm:$0xff]   ;;  %v14392_v23 = vld [vmem:[%s18439_s1 + $0x458] sm:$0xff]  }
  0x94   : > { %12312 = vmatpush3.bf16.msra.mxu1 %v14311_v26  ;;  %12376 = vmatpush3.bf16.msra.mxu0 %v14313_v27  ;;  %v14378_v26 = vld [vmem:[%s15516_s13 + $0x448] ss:$264 sps:$4 sm:$0xff]  }
  0x95   : > { %12313 = vmatprep.subr.bf16.mxu1 %v14320_v30  ;;  %12377 = vmatprep.subr.bf16.mxu0 %v14322_v32  ;;  %v14379_v27 = vld [vmem:[%s15516_s13 + $0x450] ss:$264 sps:$4 sm:$0xff]   ;;  %v14384_v30 = vld [vmem:[%s15516_s13 + $0x65c] ss:$264 sps:$4 sm:$0xff]  }
  0x96   : > { %7937 = vmatmul.mubr.bf16.gmra.mrb[56].mxu1 %v14298_v24  ;;  %8034 = vmatmul.mubr.bf16.gmra.mrb[56].mxu0 %v14299_v25  ;;  %v14391_v24 = vld [vmem:[%s18439_s1 + $0x398] sm:$0xff]   ;;  %v14401_v32 = vld [vmem:[%s18439_s1 + $0x3a0] sm:$0xff]  }
  0x97   : > { %7944 = vmatprep.mubr.bf16.mxu1 %v14304_v28  ;;  %8041 = vmatprep.mubr.bf16.mxu0 %v14306_v29  ;;  %v14393_v25 = vld [vmem:[%s18439_s1 + $0x418] sm:$0xff]   ;;  %v14400_v28 = vld [vmem:[%s18439_s1 + $0x3e0] sm:$0xff]  }
  0x98   : > { %12314 = vmatpush3.bf16.msra.mxu1 %v14321_v31  ;;  %12378 = vmatpush3.bf16.msra.mxu0 %v14323_v33  ;;  %v14402_v29 = vld [vmem:[%s18439_s1 + $0x460] sm:$0xff]  }
  0x99   : > { %12315 = vmatprep.subr.bf16.mxu1 %v14330_v36  ;;  %12379 = vmatprep.subr.bf16.mxu0 %v14332_v40  ;;  %v14386_v31 = vld [vmem:[%s15516_s13 + $0x664] ss:$264 sps:$4 sm:$0xff]   ;;  %v14420_v40 = vld [vmem:[%s18439_s1 + $0x3f0] sm:$0xff]  }
  0x9a   : > { %v14403_v33 = vld [vmem:[%s18439_s1 + $0x420] sm:$0xff]   ;;  %v14411_v36 = vld [vmem:[%s18439_s1 + $0x3a8] sm:$0xff]  }
  0x9c   : > { %12316 = vmatpush3.bf16.msra.mxu1 %v14331_v39  ;;  %12380 = vmatpush3.bf16.msra.mxu0 %v14333_v41  ;;  %v14389_v39 = vld [vmem:[%s15516_s13 + $0x660] ss:$264 sps:$4 sm:$0xff]   ;;  %v14394_v41 = vld [vmem:[%s15516_s13 + $0x86c] ss:$264 sps:$4 sm:$0xff]  }
  0x9d   : > { %12317 = vmatprep.subr.bf16.mxu1 %v14340_v42  ;;  %12381 = vmatprep.subr.bf16.mxu0 %v14342_v47  ;;  %v14422_v42 = vld [vmem:[%s18439_s1 + $0x470] sm:$0xff]   ;;  %v14432_v47 = vld [vmem:[%s18439_s1 + $0x478] sm:$0xff]  }
  0x9e   : > { %7945 = vmatmul.mubr.bf16.gmra.mrb[60].mxu1 %v14308_v34  ;;  %8042 = vmatmul.mubr.bf16.gmra.mrb[60].mxu0 %v14309_v35  ;;  %v14410_v34 = vld [vmem:[%s18439_s1 + $0x3e8] sm:$0xff]  }
  0x9f   : > { %7952 = vmatprep.mubr.bf16.mxu1 %v14314_v37  ;;  %8049 = vmatprep.mubr.bf16.mxu0 %v14316_v38  ;;  %v14412_v35 = vld [vmem:[%s18439_s1 + $0x468] sm:$0xff]   ;;  %v14388_v38 = vld [vmem:[%s15516_s13 + $0x658] ss:$264 sps:$4 sm:$0xff]  }
  0xa0   : > { %12318 = vmatpush3.bf16.msra.mxu1 %v14341_v45  ;;  %12382 = vmatpush3.bf16.msra.mxu0 %v14343_v48  ;;  %v14413_v37 = vld [vmem:[%s18439_s1 + $0x428] sm:$0xff]   ;;  %v14423_v45 = vld [vmem:[%s18439_s1 + $0x430] sm:$0xff]   ;;  %v14431_v48 = vld [vmem:[%s18439_s1 + $0x3b8] sm:$0xff]  }
  0xa1   : > { %12319 = vmatprep.subr.bf16.mxu1 %v14350_v50  ;;  %12383 = vmatprep.subr.bf16.mxu0 %v14352_v52  ;;  %v14399_v50 = vld [vmem:[%s15516_s13 + $0x870] ss:$264 sps:$4 sm:$0xff]   ;;  %v14404_v52 = vld [vmem:[%s15516_s13 + $0xa7c] ss:$264 sps:$4 sm:$0xff]  }
  0xa4   : > { %12320 = vmatpush3.bf16.msra.mxu1 %v14351_v51  ;;  %12384 = vmatpush3.bf16.msra.mxu0 %v14353_v53  ;;  %v14433_v51 = vld [vmem:[%s18439_s1 + $0x438] sm:$0xff]   ;;  %v14440_v53 = vld [vmem:[%s18439_s1 + $0x4c0] sm:$0xff]  }
  0xa5   : > { %12433 = vmatprep.subr.bf16.mxu1 %v14360_v58  ;;  %12497 = vmatprep.subr.bf16.mxu0 %v14362_v59  ;;  %v14414_v58 = vld [vmem:[%s15516_s13 + $0xc8c] ss:$264 sps:$4 sm:$0xff]  }
  0xa6   : > { %7953 = vmatmul.mubr.bf16.gmra.mrb[64].mxu1 %v14318_v43  ;;  %8050 = vmatmul.mubr.bf16.gmra.mrb[64].mxu0 %v14319_v44  ;;  %v14396_v43 = vld [vmem:[%s15516_s13 + $0x874] ss:$264 sps:$4 sm:$0xff]  }
  0xa7   : > { %7960 = vmatprep.mubr.bf16.mxu1 %v14324_v46  ;;  %8057 = vmatprep.mubr.bf16.mxu0 %v14326_v49  ;;  %v14421_v44 = vld [vmem:[%s18439_s1 + $0x3b0] sm:$0xff]   ;;  %v14430_v46 = vld [vmem:[%s18439_s1 + $0x3f8] sm:$0xff]  }
  0xa8   : > { %v14398_v49 = vld [vmem:[%s15516_s13 + $0x868] ss:$264 sps:$4 sm:$0xff]   ;;  %v14416_v59 = vld [vmem:[%s15516_s13 + $0xc94] ss:$264 sps:$4 sm:$0xff]  }
  0xae   : > { %7961 = vmatmul.mubr.bf16.gmra.mrb[68].mxu1 %v14328_v54  ;;  %8058 = vmatmul.mubr.bf16.gmra.mrb[68].mxu0 %v14329_v55  ;;  %v14406_v54 = vld [vmem:[%s15516_s13 + $0xa84] ss:$264 sps:$4 sm:$0xff]  }
  0xaf   : > { %7968 = vmatprep.mubr.bf16.mxu1 %v14334_v56  ;;  %8065 = vmatprep.mubr.bf16.mxu0 %v14336_v57  ;;  %v14442_v55 = vld [vmem:[%s18439_s1 + $0x540] sm:$0xff]  }
  0xb0   : > { %v14408_v56 = vld [vmem:[%s15516_s13 + $0xa78] ss:$264 sps:$4 sm:$0xff]  }
  0xb1   : > { %v14409_v57 = vld [vmem:[%s15516_s13 + $0xa80] ss:$264 sps:$4 sm:$0xff]  }
  0xb6   : > { %7969 = vmatmul.mubr.bf16.gmra.mrb[72].mxu1 %v14338_v60  ;;  %8066 = vmatmul.mubr.bf16.gmra.mrb[72].mxu0 %v14339_v61  ;;  %v14418_v60 = vld [vmem:[%s15516_s13 + $0xc88] ss:$264 sps:$4 sm:$0xff]  }
  0xb7   : > { %7976 = vmatprep.mubr.bf16.mxu1 %v14344_v62  ;;  %8073 = vmatprep.mubr.bf16.mxu0 %v14346_v63  ;;  %v14419_v61 = vld [vmem:[%s15516_s13 + $0xc90] ss:$264 sps:$4 sm:$0xff]   ;;  %v14424_v62 = vld [vmem:[%s15516_s13 + $0xe9c] ss:$264 sps:$4 sm:$0xff]  }
  0xb8   : > { %v14426_v63 = vld [vmem:[%s15516_s13 + $0xea4] ss:$264 sps:$4 sm:$0xff]  }
  0xbe   : > { %7977 = vmatmul.mubr.bf16.gmra.mrb[76].mxu1 %v14348_v0  ;;  %8074 = vmatmul.mubr.bf16.gmra.mrb[76].mxu0 %v14349_v1 }
  0xbf   : > { %8114 = vmatprep.mubr.bf16.mxu1 %v14356_v2  ;;  %8211 = vmatprep.mubr.bf16.mxu0 %v14359_v3  ;;  %v14428_v2 = vld [vmem:[%s15516_s13 + $0xe98] ss:$264 sps:$4 sm:$0xff]  }
  0xc6   : > { %8115 = vmatmul.mubr.bf16.vlgmr.msra.gmra.mrb[80].mxu1 %v14354_v4  ;;  %8212 = vmatmul.mubr.bf16.vlgmr.msra.gmra.mrb[80].mxu0 %v14357_v5  ;;  %v14429_v5 = vld [vmem:[%s15516_s13 + $0xea0] ss:$264 sps:$4 sm:$0xff]  }
  0xc7   : > { %12434 = vmatpush3.bf16.msra.mxu1 %v14361_v6  ;;  %12498 = vmatpush3.bf16.msra.mxu0 %v14363_v7 }
  0xc8   : > { %8122 = vmatprep.mubr.bf16.mxu1 %v14364_v8  ;;  %8219 = vmatprep.mubr.bf16.mxu0 %v14366_v9 }
  0xc9   : > { %12435 = vmatprep.subr.bf16.mxu1 %v14370_v10  ;;  %12499 = vmatprep.subr.bf16.mxu0 %v14372_v11  ;;  %v14436_v10 = vld [vmem:[%s15516_s13 + $0x3c] ss:$264 sps:$4 sm:$0xff]  }
  0xca   : > { %v14439_v11 = vld [vmem:[%s15516_s13 + $0x44] ss:$264 sps:$4 sm:$0xff]  }
  0xcb   : > { %12436 = vmatpush3.bf16.msra.mxu1 %v14371_v12  ;;  %12500 = vmatpush3.bf16.msra.mxu0 %v14373_v13 }
  0xcc   : > { %12437 = vmatprep.subr.bf16.mxu1 %v14380_v14  ;;  %12501 = vmatprep.subr.bf16.mxu0 %v14382_v17 }
  0xce   : > { %8123 = vmatmul.mubr.bf16.gmra.mrb[84].mxu1 %v14368_v15  ;;  %8220 = vmatmul.mubr.bf16.gmra.mrb[84].mxu0 %v14369_v16  ;;  %v14434_v16 = vld [vmem:[%s15516_s13 + $0x38] ss:$264 sps:$4 sm:$0xff]  }
  0xcf   : > { %8130 = vmatprep.mubr.bf16.mxu1 %v14374_v18  ;;  %8227 = vmatprep.mubr.bf16.mxu0 %v14376_v19  ;;  %v14437_v19 = vld [vmem:[%s15516_s13 + $0x40] ss:$264 sps:$4 sm:$0xff]  }
  0xd0   : > { %12438 = vmatpush3.bf16.msra.mxu1 %v14381_v20  ;;  %12502 = vmatpush3.bf16.msra.mxu0 %v14383_v21 }
  0xd1   : > { %12439 = vmatprep.subr.bf16.mxu1 %v14390_v22  ;;  %12503 = vmatprep.subr.bf16.mxu0 %v14392_v23  ;;  %v14441_v22 = vld [vmem:[%s18439_s1 + $0x480] sm:$0xff]   ;;  %v14444_v23 = vld [vmem:[%s15516_s13 + $0x24c] ss:$264 sps:$4 sm:$0xff]  }
  0xd4   : > { %12440 = vmatpush3.bf16.msra.mxu1 %v14391_v24  ;;  %12504 = vmatpush3.bf16.msra.mxu0 %v14393_v25 }
  0xd5   : > { %12441 = vmatprep.subr.bf16.mxu1 %v14400_v28  ;;  %12505 = vmatprep.subr.bf16.mxu0 %v14402_v29  ;;  %v14443_v28 = vld [vmem:[%s18439_s1 + $0x500] sm:$0xff]   ;;  %v14446_v29 = vld [vmem:[%s15516_s13 + $0x254] ss:$264 sps:$4 sm:$0xff]  }
  0xd6   : > { %8131 = vmatmul.mubr.bf16.gmra.mrb[88].mxu1 %v14378_v26  ;;  %8228 = vmatmul.mubr.bf16.gmra.mrb[88].mxu0 %v14379_v27 }
  0xd7   : > { %8138 = vmatprep.mubr.bf16.mxu1 %v14384_v30  ;;  %8235 = vmatprep.mubr.bf16.mxu0 %v14386_v31  ;;  %v14450_v30 = vld [vmem:[%s18439_s1 + $0x4c8] sm:$0xff]  }
  0xd8   : > { %12442 = vmatpush3.bf16.msra.mxu1 %v14401_v32  ;;  %12506 = vmatpush3.bf16.msra.mxu0 %v14403_v33 }
  0xd9   : > { %12443 = vmatprep.subr.bf16.mxu1 %v14410_v34  ;;  %12507 = vmatprep.subr.bf16.mxu0 %v14412_v35  ;;  %v14451_v35 = vld [vmem:[%s18439_s1 + $0x488] sm:$0xff]  }
  0xdc   : > { %12444 = vmatpush3.bf16.msra.mxu1 %v14411_v36  ;;  %12508 = vmatpush3.bf16.msra.mxu0 %v14413_v37  ;;  %v14452_v36 = vld [vmem:[%s18439_s1 + $0x548] sm:$0xff]  }
  0xdd   : > { %12445 = vmatprep.subr.bf16.mxu1 %v14420_v40  ;;  %12509 = vmatprep.subr.bf16.mxu0 %v14422_v42  ;;  %v14453_v37 = vld [vmem:[%s18439_s1 + $0x508] sm:$0xff]   ;;  %v14449_v40 = vld [vmem:[%s15516_s13 + $0x250] ss:$264 sps:$4 sm:$0xff]  }
  0xde   : > { %8139 = vmatmul.mubr.bf16.gmra.mrb[92].mxu1 %v14388_v38  ;;  %8236 = vmatmul.mubr.bf16.gmra.mrb[92].mxu0 %v14389_v39  ;;  %v14460_v38 = vld [vmem:[%s18439_s1 + $0x4d0] sm:$0xff]  }
  0xdf   : > { %8146 = vmatprep.mubr.bf16.mxu1 %v14394_v41  ;;  %8243 = vmatprep.mubr.bf16.mxu0 %v14396_v43  ;;  %v14448_v39 = vld [vmem:[%s15516_s13 + $0x248] ss:$264 sps:$4 sm:$0xff]  }
  0xe0   : > { %12446 = vmatpush3.bf16.msra.mxu1 %v14421_v44  ;;  %12510 = vmatpush3.bf16.msra.mxu0 %v14423_v45  ;;  %v14462_v41 = vld [vmem:[%s18439_s1 + $0x550] sm:$0xff]   ;;  %v14454_v44 = vld [vmem:[%s15516_s13 + $0x45c] ss:$264 sps:$4 sm:$0xff]  }
  0xe1   : > { %12447 = vmatprep.subr.bf16.mxu1 %v14430_v46  ;;  %12511 = vmatprep.subr.bf16.mxu0 %v14432_v47  ;;  %v14456_v47 = vld [vmem:[%s15516_s13 + $0x464] ss:$264 sps:$4 sm:$0xff]  }
  0xe4   : > { %12448 = vmatpush3.bf16.msra.mxu1 %v14431_v48  ;;  %12512 = vmatpush3.bf16.msra.mxu0 %v14433_v51  ;;  %v14461_v48 = vld [vmem:[%s18439_s1 + $0x490] sm:$0xff]  }
  0xe5   : > { %12561 = vmatprep.subr.bf16.mxu1 %v14440_v53  ;;  %12625 = vmatprep.subr.bf16.mxu0 %v14442_v55 }
  0xe6   : > { %8147 = vmatmul.mubr.bf16.gmra.mrb[96].mxu1 %v14398_v49  ;;  %8244 = vmatmul.mubr.bf16.gmra.mrb[96].mxu0 %v14399_v50  ;;  %v14463_v49 = vld [vmem:[%s18439_s1 + $0x510] sm:$0xff]  }
  0xe7   : > { %8154 = vmatprep.mubr.bf16.mxu1 %v14404_v52  ;;  %8251 = vmatprep.mubr.bf16.mxu0 %v14406_v54 }
  0xee   : > { %8155 = vmatmul.mubr.bf16.gmra.mrb[100].mxu1 %v14408_v56  ;;  %8252 = vmatmul.mubr.bf16.gmra.mrb[100].mxu0 %v14409_v57  ;;  %v14470_v56 = vld [vmem:[%s18439_s1 + $0x4d8] sm:$0xff]  }
  0xef   : > { %8162 = vmatprep.mubr.bf16.mxu1 %v14414_v58  ;;  %8259 = vmatprep.mubr.bf16.mxu0 %v14416_v59  ;;  %v14472_v57 = vld [vmem:[%s18439_s1 + $0x558] sm:$0xff]  }
  0xf6   : > { %8163 = vmatmul.mubr.bf16.gmra.mrb[104].mxu1 %v14418_v60  ;;  %8260 = vmatmul.mubr.bf16.gmra.mrb[104].mxu0 %v14419_v61  ;;  %v14471_v60 = vld [vmem:[%s18439_s1 + $0x498] sm:$0xff]  }
  0xf7   : > { %8170 = vmatprep.mubr.bf16.mxu1 %v14424_v62  ;;  %8267 = vmatprep.mubr.bf16.mxu0 %v14426_v63  ;;  %v14458_v61 = vld [vmem:[%s15516_s13 + $0x458] ss:$264 sps:$4 sm:$0xff]  }
  0xf8   : > { %v14459_v62 = vld [vmem:[%s15516_s13 + $0x460] ss:$264 sps:$4 sm:$0xff]   ;;  %v14473_v63 = vld [vmem:[%s18439_s1 + $0x518] sm:$0xff]  }
  0xf9   : > { %v12001_v0 = vpop.f32.mrb[0].mxu0  ;;  %v12025_v1 = vpop.f32.mrb[0].mxu1 }
  0xfa   : > { %v12002_v3 = vpop.f32.mrb[1].mxu0  ;;  %v12026_v4 = vpop.f32.mrb[1].mxu1 }
  0xfb   : > { %v16041_v6 = vadd.f32 %v12002_v3, %v12001_v0  ;;  %v16043_v7 = vadd.f32 %v12026_v4, %v12025_v1  ;;  %v12004_v8 = vpop.f32.mrb[2].mxu0  ;;  %v12028_v9 = vpop.f32.mrb[2].mxu1  ;;  %v14466_v3 = vld [vmem:[%s15516_s13 + $0x674] ss:$264 sps:$4 sm:$0xff]   ;;  %v14480_v4 = vld [vmem:[%s18439_s1 + $0x4e0] sm:$0xff]  }
  0xfc   : > { %v12005_v12 = vpop.f32.mrb[3].mxu0  ;;  %v12029_v13 = vpop.f32.mrb[3].mxu1 }
  0xfd   : > { %v16047_v14 = vadd.f32 %v12005_v12, %v12004_v8  ;;  %v16049_v15 = vadd.f32 %v12029_v13, %v12028_v9 }
  0xfe   : > { %8171 = vmatmul.mubr.bf16.gmra.mrb[108].mxu1 %v14428_v2  ;;  %8268 = vmatmul.mubr.bf16.gmra.mrb[108].mxu0 %v14429_v5  ;;  %v14464_v2 = vld [vmem:[%s15516_s13 + $0x66c] ss:$264 sps:$4 sm:$0xff]   ;;  %v14482_v5 = vld [vmem:[%s18439_s1 + $0x560] sm:$0xff]  }
  0xff   : > { %8308 = vmatprep.mubr.bf16.mxu1 %v14436_v10  ;;  %8405 = vmatprep.mubr.bf16.mxu0 %v14439_v11  ;;  %v14481_v10 = vld [vmem:[%s18439_s1 + $0x4a0] sm:$0xff]  }
 0x101   : > { %v12007_v17 = vpop.f32.mrb[4].mxu0  ;;  %v12031_v18 = vpop.f32.mrb[4].mxu1 }
 0x102   : > { %v12008_v20 = vpop.f32.mrb[5].mxu0  ;;  %v12032_v21 = vpop.f32.mrb[5].mxu1 }
 0x103   : > { %v16057_v24 = vadd.f32 %v12008_v20, %v12007_v17  ;;  %v16059_v25 = vadd.f32 %v12032_v21, %v12031_v18  ;;  %v12010_v26 = vpop.f32.mrb[6].mxu0  ;;  %v12034_v27 = vpop.f32.mrb[6].mxu1  ;;  %v14483_v17 = vld [vmem:[%s18439_s1 + $0x520] sm:$0xff]   ;;  %v14490_v18 = vld [vmem:[%s18439_s1 + $0x4e8] sm:$0xff]  }
 0x104   : > { %v12011_v31 = vpop.f32.mrb[7].mxu0  ;;  %v12035_v32 = vpop.f32.mrb[7].mxu1 }
 0x105   : > { %v16068_v33 = vadd.f32 %v12011_v31, %v12010_v26  ;;  %v16070_v34 = vadd.f32 %v12035_v32, %v12034_v27  ;;  %v14491_v26 = vld [vmem:[%s18439_s1 + $0x4a8] sm:$0xff]   ;;  %v14474_v32 = vld [vmem:[%s15516_s13 + $0x87c] ss:$264 sps:$4 sm:$0xff]  }
 0x106   : > { %8309 = vmatmul.mubr.bf16.vlgmr.msra.gmra.mrb[112].mxu1 %v14434_v16  ;;  %8406 = vmatmul.mubr.bf16.vlgmr.msra.gmra.mrb[112].mxu0 %v14437_v19  ;;  %v14468_v27 = vld [vmem:[%s15516_s13 + $0x668] ss:$264 sps:$4 sm:$0xff]  }
 0x107   : > { %12562 = vmatpush3.bf16.msra.mxu1 %v14441_v22  ;;  %12626 = vmatpush3.bf16.msra.mxu0 %v14443_v28  ;;  %v14469_v28 = vld [vmem:[%s15516_s13 + $0x670] ss:$264 sps:$4 sm:$0xff]  }
 0x108   : > { %8316 = vmatprep.mubr.bf16.mxu1 %v14444_v23  ;;  %8413 = vmatprep.mubr.bf16.mxu0 %v14446_v29  ;;  %v14492_v23 = vld [vmem:[%s18439_s1 + $0x568] sm:$0xff]  }
 0x109   : > { %v12013_v42 = vpop.f32.mrb[8].mxu0  ;;  %v12037_v43 = vpop.f32.mrb[8].mxu1  ;;  %12563 = vmatprep.subr.bf16.mxu1 %v14450_v30  ;;  %12627 = vmatprep.subr.bf16.mxu0 %v14452_v36  ;;  %v14493_v29 = vld [vmem:[%s18439_s1 + $0x528] sm:$0xff]   ;;  %v14500_v36 = vld [vmem:[%s18439_s1 + $0x4f0] sm:$0xff]  }
 0x10a   : > { %v12014_v45 = vpop.f32.mrb[9].mxu0  ;;  %v12038_v46 = vpop.f32.mrb[9].mxu1 }
 0x10b   : > { %v16097_v50 = vadd.f32 %v12014_v45, %v12013_v42  ;;  %v16099_v51 = vadd.f32 %v12038_v46, %v12037_v43  ;;  %v12016_v52 = vpop.f32.mrb[10].mxu0  ;;  %v12040_v53 = vpop.f32.mrb[10].mxu1  ;;  %12564 = vmatpush3.bf16.msra.mxu1 %v14451_v35  ;;  %12628 = vmatpush3.bf16.msra.mxu0 %v14453_v37  ;;  %v14476_v35 = vld [vmem:[%s15516_s13 + $0x884] ss:$264 sps:$4 sm:$0xff]   ;;  %v14502_v37 = vld [vmem:[%s18439_s1 + $0x570] sm:$0xff]   ;;  %v14510_v46 = vld [vmem:[%s18439_s1 + $0x4f8] sm:$0xff]  }
 0x10c   : > { %v12017_v54 = vpop.f32.mrb[11].mxu0  ;;  %v12041_v55 = vpop.f32.mrb[11].mxu1  ;;  %12565 = vmatprep.subr.bf16.mxu1 %v14460_v38  ;;  %12629 = vmatprep.subr.bf16.mxu0 %v14462_v41  ;;  %v14503_v45 = vld [vmem:[%s18439_s1 + $0x530] sm:$0xff]  }
 0x10d   : > { %v16107_v58 = vadd.f32 %v12017_v54, %v12016_v52  ;;  %v16109_v59 = vadd.f32 %v12041_v55, %v12040_v53  ;;  %v14512_v54 = vld [vmem:[%s18439_s1 + $0x578] sm:$0xff]  }
 0x10e   : > { %8317 = vmatmul.mubr.bf16.gmra.mrb[116].mxu1 %v14448_v39  ;;  %8414 = vmatmul.mubr.bf16.gmra.mrb[116].mxu0 %v14449_v40  ;;  %v14501_v40 = vld [vmem:[%s18439_s1 + $0x4b0] sm:$0xff]  }
 0x10f   : > { %8324 = vmatprep.mubr.bf16.mxu1 %v14454_v44  ;;  %8421 = vmatprep.mubr.bf16.mxu0 %v14456_v47 }
 0x110   : > { %12566 = vmatpush3.bf16.msra.mxu1 %v14461_v48  ;;  %12630 = vmatpush3.bf16.msra.mxu0 %v14463_v49 }
 0x111   : > { %v12019_v0 = vpop.f32.mrb[12].mxu0  ;;  %v12043_v1 = vpop.f32.mrb[12].mxu1  ;;  %12567 = vmatprep.subr.bf16.mxu1 %v14470_v56  ;;  %12631 = vmatprep.subr.bf16.mxu0 %v14472_v57  ;;  %v14478_v57 = vld [vmem:[%s15516_s13 + $0x878] ss:$264 sps:$4 sm:$0xff]  }
 0x112   : > { %v12020_v8 = vpop.f32.mrb[13].mxu0  ;;  %v12044_v9 = vpop.f32.mrb[13].mxu1 }
 0x113   : > { %v16130_v11 = vadd.f32 %v12020_v8, %v12019_v0  ;;  %v16132_v12 = vadd.f32 %v12044_v9, %v12043_v1  ;;  %v12022_v13 = vpop.f32.mrb[14].mxu0  ;;  %v12046_v16 = vpop.f32.mrb[14].mxu1  ;;  %v14520_v1 = vld [vmem:[%s18439_s1 + $0x5c0] sm:$0xff]  }
 0x114   : > { %v12023_v19 = vpop.f32.mrb[15].mxu0  ;;  %v12047_v20 = vpop.f32.mrb[15].mxu1  ;;  %12568 = vmatpush3.bf16.msra.mxu1 %v14471_v60  ;;  %12632 = vmatpush3.bf16.msra.mxu0 %v14473_v63  ;;  %v14511_v60 = vld [vmem:[%s18439_s1 + $0x4b8] sm:$0xff]  }
 0x115   : > { %v16140_v21 = vadd.f32 %v12023_v19, %v12022_v13  ;;  %v16142_v22 = vadd.f32 %v12047_v20, %v12046_v16  ;;  %12569 = vmatprep.subr.bf16.mxu1 %v14480_v4  ;;  %12633 = vmatprep.subr.bf16.mxu0 %v14482_v5  ;;  %v14486_v5 = vld [vmem:[%s15516_s13 + $0xa94] ss:$264 sps:$4 sm:$0xff]  }
 0x116   : > { %8325 = vmatmul.mubr.bf16.gmra.mrb[120].mxu1 %v14458_v61  ;;  %8422 = vmatmul.mubr.bf16.gmra.mrb[120].mxu0 %v14459_v62  ;;  %v14513_v61 = vld [vmem:[%s18439_s1 + $0x538] sm:$0xff]  }
 0x117   : > { %8332 = vmatprep.mubr.bf16.mxu1 %v14464_v2  ;;  %8429 = vmatprep.mubr.bf16.mxu0 %v14466_v3  ;;  %v14522_v2 = vld [vmem:[%s18439_s1 + $0x640] sm:$0xff]  }
 0x118   : > { %12570 = vmatpush3.bf16.msra.mxu1 %v14481_v10  ;;  %12634 = vmatpush3.bf16.msra.mxu0 %v14483_v17 }
 0x119   : > { %v12065_v30 = vpop.f32.mrb[16].mxu1  ;;  %v12129_v31 = vpop.f32.mrb[16].mxu0  ;;  %12571 = vmatprep.subr.bf16.mxu1 %v14490_v18  ;;  %12635 = vmatprep.subr.bf16.mxu0 %v14492_v23 }
 0x11a   : > { %v12066_v38 = vpop.f32.mrb[17].mxu1  ;;  %v12130_v39 = vpop.f32.mrb[17].mxu0 }
 0x11b   : > { %v12067_v41 = vadd.f32 %v12066_v38, %v12065_v30  ;;  %v12131_v42 = vadd.f32 %v12130_v39, %v12129_v31  ;;  %v12068_v43 = vpop.f32.mrb[18].mxu1  ;;  %v12132_v44 = vpop.f32.mrb[18].mxu0  ;;  %v14494_v31 = vld [vmem:[%s15516_s13 + $0xc9c] ss:$264 sps:$4 sm:$0xff]  }
 0x11c   : > { %v12069_v47 = vpop.f32.mrb[19].mxu1  ;;  %v12133_v48 = vpop.f32.mrb[19].mxu0  ;;  %12572 = vmatpush3.bf16.msra.mxu1 %v14491_v26  ;;  %12636 = vmatpush3.bf16.msra.mxu0 %v14493_v29 }
 0x11d   : > { %v7729_v49 = vadd.f32 %v12067_v41, %v16041_v6  ;;  %v12070_v52 = vadd.f32 %v12069_v47, %v12068_v43  ;;  %v12134_v53 = vadd.f32 %v12133_v48, %v12132_v44  ;;  %12573 = vmatprep.subr.bf16.mxu1 %v14500_v36  ;;  %12637 = vmatprep.subr.bf16.mxu0 %v14502_v37  ;;  %v14479_v6 = vld [vmem:[%s15516_s13 + $0x880] ss:$264 sps:$4 sm:$0xff]   ;;  %v14496_v36 = vld [vmem:[%s15516_s13 + $0xca4] ss:$264 sps:$4 sm:$0xff]  }
 0x11e   : > { %8333 = vmatmul.mubr.bf16.gmra.mrb[124].mxu1 %v14468_v27  ;;  %8430 = vmatmul.mubr.bf16.gmra.mrb[124].mxu0 %v14469_v28  ;;  %v14488_v27 = vld [vmem:[%s15516_s13 + $0xa88] ss:$264 sps:$4 sm:$0xff]   ;;  %v14498_v47 = vld [vmem:[%s15516_s13 + $0xc98] ss:$264 sps:$4 sm:$0xff]  }
 0x11f   : > { %v16176_v55 = vadd.f32 %v12131_v42, %v7729_v49  ;;  %v7732_v56 = vadd.f32 %v12070_v52, %v16047_v14  ;;  %8340 = vmatprep.mubr.bf16.mxu1 %v14474_v32  ;;  %8437 = vmatprep.mubr.bf16.mxu0 %v14476_v35  ;;  %v14484_v14 = vld [vmem:[%s15516_s13 + $0xa8c] ss:$264 sps:$4 sm:$0xff]   ;;  %v14489_v28 = vld [vmem:[%s15516_s13 + $0xa90] ss:$264 sps:$4 sm:$0xff]   ;;  %v14499_v48 = vld [vmem:[%s15516_s13 + $0xca0] ss:$264 sps:$4 sm:$0xff]  }
 0x120   : > { %12574 = vmatpush3.bf16.msra.mxu1 %v14501_v40  ;;  %12638 = vmatpush3.bf16.msra.mxu0 %v14503_v45 }
 0x121   : > { %v16187_v62 = vadd.f32 %v12134_v53, %v7732_v56  ;;  %v12071_v63 = vpop.f32.mrb[20].mxu1  ;;  %v12135_v0 = vpop.f32.mrb[20].mxu0  ;;  %12575 = vmatprep.subr.bf16.mxu1 %v14510_v46  ;;  %12639 = vmatprep.subr.bf16.mxu0 %v14512_v54  ;;  %v14504_v54 = vld [vmem:[%s15516_s13 + $0xeac] ss:$264 sps:$4 sm:$0xff]  }
 0x122   : > { %v12072_v3 = vpop.f32.mrb[21].mxu1  ;;  %v12136_v4 = vpop.f32.mrb[21].mxu0 }
 0x123   : > { %v12073_v8 = vadd.f32 %v12072_v3, %v12071_v63  ;;  %v12137_v9 = vadd.f32 %v12136_v4, %v12135_v0  ;;  %v12074_v10 = vpop.f32.mrb[22].mxu1  ;;  %v12138_v13 = vpop.f32.mrb[22].mxu0  ;;  %v14506_v63 = vld [vmem:[%s15516_s13 + $0xeb4] ss:$264 sps:$4 sm:$0xff]  }
 0x124   : > { %v12075_v16 = vpop.f32.mrb[23].mxu1  ;;  %v12139_v17 = vpop.f32.mrb[23].mxu0  ;;  %12576 = vmatpush3.bf16.msra.mxu1 %v14511_v60  ;;  %12640 = vmatpush3.bf16.msra.mxu0 %v14513_v61 }
 0x125   : > { %v7737_v18 = vadd.f32 %v12073_v8, %v16057_v24  ;;  %v12076_v19 = vadd.f32 %v12075_v16, %v12074_v10  ;;  %v12140_v20 = vadd.f32 %v12139_v17, %v12138_v13  ;;  %12689 = vmatprep.subr.bf16.mxu1 %v14520_v1  ;;  %12753 = vmatprep.subr.bf16.mxu0 %v14522_v2  ;;  %v14509_v8 = vld [vmem:[%s15516_s13 + $0xeb0] ss:$264 sps:$4 sm:$0xff]   ;;  %v14516_v16 = vld [vmem:[%s15516_s13 + $0x4c] ss:$264 sps:$4 sm:$0xff]  }
 0x126   : > { %8341 = vmatmul.mubr.bf16.gmra.mrb[128].mxu1 %v14478_v57  ;;  %8438 = vmatmul.mubr.bf16.gmra.mrb[128].mxu0 %v14479_v6  ;;  %v14519_v17 = vld [vmem:[%s15516_s13 + $0x54] ss:$264 sps:$4 sm:$0xff]  }
 0x127   : > { %v16198_v23 = vadd.f32 %v12137_v9, %v7737_v18  ;;  %v7740_v26 = vadd.f32 %v12076_v19, %v16068_v33  ;;  %8348 = vmatprep.mubr.bf16.mxu1 %v14484_v14  ;;  %8445 = vmatprep.mubr.bf16.mxu0 %v14486_v5  ;;  %v14508_v5 = vld [vmem:[%s15516_s13 + $0xea8] ss:$264 sps:$4 sm:$0xff]  }
 0x129   : > { %v16203_v29 = vadd.f32 %v12140_v20, %v7740_v26  ;;  %v12077_v30 = vpop.f32.mrb[24].mxu1  ;;  %v12141_v24 = vpop.f32.mrb[24].mxu0 }
 0x12a   : > { %v12078_v32 = vpop.f32.mrb[25].mxu1  ;;  %v12142_v35 = vpop.f32.mrb[25].mxu0 }
 0x12b   : > { %v12079_v37 = vadd.f32 %v12078_v32, %v12077_v30  ;;  %v12143_v38 = vadd.f32 %v12142_v35, %v12141_v24  ;;  %v12080_v39 = vpop.f32.mrb[26].mxu1  ;;  %v12144_v40 = vpop.f32.mrb[26].mxu0 }
 0x12c   : > { %v12081_v41 = vpop.f32.mrb[27].mxu1  ;;  %v12145_v33 = vpop.f32.mrb[27].mxu0 }
 0x12d   : > { %v7745_v42 = vadd.f32 %v12079_v37, %v16097_v50  ;;  %v12082_v43 = vadd.f32 %v12081_v41, %v12080_v39  ;;  %v12146_v44 = vadd.f32 %v12145_v33, %v12144_v40  ;;  %v14517_v37 = vld [vmem:[%s15516_s13 + $0x50] ss:$264 sps:$4 sm:$0xff]   ;;  %v14523_v41 = vld [vmem:[%s18439_s1 + $0x600] sm:$0xff]  }
 0x12e   : > { %8349 = vmatmul.mubr.bf16.gmra.mrb[132].mxu1 %v14488_v27  ;;  %8446 = vmatmul.mubr.bf16.gmra.mrb[132].mxu0 %v14489_v28 }
 0x12f   : > { %v16208_v45 = vadd.f32 %v12143_v38, %v7745_v42  ;;  %v7748_v46 = vadd.f32 %v12082_v43, %v16107_v58  ;;  %8356 = vmatprep.mubr.bf16.mxu1 %v14494_v31  ;;  %8453 = vmatprep.mubr.bf16.mxu0 %v14496_v36  ;;  %v14514_v36 = vld [vmem:[%s15516_s13 + $0x48] ss:$264 sps:$4 sm:$0xff]  }
 0x131   : > { %v16213_v49 = vadd.f32 %v12146_v44, %v7748_v46  ;;  %v12083_v52 = vpop.f32.mrb[28].mxu1  ;;  %v12147_v53 = vpop.f32.mrb[28].mxu0 }
 0x132   : > { %v12084_v56 = vpop.f32.mrb[29].mxu1  ;;  %v12148_v50 = vpop.f32.mrb[29].mxu0 }
 0x133   : > { %v12085_v57 = vadd.f32 %v12084_v56, %v12083_v52  ;;  %v12149_v6 = vadd.f32 %v12148_v50, %v12147_v53  ;;  %v12086_v60 = vpop.f32.mrb[30].mxu1  ;;  %v12150_v61 = vpop.f32.mrb[30].mxu0  ;;  %v14526_v53 = vld [vmem:[%s15516_s13 + $0x264] ss:$264 sps:$4 sm:$0xff]  }
 0x134   : > { %v12087_v0 = vpop.f32.mrb[31].mxu1  ;;  %v12151_v58 = vpop.f32.mrb[31].mxu0 }
 0x135   : > { %v7753_v14 = vadd.f32 %v12085_v57, %v16130_v11  ;;  %v12088_v1 = vadd.f32 %v12087_v0, %v12086_v60  ;;  %v12152_v2 = vadd.f32 %v12151_v58, %v12150_v61  ;;  %v14530_v57 = vld [vmem:[%s18439_s1 + $0x5c8] sm:$0xff]   ;;  %v14540_v0 = vld [vmem:[%s18439_s1 + $0x5d0] sm:$0xff]   ;;  %v14528_v58 = vld [vmem:[%s15516_s13 + $0x258] ss:$264 sps:$4 sm:$0xff]  }
 0x136   : > { %8357 = vmatmul.mubr.bf16.gmra.mrb[136].mxu1 %v14498_v47  ;;  %8454 = vmatmul.mubr.bf16.gmra.mrb[136].mxu0 %v14499_v48  ;;  %v14532_v60 = vld [vmem:[%s18439_s1 + $0x648] sm:$0xff]  }
 0x137   : > { %v16218_v3 = vadd.f32 %v12149_v6, %v7753_v14  ;;  %v7756_v4 = vadd.f32 %v12088_v1, %v16140_v21  ;;  %8364 = vmatprep.mubr.bf16.mxu1 %v14504_v54  ;;  %8461 = vmatprep.mubr.bf16.mxu0 %v14506_v63  ;;  %v14531_v6 = vld [vmem:[%s18439_s1 + $0x588] sm:$0xff]   ;;  %v14542_v1 = vld [vmem:[%s18439_s1 + $0x650] sm:$0xff]  }
 0x138   : > { %v14529_v14 = vld [vmem:[%s15516_s13 + $0x260] ss:$264 sps:$4 sm:$0xff]  }
 0x139   : > { %v16223_v9 = vadd.f32 %v12152_v2, %v7756_v4  ;;  %v12089_v10 = vpop.f32.mrb[32].mxu1  ;;  %v12153_v13 = vpop.f32.mrb[32].mxu0 }
 0x13a   : > { %v12090_v18 = vpop.f32.mrb[33].mxu1  ;;  %v12154_v11 = vpop.f32.mrb[33].mxu0 }
 0x13b   : > { %v12091_v19 = vadd.f32 %v12090_v18, %v12089_v10  ;;  %v12155_v20 = vadd.f32 %v12154_v11, %v12153_v13  ;;  %v12092_v26 = vpop.f32.mrb[34].mxu1  ;;  %v12156_v27 = vpop.f32.mrb[34].mxu0  ;;  %v14534_v10 = vld [vmem:[%s15516_s13 + $0x46c] ss:$264 sps:$4 sm:$0xff]  }
 0x13c   : > { %v12093_v28 = vpop.f32.mrb[35].mxu1  ;;  %v12157_v21 = vpop.f32.mrb[35].mxu0  ;;  %v14536_v11 = vld [vmem:[%s15516_s13 + $0x474] ss:$264 sps:$4 sm:$0xff]  }
 0x13d   : > { %v7761_v30 = vadd.f32 %v12091_v19, %v16043_v7  ;;  %v12094_v24 = vadd.f32 %v12093_v28, %v12092_v26  ;;  %v12158_v31 = vadd.f32 %v12157_v21, %v12156_v27  ;;  %v14521_v7 = vld [vmem:[%s18439_s1 + $0x580] sm:$0xff]   ;;  %v14541_v26 = vld [vmem:[%s18439_s1 + $0x590] sm:$0xff]   ;;  %v14550_v28 = vld [vmem:[%s18439_s1 + $0x5d8] sm:$0xff]  }
 0x13e   : > { %8365 = vmatmul.mubr.bf16.gmra.mrb[140].mxu1 %v14508_v5  ;;  %8462 = vmatmul.mubr.bf16.gmra.mrb[140].mxu0 %v14509_v8  ;;  %v14543_v27 = vld [vmem:[%s18439_s1 + $0x610] sm:$0xff]  }
 0x13f   : > { %v16228_v32 = vadd.f32 %v12155_v20, %v7761_v30  ;;  %v7764_v35 = vadd.f32 %v12094_v24, %v16049_v15  ;;  %8502 = vmatprep.mubr.bf16.mxu1 %v14516_v16  ;;  %8599 = vmatprep.mubr.bf16.mxu0 %v14519_v17  ;;  %v14524_v15 = vld [vmem:[%s15516_s13 + $0x25c] ss:$264 sps:$4 sm:$0xff]  }
 0x141   : > { %v16233_v38 = vadd.f32 %v12158_v31, %v7764_v35  ;;  %v12095_v39 = vpop.f32.mrb[36].mxu1  ;;  %v12159_v40 = vpop.f32.mrb[36].mxu0  ;;  %v14552_v31 = vld [vmem:[%s18439_s1 + $0x658] sm:$0xff]  }
 0x142   : > { %v12096_v33 = vpop.f32.mrb[37].mxu1  ;;  %v12160_v42 = vpop.f32.mrb[37].mxu0  ;;  %v14551_v35 = vld [vmem:[%s18439_s1 + $0x598] sm:$0xff]  }
 0x143   : > { %v12097_v43 = vadd.f32 %v12096_v33, %v12095_v39  ;;  %v12161_v44 = vadd.f32 %v12160_v42, %v12159_v40  ;;  %v12098_v46 = vpop.f32.mrb[38].mxu1  ;;  %v12162_v47 = vpop.f32.mrb[38].mxu0  ;;  %v14538_v39 = vld [vmem:[%s15516_s13 + $0x468] ss:$264 sps:$4 sm:$0xff]   ;;  %v14562_v42 = vld [vmem:[%s18439_s1 + $0x660] sm:$0xff]  }
 0x144   : > { %v12099_v48 = vpop.f32.mrb[39].mxu1  ;;  %v12163_v52 = vpop.f32.mrb[39].mxu0  ;;  %v14539_v40 = vld [vmem:[%s15516_s13 + $0x470] ss:$264 sps:$4 sm:$0xff]  }
 0x145   : > { %v7769_v54 = vadd.f32 %v12097_v43, %v16059_v25  ;;  %v12100_v56 = vadd.f32 %v12099_v48, %v12098_v46  ;;  %v12164_v50 = vadd.f32 %v12163_v52, %v12162_v47  ;;  %v14533_v25 = vld [vmem:[%s18439_s1 + $0x608] sm:$0xff]  }
 0x146   : > { %8503 = vmatmul.mubr.bf16.vlgmr.msra.gmra.mrb[144].mxu1 %v14514_v36  ;;  %8600 = vmatmul.mubr.bf16.vlgmr.msra.gmra.mrb[144].mxu0 %v14517_v37  ;;  %v14546_v46 = vld [vmem:[%s15516_s13 + $0x684] ss:$264 sps:$4 sm:$0xff]  }
 0x147   : > { %v16256_v61 = vadd.f32 %v12161_v44, %v7769_v54  ;;  %v7772_v63 = vadd.f32 %v12100_v56, %v16070_v34  ;;  %12690 = vmatpush3.bf16.msra.mxu1 %v14521_v7  ;;  %12754 = vmatpush3.bf16.msra.mxu0 %v14523_v41  ;;  %v14560_v7 = vld [vmem:[%s18439_s1 + $0x5e0] sm:$0xff]  }
 0x148   : > { %8510 = vmatprep.mubr.bf16.mxu1 %v14524_v15  ;;  %8607 = vmatprep.mubr.bf16.mxu0 %v14526_v53  ;;  %v14544_v44 = vld [vmem:[%s15516_s13 + $0x67c] ss:$264 sps:$4 sm:$0xff]  }
 0x149   : > { %v16267_v2 = vadd.f32 %v12164_v50, %v7772_v63  ;;  %v12101_v4 = vpop.f32.mrb[40].mxu1  ;;  %v12165_v34 = vpop.f32.mrb[40].mxu0  ;;  %12691 = vmatprep.subr.bf16.mxu1 %v14530_v57  ;;  %12755 = vmatprep.subr.bf16.mxu0 %v14532_v60  ;;  %v14561_v54 = vld [vmem:[%s18439_s1 + $0x5a0] sm:$0xff]  }
 0x14a   : > { %v12102_v5 = vpop.f32.mrb[41].mxu1  ;;  %v12166_v8 = vpop.f32.mrb[41].mxu0  ;;  %v14563_v57 = vld [vmem:[%s18439_s1 + $0x620] sm:$0xff]  }
 0x14b   : > { %v12103_v13 = vadd.f32 %v12102_v5, %v12101_v4  ;;  %v12167_v16 = vadd.f32 %v12166_v8, %v12165_v34  ;;  %v12104_v17 = vpop.f32.mrb[42].mxu1  ;;  %v12168_v18 = vpop.f32.mrb[42].mxu0  ;;  %12692 = vmatpush3.bf16.msra.mxu1 %v14531_v6  ;;  %12756 = vmatpush3.bf16.msra.mxu0 %v14533_v25  ;;  %v14570_v6 = vld [vmem:[%s18439_s1 + $0x5e8] sm:$0xff]   ;;  %v14548_v4 = vld [vmem:[%s15516_s13 + $0x678] ss:$264 sps:$4 sm:$0xff]   ;;  %v14580_v5 = vld [vmem:[%s18439_s1 + $0x5f0] sm:$0xff]  }
 0x14c   : > { %v12105_v19 = vpop.f32.mrb[43].mxu1  ;;  %v12169_v20 = vpop.f32.mrb[43].mxu0  ;;  %12693 = vmatprep.subr.bf16.mxu1 %v14540_v0  ;;  %12757 = vmatprep.subr.bf16.mxu0 %v14542_v1  ;;  %v14572_v0 = vld [vmem:[%s18439_s1 + $0x668] sm:$0xff]  }
 0x14d   : > { %v7777_v21 = vadd.f32 %v12103_v13, %v16099_v51  ;;  %v12106_v30 = vadd.f32 %v12105_v19, %v12104_v17  ;;  %v12170_v24 = vadd.f32 %v12169_v20, %v12168_v18  ;;  %v14553_v51 = vld [vmem:[%s18439_s1 + $0x618] sm:$0xff]   ;;  %v14549_v34 = vld [vmem:[%s15516_s13 + $0x680] ss:$264 sps:$4 sm:$0xff]  }
 0x14e   : > { %8511 = vmatmul.mubr.bf16.gmra.mrb[148].mxu1 %v14528_v58  ;;  %8608 = vmatmul.mubr.bf16.gmra.mrb[148].mxu0 %v14529_v14  ;;  %v14571_v58 = vld [vmem:[%s18439_s1 + $0x5a8] sm:$0xff]  }
 0x14f   : > { %v16287_v36 = vadd.f32 %v12167_v16, %v7777_v21  ;;  %v7780_v37 = vadd.f32 %v12106_v30, %v16109_v59  ;;  %8518 = vmatprep.mubr.bf16.mxu1 %v14534_v10  ;;  %8615 = vmatprep.mubr.bf16.mxu0 %v14536_v11  ;;  %v14582_v16 = vld [vmem:[%s18439_s1 + $0x670] sm:$0xff]   ;;  %v14590_v30 = vld [vmem:[%s18439_s1 + $0x5f8] sm:$0xff]  }
 0x150   : > { %12694 = vmatpush3.bf16.msra.mxu1 %v14541_v26  ;;  %12758 = vmatpush3.bf16.msra.mxu0 %v14543_v27  ;;  %v14556_v11 = vld [vmem:[%s15516_s13 + $0x894] ss:$264 sps:$4 sm:$0xff]  }
 0x151   : > { %v16298_v41 = vadd.f32 %v12170_v24, %v7780_v37  ;;  %v12107_v33 = vpop.f32.mrb[44].mxu1  ;;  %v12171_v59 = vpop.f32.mrb[44].mxu0  ;;  %12695 = vmatprep.subr.bf16.mxu1 %v14550_v28  ;;  %12759 = vmatprep.subr.bf16.mxu0 %v14552_v31  ;;  %v14581_v28 = vld [vmem:[%s18439_s1 + $0x5b0] sm:$0xff]  }
 0x152   : > { %v12108_v15 = vpop.f32.mrb[45].mxu1  ;;  %v12172_v43 = vpop.f32.mrb[45].mxu0  ;;  %v14583_v21 = vld [vmem:[%s18439_s1 + $0x630] sm:$0xff]  }
 0x153   : > { %v12109_v47 = vadd.f32 %v12108_v15, %v12107_v33  ;;  %v12173_v48 = vadd.f32 %v12172_v43, %v12171_v59  ;;  %v12110_v52 = vpop.f32.mrb[46].mxu1  ;;  %v12174_v53 = vpop.f32.mrb[46].mxu0  ;;  %v14558_v59 = vld [vmem:[%s15516_s13 + $0x888] ss:$264 sps:$4 sm:$0xff]   ;;  %v14600_v15 = vld [vmem:[%s18439_s1 + $0x6c0] sm:$0xff]  }
 0x154   : > { %v12111_v56 = vpop.f32.mrb[47].mxu1  ;;  %v12175_v50 = vpop.f32.mrb[47].mxu0  ;;  %12696 = vmatpush3.bf16.msra.mxu1 %v14551_v35  ;;  %12760 = vmatpush3.bf16.msra.mxu0 %v14553_v51 }
 0x155   : > { %v7785_v60 = vadd.f32 %v12109_v47, %v16132_v12  ;;  %v12112_v25 = vadd.f32 %v12111_v56, %v12110_v52  ;;  %v12176_v63 = vadd.f32 %v12175_v50, %v12174_v53  ;;  %12697 = vmatprep.subr.bf16.mxu1 %v14560_v7  ;;  %12761 = vmatprep.subr.bf16.mxu0 %v14562_v42  ;;  %v14573_v12 = vld [vmem:[%s18439_s1 + $0x628] sm:$0xff]   ;;  %v14559_v42 = vld [vmem:[%s15516_s13 + $0x890] ss:$264 sps:$4 sm:$0xff]   ;;  %v14564_v52 = vld [vmem:[%s15516_s13 + $0xa9c] ss:$264 sps:$4 sm:$0xff]  }
 0x156   : > { %8519 = vmatmul.mubr.bf16.gmra.mrb[152].mxu1 %v14538_v39  ;;  %8616 = vmatmul.mubr.bf16.gmra.mrb[152].mxu0 %v14539_v40  ;;  %v14592_v39 = vld [vmem:[%s18439_s1 + $0x678] sm:$0xff]   ;;  %v14566_v53 = vld [vmem:[%s15516_s13 + $0xaa4] ss:$264 sps:$4 sm:$0xff]  }
 0x157   : > { %v16321_v14 = vadd.f32 %v12173_v48, %v7785_v60  ;;  %v7788_v1 = vadd.f32 %v12112_v25, %v16142_v22  ;;  %8526 = vmatprep.mubr.bf16.mxu1 %v14544_v44  ;;  %8623 = vmatprep.mubr.bf16.mxu0 %v14546_v46  ;;  %v14554_v22 = vld [vmem:[%s15516_s13 + $0x88c] ss:$264 sps:$4 sm:$0xff]   ;;  %v14591_v40 = vld [vmem:[%s18439_s1 + $0x5b8] sm:$0xff]   ;;  %v14602_v46 = vld [vmem:[%s18439_s1 + $0x740] sm:$0xff]  }
 0x158   : > { %12698 = vmatpush3.bf16.msra.mxu1 %v14561_v54  ;;  %12762 = vmatpush3.bf16.msra.mxu0 %v14563_v57 }
 0x159   : > { %v16332_v8 = vadd.f32 %v12176_v63, %v7788_v1  ;;  %v12193_v10 = vpop.f32.mrb[48].mxu1  ;;  %v12257_v13 = vpop.f32.mrb[48].mxu0  ;;  %12699 = vmatprep.subr.bf16.mxu1 %v14570_v6  ;;  %12763 = vmatprep.subr.bf16.mxu0 %v14572_v0 }
 0x15a   : > { %v12194_v17 = vpop.f32.mrb[49].mxu1  ;;  %v12258_v18 = vpop.f32.mrb[49].mxu0 }
 0x15b   : > { %v12195_v19 = vadd.f32 %v12194_v17, %v12193_v10  ;;  %v12259_v20 = vadd.f32 %v12258_v18, %v12257_v13  ;;  %v12196_v26 = vpop.f32.mrb[50].mxu1  ;;  %v12260_v27 = vpop.f32.mrb[50].mxu0 }
 0x15c   : > { %v12197_v24 = vpop.f32.mrb[51].mxu1  ;;  %v12261_v31 = vpop.f32.mrb[51].mxu0  ;;  %12700 = vmatpush3.bf16.msra.mxu1 %v14571_v58  ;;  %12764 = vmatpush3.bf16.msra.mxu0 %v14573_v12 }
 0x15d   : > { %v7923_v35 = vadd.f32 %v12195_v19, %v16176_v55  ;;  %v12198_v37 = vadd.f32 %v12197_v24, %v12196_v26  ;;  %v12262_v51 = vadd.f32 %v12261_v31, %v12260_v27  ;;  %12701 = vmatprep.subr.bf16.mxu1 %v14580_v5  ;;  %12765 = vmatprep.subr.bf16.mxu0 %v14582_v16  ;;  %v14593_v55 = vld [vmem:[%s18439_s1 + $0x638] sm:$0xff]   ;;  %v14578_v24 = vld [vmem:[%s15516_s13 + $0xca8] ss:$264 sps:$4 sm:$0xff]  }
 0x15e   : > { %8527 = vmatmul.mubr.bf16.gmra.mrb[156].mxu1 %v14548_v4  ;;  %8624 = vmatmul.mubr.bf16.gmra.mrb[156].mxu0 %v14549_v34  ;;  %v14568_v5 = vld [vmem:[%s15516_s13 + $0xa98] ss:$264 sps:$4 sm:$0xff]   ;;  %v14576_v19 = vld [vmem:[%s15516_s13 + $0xcb4] ss:$264 sps:$4 sm:$0xff]  }
 0x15f   : > { %v16355_v7 = vadd.f32 %v12259_v20, %v7923_v35  ;;  %v7926_v33 = vadd.f32 %v12198_v37, %v16187_v62  ;;  %8534 = vmatprep.mubr.bf16.mxu1 %v14554_v22  ;;  %8631 = vmatprep.mubr.bf16.mxu0 %v14556_v11  ;;  %v14574_v22 = vld [vmem:[%s15516_s13 + $0xcac] ss:$264 sps:$4 sm:$0xff]  }
 0x160   : > { %12702 = vmatpush3.bf16.msra.mxu1 %v14581_v28  ;;  %12766 = vmatpush3.bf16.msra.mxu0 %v14583_v21 }
 0x161   : > { %v16366_v43 = vadd.f32 %v12262_v51, %v7926_v33  ;;  %v12199_v44 = vpop.f32.mrb[52].mxu1  ;;  %v12263_v62 = vpop.f32.mrb[52].mxu0  ;;  %12703 = vmatprep.subr.bf16.mxu1 %v14590_v30  ;;  %12767 = vmatprep.subr.bf16.mxu0 %v14592_v39  ;;  %v14579_v51 = vld [vmem:[%s15516_s13 + $0xcb0] ss:$264 sps:$4 sm:$0xff]   ;;  %v14584_v39 = vld [vmem:[%s15516_s13 + $0xebc] ss:$264 sps:$4 sm:$0xff]  }
 0x162   : > { %v12200_v47 = vpop.f32.mrb[53].mxu1  ;;  %v12264_v48 = vpop.f32.mrb[53].mxu0 }
 0x163   : > { %v12201_v54 = vadd.f32 %v12200_v47, %v12199_v44  ;;  %v12265_v56 = vadd.f32 %v12264_v48, %v12263_v62  ;;  %v12202_v50 = vpop.f32.mrb[54].mxu1  ;;  %v12266_v57 = vpop.f32.mrb[54].mxu0 }
 0x164   : > { %v12203_v6 = vpop.f32.mrb[55].mxu1  ;;  %v12267_v60 = vpop.f32.mrb[55].mxu0  ;;  %12704 = vmatpush3.bf16.msra.mxu1 %v14591_v40  ;;  %12768 = vmatpush3.bf16.msra.mxu0 %v14593_v55 }
 0x165   : > { %v7931_v25 = vadd.f32 %v12201_v54, %v16198_v23  ;;  %v12204_v63 = vadd.f32 %v12203_v6, %v12202_v50  ;;  %v12268_v0 = vadd.f32 %v12267_v60, %v12266_v57  ;;  %12817 = vmatprep.subr.bf16.mxu1 %v14600_v15  ;;  %12881 = vmatprep.subr.bf16.mxu0 %v14602_v46  ;;  %v14569_v23 = vld [vmem:[%s15516_s13 + $0xaa0] ss:$264 sps:$4 sm:$0xff]   ;;  %v14586_v15 = vld [vmem:[%s15516_s13 + $0xec4] ss:$264 sps:$4 sm:$0xff]  }
 0x166   : > { %8535 = vmatmul.mubr.bf16.gmra.mrb[160].mxu1 %v14558_v59  ;;  %8632 = vmatmul.mubr.bf16.gmra.mrb[160].mxu0 %v14559_v42  ;;  %v14589_v54 = vld [vmem:[%s15516_s13 + $0xec0] ss:$264 sps:$4 sm:$0xff]   ;;  %v14596_v6 = vld [vmem:[%s15516_s13 + $0x5c] ss:$264 sps:$4 sm:$0xff]  }
 0x167   : > { %v16374_v58 = vadd.f32 %v12265_v56, %v7931_v25  ;;  %v7934_v1 = vadd.f32 %v12204_v63, %v16203_v29  ;;  %8542 = vmatprep.mubr.bf16.mxu1 %v14564_v52  ;;  %8639 = vmatprep.mubr.bf16.mxu0 %v14566_v53  ;;  %v14588_v53 = vld [vmem:[%s15516_s13 + $0xeb8] ss:$264 sps:$4 sm:$0xff]   ;;  %v14599_v25 = vld [vmem:[%s15516_s13 + $0x64] ss:$264 sps:$4 sm:$0xff]  }
 0x169   : > { %v16377_v12 = vadd.f32 %v12268_v0, %v7934_v1  ;;  %v12205_v4 = vpop.f32.mrb[56].mxu1  ;;  %v12269_v34 = vpop.f32.mrb[56].mxu0 }
 0x16a   : > { %v12206_v10 = vpop.f32.mrb[57].mxu1  ;;  %v12270_v13 = vpop.f32.mrb[57].mxu0 }
 0x16b   : > { %v12207_v16 = vadd.f32 %v12206_v10, %v12205_v4  ;;  %v12271_v17 = vadd.f32 %v12270_v13, %v12269_v34  ;;  %v12208_v18 = vpop.f32.mrb[58].mxu1  ;;  %v12272_v11 = vpop.f32.mrb[58].mxu0 }
 0x16c   : > { %v12209_v20 = vpop.f32.mrb[59].mxu1  ;;  %v12273_v29 = vpop.f32.mrb[59].mxu0 }
 0x16d   : > { %v7939_v26 = vadd.f32 %v12207_v16, %v16208_v45  ;;  %v12210_v27 = vadd.f32 %v12209_v20, %v12208_v18  ;;  %v12274_v28 = vadd.f32 %v12273_v29, %v12272_v11  ;;  %v14594_v16 = vld [vmem:[%s15516_s13 + $0x58] ss:$264 sps:$4 sm:$0xff]  }
 0x16e   : > { %8543 = vmatmul.mubr.bf16.gmra.mrb[164].mxu1 %v14568_v5  ;;  %8640 = vmatmul.mubr.bf16.gmra.mrb[164].mxu0 %v14569_v23  ;;  %v14603_v20 = vld [vmem:[%s18439_s1 + $0x700] sm:$0xff]  }
 0x16f   : > { %v16384_v21 = vadd.f32 %v12271_v17, %v7939_v26  ;;  %v7942_v30 = vadd.f32 %v12210_v27, %v16213_v49  ;;  %8550 = vmatprep.mubr.bf16.mxu1 %v14574_v22  ;;  %8647 = vmatprep.mubr.bf16.mxu0 %v14576_v19  ;;  %v14597_v17 = vld [vmem:[%s15516_s13 + $0x60] ss:$264 sps:$4 sm:$0xff]   ;;  %v14604_v27 = vld [vmem:[%s15516_s13 + $0x26c] ss:$264 sps:$4 sm:$0xff]  }
 0x171   : > { %v16388_v31 = vadd.f32 %v12274_v28, %v7942_v30  ;;  %v12211_v35 = vpop.f32.mrb[60].mxu1  ;;  %v12275_v37 = vpop.f32.mrb[60].mxu0 }
 0x172   : > { %v12212_v40 = vpop.f32.mrb[61].mxu1  ;;  %v12276_v45 = vpop.f32.mrb[61].mxu0 }
 0x173   : > { %v12213_v33 = vadd.f32 %v12212_v40, %v12211_v35  ;;  %v12277_v55 = vadd.f32 %v12276_v45, %v12275_v37  ;;  %v12214_v59 = vpop.f32.mrb[62].mxu1  ;;  %v12278_v42 = vpop.f32.mrb[62].mxu0  ;;  %v14612_v40 = vld [vmem:[%s18439_s1 + $0x748] sm:$0xff]  }
 0x174   : > { %v12215_v44 = vpop.f32.mrb[63].mxu1  ;;  %v12279_v49 = vpop.f32.mrb[63].mxu0 }
 0x175   : > { %v7947_v62 = vadd.f32 %v12213_v33, %v16218_v3  ;;  %v12216_v46 = vadd.f32 %v12215_v44, %v12214_v59  ;;  %v12280_v47 = vadd.f32 %v12279_v49, %v12278_v42  ;;  %v14611_v59 = vld [vmem:[%s18439_s1 + $0x688] sm:$0xff]   ;;  %v14620_v44 = vld [vmem:[%s18439_s1 + $0x6d0] sm:$0xff]  }
 0x176   : > { %8551 = vmatmul.mubr.bf16.gmra.mrb[168].mxu1 %v14578_v24  ;;  %8648 = vmatmul.mubr.bf16.gmra.mrb[168].mxu0 %v14579_v51  ;;  %v14608_v49 = vld [vmem:[%s15516_s13 + $0x268] ss:$264 sps:$4 sm:$0xff]  }
 0x177   : > { %v16394_v48 = vadd.f32 %v12277_v55, %v7947_v62  ;;  %v7950_v52 = vadd.f32 %v12216_v46, %v16223_v9  ;;  %8558 = vmatprep.mubr.bf16.mxu1 %v14584_v39  ;;  %8655 = vmatprep.mubr.bf16.mxu0 %v14586_v15  ;;  %v14610_v39 = vld [vmem:[%s18439_s1 + $0x6c8] sm:$0xff]   ;;  %v14609_v62 = vld [vmem:[%s15516_s13 + $0x270] ss:$264 sps:$4 sm:$0xff]  }
 0x178   : > { %v14622_v46 = vld [vmem:[%s18439_s1 + $0x750] sm:$0xff]  }
 0x179   : > { %v16399_v56 = vadd.f32 %v12280_v47, %v7950_v52  ;;  %v12217_v50 = vpop.f32.mrb[64].mxu1  ;;  %v12281_v57 = vpop.f32.mrb[64].mxu0 }
 0x17a   : > { %v12218_v60 = vpop.f32.mrb[65].mxu1  ;;  %v12282_v3 = vpop.f32.mrb[65].mxu0 }
 0x17b   : > { %v12219_v63 = vadd.f32 %v12218_v60, %v12217_v50  ;;  %v12283_v0 = vadd.f32 %v12282_v3, %v12281_v57  ;;  %v12220_v1 = vpop.f32.mrb[66].mxu1  ;;  %v12284_v4 = vpop.f32.mrb[66].mxu0 }
 0x17c   : > { %v12221_v34 = vpop.f32.mrb[67].mxu1  ;;  %v12285_v9 = vpop.f32.mrb[67].mxu0 }
 0x17d   : > { %v7955_v5 = vadd.f32 %v12219_v63, %v16228_v32  ;;  %v12222_v23 = vadd.f32 %v12221_v34, %v12220_v1  ;;  %v12286_v10 = vadd.f32 %v12285_v9, %v12284_v4  ;;  %v14601_v32 = vld [vmem:[%s18439_s1 + $0x680] sm:$0xff]   ;;  %v14630_v1 = vld [vmem:[%s18439_s1 + $0x6d8] sm:$0xff]  }
 0x17e   : > { %8559 = vmatmul.mubr.bf16.gmra.mrb[172].mxu1 %v14588_v53  ;;  %8656 = vmatmul.mubr.bf16.gmra.mrb[172].mxu0 %v14589_v54  ;;  %v14614_v53 = vld [vmem:[%s15516_s13 + $0x47c] ss:$264 sps:$4 sm:$0xff]  }
 0x17f   : > { %v16404_v13 = vadd.f32 %v12283_v0, %v7955_v5  ;;  %v7958_v22 = vadd.f32 %v12222_v23, %v16233_v38  ;;  %8696 = vmatprep.mubr.bf16.mxu1 %v14596_v6  ;;  %8793 = vmatprep.mubr.bf16.mxu0 %v14599_v25  ;;  %v14606_v38 = vld [vmem:[%s15516_s13 + $0x274] ss:$264 sps:$4 sm:$0xff]   ;;  %v14616_v54 = vld [vmem:[%s15516_s13 + $0x484] ss:$264 sps:$4 sm:$0xff]  }
 0x180   : > { %v14621_v6 = vld [vmem:[%s18439_s1 + $0x690] sm:$0xff]  }
 0x181   : > { %v16409_v18 = vadd.f32 %v12286_v10, %v7958_v22  ;;  %v12223_v11 = vpop.f32.mrb[68].mxu1  ;;  %v12287_v19 = vpop.f32.mrb[68].mxu0  ;;  %v14623_v0 = vld [vmem:[%s18439_s1 + $0x710] sm:$0xff]   ;;  %v14632_v10 = vld [vmem:[%s18439_s1 + $0x758] sm:$0xff]  }
 0x182   : > { %v12224_v29 = vpop.f32.mrb[69].mxu1  ;;  %v12288_v26 = vpop.f32.mrb[69].mxu0 }
 0x183   : > { %v12225_v28 = vadd.f32 %v12224_v29, %v12223_v11  ;;  %v12289_v30 = vadd.f32 %v12288_v26, %v12287_v19  ;;  %v12226_v24 = vpop.f32.mrb[70].mxu1  ;;  %v12290_v35 = vpop.f32.mrb[70].mxu0  ;;  %v14619_v11 = vld [vmem:[%s15516_s13 + $0x480] ss:$264 sps:$4 sm:$0xff]   ;;  %v14633_v19 = vld [vmem:[%s18439_s1 + $0x718] sm:$0xff]  }
 0x184   : > { %v12227_v37 = vpop.f32.mrb[71].mxu1  ;;  %v12291_v51 = vpop.f32.mrb[71].mxu0  ;;  %v14624_v26 = vld [vmem:[%s15516_s13 + $0x68c] ss:$264 sps:$4 sm:$0xff]  }
 0x185   : > { %v7963_v45 = vadd.f32 %v12225_v28, %v16256_v61  ;;  %v12228_v33 = vadd.f32 %v12227_v37, %v12226_v24  ;;  %v12292_v55 = vadd.f32 %v12291_v51, %v12290_v35  ;;  %v14613_v61 = vld [vmem:[%s18439_s1 + $0x708] sm:$0xff]   ;;  %v14641_v24 = vld [vmem:[%s18439_s1 + $0x6a0] sm:$0xff]  }
 0x186   : > { %8697 = vmatmul.mubr.bf16.vlgmr.msra.gmra.mrb[176].mxu1 %v14594_v16  ;;  %8794 = vmatmul.mubr.bf16.vlgmr.msra.gmra.mrb[176].mxu0 %v14597_v17  ;;  %v14618_v17 = vld [vmem:[%s15516_s13 + $0x478] ss:$264 sps:$4 sm:$0xff]  }
 0x187   : > { %v16429_v42 = vadd.f32 %v12289_v30, %v7963_v45  ;;  %v7966_v15 = vadd.f32 %v12228_v33, %v16267_v2  ;;  %12818 = vmatpush3.bf16.msra.mxu1 %v14601_v32  ;;  %12882 = vmatpush3.bf16.msra.mxu0 %v14603_v20  ;;  %v14643_v35 = vld [vmem:[%s18439_s1 + $0x720] sm:$0xff]  }
 0x188   : > { %8704 = vmatprep.mubr.bf16.mxu1 %v14604_v27  ;;  %8801 = vmatprep.mubr.bf16.mxu0 %v14606_v38  ;;  %v14640_v27 = vld [vmem:[%s18439_s1 + $0x6e0] sm:$0xff]  }
 0x189   : > { %v16443_v2 = vadd.f32 %v12292_v55, %v7966_v15  ;;  %v12229_v47 = vpop.f32.mrb[72].mxu1  ;;  %v12293_v52 = vpop.f32.mrb[72].mxu0  ;;  %12819 = vmatprep.subr.bf16.mxu1 %v14610_v39  ;;  %12883 = vmatprep.subr.bf16.mxu0 %v14612_v40  ;;  %v14642_v38 = vld [vmem:[%s18439_s1 + $0x760] sm:$0xff]   ;;  %v14650_v55 = vld [vmem:[%s18439_s1 + $0x6e8] sm:$0xff]  }
 0x18a   : > { %v12230_v50 = vpop.f32.mrb[73].mxu1  ;;  %v12294_v57 = vpop.f32.mrb[73].mxu0 }
 0x18b   : > { %v12231_v60 = vadd.f32 %v12230_v50, %v12229_v47  ;;  %v12295_v3 = vadd.f32 %v12294_v57, %v12293_v52  ;;  %v12232_v25 = vpop.f32.mrb[74].mxu1  ;;  %v12296_v63 = vpop.f32.mrb[74].mxu0  ;;  %12820 = vmatpush3.bf16.msra.mxu1 %v14611_v59  ;;  %12884 = vmatpush3.bf16.msra.mxu0 %v14613_v61  ;;  %v14660_v47 = vld [vmem:[%s18439_s1 + $0x6f0] sm:$0xff]  }
 0x18c   : > { %v12233_v4 = vpop.f32.mrb[75].mxu1  ;;  %v12297_v34 = vpop.f32.mrb[75].mxu0  ;;  %12821 = vmatprep.subr.bf16.mxu1 %v14620_v44  ;;  %12885 = vmatprep.subr.bf16.mxu0 %v14622_v46  ;;  %v14652_v44 = vld [vmem:[%s18439_s1 + $0x768] sm:$0xff]  }
 0x18d   : > { %v7971_v9 = vadd.f32 %v12231_v60, %v16287_v36  ;;  %v12234_v5 = vadd.f32 %v12233_v4, %v12232_v25  ;;  %v12298_v23 = vadd.f32 %v12297_v34, %v12296_v63  ;;  %v14631_v36 = vld [vmem:[%s18439_s1 + $0x698] sm:$0xff]   ;;  %v14628_v52 = vld [vmem:[%s15516_s13 + $0x688] ss:$264 sps:$4 sm:$0xff]  }
 0x18e   : > { %8705 = vmatmul.mubr.bf16.gmra.mrb[180].mxu1 %v14608_v49  ;;  %8802 = vmatmul.mubr.bf16.gmra.mrb[180].mxu0 %v14609_v62  ;;  %v14651_v49 = vld [vmem:[%s18439_s1 + $0x6a8] sm:$0xff]   ;;  %v14634_v60 = vld [vmem:[%s15516_s13 + $0x89c] ss:$264 sps:$4 sm:$0xff]   ;;  %v14661_v63 = vld [vmem:[%s18439_s1 + $0x6b0] sm:$0xff]  }
 0x18f   : > { %v16460_v22 = vadd.f32 %v12295_v3, %v7971_v9  ;;  %v7974_v16 = vadd.f32 %v12234_v5, %v16298_v41  ;;  %8712 = vmatprep.mubr.bf16.mxu1 %v14614_v53  ;;  %8809 = vmatprep.mubr.bf16.mxu0 %v14616_v54  ;;  %v14626_v41 = vld [vmem:[%s15516_s13 + $0x694] ss:$264 sps:$4 sm:$0xff]   ;;  %v14629_v53 = vld [vmem:[%s15516_s13 + $0x690] ss:$264 sps:$4 sm:$0xff]  }
 0x190   : > { %12822 = vmatpush3.bf16.msra.mxu1 %v14621_v6  ;;  %12886 = vmatpush3.bf16.msra.mxu0 %v14623_v0  ;;  %v14662_v54 = vld [vmem:[%s18439_s1 + $0x770] sm:$0xff]  }
 0x191   : > { %v16471_v32 = vadd.f32 %v12298_v23, %v7974_v16  ;;  %v12235_v20 = vpop.f32.mrb[76].mxu1  ;;  %v12299_v29 = vpop.f32.mrb[76].mxu0  ;;  %12823 = vmatprep.subr.bf16.mxu1 %v14630_v1  ;;  %12887 = vmatprep.subr.bf16.mxu0 %v14632_v10  ;;  %v14663_v23 = vld [vmem:[%s18439_s1 + $0x730] sm:$0xff]  }
 0x192   : > { %v12236_v28 = vpop.f32.mrb[77].mxu1  ;;  %v12300_v30 = vpop.f32.mrb[77].mxu0 }
 0x193   : > { %v12237_v37 = vadd.f32 %v12236_v28, %v12235_v20  ;;  %v12301_v51 = vadd.f32 %v12300_v30, %v12299_v29  ;;  %v12238_v39 = vpop.f32.mrb[78].mxu1  ;;  %v12302_v40 = vpop.f32.mrb[78].mxu0 }
 0x194   : > { %v12239_v45 = vpop.f32.mrb[79].mxu1  ;;  %v12303_v33 = vpop.f32.mrb[79].mxu0  ;;  %12824 = vmatpush3.bf16.msra.mxu1 %v14631_v36  ;;  %12888 = vmatpush3.bf16.msra.mxu0 %v14633_v19  ;;  %v14673_v19 = vld [vmem:[%s18439_s1 + $0x738] sm:$0xff]  }
 0x195   : > { %v7979_v59 = vadd.f32 %v12237_v37, %v16321_v14  ;;  %v12240_v15 = vadd.f32 %v12239_v45, %v12238_v39  ;;  %v12304_v61 = vadd.f32 %v12303_v33, %v12302_v40  ;;  %12825 = vmatprep.subr.bf16.mxu1 %v14640_v27  ;;  %12889 = vmatprep.subr.bf16.mxu0 %v14642_v38  ;;  %v14653_v14 = vld [vmem:[%s18439_s1 + $0x728] sm:$0xff]   ;;  %v14682_v38 = vld [vmem:[%s18439_s1 + $0x840] sm:$0xff]   ;;  %v14646_v33 = vld [vmem:[%s15516_s13 + $0xab4] ss:$264 sps:$4 sm:$0xff]  }
 0x196   : > { %8713 = vmatmul.mubr.bf16.gmra.mrb[184].mxu1 %v14618_v17  ;;  %8810 = vmatmul.mubr.bf16.gmra.mrb[184].mxu0 %v14619_v11  ;;  %v14670_v17 = vld [vmem:[%s18439_s1 + $0x6f8] sm:$0xff]   ;;  %v14639_v27 = vld [vmem:[%s15516_s13 + $0x8a0] ss:$264 sps:$4 sm:$0xff]   ;;  %v14644_v37 = vld [vmem:[%s15516_s13 + $0xaac] ss:$264 sps:$4 sm:$0xff]  }
 0x197   : > { %v16500_v62 = vadd.f32 %v12301_v51, %v7979_v59  ;;  %v7982_v46 = vadd.f32 %v12240_v15, %v16332_v8  ;;  %8720 = vmatprep.mubr.bf16.mxu1 %v14624_v26  ;;  %8817 = vmatprep.mubr.bf16.mxu0 %v14626_v41  ;;  %v14636_v8 = vld [vmem:[%s15516_s13 + $0x8a4] ss:$264 sps:$4 sm:$0xff]   ;;  %v14672_v11 = vld [vmem:[%s18439_s1 + $0x778] sm:$0xff]  }
 0x198   : > { %12826 = vmatpush3.bf16.msra.mxu1 %v14641_v24  ;;  %12890 = vmatpush3.bf16.msra.mxu0 %v14643_v35  ;;  %v14680_v26 = vld [vmem:[%s18439_s1 + $0x7c0] sm:$0xff]  }
 0x199   : > { %v16511_v50 = vadd.f32 %v12304_v61, %v7982_v46  ;;  %v12321_v57 = vpop.f32.mrb[80].mxu1  ;;  %v12385_v6 = vpop.f32.mrb[80].mxu0  ;;  %12827 = vmatprep.subr.bf16.mxu1 %v14650_v55  ;;  %12891 = vmatprep.subr.bf16.mxu0 %v14652_v44  ;;  %v14638_v41 = vld [vmem:[%s15516_s13 + $0x898] ss:$264 sps:$4 sm:$0xff]  }
 0x19a   : > { %v12322_v3 = vpop.f32.mrb[81].mxu1  ;;  %v12386_v25 = vpop.f32.mrb[81].mxu0 }
 0x19b   : > { %v12323_v0 = vadd.f32 %v12322_v3, %v12321_v57  ;;  %v12387_v1 = vadd.f32 %v12386_v25, %v12385_v6  ;;  %v12324_v4 = vpop.f32.mrb[82].mxu1  ;;  %v12388_v34 = vpop.f32.mrb[82].mxu0  ;;  %v14649_v57 = vld [vmem:[%s15516_s13 + $0xab0] ss:$264 sps:$4 sm:$0xff]   ;;  %v14654_v25 = vld [vmem:[%s15516_s13 + $0xcbc] ss:$264 sps:$4 sm:$0xff]  }
 0x19c   : > { %v12325_v9 = vpop.f32.mrb[83].mxu1  ;;  %v12389_v5 = vpop.f32.mrb[83].mxu0  ;;  %12828 = vmatpush3.bf16.msra.mxu1 %v14651_v49  ;;  %12892 = vmatpush3.bf16.msra.mxu0 %v14653_v14 }
 0x19d   : > { %v8117_v10 = vadd.f32 %v12323_v0, %v16355_v7  ;;  %v12326_v16 = vadd.f32 %v12325_v9, %v12324_v4  ;;  %v12390_v36 = vadd.f32 %v12389_v5, %v12388_v34  ;;  %12829 = vmatprep.subr.bf16.mxu1 %v14660_v47  ;;  %12893 = vmatprep.subr.bf16.mxu0 %v14662_v54  ;;  %v14671_v7 = vld [vmem:[%s18439_s1 + $0x6b8] sm:$0xff]  }
 0x19e   : > { %8721 = vmatmul.mubr.bf16.gmra.mrb[188].mxu1 %v14628_v52  ;;  %8818 = vmatmul.mubr.bf16.gmra.mrb[188].mxu0 %v14629_v53 }
 0x19f   : > { %v16534_v20 = vadd.f32 %v12387_v1, %v8117_v10  ;;  %v8120_v29 = vadd.f32 %v12326_v16, %v16366_v43  ;;  %8728 = vmatprep.mubr.bf16.mxu1 %v14634_v60  ;;  %8825 = vmatprep.mubr.bf16.mxu0 %v14636_v8 }
 0x1a0   : > { %12830 = vmatpush3.bf16.msra.mxu1 %v14661_v63  ;;  %12894 = vmatpush3.bf16.msra.mxu0 %v14663_v23  ;;  %v14656_v63 = vld [vmem:[%s15516_s13 + $0xcc4] ss:$264 sps:$4 sm:$0xff]  }
 0x1a1   : > { %v16545_v28 = vadd.f32 %v12390_v36, %v8120_v29  ;;  %v12327_v30 = vpop.f32.mrb[84].mxu1  ;;  %v12391_v43 = vpop.f32.mrb[84].mxu0  ;;  %12831 = vmatprep.subr.bf16.mxu1 %v14670_v17  ;;  %12895 = vmatprep.subr.bf16.mxu0 %v14672_v11  ;;  %v14658_v36 = vld [vmem:[%s15516_s13 + $0xcb8] ss:$264 sps:$4 sm:$0xff]  }
 0x1a2   : > { %v12328_v24 = vpop.f32.mrb[85].mxu1  ;;  %v12392_v35 = vpop.f32.mrb[85].mxu0 }
 0x1a3   : > { %v12329_v51 = vadd.f32 %v12328_v24, %v12327_v30  ;;  %v12393_v39 = vadd.f32 %v12392_v35, %v12391_v43  ;;  %v12330_v40 = vpop.f32.mrb[86].mxu1  ;;  %v12394_v45 = vpop.f32.mrb[86].mxu0 }
 0x1a4   : > { %v12331_v55 = vpop.f32.mrb[87].mxu1  ;;  %v12395_v59 = vpop.f32.mrb[87].mxu0  ;;  %12832 = vmatpush3.bf16.msra.mxu1 %v14671_v7  ;;  %12896 = vmatpush3.bf16.msra.mxu0 %v14673_v19 }
 0x1a5   : > { %v8125_v15 = vadd.f32 %v12329_v51, %v16374_v58  ;;  %v12332_v61 = vadd.f32 %v12331_v55, %v12330_v40  ;;  %v12396_v44 = vadd.f32 %v12395_v59, %v12394_v45  ;;  %12945 = vmatprep.subr.bf16.mxu1 %v14680_v26  ;;  %13009 = vmatprep.subr.bf16.mxu0 %v14682_v38  ;;  %v14648_v58 = vld [vmem:[%s15516_s13 + $0xaa8] ss:$264 sps:$4 sm:$0xff]   ;;  %v14676_v59 = vld [vmem:[%s15516_s13 + $0x6c] ss:$264 sps:$4 sm:$0xff]  }
 0x1a6   : > { %8729 = vmatmul.mubr.bf16.gmra.mrb[192].mxu1 %v14638_v41  ;;  %8826 = vmatmul.mubr.bf16.gmra.mrb[192].mxu0 %v14639_v27  ;;  %v14664_v41 = vld [vmem:[%s15516_s13 + $0xecc] ss:$264 sps:$4 sm:$0xff]   ;;  %v14668_v51 = vld [vmem:[%s15516_s13 + $0xec8] ss:$264 sps:$4 sm:$0xff]  }
 0x1a7   : > { %v16550_v49 = vadd.f32 %v12393_v39, %v8125_v15  ;;  %v8128_v14 = vadd.f32 %v12332_v61, %v16377_v12  ;;  %8736 = vmatprep.mubr.bf16.mxu1 %v14644_v37  ;;  %8833 = vmatprep.mubr.bf16.mxu0 %v14646_v33  ;;  %v14666_v27 = vld [vmem:[%s15516_s13 + $0xed4] ss:$264 sps:$4 sm:$0xff]   ;;  %v14669_v33 = vld [vmem:[%s15516_s13 + $0xed0] ss:$264 sps:$4 sm:$0xff]  }
 0x1a8   : > { %v14679_v15 = vld [vmem:[%s15516_s13 + $0x74] ss:$264 sps:$4 sm:$0xff]  }
 0x1a9   : > { %v16553_v46 = vadd.f32 %v12396_v44, %v8128_v14  ;;  %v12333_v47 = vpop.f32.mrb[88].mxu1  ;;  %v12397_v52 = vpop.f32.mrb[88].mxu0 }
 0x1aa   : > { %v12334_v53 = vpop.f32.mrb[89].mxu1  ;;  %v12398_v54 = vpop.f32.mrb[89].mxu0 }
 0x1ab   : > { %v12335_v6 = vadd.f32 %v12334_v53, %v12333_v47  ;;  %v12399_v60 = vadd.f32 %v12398_v54, %v12397_v52  ;;  %v12336_v8 = vpop.f32.mrb[90].mxu1  ;;  %v12400_v3 = vpop.f32.mrb[90].mxu0 }
 0x1ac   : > { %v12337_v0 = vpop.f32.mrb[91].mxu1  ;;  %v12401_v1 = vpop.f32.mrb[91].mxu0 }
 0x1ad   : > { %v8133_v12 = vadd.f32 %v12335_v6, %v16384_v21  ;;  %v12338_v4 = vadd.f32 %v12337_v0, %v12336_v8  ;;  %v12402_v34 = vadd.f32 %v12401_v1, %v12400_v3  ;;  %v14659_v21 = vld [vmem:[%s15516_s13 + $0xcc0] ss:$264 sps:$4 sm:$0xff]  }
 0x1ae   : > { %8737 = vmatmul.mubr.bf16.gmra.mrb[196].mxu1 %v14648_v58  ;;  %8834 = vmatmul.mubr.bf16.gmra.mrb[196].mxu0 %v14649_v57 }
 0x1af   : > { %v16560_v9 = vadd.f32 %v12399_v60, %v8133_v12  ;;  %v8136_v5 = vadd.f32 %v12338_v4, %v16388_v31  ;;  %8744 = vmatprep.mubr.bf16.mxu1 %v14654_v25  ;;  %8841 = vmatprep.mubr.bf16.mxu0 %v14656_v63  ;;  %v14674_v60 = vld [vmem:[%s15516_s13 + $0x68] ss:$264 sps:$4 sm:$0xff]   ;;  %v14684_v12 = vld [vmem:[%s15516_s13 + $0x27c] ss:$264 sps:$4 sm:$0xff]  }
 0x1b0   : > { %v14677_v63 = vld [vmem:[%s15516_s13 + $0x70] ss:$264 sps:$4 sm:$0xff]   ;;  %v14686_v4 = vld [vmem:[%s15516_s13 + $0x284] ss:$264 sps:$4 sm:$0xff]  }
 0x1b1   : > { %v16563_v23 = vadd.f32 %v12402_v34, %v8136_v5  ;;  %v12339_v10 = vpop.f32.mrb[92].mxu1  ;;  %v12403_v16 = vpop.f32.mrb[92].mxu0 }
 0x1b2   : > { %v12340_v17 = vpop.f32.mrb[93].mxu1  ;;  %v12404_v11 = vpop.f32.mrb[93].mxu0 }
 0x1b3   : > { %v12341_v7 = vadd.f32 %v12340_v17, %v12339_v10  ;;  %v12405_v19 = vadd.f32 %v12404_v11, %v12403_v16  ;;  %v12342_v29 = vpop.f32.mrb[94].mxu1  ;;  %v12406_v26 = vpop.f32.mrb[94].mxu0  ;;  %v14683_v16 = vld [vmem:[%s18439_s1 + $0x800] sm:$0xff]  }
 0x1b4   : > { %v12343_v38 = vpop.f32.mrb[95].mxu1  ;;  %v12407_v31 = vpop.f32.mrb[95].mxu0 }
 0x1b5   : > { %v8141_v30 = vadd.f32 %v12341_v7, %v16394_v48  ;;  %v12344_v43 = vadd.f32 %v12343_v38, %v12342_v29  ;;  %v12408_v24 = vadd.f32 %v12407_v31, %v12406_v26  ;;  %v14691_v29 = vld [vmem:[%s18439_s1 + $0x788] sm:$0xff]   ;;  %v14700_v38 = vld [vmem:[%s18439_s1 + $0x7d0] sm:$0xff]   ;;  %v14688_v31 = vld [vmem:[%s15516_s13 + $0x278] ss:$264 sps:$4 sm:$0xff]  }
 0x1b6   : > { %8745 = vmatmul.mubr.bf16.gmra.mrb[200].mxu1 %v14658_v36  ;;  %8842 = vmatmul.mubr.bf16.gmra.mrb[200].mxu0 %v14659_v21  ;;  %v14690_v36 = vld [vmem:[%s18439_s1 + $0x7c8] sm:$0xff]  }
 0x1b7   : > { %v16570_v35 = vadd.f32 %v12405_v19, %v8141_v30  ;;  %v8144_v37 = vadd.f32 %v12344_v43, %v16399_v56  ;;  %8752 = vmatprep.mubr.bf16.mxu1 %v14664_v41  ;;  %8849 = vmatprep.mubr.bf16.mxu0 %v14666_v27  ;;  %v14692_v26 = vld [vmem:[%s18439_s1 + $0x848] sm:$0xff]   ;;  %v14702_v43 = vld [vmem:[%s18439_s1 + $0x850] sm:$0xff]  }
 0x1b8   : > { %v14693_v41 = vld [vmem:[%s18439_s1 + $0x808] sm:$0xff]  }
 0x1b9   : > { %v16574_v39 = vadd.f32 %v12408_v24, %v8144_v37  ;;  %v12345_v40 = vpop.f32.mrb[96].mxu1  ;;  %v12409_v45 = vpop.f32.mrb[96].mxu0  ;;  %v14689_v30 = vld [vmem:[%s15516_s13 + $0x280] ss:$264 sps:$4 sm:$0xff]  }
 0x1ba   : > { %v12346_v55 = vpop.f32.mrb[97].mxu1  ;;  %v12410_v48 = vpop.f32.mrb[97].mxu0 }
 0x1bb   : > { %v12347_v61 = vadd.f32 %v12346_v55, %v12345_v40  ;;  %v12411_v44 = vadd.f32 %v12410_v48, %v12409_v45  ;;  %v12348_v14 = vpop.f32.mrb[98].mxu1  ;;  %v12412_v47 = vpop.f32.mrb[98].mxu0  ;;  %v14696_v40 = vld [vmem:[%s15516_s13 + $0x494] ss:$264 sps:$4 sm:$0xff]  }
 0x1bc   : > { %v12349_v52 = vpop.f32.mrb[99].mxu1  ;;  %v12413_v56 = vpop.f32.mrb[99].mxu0  ;;  %v14701_v55 = vld [vmem:[%s18439_s1 + $0x790] sm:$0xff]  }
 0x1bd   : > { %v8149_v58 = vadd.f32 %v12347_v61, %v16404_v13  ;;  %v12350_v53 = vadd.f32 %v12349_v52, %v12348_v14  ;;  %v12414_v54 = vadd.f32 %v12413_v56, %v12412_v47  ;;  %v14681_v13 = vld [vmem:[%s18439_s1 + $0x780] sm:$0xff]   ;;  %v14710_v14 = vld [vmem:[%s18439_s1 + $0x7d8] sm:$0xff]  }
 0x1be   : > { %8753 = vmatmul.mubr.bf16.gmra.mrb[204].mxu1 %v14668_v51  ;;  %8850 = vmatmul.mubr.bf16.gmra.mrb[204].mxu0 %v14669_v33 }
 0x1bf   : > { %v16580_v57 = vadd.f32 %v12411_v44, %v8149_v58  ;;  %v8152_v6 = vadd.f32 %v12350_v53, %v16409_v18  ;;  %8890 = vmatprep.mubr.bf16.mxu1 %v14676_v59  ;;  %8987 = vmatprep.mubr.bf16.mxu0 %v14679_v15  ;;  %v14703_v44 = vld [vmem:[%s18439_s1 + $0x810] sm:$0xff]  }
 0x1c1   : > { %v16584_v8 = vadd.f32 %v12414_v54, %v8152_v6  ;;  %v12351_v3 = vpop.f32.mrb[100].mxu1  ;;  %v12415_v25 = vpop.f32.mrb[100].mxu0  ;;  %v14712_v54 = vld [vmem:[%s18439_s1 + $0x858] sm:$0xff]  }
 0x1c2   : > { %v12352_v0 = vpop.f32.mrb[101].mxu1  ;;  %v12416_v1 = vpop.f32.mrb[101].mxu0 }
 0x1c3   : > { %v12353_v34 = vadd.f32 %v12352_v0, %v12351_v3  ;;  %v12417_v5 = vadd.f32 %v12416_v1, %v12415_v25  ;;  %v12354_v10 = vpop.f32.mrb[102].mxu1  ;;  %v12418_v18 = vpop.f32.mrb[102].mxu0  ;;  %v14698_v3 = vld [vmem:[%s15516_s13 + $0x488] ss:$264 sps:$4 sm:$0xff]  }
 0x1c4   : > { %v12355_v17 = vpop.f32.mrb[103].mxu1  ;;  %v12419_v11 = vpop.f32.mrb[103].mxu0  ;;  %v14699_v25 = vld [vmem:[%s15516_s13 + $0x490] ss:$264 sps:$4 sm:$0xff]  }
 0x1c5   : > { %v8157_v21 = vadd.f32 %v12353_v34, %v16429_v42  ;;  %v12356_v7 = vadd.f32 %v12355_v17, %v12354_v10  ;;  %v12420_v19 = vadd.f32 %v12419_v11, %v12418_v18  ;;  %v14722_v34 = vld [vmem:[%s18439_s1 + $0x860] sm:$0xff]  }
 0x1c6   : > { %8891 = vmatmul.mubr.bf16.vlgmr.msra.gmra.mrb[208].mxu1 %v14674_v60  ;;  %8988 = vmatmul.mubr.bf16.vlgmr.msra.gmra.mrb[208].mxu0 %v14677_v63  ;;  %v14713_v63 = vld [vmem:[%s18439_s1 + $0x818] sm:$0xff]   ;;  %v14721_v18 = vld [vmem:[%s18439_s1 + $0x7a0] sm:$0xff]  }
 0x1c7   : > { %v16608_v27 = vadd.f32 %v12417_v5, %v8157_v21  ;;  %v8160_v42 = vadd.f32 %v12356_v7, %v16443_v2  ;;  %12946 = vmatpush3.bf16.msra.mxu1 %v14681_v13  ;;  %13010 = vmatpush3.bf16.msra.mxu0 %v14683_v16  ;;  %v14694_v2 = vld [vmem:[%s15516_s13 + $0x48c] ss:$264 sps:$4 sm:$0xff]   ;;  %v14723_v16 = vld [vmem:[%s18439_s1 + $0x820] sm:$0xff]  }
 0x1c8   : > { %8898 = vmatprep.mubr.bf16.mxu1 %v14684_v12  ;;  %8995 = vmatprep.mubr.bf16.mxu0 %v14686_v4  ;;  %v14704_v12 = vld [vmem:[%s15516_s13 + $0x69c] ss:$264 sps:$4 sm:$0xff]   ;;  %v14730_v7 = vld [vmem:[%s18439_s1 + $0x7e8] sm:$0xff]  }
 0x1c9   : > { %v16619_v24 = vadd.f32 %v12420_v19, %v8160_v42  ;;  %v12357_v37 = vpop.f32.mrb[104].mxu1  ;;  %v12421_v51 = vpop.f32.mrb[104].mxu0  ;;  %12947 = vmatprep.subr.bf16.mxu1 %v14690_v36  ;;  %13011 = vmatprep.subr.bf16.mxu0 %v14692_v26  ;;  %v14720_v4 = vld [vmem:[%s18439_s1 + $0x7e0] sm:$0xff]  }
 0x1ca   : > { %v12358_v45 = vpop.f32.mrb[105].mxu1  ;;  %v12422_v33 = vpop.f32.mrb[105].mxu0 }
 0x1cb   : > { %v12359_v48 = vadd.f32 %v12358_v45, %v12357_v37  ;;  %v12423_v59 = vadd.f32 %v12422_v33, %v12421_v51  ;;  %v12360_v15 = vpop.f32.mrb[106].mxu1  ;;  %v12424_v61 = vpop.f32.mrb[106].mxu0  ;;  %12948 = vmatpush3.bf16.msra.mxu1 %v14691_v29  ;;  %13012 = vmatpush3.bf16.msra.mxu0 %v14693_v41  ;;  %v14709_v37 = vld [vmem:[%s15516_s13 + $0x6a0] ss:$264 sps:$4 sm:$0xff]  }
 0x1cc   : > { %v12361_v47 = vpop.f32.mrb[107].mxu1  ;;  %v12425_v52 = vpop.f32.mrb[107].mxu0  ;;  %12949 = vmatprep.subr.bf16.mxu1 %v14700_v38  ;;  %13013 = vmatprep.subr.bf16.mxu0 %v14702_v43  ;;  %v14732_v38 = vld [vmem:[%s18439_s1 + $0x868] sm:$0xff]   ;;  %v14708_v43 = vld [vmem:[%s15516_s13 + $0x698] ss:$264 sps:$4 sm:$0xff]  }
 0x1cd   : > { %v8165_v56 = vadd.f32 %v12359_v48, %v16460_v22  ;;  %v12362_v58 = vadd.f32 %v12361_v47, %v12360_v15  ;;  %v12426_v53 = vadd.f32 %v12425_v52, %v12424_v61  ;;  %v14711_v22 = vld [vmem:[%s18439_s1 + $0x798] sm:$0xff]   ;;  %v14733_v51 = vld [vmem:[%s18439_s1 + $0x828] sm:$0xff]   ;;  %v14741_v61 = vld [vmem:[%s18439_s1 + $0x7b0] sm:$0xff]  }
 0x1ce   : > { %8899 = vmatmul.mubr.bf16.gmra.mrb[212].mxu1 %v14688_v31  ;;  %8996 = vmatmul.mubr.bf16.gmra.mrb[212].mxu0 %v14689_v30  ;;  %v14716_v48 = vld [vmem:[%s15516_s13 + $0x8b4] ss:$264 sps:$4 sm:$0xff]  }
 0x1cf   : > { %v16636_v6 = vadd.f32 %v12423_v59, %v8165_v56  ;;  %v8168_v60 = vadd.f32 %v12362_v58, %v16471_v32  ;;  %8906 = vmatprep.mubr.bf16.mxu1 %v14694_v2  ;;  %9003 = vmatprep.mubr.bf16.mxu0 %v14696_v40  ;;  %v14706_v32 = vld [vmem:[%s15516_s13 + $0x6a4] ss:$264 sps:$4 sm:$0xff]   ;;  %v14740_v2 = vld [vmem:[%s18439_s1 + $0x7f0] sm:$0xff]  }
 0x1d0   : > { %12950 = vmatpush3.bf16.msra.mxu1 %v14701_v55  ;;  %13014 = vmatpush3.bf16.msra.mxu0 %v14703_v44  ;;  %v14714_v55 = vld [vmem:[%s15516_s13 + $0x8ac] ss:$264 sps:$4 sm:$0xff]  }
 0x1d1   : > { %v16647_v13 = vadd.f32 %v12426_v53, %v8168_v60  ;;  %v12363_v0 = vpop.f32.mrb[108].mxu1  ;;  %v12427_v1 = vpop.f32.mrb[108].mxu0  ;;  %12951 = vmatprep.subr.bf16.mxu1 %v14710_v14  ;;  %13015 = vmatprep.subr.bf16.mxu0 %v14712_v54  ;;  %v14743_v44 = vld [vmem:[%s18439_s1 + $0x830] sm:$0xff]   ;;  %v14750_v54 = vld [vmem:[%s18439_s1 + $0x7f8] sm:$0xff]  }
 0x1d2   : > { %v12364_v5 = vpop.f32.mrb[109].mxu1  ;;  %v12428_v10 = vpop.f32.mrb[109].mxu0  ;;  %v14752_v60 = vld [vmem:[%s18439_s1 + $0x878] sm:$0xff]  }
 0x1d3   : > { %v12365_v36 = vadd.f32 %v12364_v5, %v12363_v0  ;;  %v12429_v17 = vadd.f32 %v12428_v10, %v12427_v1  ;;  %v12366_v11 = vpop.f32.mrb[110].mxu1  ;;  %v12430_v21 = vpop.f32.mrb[110].mxu0  ;;  %v14751_v1 = vld [vmem:[%s18439_s1 + $0x7b8] sm:$0xff]   ;;  %v14760_v10 = vld [vmem:[%s18439_s1 + $0x8c0] sm:$0xff]  }
 0x1d4   : > { %v12367_v19 = vpop.f32.mrb[111].mxu1  ;;  %v12431_v29 = vpop.f32.mrb[111].mxu0  ;;  %12952 = vmatpush3.bf16.msra.mxu1 %v14711_v22  ;;  %13016 = vmatpush3.bf16.msra.mxu0 %v14713_v63 }
 0x1d5   : > { %v8173_v26 = vadd.f32 %v12365_v36, %v16500_v62  ;;  %v12368_v41 = vadd.f32 %v12367_v19, %v12366_v11  ;;  %v12432_v42 = vadd.f32 %v12431_v29, %v12430_v21  ;;  %12953 = vmatprep.subr.bf16.mxu1 %v14720_v4  ;;  %13017 = vmatprep.subr.bf16.mxu0 %v14722_v34  ;;  %v14731_v62 = vld [vmem:[%s18439_s1 + $0x7a8] sm:$0xff]  }
 0x1d6   : > { %8907 = vmatmul.mubr.bf16.gmra.mrb[216].mxu1 %v14698_v3  ;;  %9004 = vmatmul.mubr.bf16.gmra.mrb[216].mxu0 %v14699_v25  ;;  %v14726_v19 = vld [vmem:[%s15516_s13 + $0xac4] ss:$264 sps:$4 sm:$0xff]  }
 0x1d7   : > { %v16670_v31 = vadd.f32 %v12429_v17, %v8173_v26  ;;  %v8176_v30 = vadd.f32 %v12368_v41, %v16511_v50  ;;  %8914 = vmatprep.mubr.bf16.mxu1 %v14704_v12  ;;  %9011 = vmatprep.mubr.bf16.mxu0 %v14706_v32  ;;  %v14742_v50 = vld [vmem:[%s18439_s1 + $0x870] sm:$0xff]  }
 0x1d8   : > { %12954 = vmatpush3.bf16.msra.mxu1 %v14721_v18  ;;  %13018 = vmatpush3.bf16.msra.mxu0 %v14723_v16  ;;  %v14718_v12 = vld [vmem:[%s15516_s13 + $0x8a8] ss:$264 sps:$4 sm:$0xff]   ;;  %v14762_v18 = vld [vmem:[%s18439_s1 + $0x940] sm:$0xff]  }
 0x1d9   : > { %v16687_v40 = vadd.f32 %v12432_v42, %v8176_v30  ;;  %v12449_v45 = vpop.f32.mrb[112].mxu1  ;;  %v12513_v33 = vpop.f32.mrb[112].mxu0  ;;  %12955 = vmatprep.subr.bf16.mxu1 %v14730_v7  ;;  %13019 = vmatprep.subr.bf16.mxu0 %v14732_v38  ;;  %v14719_v32 = vld [vmem:[%s15516_s13 + $0x8b0] ss:$264 sps:$4 sm:$0xff]  }
 0x1da   : > { %v12450_v59 = vpop.f32.mrb[113].mxu1  ;;  %v12514_v15 = vpop.f32.mrb[113].mxu0 }
 0x1db   : > { %v12451_v14 = vadd.f32 %v12450_v59, %v12449_v45  ;;  %v12515_v47 = vadd.f32 %v12514_v15, %v12513_v33  ;;  %v12452_v52 = vpop.f32.mrb[114].mxu1  ;;  %v12516_v56 = vpop.f32.mrb[114].mxu0  ;;  %v14736_v45 = vld [vmem:[%s15516_s13 + $0xcd4] ss:$264 sps:$4 sm:$0xff]  }
 0x1dc   : > { %v12453_v58 = vpop.f32.mrb[115].mxu1  ;;  %v12517_v53 = vpop.f32.mrb[115].mxu0  ;;  %12956 = vmatpush3.bf16.msra.mxu1 %v14731_v62  ;;  %13020 = vmatpush3.bf16.msra.mxu0 %v14733_v51 }
 0x1dd   : > { %v8311_v3 = vadd.f32 %v12451_v14, %v16534_v20  ;;  %v12454_v25 = vadd.f32 %v12453_v58, %v12452_v52  ;;  %v12518_v22 = vadd.f32 %v12517_v53, %v12516_v56  ;;  %12957 = vmatprep.subr.bf16.mxu1 %v14740_v2  ;;  %13021 = vmatprep.subr.bf16.mxu0 %v14742_v50  ;;  %v14753_v20 = vld [vmem:[%s18439_s1 + $0x838] sm:$0xff]   ;;  %v14734_v50 = vld [vmem:[%s15516_s13 + $0xccc] ss:$264 sps:$4 sm:$0xff]   ;;  %v14738_v53 = vld [vmem:[%s15516_s13 + $0xcc8] ss:$264 sps:$4 sm:$0xff]  }
 0x1de   : > { %8915 = vmatmul.mubr.bf16.gmra.mrb[220].mxu1 %v14708_v43  ;;  %9012 = vmatmul.mubr.bf16.gmra.mrb[220].mxu0 %v14709_v37  ;;  %v14728_v43 = vld [vmem:[%s15516_s13 + $0xab8] ss:$264 sps:$4 sm:$0xff]  }
 0x1df   : > { %v16704_v63 = vadd.f32 %v12515_v47, %v8311_v3  ;;  %v8314_v0 = vadd.f32 %v12454_v25, %v16545_v28  ;;  %8922 = vmatprep.mubr.bf16.mxu1 %v14714_v55  ;;  %9019 = vmatprep.mubr.bf16.mxu0 %v14716_v48  ;;  %v14724_v28 = vld [vmem:[%s15516_s13 + $0xabc] ss:$264 sps:$4 sm:$0xff]   ;;  %v14729_v37 = vld [vmem:[%s15516_s13 + $0xac0] ss:$264 sps:$4 sm:$0xff]  }
 0x1e0   : > { %12958 = vmatpush3.bf16.msra.mxu1 %v14741_v61  ;;  %13022 = vmatpush3.bf16.msra.mxu0 %v14743_v44 }
 0x1e1   : > { %v16715_v4 = vadd.f32 %v12518_v22, %v8314_v0  ;;  %v12455_v34 = vpop.f32.mrb[116].mxu1  ;;  %v12519_v5 = vpop.f32.mrb[116].mxu0  ;;  %12959 = vmatprep.subr.bf16.mxu1 %v14750_v54  ;;  %13023 = vmatprep.subr.bf16.mxu0 %v14752_v60  ;;  %v14739_v54 = vld [vmem:[%s15516_s13 + $0xcd0] ss:$264 sps:$4 sm:$0xff]   ;;  %v14744_v22 = vld [vmem:[%s15516_s13 + $0xedc] ss:$264 sps:$4 sm:$0xff]  }
 0x1e2   : > { %v12456_v16 = vpop.f32.mrb[117].mxu1  ;;  %v12520_v36 = vpop.f32.mrb[117].mxu0 }
 0x1e3   : > { %v12457_v17 = vadd.f32 %v12456_v16, %v12455_v34  ;;  %v12521_v11 = vadd.f32 %v12520_v36, %v12519_v5  ;;  %v12458_v21 = vpop.f32.mrb[118].mxu1  ;;  %v12522_v7 = vpop.f32.mrb[118].mxu0 }
 0x1e4   : > { %v12459_v29 = vpop.f32.mrb[119].mxu1  ;;  %v12523_v26 = vpop.f32.mrb[119].mxu0  ;;  %12960 = vmatpush3.bf16.msra.mxu1 %v14751_v1  ;;  %13024 = vmatpush3.bf16.msra.mxu0 %v14753_v20  ;;  %v14746_v1 = vld [vmem:[%s15516_s13 + $0xee4] ss:$264 sps:$4 sm:$0xff]  }
 0x1e5   : > { %v8319_v41 = vadd.f32 %v12457_v17, %v16550_v49  ;;  %v12460_v42 = vadd.f32 %v12459_v29, %v12458_v21  ;;  %v12524_v38 = vadd.f32 %v12523_v26, %v12522_v7  ;;  %13073 = vmatprep.subr.bf16.mxu1 %v14760_v10  ;;  %13137 = vmatprep.subr.bf16.mxu0 %v14762_v18  ;;  %v14748_v17 = vld [vmem:[%s15516_s13 + $0xed8] ss:$264 sps:$4 sm:$0xff]  }
 0x1e6   : > { %8923 = vmatmul.mubr.bf16.gmra.mrb[224].mxu1 %v14718_v12  ;;  %9020 = vmatmul.mubr.bf16.gmra.mrb[224].mxu0 %v14719_v32 }
 0x1e7   : > { %v16726_v30 = vadd.f32 %v12521_v11, %v8319_v41  ;;  %v8322_v62 = vadd.f32 %v12460_v42, %v16553_v46  ;;  %8930 = vmatprep.mubr.bf16.mxu1 %v14724_v28  ;;  %9027 = vmatprep.mubr.bf16.mxu0 %v14726_v19  ;;  %v14749_v19 = vld [vmem:[%s15516_s13 + $0xee0] ss:$264 sps:$4 sm:$0xff]  }
 0x1e9   : > { %v16731_v51 = vadd.f32 %v12524_v38, %v8322_v62  ;;  %v12461_v2 = vpop.f32.mrb[120].mxu1  ;;  %v12525_v49 = vpop.f32.mrb[120].mxu0  ;;  %v14756_v62 = vld [vmem:[%s15516_s13 + $0x7c] ss:$264 sps:$4 sm:$0xff]  }
 0x1ea   : > { %v12462_v33 = vpop.f32.mrb[121].mxu1  ;;  %v12526_v55 = vpop.f32.mrb[121].mxu0 }
 0x1eb   : > { %v12463_v48 = vadd.f32 %v12462_v33, %v12461_v2  ;;  %v12527_v59 = vadd.f32 %v12526_v55, %v12525_v49  ;;  %v12464_v15 = vpop.f32.mrb[122].mxu1  ;;  %v12528_v61 = vpop.f32.mrb[122].mxu0  ;;  %v14754_v55 = vld [vmem:[%s15516_s13 + $0x78] ss:$264 sps:$4 sm:$0xff]  }
 0x1ec   : > { %v12465_v44 = vpop.f32.mrb[123].mxu1  ;;  %v12529_v46 = vpop.f32.mrb[123].mxu0 }
 0x1ed   : > { %v8327_v14 = vadd.f32 %v12463_v48, %v16560_v9  ;;  %v12466_v47 = vadd.f32 %v12465_v44, %v12464_v15  ;;  %v12530_v52 = vadd.f32 %v12529_v46, %v12528_v61  ;;  %v14757_v61 = vld [vmem:[%s15516_s13 + $0x80] ss:$264 sps:$4 sm:$0xff]  }
 0x1ee   : > { %8931 = vmatmul.mubr.bf16.gmra.mrb[228].mxu1 %v14728_v43  ;;  %9028 = vmatmul.mubr.bf16.gmra.mrb[228].mxu0 %v14729_v37  ;;  %v14759_v43 = vld [vmem:[%s15516_s13 + $0x84] ss:$264 sps:$4 sm:$0xff]  }
 0x1ef   : > { %v16736_v56 = vadd.f32 %v12527_v59, %v8327_v14  ;;  %v8330_v58 = vadd.f32 %v12466_v47, %v16563_v23  ;;  %8938 = vmatprep.mubr.bf16.mxu1 %v14734_v50  ;;  %9035 = vmatprep.mubr.bf16.mxu0 %v14736_v45  ;;  %v14761_v46 = vld [vmem:[%s18439_s1 + $0x880] sm:$0xff]  }
 0x1f0   : > { %v14763_v14 = vld [vmem:[%s18439_s1 + $0x900] sm:$0xff]  }
 0x1f1   : > { %v16741_v60 = vadd.f32 %v12530_v52, %v8330_v58  ;;  %v12467_v3 = vpop.f32.mrb[124].mxu1  ;;  %v12531_v25 = vpop.f32.mrb[124].mxu0 }
 0x1f2   : > { %v12468_v0 = vpop.f32.mrb[125].mxu1  ;;  %v12532_v9 = vpop.f32.mrb[125].mxu0 }
 0x1f3   : > { %v12469_v12 = vadd.f32 %v12468_v0, %v12467_v3  ;;  %v12533_v32 = vadd.f32 %v12532_v9, %v12531_v25  ;;  %v12470_v20 = vpop.f32.mrb[126].mxu1  ;;  %v12534_v34 = vpop.f32.mrb[126].mxu0 }
 0x1f4   : > { %v12471_v5 = vpop.f32.mrb[127].mxu1  ;;  %v12535_v23 = vpop.f32.mrb[127].mxu0 }
 0x1f5   : > { %v8335_v28 = vadd.f32 %v12469_v12, %v16570_v35  ;;  %v12472_v10 = vadd.f32 %v12471_v5, %v12470_v20  ;;  %v12536_v18 = vadd.f32 %v12535_v23, %v12534_v34  ;;  %v14771_v12 = vld [vmem:[%s18439_s1 + $0x888] sm:$0xff]   ;;  %v14780_v5 = vld [vmem:[%s18439_s1 + $0x8d0] sm:$0xff]  }
 0x1f6   : > { %8939 = vmatmul.mubr.bf16.gmra.mrb[232].mxu1 %v14738_v53  ;;  %9036 = vmatmul.mubr.bf16.gmra.mrb[232].mxu0 %v14739_v54  ;;  %v14766_v54 = vld [vmem:[%s15516_s13 + $0x294] ss:$264 sps:$4 sm:$0xff]   ;;  %v14773_v20 = vld [vmem:[%s18439_s1 + $0x908] sm:$0xff]  }
 0x1f7   : > { %v16746_v16 = vadd.f32 %v12533_v32, %v8335_v28  ;;  %v8338_v36 = vadd.f32 %v12472_v10, %v16574_v39  ;;  %8946 = vmatprep.mubr.bf16.mxu1 %v14744_v22  ;;  %9043 = vmatprep.mubr.bf16.mxu0 %v14746_v1  ;;  %v14770_v22 = vld [vmem:[%s18439_s1 + $0x8c8] sm:$0xff]   ;;  %v14769_v28 = vld [vmem:[%s15516_s13 + $0x290] ss:$264 sps:$4 sm:$0xff]  }
 0x1f8   : > { %v14772_v32 = vld [vmem:[%s18439_s1 + $0x948] sm:$0xff]   ;;  %v14782_v10 = vld [vmem:[%s18439_s1 + $0x950] sm:$0xff]  }
 0x1f9   : > { %v16750_v11 = vadd.f32 %v12536_v18, %v8338_v36  ;;  %v12473_v21 = vpop.f32.mrb[128].mxu1  ;;  %v12537_v7 = vpop.f32.mrb[128].mxu0  ;;  %v14768_v23 = vld [vmem:[%s15516_s13 + $0x288] ss:$264 sps:$4 sm:$0xff]  }
 0x1fa   : > { %v12474_v29 = vpop.f32.mrb[129].mxu1  ;;  %v12538_v35 = vpop.f32.mrb[129].mxu0 }
 0x1fb   : > { %v12475_v26 = vadd.f32 %v12474_v29, %v12473_v21  ;;  %v12539_v41 = vadd.f32 %v12538_v35, %v12537_v7  ;;  %v12476_v42 = vpop.f32.mrb[130].mxu1  ;;  %v12540_v38 = vpop.f32.mrb[130].mxu0 }
 0x1fc   : > { %v12477_v37 = vpop.f32.mrb[131].mxu1  ;;  %v12541_v39 = vpop.f32.mrb[131].mxu0 }
 0x1fd   : > { %v8343_v2 = vadd.f32 %v12475_v26, %v16580_v57  ;;  %v12478_v49 = vadd.f32 %v12477_v37, %v12476_v42  ;;  %v12542_v50 = vadd.f32 %v12541_v39, %v12540_v38  ;;  %v14781_v42 = vld [vmem:[%s18439_s1 + $0x890] sm:$0xff]  }
 0x1fe   : > { %8947 = vmatmul.mubr.bf16.gmra.mrb[236].mxu1 %v14748_v17  ;;  %9044 = vmatmul.mubr.bf16.gmra.mrb[236].mxu0 %v14749_v19  ;;  %v14776_v19 = vld [vmem:[%s15516_s13 + $0x4a4] ss:$264 sps:$4 sm:$0xff]   ;;  %v14783_v38 = vld [vmem:[%s18439_s1 + $0x910] sm:$0xff]  }
 0x1ff   : > { %v16756_v45 = vadd.f32 %v12539_v41, %v8343_v2  ;;  %v8346_v33 = vadd.f32 %v12478_v49, %v16584_v8  ;;  %9084 = vmatprep.mubr.bf16.mxu1 %v14756_v62  ;;  %9181 = vmatprep.mubr.bf16.mxu0 %v14759_v43  ;;  %v14764_v8 = vld [vmem:[%s15516_s13 + $0x28c] ss:$264 sps:$4 sm:$0xff]   ;;  %v14790_v62 = vld [vmem:[%s18439_s1 + $0x8d8] sm:$0xff]  }
 0x201   : > { %v16760_v48 = vadd.f32 %v12542_v50, %v8346_v33  ;;  %v12479_v59 = vpop.f32.mrb[132].mxu1  ;;  %v12543_v15 = vpop.f32.mrb[132].mxu0  ;;  %v14792_v50 = vld [vmem:[%s18439_s1 + $0x958] sm:$0xff]  }
 0x202   : > { %v12480_v44 = vpop.f32.mrb[133].mxu1  ;;  %v12544_v57 = vpop.f32.mrb[133].mxu0  ;;  %v14791_v33 = vld [vmem:[%s18439_s1 + $0x898] sm:$0xff]  }
 0x203   : > { %v12481_v47 = vadd.f32 %v12480_v44, %v12479_v59  ;;  %v12545_v52 = vadd.f32 %v12544_v57, %v12543_v15  ;;  %v12482_v58 = vpop.f32.mrb[134].mxu1  ;;  %v12546_v53 = vpop.f32.mrb[134].mxu0  ;;  %v14778_v15 = vld [vmem:[%s15516_s13 + $0x498] ss:$264 sps:$4 sm:$0xff]  }
 0x204   : > { %v12483_v3 = vpop.f32.mrb[135].mxu1  ;;  %v12547_v25 = vpop.f32.mrb[135].mxu0  ;;  %v14800_v44 = vld [vmem:[%s18439_s1 + $0x8e0] sm:$0xff]  }
 0x205   : > { %v8351_v0 = vadd.f32 %v12481_v47, %v16608_v27  ;;  %v12484_v9 = vadd.f32 %v12483_v3, %v12482_v58  ;;  %v12548_v1 = vadd.f32 %v12547_v25, %v12546_v53  ;;  %v14786_v58 = vld [vmem:[%s15516_s13 + $0x6b4] ss:$264 sps:$4 sm:$0xff]   ;;  %v14801_v53 = vld [vmem:[%s18439_s1 + $0x8a0] sm:$0xff]  }
 0x206   : > { %9085 = vmatmul.mubr.bf16.vlgmr.msra.gmra.mrb[240].mxu1 %v14754_v55  ;;  %9182 = vmatmul.mubr.bf16.vlgmr.msra.gmra.mrb[240].mxu0 %v14757_v61  ;;  %v14779_v61 = vld [vmem:[%s15516_s13 + $0x4a0] ss:$264 sps:$4 sm:$0xff]  }
 0x207   : > { %v16784_v34 = vadd.f32 %v12545_v52, %v8351_v0  ;;  %v8354_v27 = vadd.f32 %v12484_v9, %v16619_v24  ;;  %13074 = vmatpush3.bf16.msra.mxu1 %v14761_v46  ;;  %13138 = vmatpush3.bf16.msra.mxu0 %v14763_v14  ;;  %v14774_v24 = vld [vmem:[%s15516_s13 + $0x49c] ss:$264 sps:$4 sm:$0xff]  }
 0x208   : > { %9092 = vmatprep.mubr.bf16.mxu1 %v14764_v8  ;;  %9189 = vmatprep.mubr.bf16.mxu0 %v14766_v54  ;;  %v14802_v8 = vld [vmem:[%s18439_s1 + $0x960] sm:$0xff]  }
 0x209   : > { %v16795_v18 = vadd.f32 %v12548_v1, %v8354_v27  ;;  %v12485_v36 = vpop.f32.mrb[136].mxu1  ;;  %v12549_v17 = vpop.f32.mrb[136].mxu0  ;;  %13075 = vmatprep.subr.bf16.mxu1 %v14770_v22  ;;  %13139 = vmatprep.subr.bf16.mxu0 %v14772_v32  ;;  %v14803_v54 = vld [vmem:[%s18439_s1 + $0x920] sm:$0xff]   ;;  %v14812_v32 = vld [vmem:[%s18439_s1 + $0x968] sm:$0xff]  }
 0x20a   : > { %v12486_v21 = vpop.f32.mrb[137].mxu1  ;;  %v12550_v7 = vpop.f32.mrb[137].mxu0 }
 0x20b   : > { %v12487_v29 = vadd.f32 %v12486_v21, %v12485_v36  ;;  %v12551_v35 = vadd.f32 %v12550_v7, %v12549_v17  ;;  %v12488_v26 = vpop.f32.mrb[138].mxu1  ;;  %v12552_v41 = vpop.f32.mrb[138].mxu0  ;;  %13076 = vmatpush3.bf16.msra.mxu1 %v14771_v12  ;;  %13140 = vmatpush3.bf16.msra.mxu0 %v14773_v20  ;;  %v14810_v12 = vld [vmem:[%s18439_s1 + $0x8e8] sm:$0xff]   ;;  %v14789_v36 = vld [vmem:[%s15516_s13 + $0x6b0] ss:$264 sps:$4 sm:$0xff]  }
 0x20c   : > { %v12489_v43 = vpop.f32.mrb[139].mxu1  ;;  %v12553_v37 = vpop.f32.mrb[139].mxu0  ;;  %13077 = vmatprep.subr.bf16.mxu1 %v14780_v5  ;;  %13141 = vmatprep.subr.bf16.mxu0 %v14782_v10  ;;  %v14788_v10 = vld [vmem:[%s15516_s13 + $0x6a8] ss:$264 sps:$4 sm:$0xff]  }
 0x20d   : > { %v8359_v39 = vadd.f32 %v12487_v29, %v16636_v6  ;;  %v12490_v2 = vadd.f32 %v12489_v43, %v12488_v26  ;;  %v12554_v49 = vadd.f32 %v12553_v37, %v12552_v41  ;;  %v14793_v6 = vld [vmem:[%s18439_s1 + $0x918] sm:$0xff]   ;;  %v14813_v17 = vld [vmem:[%s18439_s1 + $0x928] sm:$0xff]   ;;  %v14820_v29 = vld [vmem:[%s18439_s1 + $0x8f0] sm:$0xff]  }
 0x20e   : > { %9093 = vmatmul.mubr.bf16.gmra.mrb[244].mxu1 %v14768_v23  ;;  %9190 = vmatmul.mubr.bf16.gmra.mrb[244].mxu0 %v14769_v28 }
 0x20f   : > { %v16815_v55 = vadd.f32 %v12551_v35, %v8359_v39  ;;  %v8362_v59 = vadd.f32 %v12490_v2, %v16647_v13  ;;  %9100 = vmatprep.mubr.bf16.mxu1 %v14774_v24  ;;  %9197 = vmatprep.mubr.bf16.mxu0 %v14776_v19  ;;  %v14784_v13 = vld [vmem:[%s15516_s13 + $0x6ac] ss:$264 sps:$4 sm:$0xff]   ;;  %v14796_v19 = vld [vmem:[%s15516_s13 + $0x8bc] ss:$264 sps:$4 sm:$0xff]  }
 0x210   : > { %13078 = vmatpush3.bf16.msra.mxu1 %v14781_v42  ;;  %13142 = vmatpush3.bf16.msra.mxu0 %v14783_v38  ;;  %v14822_v35 = vld [vmem:[%s18439_s1 + $0x970] sm:$0xff]  }
 0x211   : > { %v16826_v57 = vadd.f32 %v12554_v49, %v8362_v59  ;;  %v12491_v46 = vpop.f32.mrb[140].mxu1  ;;  %v12555_v14 = vpop.f32.mrb[140].mxu0  ;;  %13079 = vmatprep.subr.bf16.mxu1 %v14790_v62  ;;  %13143 = vmatprep.subr.bf16.mxu0 %v14792_v50  ;;  %v14821_v42 = vld [vmem:[%s18439_s1 + $0x8b0] sm:$0xff]   ;;  %v14830_v50 = vld [vmem:[%s18439_s1 + $0x8f8] sm:$0xff]  }
 0x212   : > { %v12492_v47 = vpop.f32.mrb[141].mxu1  ;;  %v12556_v52 = vpop.f32.mrb[141].mxu0  ;;  %v14823_v38 = vld [vmem:[%s18439_s1 + $0x930] sm:$0xff]  }
 0x213   : > { %v12493_v3 = vadd.f32 %v12492_v47, %v12491_v46  ;;  %v12557_v25 = vadd.f32 %v12556_v52, %v12555_v14  ;;  %v12494_v22 = vpop.f32.mrb[142].mxu1  ;;  %v12558_v0 = vpop.f32.mrb[142].mxu0  ;;  %v14831_v46 = vld [vmem:[%s18439_s1 + $0x8b8] sm:$0xff]  }
 0x214   : > { %v12495_v9 = vpop.f32.mrb[143].mxu1  ;;  %v12559_v1 = vpop.f32.mrb[143].mxu0  ;;  %13080 = vmatpush3.bf16.msra.mxu1 %v14791_v33  ;;  %13144 = vmatpush3.bf16.msra.mxu0 %v14793_v6  ;;  %v14832_v33 = vld [vmem:[%s18439_s1 + $0x978] sm:$0xff]  }
 0x215   : > { %v8367_v20 = vadd.f32 %v12493_v3, %v16670_v31  ;;  %v12496_v27 = vadd.f32 %v12495_v9, %v12494_v22  ;;  %v12560_v5 = vadd.f32 %v12559_v1, %v12558_v0  ;;  %13081 = vmatprep.subr.bf16.mxu1 %v14800_v44  ;;  %13145 = vmatprep.subr.bf16.mxu0 %v14802_v8  ;;  %v14811_v31 = vld [vmem:[%s18439_s1 + $0x8a8] sm:$0xff]   ;;  %v14794_v14 = vld [vmem:[%s15516_s13 + $0x8b8] ss:$264 sps:$4 sm:$0xff]  }
 0x216   : > { %9101 = vmatmul.mubr.bf16.gmra.mrb[248].mxu1 %v14778_v15  ;;  %9198 = vmatmul.mubr.bf16.gmra.mrb[248].mxu0 %v14779_v61 }
 0x217   : > { %v16846_v23 = vadd.f32 %v12557_v25, %v8367_v20  ;;  %v8370_v28 = vadd.f32 %v12496_v27, %v16687_v40  ;;  %9108 = vmatprep.mubr.bf16.mxu1 %v14784_v13  ;;  %9205 = vmatprep.mubr.bf16.mxu0 %v14786_v58  ;;  %v14799_v40 = vld [vmem:[%s15516_s13 + $0x8c4] ss:$264 sps:$4 sm:$0xff]   ;;  %v14833_v13 = vld [vmem:[%s18439_s1 + $0x938] sm:$0xff]  }
 0x218   : > { %13082 = vmatpush3.bf16.msra.mxu1 %v14801_v53  ;;  %13146 = vmatpush3.bf16.msra.mxu0 %v14803_v54  ;;  %v14840_v58 = vld [vmem:[%s18439_s1 + $0x9c0] sm:$0xff]   ;;  %v14809_v25 = vld [vmem:[%s15516_s13 + $0xad4] ss:$264 sps:$4 sm:$0xff]  }
 0x219   : > { %v16857_v24 = vadd.f32 %v12560_v5, %v8370_v28  ;;  %v12577_v21 = vpop.f32.mrb[144].mxu1  ;;  %v12641_v7 = vpop.f32.mrb[144].mxu0  ;;  %13083 = vmatprep.subr.bf16.mxu1 %v14810_v12  ;;  %13147 = vmatprep.subr.bf16.mxu0 %v14812_v32  ;;  %v14842_v53 = vld [vmem:[%s18439_s1 + $0xa40] sm:$0xff]  }
 0x21a   : > { %v12578_v26 = vpop.f32.mrb[145].mxu1  ;;  %v12642_v41 = vpop.f32.mrb[145].mxu0 }
 0x21b   : > { %v12579_v62 = vadd.f32 %v12578_v26, %v12577_v21  ;;  %v12643_v43 = vadd.f32 %v12642_v41, %v12641_v7  ;;  %v12580_v37 = vpop.f32.mrb[146].mxu1  ;;  %v12644_v39 = vpop.f32.mrb[146].mxu0  ;;  %v14816_v7 = vld [vmem:[%s15516_s13 + $0xcdc] ss:$264 sps:$4 sm:$0xff]  }
 0x21c   : > { %v12581_v2 = vpop.f32.mrb[147].mxu1  ;;  %v12645_v49 = vpop.f32.mrb[147].mxu0  ;;  %13084 = vmatpush3.bf16.msra.mxu1 %v14811_v31  ;;  %13148 = vmatpush3.bf16.msra.mxu0 %v14813_v17  ;;  %v14807_v31 = vld [vmem:[%s15516_s13 + $0xad0] ss:$264 sps:$4 sm:$0xff]  }
 0x21d   : > { %v8505_v59 = vadd.f32 %v12579_v62, %v16704_v63  ;;  %v12582_v6 = vadd.f32 %v12581_v2, %v12580_v37  ;;  %v12646_v15 = vadd.f32 %v12645_v49, %v12644_v39  ;;  %13085 = vmatprep.subr.bf16.mxu1 %v14820_v29  ;;  %13149 = vmatprep.subr.bf16.mxu0 %v14822_v35  ;;  %v14797_v63 = vld [vmem:[%s15516_s13 + $0x8c0] ss:$264 sps:$4 sm:$0xff]   ;;  %v14819_v29 = vld [vmem:[%s15516_s13 + $0xce4] ss:$264 sps:$4 sm:$0xff]  }
 0x21e   : > { %9109 = vmatmul.mubr.bf16.gmra.mrb[252].mxu1 %v14788_v10  ;;  %9206 = vmatmul.mubr.bf16.gmra.mrb[252].mxu0 %v14789_v36  ;;  %v14804_v36 = vld [vmem:[%s15516_s13 + $0xac8] ss:$264 sps:$4 sm:$0xff]   ;;  %v14814_v49 = vld [vmem:[%s15516_s13 + $0xcd8] ss:$264 sps:$4 sm:$0xff]  }
 0x21f   : > { %v16880_v61 = vadd.f32 %v12643_v43, %v8505_v59  ;;  %v8508_v44 = vadd.f32 %v12582_v6, %v16715_v4  ;;  %9116 = vmatprep.mubr.bf16.mxu1 %v14796_v19  ;;  %9213 = vmatprep.mubr.bf16.mxu0 %v14799_v40  ;;  %v14806_v4 = vld [vmem:[%s15516_s13 + $0xacc] ss:$264 sps:$4 sm:$0xff]  }
 0x220   : > { %13086 = vmatpush3.bf16.msra.mxu1 %v14821_v42  ;;  %13150 = vmatpush3.bf16.msra.mxu0 %v14823_v38 }
 0x221   : > { %v16891_v8 = vadd.f32 %v12646_v15, %v8508_v44  ;;  %v12583_v47 = vpop.f32.mrb[148].mxu1  ;;  %v12647_v52 = vpop.f32.mrb[148].mxu0  ;;  %13087 = vmatprep.subr.bf16.mxu1 %v14830_v50  ;;  %13151 = vmatprep.subr.bf16.mxu0 %v14832_v33  ;;  %v14817_v50 = vld [vmem:[%s15516_s13 + $0xce0] ss:$264 sps:$4 sm:$0xff]   ;;  %v14826_v15 = vld [vmem:[%s15516_s13 + $0xeec] ss:$264 sps:$4 sm:$0xff]  }
 0x222   : > { %v12584_v54 = vpop.f32.mrb[149].mxu1  ;;  %v12648_v3 = vpop.f32.mrb[149].mxu0 }
 0x223   : > { %v12585_v22 = vadd.f32 %v12584_v54, %v12583_v47  ;;  %v12649_v0 = vadd.f32 %v12648_v3, %v12647_v52  ;;  %v12586_v9 = vpop.f32.mrb[150].mxu1  ;;  %v12650_v1 = vpop.f32.mrb[150].mxu0  ;;  %v14829_v47 = vld [vmem:[%s15516_s13 + $0xef4] ss:$264 sps:$4 sm:$0xff]  }
 0x224   : > { %v12587_v12 = vpop.f32.mrb[151].mxu1  ;;  %v12651_v32 = vpop.f32.mrb[151].mxu0  ;;  %13088 = vmatpush3.bf16.msra.mxu1 %v14831_v46  ;;  %13152 = vmatpush3.bf16.msra.mxu0 %v14833_v13 }
 0x225   : > { %v8513_v20 = vadd.f32 %v12585_v22, %v16726_v30  ;;  %v12588_v27 = vadd.f32 %v12587_v12, %v12586_v9  ;;  %v12652_v5 = vadd.f32 %v12651_v32, %v12650_v1  ;;  %13201 = vmatprep.subr.bf16.mxu1 %v14840_v58  ;;  %13265 = vmatprep.subr.bf16.mxu0 %v14842_v53  ;;  %v14827_v22 = vld [vmem:[%s15516_s13 + $0xef0] ss:$264 sps:$4 sm:$0xff]   ;;  %v14836_v12 = vld [vmem:[%s15516_s13 + $0x8c] ss:$264 sps:$4 sm:$0xff]  }
 0x226   : > { %9117 = vmatmul.mubr.bf16.gmra.mrb[0].mxu1 %v14794_v14  ;;  %9214 = vmatmul.mubr.bf16.gmra.mrb[0].mxu0 %v14797_v63  ;;  %v14839_v32 = vld [vmem:[%s15516_s13 + $0x94] ss:$264 sps:$4 sm:$0xff]  }
 0x227   : > { %v16902_v28 = vadd.f32 %v12649_v0, %v8513_v20  ;;  %v8516_v10 = vadd.f32 %v12588_v27, %v16731_v51  ;;  %9124 = vmatprep.mubr.bf16.mxu1 %v14806_v4  ;;  %9221 = vmatprep.mubr.bf16.mxu0 %v14809_v25  ;;  %v14824_v25 = vld [vmem:[%s15516_s13 + $0xee8] ss:$264 sps:$4 sm:$0xff]  }
 0x229   : > { %v16907_v17 = vadd.f32 %v12652_v5, %v8516_v10  ;;  %v12589_v21 = vpop.f32.mrb[152].mxu1  ;;  %v12653_v30 = vpop.f32.mrb[152].mxu0 }
 0x22a   : > { %v12590_v19 = vpop.f32.mrb[153].mxu1  ;;  %v12654_v40 = vpop.f32.mrb[153].mxu0 }
 0x22b   : > { %v12591_v35 = vadd.f32 %v12590_v19, %v12589_v21  ;;  %v12655_v26 = vadd.f32 %v12654_v40, %v12653_v30  ;;  %v12592_v41 = vpop.f32.mrb[154].mxu1  ;;  %v12656_v42 = vpop.f32.mrb[154].mxu0 }
 0x22c   : > { %v12593_v38 = vpop.f32.mrb[155].mxu1  ;;  %v12657_v51 = vpop.f32.mrb[155].mxu0 }
 0x22d   : > { %v8521_v62 = vadd.f32 %v12591_v35, %v16736_v56  ;;  %v12594_v43 = vadd.f32 %v12593_v38, %v12592_v41  ;;  %v12658_v37 = vadd.f32 %v12657_v51, %v12656_v42  ;;  %v14837_v35 = vld [vmem:[%s15516_s13 + $0x90] ss:$264 sps:$4 sm:$0xff]   ;;  %v14843_v38 = vld [vmem:[%s18439_s1 + $0xa00] sm:$0xff]  }
 0x22e   : > { %9125 = vmatmul.mubr.bf16.gmra.mrb[4].mxu1 %v14804_v36  ;;  %9222 = vmatmul.mubr.bf16.gmra.mrb[4].mxu0 %v14807_v31 }
 0x22f   : > { %v16912_v39 = vadd.f32 %v12655_v26, %v8521_v62  ;;  %v8524_v2 = vadd.f32 %v12594_v43, %v16741_v60  ;;  %9132 = vmatprep.mubr.bf16.mxu1 %v14816_v7  ;;  %9229 = vmatprep.mubr.bf16.mxu0 %v14819_v29  ;;  %v14834_v29 = vld [vmem:[%s15516_s13 + $0x88] ss:$264 sps:$4 sm:$0xff]  }
 0x231   : > { %v16917_v33 = vadd.f32 %v12658_v37, %v8524_v2  ;;  %v12595_v59 = vpop.f32.mrb[156].mxu1  ;;  %v12659_v6 = vpop.f32.mrb[156].mxu0 }
 0x232   : > { %v12596_v44 = vpop.f32.mrb[157].mxu1  ;;  %v12660_v56 = vpop.f32.mrb[157].mxu0 }
 0x233   : > { %v12597_v46 = vadd.f32 %v12596_v44, %v12595_v59  ;;  %v12661_v14 = vadd.f32 %v12660_v56, %v12659_v6  ;;  %v12598_v63 = vpop.f32.mrb[158].mxu1  ;;  %v12662_v13 = vpop.f32.mrb[158].mxu0  ;;  %v14849_v6 = vld [vmem:[%s15516_s13 + $0x2a4] ss:$264 sps:$4 sm:$0xff]  }
 0x234   : > { %v12599_v52 = vpop.f32.mrb[159].mxu1  ;;  %v12663_v60 = vpop.f32.mrb[159].mxu0 }
 0x235   : > { %v8529_v4 = vadd.f32 %v12597_v46, %v16746_v16  ;;  %v12600_v58 = vadd.f32 %v12599_v52, %v12598_v63  ;;  %v12664_v53 = vadd.f32 %v12663_v60, %v12662_v13  ;;  %v14852_v63 = vld [vmem:[%s18439_s1 + $0xa48] sm:$0xff]   ;;  %v14860_v52 = vld [vmem:[%s18439_s1 + $0x9d0] sm:$0xff]   ;;  %v14844_v60 = vld [vmem:[%s15516_s13 + $0x298] ss:$264 sps:$4 sm:$0xff]  }
 0x236   : > { %9133 = vmatmul.mubr.bf16.gmra.mrb[8].mxu1 %v14814_v49  ;;  %9230 = vmatmul.mubr.bf16.gmra.mrb[8].mxu0 %v14817_v50  ;;  %v14853_v13 = vld [vmem:[%s18439_s1 + $0xa08] sm:$0xff]  }
 0x237   : > { %v16922_v54 = vadd.f32 %v12661_v14, %v8529_v4  ;;  %v8532_v3 = vadd.f32 %v12600_v58, %v16750_v11  ;;  %9140 = vmatprep.mubr.bf16.mxu1 %v14826_v15  ;;  %9237 = vmatprep.mubr.bf16.mxu0 %v14829_v47  ;;  %v14850_v15 = vld [vmem:[%s18439_s1 + $0x9c8] sm:$0xff]   ;;  %v14862_v58 = vld [vmem:[%s18439_s1 + $0xa50] sm:$0xff]  }
 0x238   : > { %v14851_v14 = vld [vmem:[%s18439_s1 + $0x988] sm:$0xff]  }
 0x239   : > { %v16927_v0 = vadd.f32 %v12664_v53, %v8532_v3  ;;  %v12601_v9 = vpop.f32.mrb[160].mxu1  ;;  %v12665_v1 = vpop.f32.mrb[160].mxu0  ;;  %v14847_v4 = vld [vmem:[%s15516_s13 + $0x2a0] ss:$264 sps:$4 sm:$0xff]  }
 0x23a   : > { %v12602_v20 = vpop.f32.mrb[161].mxu1  ;;  %v12666_v16 = vpop.f32.mrb[161].mxu0 }
 0x23b   : > { %v12603_v27 = vadd.f32 %v12602_v20, %v12601_v9  ;;  %v12667_v5 = vadd.f32 %v12666_v16, %v12665_v1  ;;  %v12604_v10 = vpop.f32.mrb[162].mxu1  ;;  %v12668_v36 = vpop.f32.mrb[162].mxu0  ;;  %v14859_v16 = vld [vmem:[%s15516_s13 + $0x4b4] ss:$264 sps:$4 sm:$0xff]  }
 0x23c   : > { %v12605_v31 = vpop.f32.mrb[163].mxu1  ;;  %v12669_v11 = vpop.f32.mrb[163].mxu0 }
 0x23d   : > { %v8537_v21 = vadd.f32 %v12603_v27, %v16756_v45  ;;  %v12606_v30 = vadd.f32 %v12605_v31, %v12604_v10  ;;  %v12670_v7 = vadd.f32 %v12669_v11, %v12668_v36  ;;  %v14841_v45 = vld [vmem:[%s18439_s1 + $0x980] sm:$0xff]   ;;  %v14861_v27 = vld [vmem:[%s18439_s1 + $0x990] sm:$0xff]   ;;  %v14870_v31 = vld [vmem:[%s18439_s1 + $0x9d8] sm:$0xff]  }
 0x23e   : > { %9141 = vmatmul.mubr.bf16.gmra.mrb[12].mxu1 %v14824_v25  ;;  %9238 = vmatmul.mubr.bf16.gmra.mrb[12].mxu0 %v14827_v22 }
 0x23f   : > { %v16932_v19 = vadd.f32 %v12667_v5, %v8537_v21  ;;  %v8540_v40 = vadd.f32 %v12606_v30, %v16760_v48  ;;  %9278 = vmatprep.mubr.bf16.mxu1 %v14836_v12  ;;  %9375 = vmatprep.mubr.bf16.mxu0 %v14839_v32  ;;  %v14846_v48 = vld [vmem:[%s15516_s13 + $0x29c] ss:$264 sps:$4 sm:$0xff]   ;;  %v14863_v5 = vld [vmem:[%s18439_s1 + $0xa10] sm:$0xff]  }
 0x241   : > { %v16937_v26 = vadd.f32 %v12670_v7, %v8540_v40  ;;  %v12607_v41 = vpop.f32.mrb[164].mxu1  ;;  %v12671_v42 = vpop.f32.mrb[164].mxu0  ;;  %v14872_v7 = vld [vmem:[%s18439_s1 + $0xa58] sm:$0xff]  }
 0x242   : > { %v12608_v51 = vpop.f32.mrb[165].mxu1  ;;  %v12672_v62 = vpop.f32.mrb[165].mxu0  ;;  %v14871_v40 = vld [vmem:[%s18439_s1 + $0x998] sm:$0xff]  }
 0x243   : > { %v12609_v43 = vadd.f32 %v12608_v51, %v12607_v41  ;;  %v12673_v37 = vadd.f32 %v12672_v62, %v12671_v42  ;;  %v12610_v2 = vpop.f32.mrb[166].mxu1  ;;  %v12674_v49 = vpop.f32.mrb[166].mxu0  ;;  %v14854_v41 = vld [vmem:[%s15516_s13 + $0x4a8] ss:$264 sps:$4 sm:$0xff]   ;;  %v14882_v62 = vld [vmem:[%s18439_s1 + $0xa60] sm:$0xff]  }
 0x244   : > { %v12611_v50 = vpop.f32.mrb[167].mxu1  ;;  %v12675_v59 = vpop.f32.mrb[167].mxu0  ;;  %v14857_v42 = vld [vmem:[%s15516_s13 + $0x4b0] ss:$264 sps:$4 sm:$0xff]  }
 0x245   : > { %v8545_v44 = vadd.f32 %v12609_v43, %v16784_v34  ;;  %v12612_v56 = vadd.f32 %v12611_v50, %v12610_v2  ;;  %v12676_v46 = vadd.f32 %v12675_v59, %v12674_v49  ;;  %v14869_v2 = vld [vmem:[%s15516_s13 + $0x6c4] ss:$264 sps:$4 sm:$0xff]  }
 0x246   : > { %9279 = vmatmul.mubr.bf16.vlgmr.msra.gmra.mrb[16].mxu1 %v14834_v29  ;;  %9376 = vmatmul.mubr.bf16.vlgmr.msra.gmra.mrb[16].mxu0 %v14837_v35 }
 0x247   : > { %v16960_v47 = vadd.f32 %v12673_v37, %v8545_v44  ;;  %v8548_v34 = vadd.f32 %v12612_v56, %v16795_v18  ;;  %13202 = vmatpush3.bf16.msra.mxu1 %v14841_v45  ;;  %13266 = vmatpush3.bf16.msra.mxu0 %v14843_v38  ;;  %v14856_v18 = vld [vmem:[%s15516_s13 + $0x4ac] ss:$264 sps:$4 sm:$0xff]   ;;  %v14880_v45 = vld [vmem:[%s18439_s1 + $0x9e0] sm:$0xff]  }
 0x248   : > { %9286 = vmatprep.mubr.bf16.mxu1 %v14846_v48  ;;  %9383 = vmatprep.mubr.bf16.mxu0 %v14849_v6  ;;  %v14866_v37 = vld [vmem:[%s15516_s13 + $0x6bc] ss:$264 sps:$4 sm:$0xff]  }
 0x249   : > { %v16971_v53 = vadd.f32 %v12676_v46, %v8548_v34  ;;  %v12613_v3 = vpop.f32.mrb[168].mxu1  ;;  %v12677_v25 = vpop.f32.mrb[168].mxu0  ;;  %13203 = vmatprep.subr.bf16.mxu1 %v14850_v15  ;;  %13267 = vmatprep.subr.bf16.mxu0 %v14852_v63  ;;  %v14881_v15 = vld [vmem:[%s18439_s1 + $0x9a0] sm:$0xff]  }
 0x24a   : > { %v12614_v22 = vpop.f32.mrb[169].mxu1  ;;  %v12678_v9 = vpop.f32.mrb[169].mxu0  ;;  %v14883_v46 = vld [vmem:[%s18439_s1 + $0xa20] sm:$0xff]  }
 0x24b   : > { %v12615_v1 = vadd.f32 %v12614_v22, %v12613_v3  ;;  %v12679_v12 = vadd.f32 %v12678_v9, %v12677_v25  ;;  %v12616_v32 = vpop.f32.mrb[170].mxu1  ;;  %v12680_v20 = vpop.f32.mrb[170].mxu0  ;;  %13204 = vmatpush3.bf16.msra.mxu1 %v14851_v14  ;;  %13268 = vmatpush3.bf16.msra.mxu0 %v14853_v13  ;;  %v14890_v14 = vld [vmem:[%s18439_s1 + $0x9e8] sm:$0xff]   ;;  %v14864_v3 = vld [vmem:[%s15516_s13 + $0x6b8] ss:$264 sps:$4 sm:$0xff]  }
 0x24c   : > { %v12617_v10 = vpop.f32.mrb[171].mxu1  ;;  %v12681_v36 = vpop.f32.mrb[171].mxu0  ;;  %13205 = vmatprep.subr.bf16.mxu1 %v14860_v52  ;;  %13269 = vmatprep.subr.bf16.mxu0 %v14862_v58  ;;  %v14892_v52 = vld [vmem:[%s18439_s1 + $0xa68] sm:$0xff]  }
 0x24d   : > { %v8553_v11 = vadd.f32 %v12615_v1, %v16815_v55  ;;  %v12618_v21 = vadd.f32 %v12617_v10, %v12616_v32  ;;  %v12682_v30 = vadd.f32 %v12681_v36, %v12680_v20  ;;  %v14873_v55 = vld [vmem:[%s18439_s1 + $0xa18] sm:$0xff]   ;;  %v14867_v25 = vld [vmem:[%s15516_s13 + $0x6c0] ss:$264 sps:$4 sm:$0xff]  }
 0x24e   : > { %9287 = vmatmul.mubr.bf16.gmra.mrb[20].mxu1 %v14844_v60  ;;  %9384 = vmatmul.mubr.bf16.gmra.mrb[20].mxu0 %v14847_v4  ;;  %v14891_v60 = vld [vmem:[%s18439_s1 + $0x9a8] sm:$0xff]  }
 0x24f   : > { %v16991_v29 = vadd.f32 %v12679_v12, %v8553_v11  ;;  %v8556_v35 = vadd.f32 %v12618_v21, %v16826_v57  ;;  %9294 = vmatprep.mubr.bf16.mxu1 %v14856_v18  ;;  %9391 = vmatprep.mubr.bf16.mxu0 %v14859_v16  ;;  %v14900_v18 = vld [vmem:[%s18439_s1 + $0x9f0] sm:$0xff]   ;;  %v14910_v21 = vld [vmem:[%s18439_s1 + $0x9f8] sm:$0xff]  }
 0x250   : > { %13206 = vmatpush3.bf16.msra.mxu1 %v14861_v27  ;;  %13270 = vmatpush3.bf16.msra.mxu0 %v14863_v5  ;;  %v14902_v12 = vld [vmem:[%s18439_s1 + $0xa70] sm:$0xff]  }
 0x251   : > { %v17002_v38 = vadd.f32 %v12682_v30, %v8556_v35  ;;  %v12619_v51 = vpop.f32.mrb[172].mxu1  ;;  %v12683_v57 = vpop.f32.mrb[172].mxu0  ;;  %13207 = vmatprep.subr.bf16.mxu1 %v14870_v31  ;;  %13271 = vmatprep.subr.bf16.mxu0 %v14872_v7  ;;  %v14879_v16 = vld [vmem:[%s15516_s13 + $0x8d4] ss:$264 sps:$4 sm:$0xff]  }
 0x252   : > { %v12620_v48 = vpop.f32.mrb[173].mxu1  ;;  %v12684_v43 = vpop.f32.mrb[173].mxu0  ;;  %v14901_v31 = vld [vmem:[%s18439_s1 + $0x9b0] sm:$0xff]  }
 0x253   : > { %v12621_v49 = vadd.f32 %v12620_v48, %v12619_v51  ;;  %v12685_v50 = vadd.f32 %v12684_v43, %v12683_v57  ;;  %v12622_v59 = vpop.f32.mrb[174].mxu1  ;;  %v12686_v6 = vpop.f32.mrb[174].mxu0  ;;  %v14903_v11 = vld [vmem:[%s18439_s1 + $0xa30] sm:$0xff]   ;;  %v14920_v48 = vld [vmem:[%s18439_s1 + $0xac0] sm:$0xff]  }
 0x254   : > { %v12623_v44 = vpop.f32.mrb[175].mxu1  ;;  %v12687_v56 = vpop.f32.mrb[175].mxu0  ;;  %13208 = vmatpush3.bf16.msra.mxu1 %v14871_v40  ;;  %13272 = vmatpush3.bf16.msra.mxu0 %v14873_v55  ;;  %v14874_v57 = vld [vmem:[%s15516_s13 + $0x8c8] ss:$264 sps:$4 sm:$0xff]  }
 0x255   : > { %v8561_v63 = vadd.f32 %v12621_v49, %v16846_v23  ;;  %v12624_v13 = vadd.f32 %v12623_v44, %v12622_v59  ;;  %v12688_v34 = vadd.f32 %v12687_v56, %v12686_v6  ;;  %13209 = vmatprep.subr.bf16.mxu1 %v14880_v45  ;;  %13273 = vmatprep.subr.bf16.mxu0 %v14882_v62  ;;  %v14893_v23 = vld [vmem:[%s18439_s1 + $0xa28] sm:$0xff]   ;;  %v14877_v62 = vld [vmem:[%s15516_s13 + $0x8d0] ss:$264 sps:$4 sm:$0xff]   ;;  %v14886_v59 = vld [vmem:[%s15516_s13 + $0xadc] ss:$264 sps:$4 sm:$0xff]  }
 0x256   : > { %9295 = vmatmul.mubr.bf16.gmra.mrb[24].mxu1 %v14854_v41  ;;  %9392 = vmatmul.mubr.bf16.gmra.mrb[24].mxu0 %v14857_v42  ;;  %v14912_v41 = vld [vmem:[%s18439_s1 + $0xa78] sm:$0xff]   ;;  %v14889_v6 = vld [vmem:[%s15516_s13 + $0xae4] ss:$264 sps:$4 sm:$0xff]  }
 0x257   : > { %v17025_v4 = vadd.f32 %v12685_v50, %v8561_v63  ;;  %v8564_v58 = vadd.f32 %v12624_v13, %v16857_v24  ;;  %9302 = vmatprep.mubr.bf16.mxu1 %v14866_v37  ;;  %9399 = vmatprep.mubr.bf16.mxu0 %v14869_v2  ;;  %v14876_v24 = vld [vmem:[%s15516_s13 + $0x8cc] ss:$264 sps:$4 sm:$0xff]   ;;  %v14911_v42 = vld [vmem:[%s18439_s1 + $0x9b8] sm:$0xff]   ;;  %v14922_v2 = vld [vmem:[%s18439_s1 + $0xb40] sm:$0xff]  }
 0x258   : > { %13210 = vmatpush3.bf16.msra.mxu1 %v14881_v15  ;;  %13274 = vmatpush3.bf16.msra.mxu0 %v14883_v46 }
 0x259   : > { %v17036_v22 = vadd.f32 %v12688_v34, %v8564_v58  ;;  %v12705_v9 = vpop.f32.mrb[176].mxu1  ;;  %v12769_v1 = vpop.f32.mrb[176].mxu0  ;;  %13211 = vmatprep.subr.bf16.mxu1 %v14890_v14  ;;  %13275 = vmatprep.subr.bf16.mxu0 %v14892_v52 }
 0x25a   : > { %v12706_v32 = vpop.f32.mrb[177].mxu1  ;;  %v12770_v20 = vpop.f32.mrb[177].mxu0 }
 0x25b   : > { %v12707_v27 = vadd.f32 %v12706_v32, %v12705_v9  ;;  %v12771_v5 = vadd.f32 %v12770_v20, %v12769_v1  ;;  %v12708_v10 = vpop.f32.mrb[178].mxu1  ;;  %v12772_v36 = vpop.f32.mrb[178].mxu0  ;;  %v14896_v9 = vld [vmem:[%s15516_s13 + $0xcec] ss:$264 sps:$4 sm:$0xff]  }
 0x25c   : > { %v12709_v30 = vpop.f32.mrb[179].mxu1  ;;  %v12773_v7 = vpop.f32.mrb[179].mxu0  ;;  %13212 = vmatpush3.bf16.msra.mxu1 %v14891_v60  ;;  %13276 = vmatpush3.bf16.msra.mxu0 %v14893_v23  ;;  %v14884_v23 = vld [vmem:[%s15516_s13 + $0xad8] ss:$264 sps:$4 sm:$0xff]  }
 0x25d   : > { %v8699_v40 = vadd.f32 %v12707_v27, %v16880_v61  ;;  %v12710_v35 = vadd.f32 %v12709_v30, %v12708_v10  ;;  %v12774_v55 = vadd.f32 %v12773_v7, %v12772_v36  ;;  %13213 = vmatprep.subr.bf16.mxu1 %v14900_v18  ;;  %13277 = vmatprep.subr.bf16.mxu0 %v14902_v12  ;;  %v14913_v61 = vld [vmem:[%s18439_s1 + $0xa38] sm:$0xff]   ;;  %v14894_v30 = vld [vmem:[%s15516_s13 + $0xce8] ss:$264 sps:$4 sm:$0xff]  }
 0x25e   : > { %9303 = vmatmul.mubr.bf16.gmra.mrb[28].mxu1 %v14864_v3  ;;  %9400 = vmatmul.mubr.bf16.gmra.mrb[28].mxu0 %v14867_v25  ;;  %v14887_v3 = vld [vmem:[%s15516_s13 + $0xae0] ss:$264 sps:$4 sm:$0xff]   ;;  %v14899_v12 = vld [vmem:[%s15516_s13 + $0xcf4] ss:$264 sps:$4 sm:$0xff]   ;;  %v14897_v7 = vld [vmem:[%s15516_s13 + $0xcf0] ss:$264 sps:$4 sm:$0xff]  }
 0x25f   : > { %v17059_v45 = vadd.f32 %v12771_v5, %v8699_v40  ;;  %v8702_v51 = vadd.f32 %v12710_v35, %v16891_v8  ;;  %9310 = vmatprep.mubr.bf16.mxu1 %v14876_v24  ;;  %9407 = vmatprep.mubr.bf16.mxu0 %v14879_v16 }
 0x260   : > { %13214 = vmatpush3.bf16.msra.mxu1 %v14901_v31  ;;  %13278 = vmatpush3.bf16.msra.mxu0 %v14903_v11 }
 0x261   : > { %v17070_v43 = vadd.f32 %v12774_v55, %v8702_v51  ;;  %v12711_v37 = vpop.f32.mrb[180].mxu1  ;;  %v12775_v8 = vpop.f32.mrb[180].mxu0  ;;  %13215 = vmatprep.subr.bf16.mxu1 %v14910_v21  ;;  %13279 = vmatprep.subr.bf16.mxu0 %v14912_v41  ;;  %v14906_v41 = vld [vmem:[%s15516_s13 + $0xefc] ss:$264 sps:$4 sm:$0xff]  }
 0x262   : > { %v12712_v49 = vpop.f32.mrb[181].mxu1  ;;  %v12776_v50 = vpop.f32.mrb[181].mxu0  ;;  %v14909_v51 = vld [vmem:[%s15516_s13 + $0xf04] ss:$264 sps:$4 sm:$0xff]  }
 0x263   : > { %v12713_v15 = vadd.f32 %v12712_v49, %v12711_v37  ;;  %v12777_v44 = vadd.f32 %v12776_v50, %v12775_v8  ;;  %v12714_v56 = vpop.f32.mrb[182].mxu1  ;;  %v12778_v46 = vpop.f32.mrb[182].mxu0 }
 0x264   : > { %v12715_v14 = vpop.f32.mrb[183].mxu1  ;;  %v12779_v63 = vpop.f32.mrb[183].mxu0  ;;  %13216 = vmatpush3.bf16.msra.mxu1 %v14911_v42  ;;  %13280 = vmatpush3.bf16.msra.mxu0 %v14913_v61 }
 0x265   : > { %v8707_v13 = vadd.f32 %v12713_v15, %v16902_v28  ;;  %v12716_v34 = vadd.f32 %v12715_v14, %v12714_v56  ;;  %v12780_v52 = vadd.f32 %v12779_v63, %v12778_v46  ;;  %13329 = vmatprep.subr.bf16.mxu1 %v14920_v48  ;;  %13393 = vmatprep.subr.bf16.mxu0 %v14922_v2  ;;  %v14907_v15 = vld [vmem:[%s15516_s13 + $0xf00] ss:$264 sps:$4 sm:$0xff]   ;;  %v14916_v14 = vld [vmem:[%s15516_s13 + $0x9c] ss:$264 sps:$4 sm:$0xff]  }
 0x266   : > { %9311 = vmatmul.mubr.bf16.gmra.mrb[32].mxu1 %v14874_v57  ;;  %9408 = vmatmul.mubr.bf16.gmra.mrb[32].mxu0 %v14877_v62 }
 0x267   : > { %v17078_v60 = vadd.f32 %v12777_v44, %v8707_v13  ;;  %v8710_v58 = vadd.f32 %v12716_v34, %v16907_v17  ;;  %9318 = vmatprep.mubr.bf16.mxu1 %v14886_v59  ;;  %9415 = vmatprep.mubr.bf16.mxu0 %v14889_v6  ;;  %v14904_v6 = vld [vmem:[%s15516_s13 + $0xef8] ss:$264 sps:$4 sm:$0xff]   ;;  %v14919_v13 = vld [vmem:[%s15516_s13 + $0xa4] ss:$264 sps:$4 sm:$0xff]  }
 0x269   : > { %v17083_v25 = vadd.f32 %v12780_v52, %v8710_v58  ;;  %v12717_v18 = vpop.f32.mrb[184].mxu1  ;;  %v12781_v28 = vpop.f32.mrb[184].mxu0 }
 0x26a   : > { %v12718_v1 = vpop.f32.mrb[185].mxu1  ;;  %v12782_v24 = vpop.f32.mrb[185].mxu0 }
 0x26b   : > { %v12719_v32 = vadd.f32 %v12718_v1, %v12717_v18  ;;  %v12783_v20 = vadd.f32 %v12782_v24, %v12781_v28  ;;  %v12720_v16 = vpop.f32.mrb[186].mxu1  ;;  %v12784_v27 = vpop.f32.mrb[186].mxu0 }
 0x26c   : > { %v12721_v5 = vpop.f32.mrb[187].mxu1  ;;  %v12785_v17 = vpop.f32.mrb[187].mxu0 }
 0x26d   : > { %v8715_v10 = vadd.f32 %v12719_v32, %v16912_v39  ;;  %v12722_v36 = vadd.f32 %v12721_v5, %v12720_v16  ;;  %v12786_v31 = vadd.f32 %v12785_v17, %v12784_v27  ;;  %v14917_v32 = vld [vmem:[%s15516_s13 + $0xa0] ss:$264 sps:$4 sm:$0xff]  }
 0x26e   : > { %9319 = vmatmul.mubr.bf16.gmra.mrb[36].mxu1 %v14884_v23  ;;  %9416 = vmatmul.mubr.bf16.gmra.mrb[36].mxu0 %v14887_v3 }
 0x26f   : > { %v17088_v11 = vadd.f32 %v12783_v20, %v8715_v10  ;;  %v8718_v21 = vadd.f32 %v12722_v36, %v16917_v33  ;;  %9326 = vmatprep.mubr.bf16.mxu1 %v14896_v9  ;;  %9423 = vmatprep.mubr.bf16.mxu0 %v14899_v12  ;;  %v14914_v12 = vld [vmem:[%s15516_s13 + $0x98] ss:$264 sps:$4 sm:$0xff]   ;;  %v14926_v10 = vld [vmem:[%s15516_s13 + $0x2ac] ss:$264 sps:$4 sm:$0xff]  }
 0x270   : > { %v14929_v36 = vld [vmem:[%s15516_s13 + $0x2b4] ss:$264 sps:$4 sm:$0xff]  }
 0x271   : > { %v17093_v40 = vadd.f32 %v12786_v31, %v8718_v21  ;;  %v12723_v35 = vpop.f32.mrb[188].mxu1  ;;  %v12787_v55 = vpop.f32.mrb[188].mxu0 }
 0x272   : > { %v12724_v42 = vpop.f32.mrb[189].mxu1  ;;  %v12788_v39 = vpop.f32.mrb[189].mxu0 }
 0x273   : > { %v12725_v61 = vadd.f32 %v12724_v42, %v12723_v35  ;;  %v12789_v57 = vadd.f32 %v12788_v39, %v12787_v55  ;;  %v12726_v62 = vpop.f32.mrb[190].mxu1  ;;  %v12790_v48 = vpop.f32.mrb[190].mxu0  ;;  %v14930_v35 = vld [vmem:[%s18439_s1 + $0xac8] sm:$0xff]  }
 0x274   : > { %v12727_v37 = vpop.f32.mrb[191].mxu1  ;;  %v12791_v33 = vpop.f32.mrb[191].mxu0 }
 0x275   : > { %v8723_v8 = vadd.f32 %v12725_v61, %v16922_v54  ;;  %v12728_v2 = vadd.f32 %v12727_v37, %v12726_v62  ;;  %v12792_v49 = vadd.f32 %v12791_v33, %v12790_v48  ;;  %v14932_v61 = vld [vmem:[%s18439_s1 + $0xb48] sm:$0xff]   ;;  %v14940_v37 = vld [vmem:[%s18439_s1 + $0xad0] sm:$0xff]  }
 0x276   : > { %9327 = vmatmul.mubr.bf16.gmra.mrb[40].mxu1 %v14894_v30  ;;  %9424 = vmatmul.mubr.bf16.gmra.mrb[40].mxu0 %v14897_v7  ;;  %v14923_v7 = vld [vmem:[%s18439_s1 + $0xb00] sm:$0xff]   ;;  %v14924_v33 = vld [vmem:[%s15516_s13 + $0x2a8] ss:$264 sps:$4 sm:$0xff]  }
 0x277   : > { %v17098_v50 = vadd.f32 %v12789_v57, %v8723_v8  ;;  %v8726_v59 = vadd.f32 %v12728_v2, %v16927_v0  ;;  %9334 = vmatprep.mubr.bf16.mxu1 %v14906_v41  ;;  %9431 = vmatprep.mubr.bf16.mxu0 %v14909_v51  ;;  %v14931_v57 = vld [vmem:[%s18439_s1 + $0xa88] sm:$0xff]   ;;  %v14927_v8 = vld [vmem:[%s15516_s13 + $0x2b0] ss:$264 sps:$4 sm:$0xff]  }
 0x278   : > { %v14942_v2 = vld [vmem:[%s18439_s1 + $0xb50] sm:$0xff]  }
 0x279   : > { %v17103_v44 = vadd.f32 %v12792_v49, %v8726_v59  ;;  %v12729_v56 = vpop.f32.mrb[192].mxu1  ;;  %v12793_v46 = vpop.f32.mrb[192].mxu0 }
 0x27a   : > { %v12730_v63 = vpop.f32.mrb[193].mxu1  ;;  %v12794_v54 = vpop.f32.mrb[193].mxu0 }
 0x27b   : > { %v12731_v34 = vadd.f32 %v12730_v63, %v12729_v56  ;;  %v12795_v52 = vadd.f32 %v12794_v54, %v12793_v46  ;;  %v12732_v58 = vpop.f32.mrb[194].mxu1  ;;  %v12796_v23 = vpop.f32.mrb[194].mxu0 }
 0x27c   : > { %v12733_v3 = vpop.f32.mrb[195].mxu1  ;;  %v12797_v0 = vpop.f32.mrb[195].mxu0 }
 0x27d   : > { %v8731_v18 = vadd.f32 %v12731_v34, %v16932_v19  ;;  %v12734_v28 = vadd.f32 %v12733_v3, %v12732_v58  ;;  %v12798_v9 = vadd.f32 %v12797_v0, %v12796_v23  ;;  %v14921_v19 = vld [vmem:[%s18439_s1 + $0xa80] sm:$0xff]   ;;  %v14943_v23 = vld [vmem:[%s18439_s1 + $0xb10] sm:$0xff]  }
 0x27e   : > { %9335 = vmatmul.mubr.bf16.gmra.mrb[44].mxu1 %v14904_v6  ;;  %9432 = vmatmul.mubr.bf16.gmra.mrb[44].mxu0 %v14907_v15  ;;  %v14936_v6 = vld [vmem:[%s15516_s13 + $0x4bc] ss:$264 sps:$4 sm:$0xff]  }
 0x27f   : > { %v17108_v1 = vadd.f32 %v12795_v52, %v8731_v18  ;;  %v8734_v24 = vadd.f32 %v12734_v28, %v16937_v26  ;;  %9472 = vmatprep.mubr.bf16.mxu1 %v14916_v14  ;;  %9569 = vmatprep.mubr.bf16.mxu0 %v14919_v13  ;;  %v14939_v15 = vld [vmem:[%s15516_s13 + $0x4c4] ss:$264 sps:$4 sm:$0xff]   ;;  %v14941_v14 = vld [vmem:[%s18439_s1 + $0xa90] sm:$0xff]   ;;  %v14950_v28 = vld [vmem:[%s18439_s1 + $0xad8] sm:$0xff]  }
 0x281   : > { %v17113_v20 = vadd.f32 %v12798_v9, %v8734_v24  ;;  %v12735_v16 = vpop.f32.mrb[196].mxu1  ;;  %v12799_v27 = vpop.f32.mrb[196].mxu0  ;;  %v14952_v9 = vld [vmem:[%s18439_s1 + $0xb58] sm:$0xff]  }
 0x282   : > { %v12736_v5 = vpop.f32.mrb[197].mxu1  ;;  %v12800_v17 = vpop.f32.mrb[197].mxu0  ;;  %v14951_v24 = vld [vmem:[%s18439_s1 + $0xa98] sm:$0xff]  }
 0x283   : > { %v12737_v31 = vadd.f32 %v12736_v5, %v12735_v16  ;;  %v12801_v21 = vadd.f32 %v12800_v17, %v12799_v27  ;;  %v12738_v30 = vpop.f32.mrb[198].mxu1  ;;  %v12802_v26 = vpop.f32.mrb[198].mxu0  ;;  %v14960_v16 = vld [vmem:[%s18439_s1 + $0xae0] sm:$0xff]  }
 0x284   : > { %v12739_v55 = vpop.f32.mrb[199].mxu1  ;;  %v12803_v41 = vpop.f32.mrb[199].mxu0  ;;  %v14934_v27 = vld [vmem:[%s15516_s13 + $0x4b8] ss:$264 sps:$4 sm:$0xff]  }
 0x285   : > { %v8739_v42 = vadd.f32 %v12737_v31, %v16960_v47  ;;  %v12740_v39 = vadd.f32 %v12739_v55, %v12738_v30  ;;  %v12804_v51 = vadd.f32 %v12803_v41, %v12802_v26  ;;  %v14933_v47 = vld [vmem:[%s18439_s1 + $0xb08] sm:$0xff]   ;;  %v14962_v5 = vld [vmem:[%s18439_s1 + $0xb60] sm:$0xff]   ;;  %v14949_v30 = vld [vmem:[%s15516_s13 + $0x6d4] ss:$264 sps:$4 sm:$0xff]  }
 0x286   : > { %9473 = vmatmul.mubr.bf16.vlgmr.msra.gmra.mrb[48].mxu1 %v14914_v12  ;;  %9570 = vmatmul.mubr.bf16.vlgmr.msra.gmra.mrb[48].mxu0 %v14917_v32 }
 0x287   : > { %v17133_v62 = vadd.f32 %v12801_v21, %v8739_v42  ;;  %v8742_v48 = vadd.f32 %v12740_v39, %v16971_v53  ;;  %13330 = vmatpush3.bf16.msra.mxu1 %v14921_v19  ;;  %13394 = vmatpush3.bf16.msra.mxu0 %v14923_v7  ;;  %v14937_v19 = vld [vmem:[%s15516_s13 + $0x4c0] ss:$264 sps:$4 sm:$0xff]  }
 0x288   : > { %9480 = vmatprep.mubr.bf16.mxu1 %v14926_v10  ;;  %9577 = vmatprep.mubr.bf16.mxu0 %v14929_v36  ;;  %v14961_v39 = vld [vmem:[%s18439_s1 + $0xaa0] sm:$0xff]  }
 0x289   : > { %v17147_v53 = vadd.f32 %v12804_v51, %v8742_v48  ;;  %v12741_v49 = vpop.f32.mrb[200].mxu1  ;;  %v12805_v59 = vpop.f32.mrb[200].mxu0  ;;  %13331 = vmatprep.subr.bf16.mxu1 %v14930_v35  ;;  %13395 = vmatprep.subr.bf16.mxu0 %v14932_v61  ;;  %v14963_v51 = vld [vmem:[%s18439_s1 + $0xb20] sm:$0xff]   ;;  %v14970_v61 = vld [vmem:[%s18439_s1 + $0xae8] sm:$0xff]  }
 0x28a   : > { %v12742_v56 = vpop.f32.mrb[201].mxu1  ;;  %v12806_v46 = vpop.f32.mrb[201].mxu0 }
 0x28b   : > { %v12743_v63 = vadd.f32 %v12742_v56, %v12741_v49  ;;  %v12807_v54 = vadd.f32 %v12806_v46, %v12805_v59  ;;  %v12744_v13 = vpop.f32.mrb[202].mxu1  ;;  %v12808_v34 = vpop.f32.mrb[202].mxu0  ;;  %13332 = vmatpush3.bf16.msra.mxu1 %v14931_v57  ;;  %13396 = vmatpush3.bf16.msra.mxu0 %v14933_v47  ;;  %v14947_v49 = vld [vmem:[%s15516_s13 + $0x6d0] ss:$264 sps:$4 sm:$0xff]   ;;  %v14973_v59 = vld [vmem:[%s18439_s1 + $0xb28] sm:$0xff]  }
 0x28c   : > { %v12745_v52 = vpop.f32.mrb[203].mxu1  ;;  %v12809_v58 = vpop.f32.mrb[203].mxu0  ;;  %13333 = vmatprep.subr.bf16.mxu1 %v14940_v37  ;;  %13397 = vmatprep.subr.bf16.mxu0 %v14942_v2  ;;  %v14972_v37 = vld [vmem:[%s18439_s1 + $0xb68] sm:$0xff]   ;;  %v14980_v46 = vld [vmem:[%s18439_s1 + $0xaf0] sm:$0xff]  }
 0x28d   : > { %v8747_v3 = vadd.f32 %v12743_v63, %v16991_v29  ;;  %v12746_v0 = vadd.f32 %v12745_v52, %v12744_v13  ;;  %v12810_v18 = vadd.f32 %v12809_v58, %v12808_v34  ;;  %v14953_v29 = vld [vmem:[%s18439_s1 + $0xb18] sm:$0xff]   ;;  %v14944_v2 = vld [vmem:[%s15516_s13 + $0x6c8] ss:$264 sps:$4 sm:$0xff]  }
 0x28e   : > { %9481 = vmatmul.mubr.bf16.gmra.mrb[52].mxu1 %v14924_v33  ;;  %9578 = vmatmul.mubr.bf16.gmra.mrb[52].mxu0 %v14927_v8 }
 0x28f   : > { %v17170_v12 = vadd.f32 %v12807_v54, %v8747_v3  ;;  %v8750_v32 = vadd.f32 %v12746_v0, %v17002_v38  ;;  %9488 = vmatprep.mubr.bf16.mxu1 %v14936_v6  ;;  %9585 = vmatprep.mubr.bf16.mxu0 %v14939_v15  ;;  %v14946_v38 = vld [vmem:[%s15516_s13 + $0x6cc] ss:$264 sps:$4 sm:$0xff]  }
 0x290   : > { %13334 = vmatpush3.bf16.msra.mxu1 %v14941_v14  ;;  %13398 = vmatpush3.bf16.msra.mxu0 %v14943_v23  ;;  %v14982_v14 = vld [vmem:[%s18439_s1 + $0xb70] sm:$0xff]   ;;  %v14959_v23 = vld [vmem:[%s15516_s13 + $0x8e4] ss:$264 sps:$4 sm:$0xff]  }
 0x291   : > { %v17181_v17 = vadd.f32 %v12810_v18, %v8750_v32  ;;  %v12747_v10 = vpop.f32.mrb[204].mxu1  ;;  %v12811_v36 = vpop.f32.mrb[204].mxu0  ;;  %13335 = vmatprep.subr.bf16.mxu1 %v14950_v28  ;;  %13399 = vmatprep.subr.bf16.mxu0 %v14952_v9  ;;  %v14981_v3 = vld [vmem:[%s18439_s1 + $0xab0] sm:$0xff]   ;;  %v14990_v9 = vld [vmem:[%s18439_s1 + $0xaf8] sm:$0xff]  }
 0x292   : > { %v12748_v31 = vpop.f32.mrb[205].mxu1  ;;  %v12812_v21 = vpop.f32.mrb[205].mxu0  ;;  %v14983_v0 = vld [vmem:[%s18439_s1 + $0xb30] sm:$0xff]  }
 0x293   : > { %v12749_v26 = vadd.f32 %v12748_v31, %v12747_v10  ;;  %v12813_v7 = vadd.f32 %v12812_v21, %v12811_v36  ;;  %v12750_v35 = vpop.f32.mrb[206].mxu1  ;;  %v12814_v55 = vpop.f32.mrb[206].mxu0  ;;  %v14954_v10 = vld [vmem:[%s15516_s13 + $0x8d8] ss:$264 sps:$4 sm:$0xff]  }
 0x294   : > { %v12751_v41 = vpop.f32.mrb[207].mxu1  ;;  %v12815_v42 = vpop.f32.mrb[207].mxu0  ;;  %13336 = vmatpush3.bf16.msra.mxu1 %v14951_v24  ;;  %13400 = vmatpush3.bf16.msra.mxu0 %v14953_v29  ;;  %v15000_v36 = vld [vmem:[%s18439_s1 + $0xbc0] sm:$0xff]  }
 0x295   : > { %v8755_v57 = vadd.f32 %v12749_v26, %v17025_v4  ;;  %v12752_v48 = vadd.f32 %v12751_v41, %v12750_v35  ;;  %v12816_v47 = vadd.f32 %v12815_v42, %v12814_v55  ;;  %13337 = vmatprep.subr.bf16.mxu1 %v14960_v16  ;;  %13401 = vmatprep.subr.bf16.mxu0 %v14962_v5  ;;  %v14971_v4 = vld [vmem:[%s18439_s1 + $0xaa8] sm:$0xff]   ;;  %v14992_v16 = vld [vmem:[%s18439_s1 + $0xb78] sm:$0xff]   ;;  %v15002_v21 = vld [vmem:[%s18439_s1 + $0xc40] sm:$0xff]  }
 0x296   : > { %9489 = vmatmul.mubr.bf16.gmra.mrb[56].mxu1 %v14934_v27  ;;  %9586 = vmatmul.mubr.bf16.gmra.mrb[56].mxu0 %v14937_v19  ;;  %v14991_v27 = vld [vmem:[%s18439_s1 + $0xab8] sm:$0xff]   ;;  %v14966_v35 = vld [vmem:[%s15516_s13 + $0xaec] ss:$264 sps:$4 sm:$0xff]  }
 0x297   : > { %v17198_v33 = vadd.f32 %v12813_v7, %v8755_v57  ;;  %v8758_v8 = vadd.f32 %v12752_v48, %v17036_v22  ;;  %9496 = vmatprep.mubr.bf16.mxu1 %v14946_v38  ;;  %9593 = vmatprep.mubr.bf16.mxu0 %v14949_v30  ;;  %v14956_v22 = vld [vmem:[%s15516_s13 + $0x8dc] ss:$264 sps:$4 sm:$0xff]   ;;  %v14957_v7 = vld [vmem:[%s15516_s13 + $0x8e0] ss:$264 sps:$4 sm:$0xff]  }
 0x298   : > { %13338 = vmatpush3.bf16.msra.mxu1 %v14961_v39  ;;  %13402 = vmatpush3.bf16.msra.mxu0 %v14963_v51  ;;  %v14969_v51 = vld [vmem:[%s15516_s13 + $0xaf4] ss:$264 sps:$4 sm:$0xff]  }
 0x299   : > { %v17209_v6 = vadd.f32 %v12816_v47, %v8758_v8  ;;  %v12833_v15 = vpop.f32.mrb[208].mxu1  ;;  %v12897_v56 = vpop.f32.mrb[208].mxu0  ;;  %13339 = vmatprep.subr.bf16.mxu1 %v14970_v61  ;;  %13403 = vmatprep.subr.bf16.mxu0 %v14972_v37 }
 0x29a   : > { %v12834_v63 = vpop.f32.mrb[209].mxu1  ;;  %v12898_v54 = vpop.f32.mrb[209].mxu0 }
 0x29b   : > { %v12835_v13 = vadd.f32 %v12834_v63, %v12833_v15  ;;  %v12899_v34 = vadd.f32 %v12898_v54, %v12897_v56  ;;  %v12836_v52 = vpop.f32.mrb[210].mxu1  ;;  %v12900_v58 = vpop.f32.mrb[210].mxu0 }
 0x29c   : > { %v12837_v18 = vpop.f32.mrb[211].mxu1  ;;  %v12901_v28 = vpop.f32.mrb[211].mxu0  ;;  %13340 = vmatpush3.bf16.msra.mxu1 %v14971_v4  ;;  %13404 = vmatpush3.bf16.msra.mxu0 %v14973_v59 }
 0x29d   : > { %v8893_v24 = vadd.f32 %v12835_v13, %v17059_v45  ;;  %v12838_v29 = vadd.f32 %v12837_v18, %v12836_v52  ;;  %v12902_v32 = vadd.f32 %v12901_v28, %v12900_v58  ;;  %13341 = vmatprep.subr.bf16.mxu1 %v14980_v46  ;;  %13405 = vmatprep.subr.bf16.mxu0 %v14982_v14  ;;  %v14993_v45 = vld [vmem:[%s18439_s1 + $0xb38] sm:$0xff]  }
 0x29e   : > { %9497 = vmatmul.mubr.bf16.gmra.mrb[60].mxu1 %v14944_v2  ;;  %9594 = vmatmul.mubr.bf16.gmra.mrb[60].mxu0 %v14947_v49  ;;  %v14976_v13 = vld [vmem:[%s15516_s13 + $0xcfc] ss:$264 sps:$4 sm:$0xff]   ;;  %v14974_v28 = vld [vmem:[%s15516_s13 + $0xcf8] ss:$264 sps:$4 sm:$0xff]  }
 0x29f   : > { %v17235_v19 = vadd.f32 %v12899_v34, %v8893_v24  ;;  %v8896_v5 = vadd.f32 %v12838_v29, %v17070_v43  ;;  %9504 = vmatprep.mubr.bf16.mxu1 %v14956_v22  ;;  %9601 = vmatprep.mubr.bf16.mxu0 %v14959_v23  ;;  %v14967_v22 = vld [vmem:[%s15516_s13 + $0xaf0] ss:$264 sps:$4 sm:$0xff]   ;;  %v14979_v34 = vld [vmem:[%s15516_s13 + $0xd04] ss:$264 sps:$4 sm:$0xff]  }
 0x2a0   : > { %13342 = vmatpush3.bf16.msra.mxu1 %v14981_v3  ;;  %13406 = vmatpush3.bf16.msra.mxu0 %v14983_v0 }
 0x2a1   : > { %v17245_v38 = vadd.f32 %v12902_v32, %v8896_v5  ;;  %v12839_v31 = vpop.f32.mrb[212].mxu1  ;;  %v12903_v43 = vpop.f32.mrb[212].mxu0  ;;  %13343 = vmatprep.subr.bf16.mxu1 %v14990_v9  ;;  %13407 = vmatprep.subr.bf16.mxu0 %v14992_v16  ;;  %v14977_v32 = vld [vmem:[%s15516_s13 + $0xd00] ss:$264 sps:$4 sm:$0xff]   ;;  %v14989_v5 = vld [vmem:[%s15516_s13 + $0xf14] ss:$264 sps:$4 sm:$0xff]  }
 0x2a2   : > { %v12840_v30 = vpop.f32.mrb[213].mxu1  ;;  %v12904_v26 = vpop.f32.mrb[213].mxu0 }
 0x2a3   : > { %v12841_v55 = vadd.f32 %v12840_v30, %v12839_v31  ;;  %v12905_v41 = vadd.f32 %v12904_v26, %v12903_v43  ;;  %v12842_v42 = vpop.f32.mrb[214].mxu1  ;;  %v12906_v39 = vpop.f32.mrb[214].mxu0 }
 0x2a4   : > { %v12843_v61 = vpop.f32.mrb[215].mxu1  ;;  %v12907_v57 = vpop.f32.mrb[215].mxu0  ;;  %13344 = vmatpush3.bf16.msra.mxu1 %v14991_v27  ;;  %13408 = vmatpush3.bf16.msra.mxu0 %v14993_v45  ;;  %v14986_v27 = vld [vmem:[%s15516_s13 + $0xf0c] ss:$264 sps:$4 sm:$0xff]  }
 0x2a5   : > { %v8901_v48 = vadd.f32 %v12841_v55, %v17078_v60  ;;  %v12844_v47 = vadd.f32 %v12843_v61, %v12842_v42  ;;  %v12908_v37 = vadd.f32 %v12907_v57, %v12906_v39  ;;  %13457 = vmatprep.subr.bf16.mxu1 %v15000_v36  ;;  %13521 = vmatprep.subr.bf16.mxu0 %v15002_v21  ;;  %v14964_v60 = vld [vmem:[%s15516_s13 + $0xae8] ss:$264 sps:$4 sm:$0xff]   ;;  %v14996_v61 = vld [vmem:[%s15516_s13 + $0xac] ss:$264 sps:$4 sm:$0xff]  }
 0x2a6   : > { %9505 = vmatmul.mubr.bf16.gmra.mrb[64].mxu1 %v14954_v10  ;;  %9602 = vmatmul.mubr.bf16.gmra.mrb[64].mxu0 %v14957_v7  ;;  %v14984_v55 = vld [vmem:[%s15516_s13 + $0xf08] ss:$264 sps:$4 sm:$0xff]  }
 0x2a7   : > { %v17254_v8 = vadd.f32 %v12905_v41, %v8901_v48  ;;  %v8904_v4 = vadd.f32 %v12844_v47, %v17083_v25  ;;  %9512 = vmatprep.mubr.bf16.mxu1 %v14966_v35  ;;  %9609 = vmatprep.mubr.bf16.mxu0 %v14969_v51  ;;  %v14987_v41 = vld [vmem:[%s15516_s13 + $0xf10] ss:$264 sps:$4 sm:$0xff]   ;;  %v14999_v48 = vld [vmem:[%s15516_s13 + $0xb4] ss:$264 sps:$4 sm:$0xff]  }
 0x2a9   : > { %v17257_v2 = vadd.f32 %v12908_v37, %v8904_v4  ;;  %v12845_v49 = vpop.f32.mrb[216].mxu1  ;;  %v12909_v59 = vpop.f32.mrb[216].mxu0 }
 0x2aa   : > { %v12846_v15 = vpop.f32.mrb[217].mxu1  ;;  %v12910_v56 = vpop.f32.mrb[217].mxu0 }
 0x2ab   : > { %v12847_v46 = vadd.f32 %v12846_v15, %v12845_v49  ;;  %v12911_v14 = vadd.f32 %v12910_v56, %v12909_v59  ;;  %v12848_v63 = vpop.f32.mrb[218].mxu1  ;;  %v12912_v54 = vpop.f32.mrb[218].mxu0 }
 0x2ac   : > { %v12849_v52 = vpop.f32.mrb[219].mxu1  ;;  %v12913_v25 = vpop.f32.mrb[219].mxu0 }
 0x2ad   : > { %v8909_v58 = vadd.f32 %v12847_v46, %v17088_v11  ;;  %v12850_v23 = vadd.f32 %v12849_v52, %v12848_v63  ;;  %v12914_v3 = vadd.f32 %v12913_v25, %v12912_v54  ;;  %v14997_v63 = vld [vmem:[%s15516_s13 + $0xb0] ss:$264 sps:$4 sm:$0xff]   ;;  %v15003_v52 = vld [vmem:[%s18439_s1 + $0xc00] sm:$0xff]  }
 0x2ae   : > { %9513 = vmatmul.mubr.bf16.gmra.mrb[68].mxu1 %v14964_v60  ;;  %9610 = vmatmul.mubr.bf16.gmra.mrb[68].mxu0 %v14967_v22 }
 0x2af   : > { %v17264_v0 = vadd.f32 %v12911_v14, %v8909_v58  ;;  %v8912_v18 = vadd.f32 %v12850_v23, %v17093_v40  ;;  %9520 = vmatprep.mubr.bf16.mxu1 %v14976_v13  ;;  %9617 = vmatprep.mubr.bf16.mxu0 %v14979_v34  ;;  %v14994_v14 = vld [vmem:[%s15516_s13 + $0xa8] ss:$264 sps:$4 sm:$0xff]   ;;  %v15006_v23 = vld [vmem:[%s15516_s13 + $0x2bc] ss:$264 sps:$4 sm:$0xff]  }
 0x2b1   : > { %v17268_v9 = vadd.f32 %v12914_v3, %v8912_v18  ;;  %v12851_v24 = vpop.f32.mrb[220].mxu1  ;;  %v12915_v29 = vpop.f32.mrb[220].mxu0 }
 0x2b2   : > { %v12852_v16 = vpop.f32.mrb[221].mxu1  ;;  %v12916_v11 = vpop.f32.mrb[221].mxu0 }
 0x2b3   : > { %v12853_v45 = vadd.f32 %v12852_v16, %v12851_v24  ;;  %v12917_v10 = vadd.f32 %v12916_v11, %v12915_v29  ;;  %v12854_v36 = vpop.f32.mrb[222].mxu1  ;;  %v12918_v31 = vpop.f32.mrb[222].mxu0  ;;  %v15010_v29 = vld [vmem:[%s18439_s1 + $0xbc8] sm:$0xff]  }
 0x2b4   : > { %v12855_v43 = vpop.f32.mrb[223].mxu1  ;;  %v12919_v40 = vpop.f32.mrb[223].mxu0 }
 0x2b5   : > { %v8917_v21 = vadd.f32 %v12853_v45, %v17098_v50  ;;  %v12856_v30 = vadd.f32 %v12855_v43, %v12854_v36  ;;  %v12920_v26 = vadd.f32 %v12919_v40, %v12918_v31  ;;  %v15012_v45 = vld [vmem:[%s18439_s1 + $0xc48] sm:$0xff]   ;;  %v15004_v43 = vld [vmem:[%s15516_s13 + $0x2b8] ss:$264 sps:$4 sm:$0xff]  }
 0x2b6   : > { %9521 = vmatmul.mubr.bf16.gmra.mrb[72].mxu1 %v14974_v28  ;;  %9618 = vmatmul.mubr.bf16.gmra.mrb[72].mxu0 %v14977_v32  ;;  %v15013_v31 = vld [vmem:[%s18439_s1 + $0xc08] sm:$0xff]  }
 0x2b7   : > { %v17274_v7 = vadd.f32 %v12917_v10, %v8917_v21  ;;  %v8920_v35 = vadd.f32 %v12856_v30, %v17103_v44  ;;  %9528 = vmatprep.mubr.bf16.mxu1 %v14986_v27  ;;  %9625 = vmatprep.mubr.bf16.mxu0 %v14989_v5  ;;  %v15007_v40 = vld [vmem:[%s15516_s13 + $0x2c0] ss:$264 sps:$4 sm:$0xff]   ;;  %v15022_v21 = vld [vmem:[%s18439_s1 + $0xc50] sm:$0xff]  }
 0x2b9   : > { %v17279_v42 = vadd.f32 %v12920_v26, %v8920_v35  ;;  %v12857_v39 = vpop.f32.mrb[224].mxu1  ;;  %v12921_v51 = vpop.f32.mrb[224].mxu0 }
 0x2ba   : > { %v12858_v57 = vpop.f32.mrb[225].mxu1  ;;  %v12922_v50 = vpop.f32.mrb[225].mxu0 }
 0x2bb   : > { %v12859_v47 = vadd.f32 %v12858_v57, %v12857_v39  ;;  %v12923_v37 = vadd.f32 %v12922_v50, %v12921_v51  ;;  %v12860_v4 = vpop.f32.mrb[226].mxu1  ;;  %v12924_v49 = vpop.f32.mrb[226].mxu0  ;;  %v15023_v57 = vld [vmem:[%s18439_s1 + $0xc10] sm:$0xff]  }
 0x2bc   : > { %v12861_v59 = vpop.f32.mrb[227].mxu1  ;;  %v12925_v44 = vpop.f32.mrb[227].mxu0 }
 0x2bd   : > { %v8925_v60 = vadd.f32 %v12859_v47, %v17108_v1  ;;  %v12862_v15 = vadd.f32 %v12861_v59, %v12860_v4  ;;  %v12926_v56 = vadd.f32 %v12925_v44, %v12924_v49  ;;  %v15001_v1 = vld [vmem:[%s18439_s1 + $0xb80] sm:$0xff]   ;;  %v15030_v59 = vld [vmem:[%s18439_s1 + $0xbd8] sm:$0xff]  }
 0x2be   : > { %9529 = vmatmul.mubr.bf16.gmra.mrb[76].mxu1 %v14984_v55  ;;  %9626 = vmatmul.mubr.bf16.gmra.mrb[76].mxu0 %v14987_v41  ;;  %v15016_v55 = vld [vmem:[%s15516_s13 + $0x4cc] ss:$264 sps:$4 sm:$0xff]   ;;  %v15032_v44 = vld [vmem:[%s18439_s1 + $0xc58] sm:$0xff]  }
 0x2bf   : > { %v17284_v22 = vadd.f32 %v12923_v37, %v8925_v60  ;;  %v8928_v46 = vadd.f32 %v12862_v15, %v17113_v20  ;;  %9666 = vmatprep.mubr.bf16.mxu1 %v14996_v61  ;;  %9763 = vmatprep.mubr.bf16.mxu0 %v14999_v48  ;;  %v15009_v20 = vld [vmem:[%s15516_s13 + $0x2c4] ss:$264 sps:$4 sm:$0xff]   ;;  %v15019_v41 = vld [vmem:[%s15516_s13 + $0x4d4] ss:$264 sps:$4 sm:$0xff]  }
 0x2c0   : > { %v15021_v61 = vld [vmem:[%s18439_s1 + $0xb90] sm:$0xff]  }
 0x2c1   : > { %v17289_v54 = vadd.f32 %v12926_v56, %v8928_v46  ;;  %v12863_v13 = vpop.f32.mrb[228].mxu1  ;;  %v12927_v34 = vpop.f32.mrb[228].mxu0 }
 0x2c2   : > { %v12864_v25 = vpop.f32.mrb[229].mxu1  ;;  %v12928_v58 = vpop.f32.mrb[229].mxu0 }
 0x2c3   : > { %v12865_v3 = vadd.f32 %v12864_v25, %v12863_v13  ;;  %v12929_v18 = vadd.f32 %v12928_v58, %v12927_v34  ;;  %v12866_v28 = vpop.f32.mrb[230].mxu1  ;;  %v12930_v24 = vpop.f32.mrb[230].mxu0  ;;  %v15014_v13 = vld [vmem:[%s15516_s13 + $0x4c8] ss:$264 sps:$4 sm:$0xff]   ;;  %v15026_v58 = vld [vmem:[%s15516_s13 + $0x6dc] ss:$264 sps:$4 sm:$0xff]  }
 0x2c4   : > { %v12867_v32 = vpop.f32.mrb[231].mxu1  ;;  %v12931_v16 = vpop.f32.mrb[231].mxu0  ;;  %v15017_v34 = vld [vmem:[%s15516_s13 + $0x4d0] ss:$264 sps:$4 sm:$0xff]  }
 0x2c5   : > { %v8933_v11 = vadd.f32 %v12865_v3, %v17133_v62  ;;  %v12868_v27 = vadd.f32 %v12867_v32, %v12866_v28  ;;  %v12932_v5 = vadd.f32 %v12931_v16, %v12930_v24  ;;  %v15011_v62 = vld [vmem:[%s18439_s1 + $0xb88] sm:$0xff]   ;;  %v15041_v28 = vld [vmem:[%s18439_s1 + $0xba0] sm:$0xff]  }
 0x2c6   : > { %9667 = vmatmul.mubr.bf16.vlgmr.msra.gmra.mrb[80].mxu1 %v14994_v14  ;;  %9764 = vmatmul.mubr.bf16.vlgmr.msra.gmra.mrb[80].mxu0 %v14997_v63  ;;  %v15031_v63 = vld [vmem:[%s18439_s1 + $0xb98] sm:$0xff]  }
 0x2c7   : > { %v17306_v10 = vadd.f32 %v12929_v18, %v8933_v11  ;;  %v8936_v36 = vadd.f32 %v12868_v27, %v17147_v53  ;;  %13458 = vmatpush3.bf16.msra.mxu1 %v15001_v1  ;;  %13522 = vmatpush3.bf16.msra.mxu0 %v15003_v52  ;;  %v15020_v53 = vld [vmem:[%s18439_s1 + $0xbd0] sm:$0xff]   ;;  %v15043_v11 = vld [vmem:[%s18439_s1 + $0xc20] sm:$0xff]   ;;  %v15050_v27 = vld [vmem:[%s18439_s1 + $0xbe8] sm:$0xff]  }
 0x2c8   : > { %9674 = vmatprep.mubr.bf16.mxu1 %v15006_v23  ;;  %9771 = vmatprep.mubr.bf16.mxu0 %v15009_v20  ;;  %v15040_v23 = vld [vmem:[%s18439_s1 + $0xbe0] sm:$0xff]  }
 0x2c9   : > { %v17323_v30 = vadd.f32 %v12932_v5, %v8936_v36  ;;  %v12869_v26 = vpop.f32.mrb[232].mxu1  ;;  %v12933_v35 = vpop.f32.mrb[232].mxu0  ;;  %13459 = vmatprep.subr.bf16.mxu1 %v15010_v29  ;;  %13523 = vmatprep.subr.bf16.mxu0 %v15012_v45  ;;  %v15042_v20 = vld [vmem:[%s18439_s1 + $0xc60] sm:$0xff]  }
 0x2ca   : > { %v12870_v39 = vpop.f32.mrb[233].mxu1  ;;  %v12934_v51 = vpop.f32.mrb[233].mxu0 }
 0x2cb   : > { %v12871_v50 = vadd.f32 %v12870_v39, %v12869_v26  ;;  %v12935_v48 = vadd.f32 %v12934_v51, %v12933_v35  ;;  %v12872_v47 = vpop.f32.mrb[234].mxu1  ;;  %v12936_v37 = vpop.f32.mrb[234].mxu0  ;;  %13460 = vmatpush3.bf16.msra.mxu1 %v15011_v62  ;;  %13524 = vmatpush3.bf16.msra.mxu0 %v15013_v31  ;;  %v15027_v26 = vld [vmem:[%s15516_s13 + $0x6e0] ss:$264 sps:$4 sm:$0xff]   ;;  %v15036_v51 = vld [vmem:[%s15516_s13 + $0x8ec] ss:$264 sps:$4 sm:$0xff]  }
 0x2cc   : > { %v12873_v4 = vpop.f32.mrb[235].mxu1  ;;  %v12937_v49 = vpop.f32.mrb[235].mxu0  ;;  %13461 = vmatprep.subr.bf16.mxu1 %v15020_v53  ;;  %13525 = vmatprep.subr.bf16.mxu0 %v15022_v21  ;;  %v15024_v21 = vld [vmem:[%s15516_s13 + $0x6d8] ss:$264 sps:$4 sm:$0xff]   ;;  %v15053_v35 = vld [vmem:[%s18439_s1 + $0xc28] sm:$0xff]  }
 0x2cd   : > { %v8941_v60 = vadd.f32 %v12871_v50, %v17170_v12  ;;  %v12874_v15 = vadd.f32 %v12873_v4, %v12872_v47  ;;  %v12938_v56 = vadd.f32 %v12937_v49, %v12936_v37  ;;  %v15033_v12 = vld [vmem:[%s18439_s1 + $0xc18] sm:$0xff]   ;;  %v15061_v47 = vld [vmem:[%s18439_s1 + $0xbb0] sm:$0xff]  }
 0x2ce   : > { %9675 = vmatmul.mubr.bf16.gmra.mrb[84].mxu1 %v15004_v43  ;;  %9772 = vmatmul.mubr.bf16.gmra.mrb[84].mxu0 %v15007_v40  ;;  %v15052_v43 = vld [vmem:[%s18439_s1 + $0xc68] sm:$0xff]  }
 0x2cf   : > { %v17340_v46 = vadd.f32 %v12935_v48, %v8941_v60  ;;  %v8944_v14 = vadd.f32 %v12874_v15, %v17181_v17  ;;  %9682 = vmatprep.mubr.bf16.mxu1 %v15016_v55  ;;  %9779 = vmatprep.mubr.bf16.mxu0 %v15019_v41  ;;  %v15029_v17 = vld [vmem:[%s15516_s13 + $0x6e4] ss:$264 sps:$4 sm:$0xff]   ;;  %v15063_v15 = vld [vmem:[%s18439_s1 + $0xc30] sm:$0xff]  }
 0x2d0   : > { %13462 = vmatpush3.bf16.msra.mxu1 %v15021_v61  ;;  %13526 = vmatpush3.bf16.msra.mxu0 %v15023_v57  ;;  %v15060_v61 = vld [vmem:[%s18439_s1 + $0xbf0] sm:$0xff]  }
 0x2d1   : > { %v17351_v1 = vadd.f32 %v12938_v56, %v8944_v14  ;;  %v12875_v52 = vpop.f32.mrb[236].mxu1  ;;  %v12939_v25 = vpop.f32.mrb[236].mxu0  ;;  %13463 = vmatprep.subr.bf16.mxu1 %v15030_v59  ;;  %13527 = vmatprep.subr.bf16.mxu0 %v15032_v44  ;;  %v15062_v57 = vld [vmem:[%s18439_s1 + $0xc70] sm:$0xff]  }
 0x2d2   : > { %v12876_v3 = vpop.f32.mrb[237].mxu1  ;;  %v12940_v18 = vpop.f32.mrb[237].mxu0 }
 0x2d3   : > { %v12877_v24 = vadd.f32 %v12876_v3, %v12875_v52  ;;  %v12941_v29 = vadd.f32 %v12940_v18, %v12939_v25  ;;  %v12878_v32 = vpop.f32.mrb[238].mxu1  ;;  %v12942_v16 = vpop.f32.mrb[238].mxu0  ;;  %v15080_v25 = vld [vmem:[%s18439_s1 + $0xcc0] sm:$0xff]  }
 0x2d4   : > { %v12879_v5 = vpop.f32.mrb[239].mxu1  ;;  %v12943_v45 = vpop.f32.mrb[239].mxu0  ;;  %13464 = vmatpush3.bf16.msra.mxu1 %v15031_v63  ;;  %13528 = vmatpush3.bf16.msra.mxu0 %v15033_v12  ;;  %v15073_v12 = vld [vmem:[%s18439_s1 + $0xc38] sm:$0xff]  }
 0x2d5   : > { %v8949_v36 = vadd.f32 %v12877_v24, %v17198_v33  ;;  %v12880_v62 = vadd.f32 %v12879_v5, %v12878_v32  ;;  %v12944_v31 = vadd.f32 %v12943_v45, %v12942_v16  ;;  %13465 = vmatprep.subr.bf16.mxu1 %v15040_v23  ;;  %13529 = vmatprep.subr.bf16.mxu0 %v15042_v20  ;;  %v15051_v33 = vld [vmem:[%s18439_s1 + $0xba8] sm:$0xff]   ;;  %v15037_v23 = vld [vmem:[%s15516_s13 + $0x8f0] ss:$264 sps:$4 sm:$0xff]   ;;  %v15082_v20 = vld [vmem:[%s18439_s1 + $0xd40] sm:$0xff]  }
 0x2d6   : > { %9683 = vmatmul.mubr.bf16.gmra.mrb[88].mxu1 %v15014_v13  ;;  %9780 = vmatmul.mubr.bf16.gmra.mrb[88].mxu0 %v15017_v34  ;;  %v15070_v13 = vld [vmem:[%s18439_s1 + $0xbf8] sm:$0xff]   ;;  %v15049_v32 = vld [vmem:[%s15516_s13 + $0xb04] ss:$264 sps:$4 sm:$0xff]  }
 0x2d7   : > { %v17374_v40 = vadd.f32 %v12941_v29, %v8949_v36  ;;  %v8952_v53 = vadd.f32 %v12880_v62, %v17209_v6  ;;  %9690 = vmatprep.mubr.bf16.mxu1 %v15026_v58  ;;  %9787 = vmatprep.mubr.bf16.mxu0 %v15029_v17  ;;  %v15039_v6 = vld [vmem:[%s15516_s13 + $0x8f4] ss:$264 sps:$4 sm:$0xff]   ;;  %v15034_v17 = vld [vmem:[%s15516_s13 + $0x8e8] ss:$264 sps:$4 sm:$0xff]  }
 0x2d8   : > { %13466 = vmatpush3.bf16.msra.mxu1 %v15041_v28  ;;  %13530 = vmatpush3.bf16.msra.mxu0 %v15043_v11  ;;  %v15072_v34 = vld [vmem:[%s18439_s1 + $0xc78] sm:$0xff]  }
 0x2d9   : > { %v17385_v55 = vadd.f32 %v12944_v31, %v8952_v53  ;;  %v12961_v41 = vpop.f32.mrb[240].mxu1  ;;  %v13025_v39 = vpop.f32.mrb[240].mxu0  ;;  %13467 = vmatprep.subr.bf16.mxu1 %v15050_v27  ;;  %13531 = vmatprep.subr.bf16.mxu0 %v15052_v43 }
 0x2da   : > { %v12962_v50 = vpop.f32.mrb[241].mxu1  ;;  %v13026_v48 = vpop.f32.mrb[241].mxu0 }
 0x2db   : > { %v12963_v37 = vadd.f32 %v12962_v50, %v12961_v41  ;;  %v13027_v4 = vadd.f32 %v13026_v48, %v13025_v39  ;;  %v12964_v49 = vpop.f32.mrb[242].mxu1  ;;  %v13028_v59 = vpop.f32.mrb[242].mxu0  ;;  %v15047_v41 = vld [vmem:[%s15516_s13 + $0xb00] ss:$264 sps:$4 sm:$0xff]   ;;  %v15056_v48 = vld [vmem:[%s15516_s13 + $0xd0c] ss:$264 sps:$4 sm:$0xff]  }
 0x2dc   : > { %v12965_v44 = vpop.f32.mrb[243].mxu1  ;;  %v13029_v60 = vpop.f32.mrb[243].mxu0  ;;  %13468 = vmatpush3.bf16.msra.mxu1 %v15051_v33  ;;  %13532 = vmatpush3.bf16.msra.mxu0 %v15053_v35 }
 0x2dd   : > { %v9087_v56 = vadd.f32 %v12963_v37, %v17235_v19  ;;  %v12966_v14 = vadd.f32 %v12965_v44, %v12964_v49  ;;  %v13030_v63 = vadd.f32 %v13029_v60, %v13028_v59  ;;  %13469 = vmatprep.subr.bf16.mxu1 %v15060_v61  ;;  %13533 = vmatprep.subr.bf16.mxu0 %v15062_v57  ;;  %v15071_v19 = vld [vmem:[%s18439_s1 + $0xbb8] sm:$0xff]  }
 0x2de   : > { %9691 = vmatmul.mubr.bf16.gmra.mrb[92].mxu1 %v15024_v21  ;;  %9788 = vmatmul.mubr.bf16.gmra.mrb[92].mxu0 %v15027_v26  ;;  %v15044_v21 = vld [vmem:[%s15516_s13 + $0xaf8] ss:$264 sps:$4 sm:$0xff]  }
 0x2df   : > { %v9090_v52 = vadd.f32 %v12966_v14, %v17245_v38  ;;  %9698 = vmatprep.mubr.bf16.mxu1 %v15036_v51  ;;  %9795 = vmatprep.mubr.bf16.mxu0 %v15039_v6  ;;  %v17418_v58 = vadd.f32 %v13027_v4, %v9087_v56  ;;  %v15046_v38 = vld [vmem:[%s15516_s13 + $0xafc] ss:$264 sps:$4 sm:$0xff]   ;;  %v15054_v14 = vld [vmem:[%s15516_s13 + $0xd08] ss:$264 sps:$4 sm:$0xff]  }
 0x2e0   : > { %13470 = vmatpush3.bf16.msra.mxu1 %v15061_v47  ;;  %13534 = vmatpush3.bf16.msra.mxu0 %v15063_v15 }
 0x2e1   : > { %v12967_v3 = vpop.f32.mrb[244].mxu1  ;;  %v13031_v18 = vpop.f32.mrb[244].mxu0  ;;  %13471 = vmatprep.subr.bf16.mxu1 %v15070_v13  ;;  %13535 = vmatprep.subr.bf16.mxu0 %v15072_v34  ;;  %v17426_v28 = vadd.f32 %v13030_v63, %v9090_v52 }
 0x2e2   : > { %v12968_v24 = vpop.f32.mrb[245].mxu1  ;;  %v13032_v29 = vpop.f32.mrb[245].mxu0 }
 0x2e3   : > { %v12969_v16 = vadd.f32 %v12968_v24, %v12967_v3  ;;  %v13033_v11 = vadd.f32 %v13032_v29, %v13031_v18  ;;  %v12970_v27 = vpop.f32.mrb[246].mxu1  ;;  %v13034_v5 = vpop.f32.mrb[246].mxu0 }
 0x2e4   : > { %v12971_v45 = vpop.f32.mrb[247].mxu1  ;;  %v13035_v36 = vpop.f32.mrb[247].mxu0  ;;  %13472 = vmatpush3.bf16.msra.mxu1 %v15071_v19  ;;  %13536 = vmatpush3.bf16.msra.mxu0 %v15073_v12  ;;  %v15066_v19 = vld [vmem:[%s15516_s13 + $0xf1c] ss:$264 sps:$4 sm:$0xff]  }
 0x2e5   : > { %v9095_v62 = vadd.f32 %v12969_v16, %v17254_v8  ;;  %v12972_v31 = vadd.f32 %v12971_v45, %v12970_v27  ;;  %v13036_v43 = vadd.f32 %v13035_v36, %v13034_v5  ;;  %13585 = vmatprep.subr.bf16.mxu1 %v15080_v25  ;;  %13649 = vmatprep.subr.bf16.mxu0 %v15082_v20 }
 0x2e6   : > { %9699 = vmatmul.mubr.bf16.gmra.mrb[96].mxu1 %v15034_v17  ;;  %9796 = vmatmul.mubr.bf16.gmra.mrb[96].mxu0 %v15037_v23 }
 0x2e7   : > { %v9098_v53 = vadd.f32 %v12972_v31, %v17257_v2  ;;  %9706 = vmatprep.mubr.bf16.mxu1 %v15046_v38  ;;  %9803 = vmatprep.mubr.bf16.mxu0 %v15049_v32  ;;  %v17431_v33 = vadd.f32 %v13033_v11, %v9095_v62  ;;  %v15059_v2 = vld [vmem:[%s15516_s13 + $0xd14] ss:$264 sps:$4 sm:$0xff]   ;;  %v15064_v11 = vld [vmem:[%s15516_s13 + $0xf18] ss:$264 sps:$4 sm:$0xff]  }
 0x2e9   : > { %v12973_v26 = vpop.f32.mrb[248].mxu1  ;;  %v13037_v35 = vpop.f32.mrb[248].mxu0  ;;  %v17435_v39 = vadd.f32 %v13036_v43, %v9098_v53  ;;  %v15079_v53 = vld [vmem:[%s15516_s13 + $0xc4] ss:$264 sps:$4 sm:$0xff]  }
 0x2ea   : > { %v12974_v8 = vpop.f32.mrb[249].mxu1  ;;  %v13038_v51 = vpop.f32.mrb[249].mxu0 }
 0x2eb   : > { %v12975_v6 = vadd.f32 %v12974_v8, %v12973_v26  ;;  %v13039_v61 = vadd.f32 %v13038_v51, %v13037_v35  ;;  %v12976_v57 = vpop.f32.mrb[250].mxu1  ;;  %v13040_v50 = vpop.f32.mrb[250].mxu0 }
 0x2ec   : > { %v12977_v47 = vpop.f32.mrb[251].mxu1  ;;  %v13041_v37 = vpop.f32.mrb[251].mxu0 }
 0x2ed   : > { %v9103_v4 = vadd.f32 %v12975_v6, %v17264_v0  ;;  %v12978_v49 = vadd.f32 %v12977_v47, %v12976_v57  ;;  %v13042_v59 = vadd.f32 %v13041_v37, %v13040_v50  ;;  %v15057_v0 = vld [vmem:[%s15516_s13 + $0xd10] ss:$264 sps:$4 sm:$0xff]   ;;  %v15077_v57 = vld [vmem:[%s15516_s13 + $0xc0] ss:$264 sps:$4 sm:$0xff]  }
 0x2ee   : > { %9707 = vmatmul.mubr.bf16.gmra.mrb[100].mxu1 %v15044_v21  ;;  %9804 = vmatmul.mubr.bf16.gmra.mrb[100].mxu0 %v15047_v41 }
 0x2ef   : > { %v9106_v44 = vadd.f32 %v12978_v49, %v17268_v9  ;;  %9714 = vmatprep.mubr.bf16.mxu1 %v15056_v48  ;;  %9811 = vmatprep.mubr.bf16.mxu0 %v15059_v2  ;;  %v17441_v60 = vadd.f32 %v13039_v61, %v9103_v4  ;;  %v15069_v9 = vld [vmem:[%s15516_s13 + $0xf24] ss:$264 sps:$4 sm:$0xff]   ;;  %v15074_v61 = vld [vmem:[%s15516_s13 + $0xb8] ss:$264 sps:$4 sm:$0xff]   ;;  %v15089_v49 = vld [vmem:[%s15516_s13 + $0x2d4] ss:$264 sps:$4 sm:$0xff]  }
 0x2f0   : > { %v15083_v2 = vld [vmem:[%s18439_s1 + $0xd00] sm:$0xff]   ;;  %v15086_v4 = vld [vmem:[%s15516_s13 + $0x2cc] ss:$264 sps:$4 sm:$0xff]  }
 0x2f1   : > { %v12979_v15 = vpop.f32.mrb[252].mxu1  ;;  %v13043_v56 = vpop.f32.mrb[252].mxu0  ;;  %v17444_v63 = vadd.f32 %v13042_v59, %v9106_v44 }
 0x2f2   : > { %v12980_v13 = vpop.f32.mrb[253].mxu1  ;;  %v13044_v34 = vpop.f32.mrb[253].mxu0 }
 0x2f3   : > { %v12981_v12 = vadd.f32 %v12980_v13, %v12979_v15  ;;  %v13045_v52 = vadd.f32 %v13044_v34, %v13043_v56  ;;  %v12982_v25 = vpop.f32.mrb[254].mxu1  ;;  %v13046_v17 = vpop.f32.mrb[254].mxu0  ;;  %v15090_v34 = vld [vmem:[%s18439_s1 + $0xcc8] sm:$0xff]  }
 0x2f4   : > { %v12983_v23 = vpop.f32.mrb[255].mxu1  ;;  %v13047_v20 = vpop.f32.mrb[255].mxu0 }
 0x2f5   : > { %v9111_v3 = vadd.f32 %v12981_v12, %v17274_v7  ;;  %v12984_v18 = vadd.f32 %v12983_v23, %v12982_v25  ;;  %v13048_v38 = vadd.f32 %v13047_v20, %v13046_v17  ;;  %v15067_v7 = vld [vmem:[%s15516_s13 + $0xf20] ss:$264 sps:$4 sm:$0xff]   ;;  %v15087_v20 = vld [vmem:[%s15516_s13 + $0x2d0] ss:$264 sps:$4 sm:$0xff]  }
 0x2f6   : > { %9715 = vmatmul.mubr.bf16.gmra.mrb[104].mxu1 %v15054_v14  ;;  %9812 = vmatmul.mubr.bf16.gmra.mrb[104].mxu0 %v15057_v0  ;;  %v15092_v0 = vld [vmem:[%s18439_s1 + $0xd48] sm:$0xff]  }
 0x2f7   : > { %v9114_v24 = vadd.f32 %v12984_v18, %v17279_v42  ;;  %9722 = vmatprep.mubr.bf16.mxu1 %v15066_v19  ;;  %9819 = vmatprep.mubr.bf16.mxu0 %v15069_v9  ;;  %v17451_v29 = vadd.f32 %v13045_v52, %v9111_v3  ;;  %v15076_v42 = vld [vmem:[%s15516_s13 + $0xbc] ss:$264 sps:$4 sm:$0xff]   ;;  %v15091_v25 = vld [vmem:[%s18439_s1 + $0xc88] sm:$0xff]   ;;  %v15100_v3 = vld [vmem:[%s18439_s1 + $0xcd0] sm:$0xff]  }
 0x2f8   : > { %v15093_v9 = vld [vmem:[%s18439_s1 + $0xd08] sm:$0xff]  }
 0x2f9   : > { %v12985_v32 = vpop.f32.mrb[0].mxu1  ;;  %v13049_v16 = vpop.f32.mrb[0].mxu0  ;;  %v17454_v27 = vadd.f32 %v13048_v38, %v9114_v24  ;;  %v15096_v24 = vld [vmem:[%s15516_s13 + $0x4dc] ss:$264 sps:$4 sm:$0xff]  }
 0x2fa   : > { %v12986_v5 = vpop.f32.mrb[1].mxu1  ;;  %v13050_v45 = vpop.f32.mrb[1].mxu0 }
 0x2fb   : > { %v12987_v36 = vadd.f32 %v12986_v5, %v12985_v32  ;;  %v13051_v62 = vadd.f32 %v13050_v45, %v13049_v16  ;;  %v12988_v31 = vpop.f32.mrb[2].mxu1  ;;  %v13052_v43 = vpop.f32.mrb[2].mxu0  ;;  %v15099_v32 = vld [vmem:[%s15516_s13 + $0x4e4] ss:$264 sps:$4 sm:$0xff]   ;;  %v15101_v45 = vld [vmem:[%s18439_s1 + $0xc90] sm:$0xff]  }
 0x2fc   : > { %v12989_v21 = vpop.f32.mrb[3].mxu1  ;;  %v13053_v26 = vpop.f32.mrb[3].mxu0 }
 0x2fd   : > { %v9119_v35 = vadd.f32 %v12987_v36, %v17284_v22  ;;  %v12990_v41 = vadd.f32 %v12989_v21, %v12988_v31  ;;  %v13054_v8 = vadd.f32 %v13053_v26, %v13052_v43  ;;  %v15081_v22 = vld [vmem:[%s18439_s1 + $0xc80] sm:$0xff]   ;;  %v15110_v21 = vld [vmem:[%s18439_s1 + $0xcd8] sm:$0xff]  }
 0x2fe   : > { %9723 = vmatmul.mubr.bf16.gmra.mrb[108].mxu1 %v15064_v11  ;;  %9820 = vmatmul.mubr.bf16.gmra.mrb[108].mxu0 %v15067_v7  ;;  %v15103_v7 = vld [vmem:[%s18439_s1 + $0xd10] sm:$0xff]   ;;  %v15112_v26 = vld [vmem:[%s18439_s1 + $0xd58] sm:$0xff]  }
 0x2ff   : > { %v9122_v51 = vadd.f32 %v12990_v41, %v17289_v54  ;;  %9860 = vmatprep.mubr.bf16.mxu1 %v15076_v42  ;;  %9957 = vmatprep.mubr.bf16.mxu0 %v15079_v53  ;;  %v17461_v6 = vadd.f32 %v13051_v62, %v9119_v35 }
 0x301   : > { %v12991_v50 = vpop.f32.mrb[4].mxu1  ;;  %v13055_v48 = vpop.f32.mrb[4].mxu0  ;;  %v17471_v47 = vadd.f32 %v13054_v8, %v9122_v51 }
 0x302   : > { %v12992_v37 = vpop.f32.mrb[5].mxu1  ;;  %v13056_v54 = vpop.f32.mrb[5].mxu0 }
 0x303   : > { %v12993_v59 = vadd.f32 %v12992_v37, %v12991_v50  ;;  %v13057_v44 = vadd.f32 %v13056_v54, %v13055_v48  ;;  %v12994_v15 = vpop.f32.mrb[6].mxu1  ;;  %v13058_v56 = vpop.f32.mrb[6].mxu0  ;;  %v15094_v50 = vld [vmem:[%s15516_s13 + $0x4d8] ss:$264 sps:$4 sm:$0xff]   ;;  %v15106_v37 = vld [vmem:[%s15516_s13 + $0x6ec] ss:$264 sps:$4 sm:$0xff]  }
 0x304   : > { %v12995_v14 = vpop.f32.mrb[7].mxu1  ;;  %v13059_v13 = vpop.f32.mrb[7].mxu0  ;;  %v15097_v48 = vld [vmem:[%s15516_s13 + $0x4e0] ss:$264 sps:$4 sm:$0xff]  }
 0x305   : > { %v9127_v19 = vadd.f32 %v12993_v59, %v17306_v10  ;;  %v12996_v12 = vadd.f32 %v12995_v14, %v12994_v15  ;;  %v13060_v52 = vadd.f32 %v13059_v13, %v13058_v56  ;;  %v15084_v10 = vld [vmem:[%s15516_s13 + $0x2c8] ss:$264 sps:$4 sm:$0xff]   ;;  %v15120_v54 = vld [vmem:[%s18439_s1 + $0xce0] sm:$0xff]  }
 0x306   : > { %9861 = vmatmul.mubr.bf16.vlgmr.msra.gmra.mrb[112].mxu1 %v15074_v61  ;;  %9958 = vmatmul.mubr.bf16.vlgmr.msra.gmra.mrb[112].mxu0 %v15077_v57  ;;  %v15111_v61 = vld [vmem:[%s18439_s1 + $0xc98] sm:$0xff]   ;;  %v15121_v15 = vld [vmem:[%s18439_s1 + $0xca0] sm:$0xff]  }
 0x307   : > { %v9130_v17 = vadd.f32 %v12996_v12, %v17323_v30  ;;  %13586 = vmatpush3.bf16.msra.mxu1 %v15081_v22  ;;  %13650 = vmatpush3.bf16.msra.mxu0 %v15083_v2  ;;  %v17489_v23 = vadd.f32 %v13057_v44, %v9127_v19  ;;  %v15102_v30 = vld [vmem:[%s18439_s1 + $0xd50] sm:$0xff]   ;;  %v15123_v56 = vld [vmem:[%s18439_s1 + $0xd20] sm:$0xff]   ;;  %v15130_v19 = vld [vmem:[%s18439_s1 + $0xce8] sm:$0xff]  }
 0x308   : > { %9868 = vmatprep.mubr.bf16.mxu1 %v15086_v4  ;;  %9965 = vmatprep.mubr.bf16.mxu0 %v15089_v49  ;;  %v15122_v4 = vld [vmem:[%s18439_s1 + $0xd60] sm:$0xff]  }
 0x309   : > { %v12997_v18 = vpop.f32.mrb[8].mxu1  ;;  %v13061_v38 = vpop.f32.mrb[8].mxu0  ;;  %13587 = vmatprep.subr.bf16.mxu1 %v15090_v34  ;;  %13651 = vmatprep.subr.bf16.mxu0 %v15092_v0  ;;  %v17501_v16 = vadd.f32 %v13060_v52, %v9130_v17 }
 0x30a   : > { %v12998_v11 = vpop.f32.mrb[9].mxu1  ;;  %v13062_v5 = vpop.f32.mrb[9].mxu0 }
 0x30b   : > { %v12999_v36 = vadd.f32 %v12998_v11, %v12997_v18  ;;  %v13063_v62 = vadd.f32 %v13062_v5, %v13061_v38  ;;  %v13000_v31 = vpop.f32.mrb[10].mxu1  ;;  %v13064_v43 = vpop.f32.mrb[10].mxu0  ;;  %13588 = vmatpush3.bf16.msra.mxu1 %v15091_v25  ;;  %13652 = vmatpush3.bf16.msra.mxu0 %v15093_v9  ;;  %v15104_v18 = vld [vmem:[%s15516_s13 + $0x6e8] ss:$264 sps:$4 sm:$0xff]   ;;  %v15116_v5 = vld [vmem:[%s15516_s13 + $0x8fc] ss:$264 sps:$4 sm:$0xff]  }
 0x30c   : > { %v13001_v42 = vpop.f32.mrb[11].mxu1  ;;  %v13065_v53 = vpop.f32.mrb[11].mxu0  ;;  %13589 = vmatprep.subr.bf16.mxu1 %v15100_v3  ;;  %13653 = vmatprep.subr.bf16.mxu0 %v15102_v30  ;;  %v15133_v3 = vld [vmem:[%s18439_s1 + $0xd28] sm:$0xff]   ;;  %v15107_v38 = vld [vmem:[%s15516_s13 + $0x6f0] ss:$264 sps:$4 sm:$0xff]  }
 0x30d   : > { %v9135_v35 = vadd.f32 %v12999_v36, %v17340_v46  ;;  %v13002_v41 = vadd.f32 %v13001_v42, %v13000_v31  ;;  %v13066_v8 = vadd.f32 %v13065_v53, %v13064_v43  ;;  %v15113_v46 = vld [vmem:[%s18439_s1 + $0xd18] sm:$0xff]   ;;  %v15141_v31 = vld [vmem:[%s18439_s1 + $0xcb0] sm:$0xff]  }
 0x30e   : > { %9869 = vmatmul.mubr.bf16.gmra.mrb[116].mxu1 %v15084_v10  ;;  %9966 = vmatmul.mubr.bf16.gmra.mrb[116].mxu0 %v15087_v20  ;;  %v15132_v10 = vld [vmem:[%s18439_s1 + $0xd68] sm:$0xff]   ;;  %v15143_v43 = vld [vmem:[%s18439_s1 + $0xd30] sm:$0xff]  }
 0x30f   : > { %v9138_v51 = vadd.f32 %v13002_v41, %v17351_v1  ;;  %9876 = vmatprep.mubr.bf16.mxu1 %v15096_v24  ;;  %9973 = vmatprep.mubr.bf16.mxu0 %v15099_v32  ;;  %v17520_v57 = vadd.f32 %v13063_v62, %v9135_v35  ;;  %v15109_v1 = vld [vmem:[%s15516_s13 + $0x6f4] ss:$264 sps:$4 sm:$0xff]  }
 0x310   : > { %13590 = vmatpush3.bf16.msra.mxu1 %v15101_v45  ;;  %13654 = vmatpush3.bf16.msra.mxu0 %v15103_v7  ;;  %v15142_v24 = vld [vmem:[%s18439_s1 + $0xd70] sm:$0xff]   ;;  %v15119_v45 = vld [vmem:[%s15516_s13 + $0x904] ss:$264 sps:$4 sm:$0xff]  }
 0x311   : > { %v13003_v22 = vpop.f32.mrb[12].mxu1  ;;  %v13067_v2 = vpop.f32.mrb[12].mxu0  ;;  %13591 = vmatprep.subr.bf16.mxu1 %v15110_v21  ;;  %13655 = vmatprep.subr.bf16.mxu0 %v15112_v26  ;;  %v17535_v49 = vadd.f32 %v13066_v8, %v9138_v51  ;;  %v15150_v8 = vld [vmem:[%s18439_s1 + $0xcf8] sm:$0xff]  }
 0x312   : > { %v13004_v59 = vpop.f32.mrb[13].mxu1  ;;  %v13068_v44 = vpop.f32.mrb[13].mxu0  ;;  %v15152_v51 = vld [vmem:[%s18439_s1 + $0xd78] sm:$0xff]  }
 0x313   : > { %v13005_v14 = vadd.f32 %v13004_v59, %v13003_v22  ;;  %v13069_v13 = vadd.f32 %v13068_v44, %v13067_v2  ;;  %v13006_v34 = vpop.f32.mrb[14].mxu1  ;;  %v13070_v0 = vpop.f32.mrb[14].mxu0  ;;  %v15151_v2 = vld [vmem:[%s18439_s1 + $0xcb8] sm:$0xff]   ;;  %v15160_v44 = vld [vmem:[%s18439_s1 + $0xdc0] sm:$0xff]  }
 0x314   : > { %v13007_v12 = vpop.f32.mrb[15].mxu1  ;;  %v13071_v52 = vpop.f32.mrb[15].mxu0  ;;  %13592 = vmatpush3.bf16.msra.mxu1 %v15111_v61  ;;  %13656 = vmatpush3.bf16.msra.mxu0 %v15113_v46 }
 0x315   : > { %v9143_v25 = vadd.f32 %v13005_v14, %v17374_v40  ;;  %v13008_v17 = vadd.f32 %v13007_v12, %v13006_v34  ;;  %v13072_v9 = vadd.f32 %v13071_v52, %v13070_v0  ;;  %13593 = vmatprep.subr.bf16.mxu1 %v15120_v54  ;;  %13657 = vmatprep.subr.bf16.mxu0 %v15122_v4  ;;  %v15131_v40 = vld [vmem:[%s18439_s1 + $0xca8] sm:$0xff]   ;;  %v15129_v12 = vld [vmem:[%s15516_s13 + $0xb14] ss:$264 sps:$4 sm:$0xff]  }
 0x316   : > { %9877 = vmatmul.mubr.bf16.gmra.mrb[120].mxu1 %v15094_v50  ;;  %9974 = vmatmul.mubr.bf16.gmra.mrb[120].mxu0 %v15097_v48 }
 0x317   : > { %v9146_v20 = vadd.f32 %v13008_v17, %v17385_v55  ;;  %9884 = vmatprep.mubr.bf16.mxu1 %v15106_v37  ;;  %9981 = vmatprep.mubr.bf16.mxu0 %v15109_v1  ;;  %v17557_v30 = vadd.f32 %v13069_v13, %v9143_v25  ;;  %v15140_v55 = vld [vmem:[%s18439_s1 + $0xcf0] sm:$0xff]   ;;  %v15114_v37 = vld [vmem:[%s15516_s13 + $0x8f8] ss:$264 sps:$4 sm:$0xff]  }
 0x318   : > { %13594 = vmatpush3.bf16.msra.mxu1 %v15121_v15  ;;  %13658 = vmatpush3.bf16.msra.mxu0 %v15123_v56  ;;  %v15117_v1 = vld [vmem:[%s15516_s13 + $0x900] ss:$264 sps:$4 sm:$0xff]  }
 0x319   : > { %v13089_v32 = vpop.f32.mrb[16].mxu1  ;;  %v13153_v11 = vpop.f32.mrb[16].mxu0  ;;  %13595 = vmatprep.subr.bf16.mxu1 %v15130_v19  ;;  %13659 = vmatprep.subr.bf16.mxu0 %v15132_v10  ;;  %v17569_v7 = vadd.f32 %v13072_v9, %v9146_v20  ;;  %v15162_v15 = vld [vmem:[%s18439_s1 + $0xe40] sm:$0xff]  }
 0x31a   : > { %v13090_v36 = vpop.f32.mrb[17].mxu1  ;;  %v13154_v62 = vpop.f32.mrb[17].mxu0 }
 0x31b   : > { %v13091_v42 = vadd.f32 %v13090_v36, %v13089_v32  ;;  %v13155_v53 = vadd.f32 %v13154_v62, %v13153_v11  ;;  %v13092_v21 = vpop.f32.mrb[18].mxu1  ;;  %v13156_v26 = vpop.f32.mrb[18].mxu0  ;;  %v15139_v32 = vld [vmem:[%s15516_s13 + $0xd24] ss:$264 sps:$4 sm:$0xff]  }
 0x31c   : > { %v13093_v35 = vpop.f32.mrb[19].mxu1  ;;  %v13157_v41 = vpop.f32.mrb[19].mxu0  ;;  %13596 = vmatpush3.bf16.msra.mxu1 %v15131_v40  ;;  %13660 = vmatpush3.bf16.msra.mxu0 %v15133_v3  ;;  %v15124_v3 = vld [vmem:[%s15516_s13 + $0xb08] ss:$264 sps:$4 sm:$0xff]  }
 0x31d   : > { %v9281_v61 = vadd.f32 %v13091_v42, %v17418_v58  ;;  %v13094_v50 = vadd.f32 %v13093_v35, %v13092_v21  ;;  %v13158_v48 = vadd.f32 %v13157_v41, %v13156_v26  ;;  %13597 = vmatprep.subr.bf16.mxu1 %v15140_v55  ;;  %13661 = vmatprep.subr.bf16.mxu0 %v15142_v24  ;;  %v15153_v58 = vld [vmem:[%s18439_s1 + $0xd38] sm:$0xff]  }
 0x31e   : > { %9885 = vmatmul.mubr.bf16.gmra.mrb[124].mxu1 %v15104_v18  ;;  %9982 = vmatmul.mubr.bf16.gmra.mrb[124].mxu0 %v15107_v38  ;;  %v15127_v18 = vld [vmem:[%s15516_s13 + $0xb10] ss:$264 sps:$4 sm:$0xff]   ;;  %v15136_v24 = vld [vmem:[%s15516_s13 + $0xd1c] ss:$264 sps:$4 sm:$0xff]  }
 0x31f   : > { %v17584_v46 = vadd.f32 %v13155_v53, %v9281_v61  ;;  %v9284_v22 = vadd.f32 %v13094_v50, %v17426_v28  ;;  %9892 = vmatprep.mubr.bf16.mxu1 %v15116_v5  ;;  %9989 = vmatprep.mubr.bf16.mxu0 %v15119_v45  ;;  %v15126_v28 = vld [vmem:[%s15516_s13 + $0xb0c] ss:$264 sps:$4 sm:$0xff]   ;;  %v15134_v41 = vld [vmem:[%s15516_s13 + $0xd18] ss:$264 sps:$4 sm:$0xff]  }
 0x320   : > { %13598 = vmatpush3.bf16.msra.mxu1 %v15141_v31  ;;  %13662 = vmatpush3.bf16.msra.mxu0 %v15143_v43 }
 0x321   : > { %v17595_v54 = vadd.f32 %v13158_v48, %v9284_v22  ;;  %v13095_v4 = vpop.f32.mrb[20].mxu1  ;;  %v13159_v59 = vpop.f32.mrb[20].mxu0  ;;  %13599 = vmatprep.subr.bf16.mxu1 %v15150_v8  ;;  %13663 = vmatprep.subr.bf16.mxu0 %v15152_v51  ;;  %v15137_v8 = vld [vmem:[%s15516_s13 + $0xd20] ss:$264 sps:$4 sm:$0xff]   ;;  %v15146_v48 = vld [vmem:[%s15516_s13 + $0xf2c] ss:$264 sps:$4 sm:$0xff]  }
 0x322   : > { %v13096_v56 = vpop.f32.mrb[21].mxu1  ;;  %v13160_v14 = vpop.f32.mrb[21].mxu0 }
 0x323   : > { %v13097_v13 = vadd.f32 %v13096_v56, %v13095_v4  ;;  %v13161_v34 = vadd.f32 %v13160_v14, %v13159_v59  ;;  %v13098_v0 = vpop.f32.mrb[22].mxu1  ;;  %v13162_v19 = vpop.f32.mrb[22].mxu0 }
 0x324   : > { %v13099_v52 = vpop.f32.mrb[23].mxu1  ;;  %v13163_v25 = vpop.f32.mrb[23].mxu0  ;;  %13600 = vmatpush3.bf16.msra.mxu1 %v15151_v2  ;;  %13664 = vmatpush3.bf16.msra.mxu0 %v15153_v58  ;;  %v15149_v2 = vld [vmem:[%s15516_s13 + $0xf34] ss:$264 sps:$4 sm:$0xff]  }
 0x325   : > { %v9289_v17 = vadd.f32 %v13097_v13, %v17431_v33  ;;  %v13100_v9 = vadd.f32 %v13099_v52, %v13098_v0  ;;  %v13164_v10 = vadd.f32 %v13163_v25, %v13162_v19  ;;  %13713 = vmatprep.subr.bf16.mxu1 %v15160_v44  ;;  %13777 = vmatprep.subr.bf16.mxu0 %v15162_v15  ;;  %v15144_v13 = vld [vmem:[%s15516_s13 + $0xf28] ss:$264 sps:$4 sm:$0xff]  }
 0x326   : > { %9893 = vmatmul.mubr.bf16.gmra.mrb[128].mxu1 %v15114_v37  ;;  %9990 = vmatmul.mubr.bf16.gmra.mrb[128].mxu0 %v15117_v1 }
 0x327   : > { %v17606_v20 = vadd.f32 %v13161_v34, %v9289_v17  ;;  %v9292_v40 = vadd.f32 %v13100_v9, %v17435_v39  ;;  %9900 = vmatprep.mubr.bf16.mxu1 %v15126_v28  ;;  %9997 = vmatprep.mubr.bf16.mxu0 %v15129_v12  ;;  %v15147_v12 = vld [vmem:[%s15516_s13 + $0xf30] ss:$264 sps:$4 sm:$0xff]  }
 0x329   : > { %v17611_v38 = vadd.f32 %v13164_v10, %v9292_v40  ;;  %v13101_v55 = vpop.f32.mrb[24].mxu1  ;;  %v13165_v33 = vpop.f32.mrb[24].mxu0  ;;  %v15156_v40 = vld [vmem:[%s15516_s13 + $0xcc] ss:$264 sps:$4 sm:$0xff]  }
 0x32a   : > { %v13102_v11 = vpop.f32.mrb[25].mxu1  ;;  %v13166_v5 = vpop.f32.mrb[25].mxu0 }
 0x32b   : > { %v13103_v45 = vadd.f32 %v13102_v11, %v13101_v55  ;;  %v13167_v36 = vadd.f32 %v13166_v5, %v13165_v33  ;;  %v13104_v62 = vpop.f32.mrb[26].mxu1  ;;  %v13168_v31 = vpop.f32.mrb[26].mxu0  ;;  %v15154_v5 = vld [vmem:[%s15516_s13 + $0xc8] ss:$264 sps:$4 sm:$0xff]  }
 0x32c   : > { %v13105_v43 = vpop.f32.mrb[27].mxu1  ;;  %v13169_v39 = vpop.f32.mrb[27].mxu0 }
 0x32d   : > { %v9297_v42 = vadd.f32 %v13103_v45, %v17441_v60  ;;  %v13106_v53 = vadd.f32 %v13105_v43, %v13104_v62  ;;  %v13170_v21 = vadd.f32 %v13169_v39, %v13168_v31  ;;  %v15157_v31 = vld [vmem:[%s15516_s13 + $0xd0] ss:$264 sps:$4 sm:$0xff]   ;;  %v15161_v39 = vld [vmem:[%s18439_s1 + $0xd80] sm:$0xff]  }
 0x32e   : > { %9901 = vmatmul.mubr.bf16.gmra.mrb[132].mxu1 %v15124_v3  ;;  %9998 = vmatmul.mubr.bf16.gmra.mrb[132].mxu0 %v15127_v18  ;;  %v15159_v3 = vld [vmem:[%s15516_s13 + $0xd4] ss:$264 sps:$4 sm:$0xff]  }
 0x32f   : > { %v17616_v26 = vadd.f32 %v13167_v36, %v9297_v42  ;;  %v9300_v35 = vadd.f32 %v13106_v53, %v17444_v63  ;;  %9908 = vmatprep.mubr.bf16.mxu1 %v15136_v24  ;;  %10005 = vmatprep.mubr.bf16.mxu0 %v15139_v32  ;;  %v15163_v42 = vld [vmem:[%s18439_s1 + $0xe00] sm:$0xff]  }
 0x331   : > { %v17621_v51 = vadd.f32 %v13170_v21, %v9300_v35  ;;  %v13107_v61 = vpop.f32.mrb[28].mxu1  ;;  %v13171_v50 = vpop.f32.mrb[28].mxu0 }
 0x332   : > { %v13108_v22 = vpop.f32.mrb[29].mxu1  ;;  %v13172_v60 = vpop.f32.mrb[29].mxu0 }
 0x333   : > { %v13109_v37 = vadd.f32 %v13108_v22, %v13107_v61  ;;  %v13173_v1 = vadd.f32 %v13172_v60, %v13171_v50  ;;  %v13110_v58 = vpop.f32.mrb[30].mxu1  ;;  %v13174_v4 = vpop.f32.mrb[30].mxu0 }
 0x334   : > { %v13111_v59 = vpop.f32.mrb[31].mxu1  ;;  %v13175_v63 = vpop.f32.mrb[31].mxu0 }
 0x335   : > { %v9305_v28 = vadd.f32 %v13109_v37, %v17451_v29  ;;  %v13112_v44 = vadd.f32 %v13111_v59, %v13110_v58  ;;  %v13176_v15 = vadd.f32 %v13175_v63, %v13174_v4  ;;  %v15171_v37 = vld [vmem:[%s18439_s1 + $0xd88] sm:$0xff]   ;;  %v15180_v59 = vld [vmem:[%s18439_s1 + $0xdd0] sm:$0xff]   ;;  %v15164_v63 = vld [vmem:[%s15516_s13 + $0x2d8] ss:$264 sps:$4 sm:$0xff]  }
 0x336   : > { %9909 = vmatmul.mubr.bf16.gmra.mrb[136].mxu1 %v15134_v41  ;;  %10006 = vmatmul.mubr.bf16.gmra.mrb[136].mxu0 %v15137_v8  ;;  %v15169_v8 = vld [vmem:[%s15516_s13 + $0x2e4] ss:$264 sps:$4 sm:$0xff]  }
 0x337   : > { %v17626_v56 = vadd.f32 %v13173_v1, %v9305_v28  ;;  %v9308_v14 = vadd.f32 %v13112_v44, %v17454_v27  ;;  %9916 = vmatprep.mubr.bf16.mxu1 %v15146_v48  ;;  %10013 = vmatprep.mubr.bf16.mxu0 %v15149_v2  ;;  %v15170_v48 = vld [vmem:[%s18439_s1 + $0xdc8] sm:$0xff]   ;;  %v15182_v44 = vld [vmem:[%s18439_s1 + $0xe50] sm:$0xff]  }
 0x338   : > { %v15172_v1 = vld [vmem:[%s18439_s1 + $0xe48] sm:$0xff]  }
 0x339   : > { %v17630_v34 = vadd.f32 %v13176_v15, %v9308_v14  ;;  %v13113_v0 = vpop.f32.mrb[32].mxu1  ;;  %v13177_v19 = vpop.f32.mrb[32].mxu0  ;;  %v15173_v58 = vld [vmem:[%s18439_s1 + $0xe08] sm:$0xff]  }
 0x33a   : > { %v13114_v52 = vpop.f32.mrb[33].mxu1  ;;  %v13178_v29 = vpop.f32.mrb[33].mxu0  ;;  %v15167_v28 = vld [vmem:[%s15516_s13 + $0x2e0] ss:$264 sps:$4 sm:$0xff]  }
 0x33b   : > { %v13115_v25 = vadd.f32 %v13114_v52, %v13113_v0  ;;  %v13179_v17 = vadd.f32 %v13178_v29, %v13177_v19  ;;  %v13116_v9 = vpop.f32.mrb[34].mxu1  ;;  %v13180_v10 = vpop.f32.mrb[34].mxu0 }
 0x33c   : > { %v13117_v18 = vpop.f32.mrb[35].mxu1  ;;  %v13181_v27 = vpop.f32.mrb[35].mxu0 }
 0x33d   : > { %v9313_v55 = vadd.f32 %v13115_v25, %v17461_v6  ;;  %v13118_v33 = vadd.f32 %v13117_v18, %v13116_v9  ;;  %v13182_v24 = vadd.f32 %v13181_v27, %v13180_v10  ;;  %v15181_v9 = vld [vmem:[%s18439_s1 + $0xd90] sm:$0xff]  }
 0x33e   : > { %9917 = vmatmul.mubr.bf16.gmra.mrb[140].mxu1 %v15144_v13  ;;  %10014 = vmatmul.mubr.bf16.gmra.mrb[140].mxu0 %v15147_v12  ;;  %v15179_v12 = vld [vmem:[%s15516_s13 + $0x4f4] ss:$264 sps:$4 sm:$0xff]  }
 0x33f   : > { %v17636_v32 = vadd.f32 %v13179_v17, %v9313_v55  ;;  %v9316_v11 = vadd.f32 %v13118_v33, %v17471_v47  ;;  %10054 = vmatprep.mubr.bf16.mxu1 %v15156_v40  ;;  %10151 = vmatprep.mubr.bf16.mxu0 %v15159_v3  ;;  %v15166_v47 = vld [vmem:[%s15516_s13 + $0x2dc] ss:$264 sps:$4 sm:$0xff]   ;;  %v15183_v10 = vld [vmem:[%s18439_s1 + $0xe10] sm:$0xff]  }
 0x340   : > { %v15190_v40 = vld [vmem:[%s18439_s1 + $0xdd8] sm:$0xff]  }
 0x341   : > { %v17640_v45 = vadd.f32 %v13182_v24, %v9316_v11  ;;  %v13119_v36 = vpop.f32.mrb[36].mxu1  ;;  %v13183_v62 = vpop.f32.mrb[36].mxu0  ;;  %v15192_v24 = vld [vmem:[%s18439_s1 + $0xe58] sm:$0xff]  }
 0x342   : > { %v13120_v43 = vpop.f32.mrb[37].mxu1  ;;  %v13184_v6 = vpop.f32.mrb[37].mxu0  ;;  %v15191_v11 = vld [vmem:[%s18439_s1 + $0xd98] sm:$0xff]  }
 0x343   : > { %v13121_v53 = vadd.f32 %v13120_v43, %v13119_v36  ;;  %v13185_v21 = vadd.f32 %v13184_v6, %v13183_v62  ;;  %v13122_v35 = vpop.f32.mrb[38].mxu1  ;;  %v13186_v41 = vpop.f32.mrb[38].mxu0  ;;  %v15174_v62 = vld [vmem:[%s15516_s13 + $0x4e8] ss:$264 sps:$4 sm:$0xff]   ;;  %v15200_v43 = vld [vmem:[%s18439_s1 + $0xde0] sm:$0xff]  }
 0x344   : > { %v13123_v61 = vpop.f32.mrb[39].mxu1  ;;  %v13187_v50 = vpop.f32.mrb[39].mxu0 }
 0x345   : > { %v9321_v22 = vadd.f32 %v13121_v53, %v17489_v23  ;;  %v13124_v60 = vadd.f32 %v13123_v61, %v13122_v35  ;;  %v13188_v2 = vadd.f32 %v13187_v50, %v13186_v41  ;;  %v15189_v35 = vld [vmem:[%s15516_s13 + $0x704] ss:$264 sps:$4 sm:$0xff]  }
 0x346   : > { %10055 = vmatmul.mubr.bf16.vlgmr.msra.gmra.mrb[144].mxu1 %v15154_v5  ;;  %10152 = vmatmul.mubr.bf16.vlgmr.msra.gmra.mrb[144].mxu0 %v15157_v31  ;;  %v15177_v31 = vld [vmem:[%s15516_s13 + $0x4f0] ss:$264 sps:$4 sm:$0xff]   ;;  %v15201_v41 = vld [vmem:[%s18439_s1 + $0xda0] sm:$0xff]  }
 0x347   : > { %v17664_v4 = vadd.f32 %v13185_v21, %v9321_v22  ;;  %v9324_v23 = vadd.f32 %v13124_v60, %v17501_v16  ;;  %13714 = vmatpush3.bf16.msra.mxu1 %v15161_v39  ;;  %13778 = vmatpush3.bf16.msra.mxu0 %v15163_v42  ;;  %v15176_v16 = vld [vmem:[%s15516_s13 + $0x4ec] ss:$264 sps:$4 sm:$0xff]  }
 0x348   : > { %10062 = vmatprep.mubr.bf16.mxu1 %v15166_v47  ;;  %10159 = vmatprep.mubr.bf16.mxu0 %v15169_v8  ;;  %v15202_v47 = vld [vmem:[%s18439_s1 + $0xe60] sm:$0xff]  }
 0x349   : > { %v17675_v15 = vadd.f32 %v13188_v2, %v9324_v23  ;;  %v13125_v14 = vpop.f32.mrb[40].mxu1  ;;  %v13189_v13 = vpop.f32.mrb[40].mxu0  ;;  %13715 = vmatprep.subr.bf16.mxu1 %v15170_v48  ;;  %13779 = vmatprep.subr.bf16.mxu0 %v15172_v1  ;;  %v15203_v8 = vld [vmem:[%s18439_s1 + $0xe20] sm:$0xff]   ;;  %v15212_v1 = vld [vmem:[%s18439_s1 + $0xe68] sm:$0xff]  }
 0x34a   : > { %v13126_v0 = vpop.f32.mrb[41].mxu1  ;;  %v13190_v19 = vpop.f32.mrb[41].mxu0 }
 0x34b   : > { %v13127_v52 = vadd.f32 %v13126_v0, %v13125_v14  ;;  %v13191_v29 = vadd.f32 %v13190_v19, %v13189_v13  ;;  %v13128_v25 = vpop.f32.mrb[42].mxu1  ;;  %v13192_v17 = vpop.f32.mrb[42].mxu0  ;;  %13716 = vmatpush3.bf16.msra.mxu1 %v15171_v37  ;;  %13780 = vmatpush3.bf16.msra.mxu0 %v15173_v58  ;;  %v15210_v37 = vld [vmem:[%s18439_s1 + $0xde8] sm:$0xff]  }
 0x34c   : > { %v13129_v3 = vpop.f32.mrb[43].mxu1  ;;  %v13193_v18 = vpop.f32.mrb[43].mxu0  ;;  %13717 = vmatprep.subr.bf16.mxu1 %v15180_v59  ;;  %13781 = vmatprep.subr.bf16.mxu0 %v15182_v44  ;;  %v15184_v44 = vld [vmem:[%s15516_s13 + $0x6f8] ss:$264 sps:$4 sm:$0xff]   ;;  %v15213_v13 = vld [vmem:[%s18439_s1 + $0xe28] sm:$0xff]  }
 0x34d   : > { %v9329_v27 = vadd.f32 %v13127_v52, %v17520_v57  ;;  %v13130_v55 = vadd.f32 %v13129_v3, %v13128_v25  ;;  %v13194_v33 = vadd.f32 %v13193_v18, %v13192_v17  ;;  %v15193_v57 = vld [vmem:[%s18439_s1 + $0xe18] sm:$0xff]   ;;  %v15187_v14 = vld [vmem:[%s15516_s13 + $0x700] ss:$264 sps:$4 sm:$0xff]   ;;  %v15220_v52 = vld [vmem:[%s18439_s1 + $0xdf0] sm:$0xff]  }
 0x34e   : > { %10063 = vmatmul.mubr.bf16.gmra.mrb[148].mxu1 %v15164_v63  ;;  %10160 = vmatmul.mubr.bf16.gmra.mrb[148].mxu0 %v15167_v28 }
 0x34f   : > { %v17695_v5 = vadd.f32 %v13191_v29, %v9329_v27  ;;  %v9332_v36 = vadd.f32 %v13130_v55, %v17535_v49  ;;  %10070 = vmatprep.mubr.bf16.mxu1 %v15176_v16  ;;  %10167 = vmatprep.mubr.bf16.mxu0 %v15179_v12  ;;  %v15186_v49 = vld [vmem:[%s15516_s13 + $0x6fc] ss:$264 sps:$4 sm:$0xff]   ;;  %v15196_v12 = vld [vmem:[%s15516_s13 + $0x90c] ss:$264 sps:$4 sm:$0xff]  }
 0x350   : > { %13718 = vmatpush3.bf16.msra.mxu1 %v15181_v9  ;;  %13782 = vmatpush3.bf16.msra.mxu0 %v15183_v10  ;;  %v15222_v29 = vld [vmem:[%s18439_s1 + $0xe70] sm:$0xff]  }
 0x351   : > { %v17706_v6 = vadd.f32 %v13194_v33, %v9332_v36  ;;  %v13131_v39 = vpop.f32.mrb[44].mxu1  ;;  %v13195_v42 = vpop.f32.mrb[44].mxu0  ;;  %13719 = vmatprep.subr.bf16.mxu1 %v15190_v40  ;;  %13783 = vmatprep.subr.bf16.mxu0 %v15192_v24  ;;  %v15221_v9 = vld [vmem:[%s18439_s1 + $0xdb0] sm:$0xff]   ;;  %v15230_v24 = vld [vmem:[%s18439_s1 + $0xdf8] sm:$0xff]  }
 0x352   : > { %v13132_v53 = vpop.f32.mrb[45].mxu1  ;;  %v13196_v21 = vpop.f32.mrb[45].mxu0  ;;  %v15223_v10 = vld [vmem:[%s18439_s1 + $0xe30] sm:$0xff]  }
 0x353   : > { %v13133_v61 = vadd.f32 %v13132_v53, %v13131_v39  ;;  %v13197_v50 = vadd.f32 %v13196_v21, %v13195_v42  ;;  %v13134_v48 = vpop.f32.mrb[46].mxu1  ;;  %v13198_v22 = vpop.f32.mrb[46].mxu0  ;;  %v15231_v39 = vld [vmem:[%s18439_s1 + $0xdb8] sm:$0xff]   ;;  %v15194_v42 = vld [vmem:[%s15516_s13 + $0x908] ss:$264 sps:$4 sm:$0xff]  }
 0x354   : > { %v13135_v60 = vpop.f32.mrb[47].mxu1  ;;  %v13199_v2 = vpop.f32.mrb[47].mxu0  ;;  %13720 = vmatpush3.bf16.msra.mxu1 %v15191_v11  ;;  %13784 = vmatpush3.bf16.msra.mxu0 %v15193_v57  ;;  %v15232_v11 = vld [vmem:[%s18439_s1 + $0xe78] sm:$0xff]  }
 0x355   : > { %v9337_v58 = vadd.f32 %v13133_v61, %v17557_v30  ;;  %v13136_v23 = vadd.f32 %v13135_v60, %v13134_v48  ;;  %v13200_v59 = vadd.f32 %v13199_v2, %v13198_v22  ;;  %13721 = vmatprep.subr.bf16.mxu1 %v15200_v43  ;;  %13785 = vmatprep.subr.bf16.mxu0 %v15202_v47  ;;  %v15211_v30 = vld [vmem:[%s18439_s1 + $0xda8] sm:$0xff]  }
 0x356   : > { %10071 = vmatmul.mubr.bf16.gmra.mrb[152].mxu1 %v15174_v62  ;;  %10168 = vmatmul.mubr.bf16.gmra.mrb[152].mxu0 %v15177_v31 }
 0x357   : > { %v17726_v63 = vadd.f32 %v13197_v50, %v9337_v58  ;;  %v9340_v28 = vadd.f32 %v13136_v23, %v17569_v7  ;;  %10078 = vmatprep.mubr.bf16.mxu1 %v15186_v49  ;;  %10175 = vmatprep.mubr.bf16.mxu0 %v15189_v35  ;;  %v15199_v7 = vld [vmem:[%s15516_s13 + $0x914] ss:$264 sps:$4 sm:$0xff]   ;;  %v15240_v35 = vld [vmem:[%s18439_s1 + $0xec0] sm:$0xff]  }
 0x358   : > { %13722 = vmatpush3.bf16.msra.mxu1 %v15201_v41  ;;  %13786 = vmatpush3.bf16.msra.mxu0 %v15203_v8  ;;  %v15233_v49 = vld [vmem:[%s18439_s1 + $0xe38] sm:$0xff]   ;;  %v15242_v41 = vld [vmem:[%s18439_s1 + $0xf40] sm:$0xff]  }
 0x359   : > { %v17737_v16 = vadd.f32 %v13200_v59, %v9340_v28  ;;  %v13217_v0 = vpop.f32.mrb[48].mxu1  ;;  %v13281_v19 = vpop.f32.mrb[48].mxu0  ;;  %13723 = vmatprep.subr.bf16.mxu1 %v15210_v37  ;;  %13787 = vmatprep.subr.bf16.mxu0 %v15212_v1  ;;  %v15209_v50 = vld [vmem:[%s15516_s13 + $0xb24] ss:$264 sps:$4 sm:$0xff]  }
 0x35a   : > { %v13218_v25 = vpop.f32.mrb[49].mxu1  ;;  %v13282_v17 = vpop.f32.mrb[49].mxu0 }
 0x35b   : > { %v13219_v40 = vadd.f32 %v13218_v25, %v13217_v0  ;;  %v13283_v3 = vadd.f32 %v13282_v17, %v13281_v19  ;;  %v13220_v18 = vpop.f32.mrb[50].mxu1  ;;  %v13284_v27 = vpop.f32.mrb[50].mxu0  ;;  %v15216_v19 = vld [vmem:[%s15516_s13 + $0xd2c] ss:$264 sps:$4 sm:$0xff]  }
 0x35c   : > { %v13221_v55 = vpop.f32.mrb[51].mxu1  ;;  %v13285_v33 = vpop.f32.mrb[51].mxu0  ;;  %13724 = vmatpush3.bf16.msra.mxu1 %v15211_v30  ;;  %13788 = vmatpush3.bf16.msra.mxu0 %v15213_v13  ;;  %v15207_v30 = vld [vmem:[%s15516_s13 + $0xb20] ss:$264 sps:$4 sm:$0xff]  }
 0x35d   : > { %v9475_v36 = vadd.f32 %v13219_v40, %v17584_v46  ;;  %v13222_v57 = vadd.f32 %v13221_v55, %v13220_v18  ;;  %v13286_v62 = vadd.f32 %v13285_v33, %v13284_v27  ;;  %13725 = vmatprep.subr.bf16.mxu1 %v15220_v52  ;;  %13789 = vmatprep.subr.bf16.mxu0 %v15222_v29  ;;  %v15197_v46 = vld [vmem:[%s15516_s13 + $0x910] ss:$264 sps:$4 sm:$0xff]   ;;  %v15219_v52 = vld [vmem:[%s15516_s13 + $0xd34] ss:$264 sps:$4 sm:$0xff]  }
 0x35e   : > { %10079 = vmatmul.mubr.bf16.gmra.mrb[156].mxu1 %v15184_v44  ;;  %10176 = vmatmul.mubr.bf16.gmra.mrb[156].mxu0 %v15187_v14  ;;  %v15204_v14 = vld [vmem:[%s15516_s13 + $0xb18] ss:$264 sps:$4 sm:$0xff]   ;;  %v15214_v33 = vld [vmem:[%s15516_s13 + $0xd28] ss:$264 sps:$4 sm:$0xff]  }
 0x35f   : > { %v17760_v31 = vadd.f32 %v13283_v3, %v9475_v36  ;;  %v9478_v43 = vadd.f32 %v13222_v57, %v17595_v54  ;;  %10086 = vmatprep.mubr.bf16.mxu1 %v15196_v12  ;;  %10183 = vmatprep.mubr.bf16.mxu0 %v15199_v7  ;;  %v15206_v54 = vld [vmem:[%s15516_s13 + $0xb1c] ss:$264 sps:$4 sm:$0xff]  }
 0x360   : > { %13726 = vmatpush3.bf16.msra.mxu1 %v15221_v9  ;;  %13790 = vmatpush3.bf16.msra.mxu0 %v15223_v10 }
 0x361   : > { %v17771_v47 = vadd.f32 %v13286_v62, %v9478_v43  ;;  %v13223_v53 = vpop.f32.mrb[52].mxu1  ;;  %v13287_v21 = vpop.f32.mrb[52].mxu0  ;;  %13727 = vmatprep.subr.bf16.mxu1 %v15230_v24  ;;  %13791 = vmatprep.subr.bf16.mxu0 %v15232_v11  ;;  %v15217_v24 = vld [vmem:[%s15516_s13 + $0xd30] ss:$264 sps:$4 sm:$0xff]   ;;  %v15226_v62 = vld [vmem:[%s15516_s13 + $0xf3c] ss:$264 sps:$4 sm:$0xff]  }
 0x362   : > { %v13224_v8 = vpop.f32.mrb[53].mxu1  ;;  %v13288_v61 = vpop.f32.mrb[53].mxu0 }
 0x363   : > { %v13225_v48 = vadd.f32 %v13224_v8, %v13223_v53  ;;  %v13289_v22 = vadd.f32 %v13288_v61, %v13287_v21  ;;  %v13226_v60 = vpop.f32.mrb[54].mxu1  ;;  %v13290_v2 = vpop.f32.mrb[54].mxu0  ;;  %v15229_v53 = vld [vmem:[%s15516_s13 + $0xf44] ss:$264 sps:$4 sm:$0xff]  }
 0x364   : > { %v13227_v37 = vpop.f32.mrb[55].mxu1  ;;  %v13291_v1 = vpop.f32.mrb[55].mxu0  ;;  %13728 = vmatpush3.bf16.msra.mxu1 %v15231_v39  ;;  %13792 = vmatpush3.bf16.msra.mxu0 %v15233_v49 }
 0x365   : > { %v9483_v58 = vadd.f32 %v13225_v48, %v17606_v20  ;;  %v13228_v23 = vadd.f32 %v13227_v37, %v13226_v60  ;;  %v13292_v59 = vadd.f32 %v13291_v1, %v13290_v2  ;;  %13841 = vmatprep.subr.bf16.mxu1 %v15240_v35  ;;  %13905 = vmatprep.subr.bf16.mxu0 %v15242_v41  ;;  %v15227_v48 = vld [vmem:[%s15516_s13 + $0xf40] ss:$264 sps:$4 sm:$0xff]   ;;  %v15236_v37 = vld [vmem:[%s15516_s13 + $0xdc] ss:$264 sps:$4 sm:$0xff]  }
 0x366   : > { %10087 = vmatmul.mubr.bf16.gmra.mrb[160].mxu1 %v15194_v42  ;;  %10184 = vmatmul.mubr.bf16.gmra.mrb[160].mxu0 %v15197_v46  ;;  %v15239_v1 = vld [vmem:[%s15516_s13 + $0xe4] ss:$264 sps:$4 sm:$0xff]  }
 0x367   : > { %v17782_v28 = vadd.f32 %v13289_v22, %v9483_v58  ;;  %v9486_v44 = vadd.f32 %v13228_v23, %v17611_v38  ;;  %10094 = vmatprep.mubr.bf16.mxu1 %v15206_v54  ;;  %10191 = vmatprep.mubr.bf16.mxu0 %v15209_v50  ;;  %v15224_v50 = vld [vmem:[%s15516_s13 + $0xf38] ss:$264 sps:$4 sm:$0xff]  }
 0x369   : > { %v17787_v13 = vadd.f32 %v13292_v59, %v9486_v44  ;;  %v13229_v0 = vpop.f32.mrb[56].mxu1  ;;  %v13293_v20 = vpop.f32.mrb[56].mxu0 }
 0x36a   : > { %v13230_v12 = vpop.f32.mrb[57].mxu1  ;;  %v13294_v7 = vpop.f32.mrb[57].mxu0 }
 0x36b   : > { %v13231_v29 = vadd.f32 %v13230_v12, %v13229_v0  ;;  %v13295_v25 = vadd.f32 %v13294_v7, %v13293_v20  ;;  %v13232_v17 = vpop.f32.mrb[58].mxu1  ;;  %v13296_v9 = vpop.f32.mrb[58].mxu0 }
 0x36c   : > { %v13233_v10 = vpop.f32.mrb[59].mxu1  ;;  %v13297_v38 = vpop.f32.mrb[59].mxu0 }
 0x36d   : > { %v9491_v40 = vadd.f32 %v13231_v29, %v17616_v26  ;;  %v13234_v3 = vadd.f32 %v13233_v10, %v13232_v17  ;;  %v13298_v18 = vadd.f32 %v13297_v38, %v13296_v9  ;;  %v15237_v29 = vld [vmem:[%s15516_s13 + $0xe0] ss:$264 sps:$4 sm:$0xff]  }
 0x36e   : > { %10095 = vmatmul.mubr.bf16.gmra.mrb[164].mxu1 %v15204_v14  ;;  %10192 = vmatmul.mubr.bf16.gmra.mrb[164].mxu0 %v15207_v30  ;;  %v15243_v10 = vld [vmem:[%s18439_s1 + $0xf00] sm:$0xff]  }
 0x36f   : > { %v17792_v27 = vadd.f32 %v13295_v25, %v9491_v40  ;;  %v9494_v55 = vadd.f32 %v13234_v3, %v17621_v51  ;;  %10102 = vmatprep.mubr.bf16.mxu1 %v15216_v19  ;;  %10199 = vmatprep.mubr.bf16.mxu0 %v15219_v52  ;;  %v15234_v52 = vld [vmem:[%s15516_s13 + $0xd8] ss:$264 sps:$4 sm:$0xff]  }
 0x371   : > { %v17797_v11 = vadd.f32 %v13298_v18, %v9494_v55  ;;  %v13235_v36 = vpop.f32.mrb[60].mxu1  ;;  %v13299_v57 = vpop.f32.mrb[60].mxu0 }
 0x372   : > { %v13236_v43 = vpop.f32.mrb[61].mxu1  ;;  %v13300_v26 = vpop.f32.mrb[61].mxu0 }
 0x373   : > { %v13237_v39 = vadd.f32 %v13236_v43, %v13235_v36  ;;  %v13301_v42 = vadd.f32 %v13300_v26, %v13299_v57  ;;  %v13238_v46 = vpop.f32.mrb[62].mxu1  ;;  %v13302_v49 = vpop.f32.mrb[62].mxu0  ;;  %v15249_v57 = vld [vmem:[%s15516_s13 + $0x2f4] ss:$264 sps:$4 sm:$0xff]  }
 0x374   : > { %v13239_v21 = vpop.f32.mrb[63].mxu1  ;;  %v13303_v51 = vpop.f32.mrb[63].mxu0 }
 0x375   : > { %v9499_v54 = vadd.f32 %v13237_v39, %v17626_v56  ;;  %v13240_v35 = vadd.f32 %v13239_v21, %v13238_v46  ;;  %v13304_v41 = vadd.f32 %v13303_v51, %v13302_v49  ;;  %v15252_v46 = vld [vmem:[%s18439_s1 + $0xf48] sm:$0xff]   ;;  %v15260_v21 = vld [vmem:[%s18439_s1 + $0xed0] sm:$0xff]  }
 0x376   : > { %10103 = vmatmul.mubr.bf16.gmra.mrb[168].mxu1 %v15214_v33  ;;  %10200 = vmatmul.mubr.bf16.gmra.mrb[168].mxu0 %v15217_v24  ;;  %v15253_v49 = vld [vmem:[%s18439_s1 + $0xf08] sm:$0xff]  }
 0x377   : > { %v17802_v8 = vadd.f32 %v13301_v42, %v9499_v54  ;;  %v9502_v61 = vadd.f32 %v13240_v35, %v17630_v34  ;;  %10110 = vmatprep.mubr.bf16.mxu1 %v15226_v62  ;;  %10207 = vmatprep.mubr.bf16.mxu0 %v15229_v53  ;;  %v15250_v62 = vld [vmem:[%s18439_s1 + $0xec8] sm:$0xff]   ;;  %v15247_v54 = vld [vmem:[%s15516_s13 + $0x2f0] ss:$264 sps:$4 sm:$0xff]  }
 0x378   : > { %v15251_v42 = vld [vmem:[%s18439_s1 + $0xe88] sm:$0xff]   ;;  %v15262_v35 = vld [vmem:[%s18439_s1 + $0xf50] sm:$0xff]  }
 0x379   : > { %v17807_v22 = vadd.f32 %v13304_v41, %v9502_v61  ;;  %v13241_v60 = vpop.f32.mrb[64].mxu1  ;;  %v13305_v2 = vpop.f32.mrb[64].mxu0  ;;  %v15244_v51 = vld [vmem:[%s15516_s13 + $0x2e8] ss:$264 sps:$4 sm:$0xff]  }
 0x37a   : > { %v13242_v58 = vpop.f32.mrb[65].mxu1  ;;  %v13306_v56 = vpop.f32.mrb[65].mxu0 }
 0x37b   : > { %v13243_v23 = vadd.f32 %v13242_v58, %v13241_v60  ;;  %v13307_v59 = vadd.f32 %v13306_v56, %v13305_v2  ;;  %v13244_v44 = vpop.f32.mrb[66].mxu1  ;;  %v13308_v14 = vpop.f32.mrb[66].mxu0  ;;  %v15259_v56 = vld [vmem:[%s15516_s13 + $0x504] ss:$264 sps:$4 sm:$0xff]  }
 0x37c   : > { %v13245_v30 = vpop.f32.mrb[67].mxu1  ;;  %v13309_v34 = vpop.f32.mrb[67].mxu0 }
 0x37d   : > { %v9507_v0 = vadd.f32 %v13243_v23, %v17636_v32  ;;  %v13246_v20 = vadd.f32 %v13245_v30, %v13244_v44  ;;  %v13310_v19 = vadd.f32 %v13309_v34, %v13308_v14  ;;  %v15241_v32 = vld [vmem:[%s18439_s1 + $0xe80] sm:$0xff]   ;;  %v15261_v23 = vld [vmem:[%s18439_s1 + $0xe90] sm:$0xff]   ;;  %v15270_v30 = vld [vmem:[%s18439_s1 + $0xed8] sm:$0xff]  }
 0x37e   : > { %10111 = vmatmul.mubr.bf16.gmra.mrb[172].mxu1 %v15224_v50  ;;  %10208 = vmatmul.mubr.bf16.gmra.mrb[172].mxu0 %v15227_v48 }
 0x37f   : > { %v17812_v12 = vadd.f32 %v13307_v59, %v9507_v0  ;;  %v9510_v7 = vadd.f32 %v13246_v20, %v17640_v45  ;;  %10248 = vmatprep.mubr.bf16.mxu1 %v15236_v37  ;;  %10345 = vmatprep.mubr.bf16.mxu0 %v15239_v1  ;;  %v15246_v45 = vld [vmem:[%s15516_s13 + $0x2ec] ss:$264 sps:$4 sm:$0xff]  }
 0x380   : > { %v15263_v59 = vld [vmem:[%s18439_s1 + $0xf10] sm:$0xff]  }
 0x381   : > { %v17817_v25 = vadd.f32 %v13310_v19, %v9510_v7  ;;  %v13247_v17 = vpop.f32.mrb[68].mxu1  ;;  %v13311_v9 = vpop.f32.mrb[68].mxu0  ;;  %v15272_v19 = vld [vmem:[%s18439_s1 + $0xf58] sm:$0xff]  }
 0x382   : > { %v13248_v38 = vpop.f32.mrb[69].mxu1  ;;  %v13312_v40 = vpop.f32.mrb[69].mxu0  ;;  %v15271_v7 = vld [vmem:[%s18439_s1 + $0xe98] sm:$0xff]  }
 0x383   : > { %v13249_v3 = vadd.f32 %v13248_v38, %v13247_v17  ;;  %v13313_v18 = vadd.f32 %v13312_v40, %v13311_v9  ;;  %v13250_v55 = vpop.f32.mrb[70].mxu1  ;;  %v13314_v33 = vpop.f32.mrb[70].mxu0  ;;  %v15254_v17 = vld [vmem:[%s15516_s13 + $0x4f8] ss:$264 sps:$4 sm:$0xff]  }
 0x384   : > { %v13251_v24 = vpop.f32.mrb[71].mxu1  ;;  %v13315_v36 = vpop.f32.mrb[71].mxu0  ;;  %v15257_v9 = vld [vmem:[%s15516_s13 + $0x500] ss:$264 sps:$4 sm:$0xff]  }
 0x385   : > { %v9515_v43 = vadd.f32 %v13249_v3, %v17664_v4  ;;  %v13252_v26 = vadd.f32 %v13251_v24, %v13250_v55  ;;  %v13316_v39 = vadd.f32 %v13315_v36, %v13314_v33  ;;  %v15282_v40 = vld [vmem:[%s18439_s1 + $0xf60] sm:$0xff]   ;;  %v15269_v55 = vld [vmem:[%s15516_s13 + $0x714] ss:$264 sps:$4 sm:$0xff]  }
 0x386   : > { %10249 = vmatmul.mubr.bf16.vlgmr.msra.gmra.mrb[176].mxu1 %v15234_v52  ;;  %10346 = vmatmul.mubr.bf16.vlgmr.msra.gmra.mrb[176].mxu0 %v15237_v29 }
 0x387   : > { %v17840_v53 = vadd.f32 %v13313_v18, %v9515_v43  ;;  %v9518_v4 = vadd.f32 %v13252_v26, %v17675_v15  ;;  %13842 = vmatpush3.bf16.msra.mxu1 %v15241_v32  ;;  %13906 = vmatpush3.bf16.msra.mxu0 %v15243_v10  ;;  %v15256_v15 = vld [vmem:[%s15516_s13 + $0x4fc] ss:$264 sps:$4 sm:$0xff]   ;;  %v15266_v18 = vld [vmem:[%s15516_s13 + $0x70c] ss:$264 sps:$4 sm:$0xff]  }
 0x388   : > { %10256 = vmatprep.mubr.bf16.mxu1 %v15246_v45  ;;  %10353 = vmatprep.mubr.bf16.mxu0 %v15249_v57  ;;  %v15280_v32 = vld [vmem:[%s18439_s1 + $0xee0] sm:$0xff]  }
 0x389   : > { %v17851_v41 = vadd.f32 %v13316_v39, %v9518_v4  ;;  %v13253_v61 = vpop.f32.mrb[72].mxu1  ;;  %v13317_v50 = vpop.f32.mrb[72].mxu0  ;;  %13843 = vmatprep.subr.bf16.mxu1 %v15250_v62  ;;  %13907 = vmatprep.subr.bf16.mxu0 %v15252_v46  ;;  %v15281_v62 = vld [vmem:[%s18439_s1 + $0xea0] sm:$0xff]  }
 0x38a   : > { %v13254_v48 = vpop.f32.mrb[73].mxu1  ;;  %v13318_v60 = vpop.f32.mrb[73].mxu0  ;;  %v15283_v39 = vld [vmem:[%s18439_s1 + $0xf20] sm:$0xff]  }
 0x38b   : > { %v13255_v2 = vadd.f32 %v13254_v48, %v13253_v61  ;;  %v13319_v37 = vadd.f32 %v13318_v60, %v13317_v50  ;;  %v13256_v1 = vpop.f32.mrb[74].mxu1  ;;  %v13320_v58 = vpop.f32.mrb[74].mxu0  ;;  %13844 = vmatpush3.bf16.msra.mxu1 %v15251_v42  ;;  %13908 = vmatpush3.bf16.msra.mxu0 %v15253_v49  ;;  %v15290_v42 = vld [vmem:[%s18439_s1 + $0xee8] sm:$0xff]   ;;  %v15267_v50 = vld [vmem:[%s15516_s13 + $0x710] ss:$264 sps:$4 sm:$0xff]  }
 0x38c   : > { %v13257_v44 = vpop.f32.mrb[75].mxu1  ;;  %v13321_v14 = vpop.f32.mrb[75].mxu0  ;;  %13845 = vmatprep.subr.bf16.mxu1 %v15260_v21  ;;  %13909 = vmatprep.subr.bf16.mxu0 %v15262_v35  ;;  %v15292_v21 = vld [vmem:[%s18439_s1 + $0xf68] sm:$0xff]  }
 0x38d   : > { %v9523_v34 = vadd.f32 %v13255_v2, %v17695_v5  ;;  %v13258_v0 = vadd.f32 %v13257_v44, %v13256_v1  ;;  %v13322_v20 = vadd.f32 %v13321_v14, %v13320_v58  ;;  %v15273_v5 = vld [vmem:[%s18439_s1 + $0xf18] sm:$0xff]   ;;  %v15264_v61 = vld [vmem:[%s15516_s13 + $0x708] ss:$264 sps:$4 sm:$0xff]   ;;  %v15279_v14 = vld [vmem:[%s15516_s13 + $0x924] ss:$264 sps:$4 sm:$0xff]  }
 0x38e   : > { %10257 = vmatmul.mubr.bf16.gmra.mrb[180].mxu1 %v15244_v51  ;;  %10354 = vmatmul.mubr.bf16.gmra.mrb[180].mxu0 %v15247_v54  ;;  %v15291_v51 = vld [vmem:[%s18439_s1 + $0xea8] sm:$0xff]   ;;  %v15302_v2 = vld [vmem:[%s18439_s1 + $0xf70] sm:$0xff]   ;;  %v15276_v58 = vld [vmem:[%s15516_s13 + $0x91c] ss:$264 sps:$4 sm:$0xff]  }
 0x38f   : > { %v17871_v52 = vadd.f32 %v13319_v37, %v9523_v34  ;;  %v9526_v29 = vadd.f32 %v13258_v0, %v17706_v6  ;;  %10264 = vmatprep.mubr.bf16.mxu1 %v15256_v15  ;;  %10361 = vmatprep.mubr.bf16.mxu0 %v15259_v56  ;;  %v15300_v15 = vld [vmem:[%s18439_s1 + $0xef0] sm:$0xff]  }
 0x390   : > { %13846 = vmatpush3.bf16.msra.mxu1 %v15261_v23  ;;  %13910 = vmatpush3.bf16.msra.mxu0 %v15263_v59 }
 0x391   : > { %v17882_v10 = vadd.f32 %v13322_v20, %v9526_v29  ;;  %v13259_v38 = vpop.f32.mrb[76].mxu1  ;;  %v13323_v6 = vpop.f32.mrb[76].mxu0  ;;  %13847 = vmatprep.subr.bf16.mxu1 %v15270_v30  ;;  %13911 = vmatprep.subr.bf16.mxu0 %v15272_v19  ;;  %v15301_v30 = vld [vmem:[%s18439_s1 + $0xeb0] sm:$0xff]  }
 0x392   : > { %v13260_v45 = vpop.f32.mrb[77].mxu1  ;;  %v13324_v3 = vpop.f32.mrb[77].mxu0  ;;  %v15303_v20 = vld [vmem:[%s18439_s1 + $0xf30] sm:$0xff]  }
 0x393   : > { %v13261_v33 = vadd.f32 %v13260_v45, %v13259_v38  ;;  %v13325_v24 = vadd.f32 %v13324_v3, %v13323_v6  ;;  %v13262_v36 = vpop.f32.mrb[78].mxu1  ;;  %v13326_v57 = vpop.f32.mrb[78].mxu0  ;;  %v15274_v38 = vld [vmem:[%s15516_s13 + $0x918] ss:$264 sps:$4 sm:$0xff]  }
 0x394   : > { %v13263_v43 = vpop.f32.mrb[79].mxu1  ;;  %v13327_v26 = vpop.f32.mrb[79].mxu0  ;;  %13848 = vmatpush3.bf16.msra.mxu1 %v15271_v7  ;;  %13912 = vmatpush3.bf16.msra.mxu0 %v15273_v5  ;;  %v15310_v5 = vld [vmem:[%s18439_s1 + $0xef8] sm:$0xff]  }
 0x395   : > { %v9531_v46 = vadd.f32 %v13261_v33, %v17726_v63  ;;  %v13264_v49 = vadd.f32 %v13263_v43, %v13262_v36  ;;  %v13328_v4 = vadd.f32 %v13327_v26, %v13326_v57  ;;  %13849 = vmatprep.subr.bf16.mxu1 %v15280_v32  ;;  %13913 = vmatprep.subr.bf16.mxu0 %v15282_v40  ;;  %v15293_v63 = vld [vmem:[%s18439_s1 + $0xf28] sm:$0xff]   ;;  %v15313_v6 = vld [vmem:[%s18439_s1 + $0xf38] sm:$0xff]  }
 0x396   : > { %10265 = vmatmul.mubr.bf16.gmra.mrb[184].mxu1 %v15254_v17  ;;  %10362 = vmatmul.mubr.bf16.gmra.mrb[184].mxu0 %v15257_v9  ;;  %v15312_v17 = vld [vmem:[%s18439_s1 + $0xf78] sm:$0xff]   ;;  %v15286_v26 = vld [vmem:[%s15516_s13 + $0xb2c] ss:$264 sps:$4 sm:$0xff]  }
 0x397   : > { %v17905_v54 = vadd.f32 %v13325_v24, %v9531_v46  ;;  %v9534_v35 = vadd.f32 %v13264_v49, %v17737_v16  ;;  %10272 = vmatprep.mubr.bf16.mxu1 %v15266_v18  ;;  %10369 = vmatprep.mubr.bf16.mxu0 %v15269_v55  ;;  %v15322_v18 = vld [vmem:[%s18439_s1 + $0x1040] sm:$0xff]  }
 0x398   : > { %13850 = vmatpush3.bf16.msra.mxu1 %v15281_v62  ;;  %13914 = vmatpush3.bf16.msra.mxu0 %v15283_v39  ;;  %v15277_v24 = vld [vmem:[%s15516_s13 + $0x920] ss:$264 sps:$4 sm:$0xff]   ;;  %v15289_v39 = vld [vmem:[%s15516_s13 + $0xb34] ss:$264 sps:$4 sm:$0xff]  }
 0x399   : > { %v17916_v48 = vadd.f32 %v13328_v4, %v9534_v35  ;;  %v13345_v60 = vpop.f32.mrb[80].mxu1  ;;  %v13409_v16 = vpop.f32.mrb[80].mxu0  ;;  %13851 = vmatprep.subr.bf16.mxu1 %v15290_v42  ;;  %13915 = vmatprep.subr.bf16.mxu0 %v15292_v21 }
 0x39a   : > { %v13346_v37 = vpop.f32.mrb[81].mxu1  ;;  %v13410_v1 = vpop.f32.mrb[81].mxu0 }
 0x39b   : > { %v13347_v56 = vadd.f32 %v13346_v37, %v13345_v60  ;;  %v13411_v23 = vadd.f32 %v13410_v1, %v13409_v16  ;;  %v13348_v59 = vpop.f32.mrb[82].mxu1  ;;  %v13412_v44 = vpop.f32.mrb[82].mxu0  ;;  %v15287_v16 = vld [vmem:[%s15516_s13 + $0xb30] ss:$264 sps:$4 sm:$0xff]  }
 0x39c   : > { %v13349_v34 = vpop.f32.mrb[83].mxu1  ;;  %v13413_v0 = vpop.f32.mrb[83].mxu0  ;;  %13852 = vmatpush3.bf16.msra.mxu1 %v15291_v51  ;;  %13916 = vmatpush3.bf16.msra.mxu0 %v15293_v63  ;;  %v15284_v63 = vld [vmem:[%s15516_s13 + $0xb28] ss:$264 sps:$4 sm:$0xff]  }
 0x39d   : > { %v9669_v19 = vadd.f32 %v13347_v56, %v17760_v31  ;;  %v13350_v7 = vadd.f32 %v13349_v34, %v13348_v59  ;;  %v13414_v29 = vadd.f32 %v13413_v0, %v13412_v44  ;;  %13853 = vmatprep.subr.bf16.mxu1 %v15300_v15  ;;  %13917 = vmatprep.subr.bf16.mxu0 %v15302_v2  ;;  %v15311_v31 = vld [vmem:[%s18439_s1 + $0xeb8] sm:$0xff]  }
 0x39e   : > { %10273 = vmatmul.mubr.bf16.gmra.mrb[188].mxu1 %v15264_v61  ;;  %10370 = vmatmul.mubr.bf16.gmra.mrb[188].mxu0 %v15267_v50  ;;  %v15296_v56 = vld [vmem:[%s15516_s13 + $0xd3c] ss:$264 sps:$4 sm:$0xff]  }
 0x39f   : > { %v17936_v9 = vadd.f32 %v13411_v23, %v9669_v19  ;;  %v9672_v32 = vadd.f32 %v13350_v7, %v17771_v47  ;;  %10280 = vmatprep.mubr.bf16.mxu1 %v15276_v58  ;;  %10377 = vmatprep.mubr.bf16.mxu0 %v15279_v14  ;;  %v15320_v47 = vld [vmem:[%s18439_s1 + $0xfc0] sm:$0xff]  }
 0x3a0   : > { %13854 = vmatpush3.bf16.msra.mxu1 %v15301_v30  ;;  %13918 = vmatpush3.bf16.msra.mxu0 %v15303_v20  ;;  %v15299_v23 = vld [vmem:[%s15516_s13 + $0xd44] ss:$264 sps:$4 sm:$0xff]  }
 0x3a1   : > { %v17949_v40 = vadd.f32 %v13414_v29, %v9672_v32  ;;  %v13351_v45 = vpop.f32.mrb[84].mxu1  ;;  %v13415_v3 = vpop.f32.mrb[84].mxu0  ;;  %13855 = vmatprep.subr.bf16.mxu1 %v15310_v5  ;;  %13919 = vmatprep.subr.bf16.mxu0 %v15312_v17  ;;  %v15294_v17 = vld [vmem:[%s15516_s13 + $0xd38] ss:$264 sps:$4 sm:$0xff]  }
 0x3a2   : > { %v13352_v55 = vpop.f32.mrb[85].mxu1  ;;  %v13416_v33 = vpop.f32.mrb[85].mxu0 }
 0x3a3   : > { %v13353_v36 = vadd.f32 %v13352_v55, %v13351_v45  ;;  %v13417_v57 = vadd.f32 %v13416_v33, %v13415_v3  ;;  %v13354_v62 = vpop.f32.mrb[86].mxu1  ;;  %v13418_v43 = vpop.f32.mrb[86].mxu0  ;;  %v15309_v45 = vld [vmem:[%s15516_s13 + $0xf54] ss:$264 sps:$4 sm:$0xff]  }
 0x3a4   : > { %v13355_v42 = vpop.f32.mrb[87].mxu1  ;;  %v13419_v46 = vpop.f32.mrb[87].mxu0  ;;  %13856 = vmatpush3.bf16.msra.mxu1 %v15311_v31  ;;  %13920 = vmatpush3.bf16.msra.mxu0 %v15313_v6 }
 0x3a5   : > { %v9677_v49 = vadd.f32 %v13353_v36, %v17782_v28  ;;  %v13356_v4 = vadd.f32 %v13355_v42, %v13354_v62  ;;  %v13420_v21 = vadd.f32 %v13419_v46, %v13418_v43  ;;  %13969 = vmatprep.subr.bf16.mxu1 %v15320_v47  ;;  %14033 = vmatprep.subr.bf16.mxu0 %v15322_v18  ;;  %v15306_v47 = vld [vmem:[%s15516_s13 + $0xf4c] ss:$264 sps:$4 sm:$0xff]   ;;  %v15304_v42 = vld [vmem:[%s15516_s13 + $0xf48] ss:$264 sps:$4 sm:$0xff]  }
 0x3a6   : > { %10281 = vmatmul.mubr.bf16.gmra.mrb[192].mxu1 %v15274_v38  ;;  %10378 = vmatmul.mubr.bf16.gmra.mrb[192].mxu0 %v15277_v24 }
 0x3a7   : > { %v17958_v51 = vadd.f32 %v13417_v57, %v9677_v49  ;;  %v9680_v35 = vadd.f32 %v13356_v4, %v17787_v13  ;;  %10288 = vmatprep.mubr.bf16.mxu1 %v15286_v26  ;;  %10385 = vmatprep.mubr.bf16.mxu0 %v15289_v39 }
 0x3a9   : > { %v17962_v61 = vadd.f32 %v13420_v21, %v9680_v35  ;;  %v13357_v50 = vpop.f32.mrb[88].mxu1  ;;  %v13421_v28 = vpop.f32.mrb[88].mxu0  ;;  %v15316_v35 = vld [vmem:[%s15516_s13 + $0xec] ss:$264 sps:$4 sm:$0xff]  }
 0x3aa   : > { %v13358_v15 = vpop.f32.mrb[89].mxu1  ;;  %v13422_v60 = vpop.f32.mrb[89].mxu0 }
 0x3ab   : > { %v13359_v2 = vadd.f32 %v13358_v15, %v13357_v50  ;;  %v13423_v37 = vadd.f32 %v13422_v60, %v13421_v28  ;;  %v13360_v1 = vpop.f32.mrb[90].mxu1  ;;  %v13424_v58 = vpop.f32.mrb[90].mxu0 }
 0x3ac   : > { %v13361_v59 = vpop.f32.mrb[91].mxu1  ;;  %v13425_v44 = vpop.f32.mrb[91].mxu0 }
 0x3ad   : > { %v9685_v13 = vadd.f32 %v13359_v2, %v17792_v27  ;;  %v13362_v14 = vadd.f32 %v13361_v59, %v13360_v1  ;;  %v13426_v30 = vadd.f32 %v13425_v44, %v13424_v58  ;;  %v15297_v27 = vld [vmem:[%s15516_s13 + $0xd40] ss:$264 sps:$4 sm:$0xff]  }
 0x3ae   : > { %10289 = vmatmul.mubr.bf16.gmra.mrb[196].mxu1 %v15284_v63  ;;  %10386 = vmatmul.mubr.bf16.gmra.mrb[196].mxu0 %v15287_v16  ;;  %v15319_v63 = vld [vmem:[%s15516_s13 + $0xf4] ss:$264 sps:$4 sm:$0xff]   ;;  %v15314_v59 = vld [vmem:[%s15516_s13 + $0xe8] ss:$264 sps:$4 sm:$0xff]  }
 0x3af   : > { %v17968_v34 = vadd.f32 %v13423_v37, %v9685_v13  ;;  %v9688_v0 = vadd.f32 %v13362_v14, %v17797_v11  ;;  %10296 = vmatprep.mubr.bf16.mxu1 %v15296_v56  ;;  %10393 = vmatprep.mubr.bf16.mxu0 %v15299_v23 }
 0x3b1   : > { %v17971_v20 = vadd.f32 %v13426_v30, %v9688_v0  ;;  %v13363_v19 = vpop.f32.mrb[92].mxu1  ;;  %v13427_v7 = vpop.f32.mrb[92].mxu0  ;;  %v15323_v0 = vld [vmem:[%s18439_s1 + $0x1000] sm:$0xff]  }
 0x3b2   : > { %v13364_v29 = vpop.f32.mrb[93].mxu1  ;;  %v13428_v5 = vpop.f32.mrb[93].mxu0 }
 0x3b3   : > { %v13365_v32 = vadd.f32 %v13364_v29, %v13363_v19  ;;  %v13429_v31 = vadd.f32 %v13428_v5, %v13427_v7  ;;  %v13366_v38 = vpop.f32.mrb[94].mxu1  ;;  %v13430_v6 = vpop.f32.mrb[94].mxu0  ;;  %v15326_v29 = vld [vmem:[%s15516_s13 + $0x2fc] ss:$264 sps:$4 sm:$0xff]  }
 0x3b4   : > { %v13367_v3 = vpop.f32.mrb[95].mxu1  ;;  %v13431_v18 = vpop.f32.mrb[95].mxu0  ;;  %v15329_v5 = vld [vmem:[%s15516_s13 + $0x304] ss:$264 sps:$4 sm:$0xff]  }
 0x3b5   : > { %v9693_v11 = vadd.f32 %v13365_v32, %v17802_v8  ;;  %v13368_v55 = vadd.f32 %v13367_v3, %v13366_v38  ;;  %v13432_v33 = vadd.f32 %v13431_v18, %v13430_v6  ;;  %v15307_v8 = vld [vmem:[%s15516_s13 + $0xf50] ss:$264 sps:$4 sm:$0xff]   ;;  %v15332_v38 = vld [vmem:[%s18439_s1 + $0x1048] sm:$0xff]  }
 0x3b6   : > { %10297 = vmatmul.mubr.bf16.gmra.mrb[200].mxu1 %v15294_v17  ;;  %10394 = vmatmul.mubr.bf16.gmra.mrb[200].mxu0 %v15297_v27  ;;  %v15340_v3 = vld [vmem:[%s18439_s1 + $0xfd0] sm:$0xff]  }
 0x3b7   : > { %v17978_v24 = vadd.f32 %v13429_v31, %v9693_v11  ;;  %v9696_v36 = vadd.f32 %v13368_v55, %v17807_v22  ;;  %10304 = vmatprep.mubr.bf16.mxu1 %v15306_v47  ;;  %10401 = vmatprep.mubr.bf16.mxu0 %v15309_v45  ;;  %v15330_v31 = vld [vmem:[%s18439_s1 + $0xfc8] sm:$0xff]  }
 0x3b8   : > { %v15333_v45 = vld [vmem:[%s18439_s1 + $0x1008] sm:$0xff]  }
 0x3b9   : > { %v17981_v57 = vadd.f32 %v13432_v33, %v9696_v36  ;;  %v13369_v62 = vpop.f32.mrb[96].mxu1  ;;  %v13433_v43 = vpop.f32.mrb[96].mxu0 }
 0x3ba   : > { %v13370_v26 = vpop.f32.mrb[97].mxu1  ;;  %v13434_v39 = vpop.f32.mrb[97].mxu0 }
 0x3bb   : > { %v13371_v46 = vadd.f32 %v13370_v26, %v13369_v62  ;;  %v13435_v49 = vadd.f32 %v13434_v39, %v13433_v43  ;;  %v13372_v4 = vpop.f32.mrb[98].mxu1  ;;  %v13436_v21 = vpop.f32.mrb[98].mxu0  ;;  %v15324_v62 = vld [vmem:[%s15516_s13 + $0x2f8] ss:$264 sps:$4 sm:$0xff]  }
 0x3bc   : > { %v13373_v50 = vpop.f32.mrb[99].mxu1  ;;  %v13437_v28 = vpop.f32.mrb[99].mxu0  ;;  %v15327_v43 = vld [vmem:[%s15516_s13 + $0x300] ss:$264 sps:$4 sm:$0xff]  }
 0x3bd   : > { %v9701_v22 = vadd.f32 %v13371_v46, %v17812_v12  ;;  %v13374_v15 = vadd.f32 %v13373_v50, %v13372_v4  ;;  %v13438_v60 = vadd.f32 %v13437_v28, %v13436_v21  ;;  %v15317_v12 = vld [vmem:[%s15516_s13 + $0xf0] ss:$264 sps:$4 sm:$0xff]   ;;  %v15336_v46 = vld [vmem:[%s15516_s13 + $0x50c] ss:$264 sps:$4 sm:$0xff]  }
 0x3be   : > { %10305 = vmatmul.mubr.bf16.gmra.mrb[204].mxu1 %v15304_v42  ;;  %10402 = vmatmul.mubr.bf16.gmra.mrb[204].mxu0 %v15307_v8 }
 0x3bf   : > { %v17988_v16 = vadd.f32 %v13435_v49, %v9701_v22  ;;  %v9704_v2 = vadd.f32 %v13374_v15, %v17817_v25  ;;  %10442 = vmatprep.mubr.bf16.mxu1 %v15316_v35  ;;  %10539 = vmatprep.mubr.bf16.mxu0 %v15319_v63  ;;  %v15321_v25 = vld [vmem:[%s18439_s1 + $0xf80] sm:$0xff]   ;;  %v15339_v49 = vld [vmem:[%s15516_s13 + $0x514] ss:$264 sps:$4 sm:$0xff]  }
 0x3c0   : > { %v15341_v35 = vld [vmem:[%s18439_s1 + $0xf90] sm:$0xff]   ;;  %v15350_v15 = vld [vmem:[%s18439_s1 + $0xfd8] sm:$0xff]  }
 0x3c1   : > { %v17991_v37 = vadd.f32 %v13438_v60, %v9704_v2  ;;  %v13375_v1 = vpop.f32.mrb[100].mxu1  ;;  %v13439_v58 = vpop.f32.mrb[100].mxu0  ;;  %v15343_v63 = vld [vmem:[%s18439_s1 + $0x1010] sm:$0xff]   ;;  %v15352_v60 = vld [vmem:[%s18439_s1 + $0x1058] sm:$0xff]  }
 0x3c2   : > { %v13376_v56 = vpop.f32.mrb[101].mxu1  ;;  %v13440_v23 = vpop.f32.mrb[101].mxu0 }
 0x3c3   : > { %v13377_v44 = vadd.f32 %v13376_v56, %v13375_v1  ;;  %v13441_v13 = vadd.f32 %v13440_v23, %v13439_v58  ;;  %v13378_v14 = vpop.f32.mrb[102].mxu1  ;;  %v13442_v30 = vpop.f32.mrb[102].mxu0  ;;  %v15353_v58 = vld [vmem:[%s18439_s1 + $0x1018] sm:$0xff]  }
 0x3c4   : > { %v13379_v19 = vpop.f32.mrb[103].mxu1  ;;  %v13443_v7 = vpop.f32.mrb[103].mxu0 }
 0x3c5   : > { %v9709_v17 = vadd.f32 %v13377_v44, %v17840_v53  ;;  %v13380_v27 = vadd.f32 %v13379_v19, %v13378_v14  ;;  %v13444_v32 = vadd.f32 %v13443_v7, %v13442_v30  ;;  %v15331_v53 = vld [vmem:[%s18439_s1 + $0xf88] sm:$0xff]   ;;  %v15337_v30 = vld [vmem:[%s15516_s13 + $0x510] ss:$264 sps:$4 sm:$0xff]  }
 0x3c6   : > { %10443 = vmatmul.mubr.bf16.vlgmr.msra.gmra.mrb[208].mxu1 %v15314_v59  ;;  %10540 = vmatmul.mubr.bf16.vlgmr.msra.gmra.mrb[208].mxu0 %v15317_v12  ;;  %v15360_v59 = vld [vmem:[%s18439_s1 + $0xfe0] sm:$0xff]   ;;  %v15334_v14 = vld [vmem:[%s15516_s13 + $0x508] ss:$264 sps:$4 sm:$0xff]  }
 0x3c7   : > { %v18010_v6 = vadd.f32 %v13441_v13, %v9709_v17  ;;  %v9712_v47 = vadd.f32 %v13380_v27, %v17851_v41  ;;  %13970 = vmatpush3.bf16.msra.mxu1 %v15321_v25  ;;  %14034 = vmatpush3.bf16.msra.mxu0 %v15323_v0  ;;  %v15342_v41 = vld [vmem:[%s18439_s1 + $0x1050] sm:$0xff]   ;;  %v15362_v12 = vld [vmem:[%s18439_s1 + $0x1060] sm:$0xff]  }
 0x3c8   : > { %10450 = vmatprep.mubr.bf16.mxu1 %v15326_v29  ;;  %10547 = vmatprep.mubr.bf16.mxu0 %v15329_v5  ;;  %v15346_v29 = vld [vmem:[%s15516_s13 + $0x71c] ss:$264 sps:$4 sm:$0xff]  }
 0x3c9   : > { %v18025_v18 = vadd.f32 %v13444_v32, %v9712_v47  ;;  %v13381_v11 = vpop.f32.mrb[104].mxu1  ;;  %v13445_v55 = vpop.f32.mrb[104].mxu0  ;;  %13971 = vmatprep.subr.bf16.mxu1 %v15330_v31  ;;  %14035 = vmatprep.subr.bf16.mxu0 %v15332_v38  ;;  %v15349_v5 = vld [vmem:[%s15516_s13 + $0x724] ss:$264 sps:$4 sm:$0xff]  }
 0x3ca   : > { %v13382_v33 = vpop.f32.mrb[105].mxu1  ;;  %v13446_v36 = vpop.f32.mrb[105].mxu0  ;;  %v15361_v32 = vld [vmem:[%s18439_s1 + $0xfa0] sm:$0xff]  }
 0x3cb   : > { %v13383_v26 = vadd.f32 %v13382_v33, %v13381_v11  ;;  %v13447_v39 = vadd.f32 %v13446_v36, %v13445_v55  ;;  %v13384_v42 = vpop.f32.mrb[106].mxu1  ;;  %v13448_v8 = vpop.f32.mrb[106].mxu0  ;;  %13972 = vmatpush3.bf16.msra.mxu1 %v15331_v53  ;;  %14036 = vmatpush3.bf16.msra.mxu0 %v15333_v45  ;;  %v15363_v31 = vld [vmem:[%s18439_s1 + $0x1020] sm:$0xff]   ;;  %v15370_v45 = vld [vmem:[%s18439_s1 + $0xfe8] sm:$0xff]  }
 0x3cc   : > { %v13385_v4 = vpop.f32.mrb[107].mxu1  ;;  %v13449_v21 = vpop.f32.mrb[107].mxu0  ;;  %13973 = vmatprep.subr.bf16.mxu1 %v15340_v3  ;;  %14037 = vmatprep.subr.bf16.mxu0 %v15342_v41  ;;  %v15372_v3 = vld [vmem:[%s18439_s1 + $0x1068] sm:$0xff]  }
 0x3cd   : > { %v9717_v50 = vadd.f32 %v13383_v26, %v17871_v52  ;;  %v13386_v28 = vadd.f32 %v13385_v4, %v13384_v42  ;;  %v13450_v22 = vadd.f32 %v13449_v21, %v13448_v8  ;;  %v15351_v52 = vld [vmem:[%s18439_s1 + $0xf98] sm:$0xff]   ;;  %v15373_v55 = vld [vmem:[%s18439_s1 + $0x1028] sm:$0xff]  }
 0x3ce   : > { %10451 = vmatmul.mubr.bf16.gmra.mrb[212].mxu1 %v15324_v62  ;;  %10548 = vmatmul.mubr.bf16.gmra.mrb[212].mxu0 %v15327_v43  ;;  %v15380_v62 = vld [vmem:[%s18439_s1 + $0xff0] sm:$0xff]   ;;  %v15344_v42 = vld [vmem:[%s15516_s13 + $0x718] ss:$264 sps:$4 sm:$0xff]  }
 0x3cf   : > { %v18044_v2 = vadd.f32 %v13447_v39, %v9717_v50  ;;  %v9720_v1 = vadd.f32 %v13386_v28, %v17882_v10  ;;  %10458 = vmatprep.mubr.bf16.mxu1 %v15336_v46  ;;  %10555 = vmatprep.mubr.bf16.mxu0 %v15339_v49  ;;  %v15382_v43 = vld [vmem:[%s18439_s1 + $0x1070] sm:$0xff]   ;;  %v15347_v8 = vld [vmem:[%s15516_s13 + $0x720] ss:$264 sps:$4 sm:$0xff]  }
 0x3d0   : > { %13974 = vmatpush3.bf16.msra.mxu1 %v15341_v35  ;;  %14038 = vmatpush3.bf16.msra.mxu0 %v15343_v63  ;;  %v15356_v35 = vld [vmem:[%s15516_s13 + $0x92c] ss:$264 sps:$4 sm:$0xff]  }
 0x3d1   : > { %v18053_v56 = vadd.f32 %v13450_v22, %v9720_v1  ;;  %v13387_v23 = vpop.f32.mrb[108].mxu1  ;;  %v13451_v10 = vpop.f32.mrb[108].mxu0  ;;  %13975 = vmatprep.subr.bf16.mxu1 %v15350_v15  ;;  %14039 = vmatprep.subr.bf16.mxu0 %v15352_v60  ;;  %v15359_v63 = vld [vmem:[%s15516_s13 + $0x934] ss:$264 sps:$4 sm:$0xff]  }
 0x3d2   : > { %v13388_v44 = vpop.f32.mrb[109].mxu1  ;;  %v13452_v13 = vpop.f32.mrb[109].mxu0  ;;  %v15381_v22 = vld [vmem:[%s18439_s1 + $0xfb0] sm:$0xff]  }
 0x3d3   : > { %v13389_v25 = vadd.f32 %v13388_v44, %v13387_v23  ;;  %v13453_v0 = vadd.f32 %v13452_v13, %v13451_v10  ;;  %v13390_v19 = vpop.f32.mrb[110].mxu1  ;;  %v13454_v7 = vpop.f32.mrb[110].mxu0  ;;  %v15383_v15 = vld [vmem:[%s18439_s1 + $0x1030] sm:$0xff]   ;;  %v15392_v23 = vld [vmem:[%s18439_s1 + $0x1078] sm:$0xff]  }
 0x3d4   : > { %v13391_v17 = vpop.f32.mrb[111].mxu1  ;;  %v13455_v27 = vpop.f32.mrb[111].mxu0  ;;  %13976 = vmatpush3.bf16.msra.mxu1 %v15351_v52  ;;  %14040 = vmatpush3.bf16.msra.mxu0 %v15353_v58  ;;  %v15390_v58 = vld [vmem:[%s18439_s1 + $0xff8] sm:$0xff]  }
 0x3d5   : > { %v9725_v38 = vadd.f32 %v13389_v25, %v17905_v54  ;;  %v13392_v47 = vadd.f32 %v13391_v17, %v13390_v19  ;;  %v13456_v53 = vadd.f32 %v13455_v27, %v13454_v7  ;;  %13977 = vmatprep.subr.bf16.mxu1 %v15360_v59  ;;  %14041 = vmatprep.subr.bf16.mxu0 %v15362_v12  ;;  %v15371_v54 = vld [vmem:[%s18439_s1 + $0xfa8] sm:$0xff]   ;;  %v15391_v59 = vld [vmem:[%s18439_s1 + $0xfb8] sm:$0xff]  }
 0x3d6   : > { %10459 = vmatmul.mubr.bf16.gmra.mrb[216].mxu1 %v15334_v14  ;;  %10556 = vmatmul.mubr.bf16.gmra.mrb[216].mxu0 %v15337_v30  ;;  %v15393_v12 = vld [vmem:[%s18439_s1 + $0x1038] sm:$0xff]   ;;  %v15354_v25 = vld [vmem:[%s15516_s13 + $0x928] ss:$264 sps:$4 sm:$0xff]   ;;  %v15369_v27 = vld [vmem:[%s15516_s13 + $0xb44] ss:$264 sps:$4 sm:$0xff]  }
 0x3d7   : > { %v18078_v41 = vadd.f32 %v13453_v0, %v9725_v38  ;;  %v9728_v11 = vadd.f32 %v13392_v47, %v17916_v48  ;;  %10466 = vmatprep.mubr.bf16.mxu1 %v15346_v29  ;;  %10563 = vmatprep.mubr.bf16.mxu0 %v15349_v5  ;;  %v15357_v0 = vld [vmem:[%s15516_s13 + $0x930] ss:$264 sps:$4 sm:$0xff]   ;;  %v15366_v17 = vld [vmem:[%s15516_s13 + $0xb3c] ss:$264 sps:$4 sm:$0xff]  }
 0x3d8   : > { %13978 = vmatpush3.bf16.msra.mxu1 %v15361_v32  ;;  %14042 = vmatpush3.bf16.msra.mxu0 %v15363_v31 }
 0x3d9   : > { %v18087_v33 = vadd.f32 %v13456_v53, %v9728_v11  ;;  %v13473_v36 = vpop.f32.mrb[112].mxu1  ;;  %v13537_v48 = vpop.f32.mrb[112].mxu0  ;;  %13979 = vmatprep.subr.bf16.mxu1 %v15370_v45  ;;  %14043 = vmatprep.subr.bf16.mxu0 %v15372_v3 }
 0x3da   : > { %v13474_v26 = vpop.f32.mrb[113].mxu1  ;;  %v13538_v39 = vpop.f32.mrb[113].mxu0 }
 0x3db   : > { %v13475_v46 = vadd.f32 %v13474_v26, %v13473_v36  ;;  %v13539_v49 = vadd.f32 %v13538_v39, %v13537_v48  ;;  %v13476_v4 = vpop.f32.mrb[114].mxu1  ;;  %v13540_v21 = vpop.f32.mrb[114].mxu0 }
 0x3dc   : > { %v13477_v50 = vpop.f32.mrb[115].mxu1  ;;  %v13541_v28 = vpop.f32.mrb[115].mxu0  ;;  %13980 = vmatpush3.bf16.msra.mxu1 %v15371_v54  ;;  %14044 = vmatpush3.bf16.msra.mxu0 %v15373_v55 }
 0x3dd   : > { %v9863_v60 = vadd.f32 %v13475_v46, %v17936_v9  ;;  %v13478_v1 = vadd.f32 %v13477_v50, %v13476_v4  ;;  %v13542_v52 = vadd.f32 %v13541_v28, %v13540_v21  ;;  %13981 = vmatprep.subr.bf16.mxu1 %v15380_v62  ;;  %14045 = vmatprep.subr.bf16.mxu0 %v15382_v43  ;;  %v15364_v62 = vld [vmem:[%s15516_s13 + $0xb38] ss:$264 sps:$4 sm:$0xff]   ;;  %v15379_v46 = vld [vmem:[%s15516_s13 + $0xd54] ss:$264 sps:$4 sm:$0xff]  }
 0x3de   : > { %10467 = vmatmul.mubr.bf16.gmra.mrb[220].mxu1 %v15344_v42  ;;  %10564 = vmatmul.mubr.bf16.gmra.mrb[220].mxu0 %v15347_v8  ;;  %v15376_v8 = vld [vmem:[%s15516_s13 + $0xd4c] ss:$264 sps:$4 sm:$0xff]  }
 0x3df   : > { %v18112_v10 = vadd.f32 %v13539_v49, %v9863_v60  ;;  %v9866_v9 = vadd.f32 %v13478_v1, %v17949_v40  ;;  %10474 = vmatprep.mubr.bf16.mxu1 %v15356_v35  ;;  %10571 = vmatprep.mubr.bf16.mxu0 %v15359_v63 }
 0x3e0   : > { %13982 = vmatpush3.bf16.msra.mxu1 %v15381_v22  ;;  %14046 = vmatpush3.bf16.msra.mxu0 %v15383_v15 }
 0x3e1   : > { %v18121_v44 = vadd.f32 %v13542_v52, %v9866_v9  ;;  %v13479_v13 = vpop.f32.mrb[116].mxu1  ;;  %v13543_v14 = vpop.f32.mrb[116].mxu0  ;;  %13983 = vmatprep.subr.bf16.mxu1 %v15390_v58  ;;  %14047 = vmatprep.subr.bf16.mxu0 %v15392_v23  ;;  %v15374_v52 = vld [vmem:[%s15516_s13 + $0xd48] ss:$264 sps:$4 sm:$0xff]  }
 0x3e2   : > { %v13480_v40 = vpop.f32.mrb[117].mxu1  ;;  %v13544_v30 = vpop.f32.mrb[117].mxu0 }
 0x3e3   : > { %v13481_v19 = vadd.f32 %v13480_v40, %v13479_v13  ;;  %v13545_v7 = vadd.f32 %v13544_v30, %v13543_v14  ;;  %v13482_v29 = vpop.f32.mrb[118].mxu1  ;;  %v13546_v5 = vpop.f32.mrb[118].mxu0  ;;  %v15389_v13 = vld [vmem:[%s15516_s13 + $0xf64] ss:$264 sps:$4 sm:$0xff]  }
 0x3e4   : > { %v13483_v32 = vpop.f32.mrb[119].mxu1  ;;  %v13547_v31 = vpop.f32.mrb[119].mxu0  ;;  %13984 = vmatpush3.bf16.msra.mxu1 %v15391_v59  ;;  %14048 = vmatpush3.bf16.msra.mxu0 %v15393_v12  ;;  %v15386_v12 = vld [vmem:[%s15516_s13 + $0xf5c] ss:$264 sps:$4 sm:$0xff]  }
 0x3e5   : > { %v9871_v38 = vadd.f32 %v13481_v19, %v17958_v51  ;;  %v13484_v47 = vadd.f32 %v13483_v32, %v13482_v29  ;;  %v13548_v53 = vadd.f32 %v13547_v31, %v13546_v5  ;;  %v15367_v51 = vld [vmem:[%s15516_s13 + $0xb40] ss:$264 sps:$4 sm:$0xff]  }
 0x3e6   : > { %10475 = vmatmul.mubr.bf16.gmra.mrb[224].mxu1 %v15354_v25  ;;  %10572 = vmatmul.mubr.bf16.gmra.mrb[224].mxu0 %v15357_v0  ;;  %v15384_v32 = vld [vmem:[%s15516_s13 + $0xf58] ss:$264 sps:$4 sm:$0xff]  }
 0x3e7   : > { %v18128_v45 = vadd.f32 %v13545_v7, %v9871_v38  ;;  %v9874_v3 = vadd.f32 %v13484_v47, %v17962_v61  ;;  %10482 = vmatprep.mubr.bf16.mxu1 %v15366_v17  ;;  %10579 = vmatprep.mubr.bf16.mxu0 %v15369_v27 }
 0x3e9   : > { %v18131_v11 = vadd.f32 %v13548_v53, %v9874_v3  ;;  %v13485_v54 = vpop.f32.mrb[120].mxu1  ;;  %v13549_v55 = vpop.f32.mrb[120].mxu0  ;;  %v15396_v3 = vld [vmem:[%s15516_s13 + $0xfc] ss:$264 sps:$4 sm:$0xff]  }
 0x3ea   : > { %v13486_v36 = vpop.f32.mrb[121].mxu1  ;;  %v13550_v48 = vpop.f32.mrb[121].mxu0 }
 0x3eb   : > { %v13487_v43 = vadd.f32 %v13486_v36, %v13485_v54  ;;  %v13551_v26 = vadd.f32 %v13550_v48, %v13549_v55  ;;  %v13488_v39 = vpop.f32.mrb[122].mxu1  ;;  %v13552_v42 = vpop.f32.mrb[122].mxu0  ;;  %v15399_v54 = vld [vmem:[%s15516_s13 + $0x104] ss:$264 sps:$4 sm:$0xff]  }
 0x3ec   : > { %v13489_v49 = vpop.f32.mrb[123].mxu1  ;;  %v13553_v4 = vpop.f32.mrb[123].mxu0 }
 0x3ed   : > { %v9879_v61 = vadd.f32 %v13487_v43, %v17968_v34  ;;  %v13490_v21 = vadd.f32 %v13489_v49, %v13488_v39  ;;  %v13554_v35 = vadd.f32 %v13553_v4, %v13552_v42  ;;  %v15377_v34 = vld [vmem:[%s15516_s13 + $0xd50] ss:$264 sps:$4 sm:$0xff]  }
 0x3ee   : > { %10483 = vmatmul.mubr.bf16.gmra.mrb[228].mxu1 %v15364_v62  ;;  %10580 = vmatmul.mubr.bf16.gmra.mrb[228].mxu0 %v15367_v51  ;;  %v15394_v49 = vld [vmem:[%s15516_s13 + $0xf8] ss:$264 sps:$4 sm:$0xff]  }
 0x3ef   : > { %v18138_v63 = vadd.f32 %v13551_v26, %v9879_v61  ;;  %v9882_v50 = vadd.f32 %v13490_v21, %v17971_v20  ;;  %10490 = vmatprep.mubr.bf16.mxu1 %v15376_v8  ;;  %10587 = vmatprep.mubr.bf16.mxu0 %v15379_v46 }
 0x3f1   : > { %v18141_v28 = vadd.f32 %v13554_v35, %v9882_v50  ;;  %v13491_v22 = vpop.f32.mrb[124].mxu1  ;;  %v13555_v15 = vpop.f32.mrb[124].mxu0  ;;  %v15402_v50 = vld [vmem:[%s15516_s13 + $0x30c] ss:$264 sps:$4 sm:$0xff]  }
 0x3f2   : > { %v13492_v60 = vpop.f32.mrb[125].mxu1  ;;  %v13556_v1 = vpop.f32.mrb[125].mxu0 }
 0x3f3   : > { %v13493_v58 = vadd.f32 %v13492_v60, %v13491_v22  ;;  %v13557_v23 = vadd.f32 %v13556_v1, %v13555_v15  ;;  %v13494_v9 = vpop.f32.mrb[126].mxu1  ;;  %v13558_v59 = vpop.f32.mrb[126].mxu0  ;;  %v15405_v22 = vld [vmem:[%s15516_s13 + $0x314] ss:$264 sps:$4 sm:$0xff]  }
 0x3f4   : > { %v13495_v14 = vpop.f32.mrb[127].mxu1  ;;  %v13559_v40 = vpop.f32.mrb[127].mxu0 }
 0x3f5   : > { %v9887_v20 = vadd.f32 %v13493_v58, %v17978_v24  ;;  %v13496_v30 = vadd.f32 %v13495_v14, %v13494_v9  ;;  %v13560_v25 = vadd.f32 %v13559_v40, %v13558_v59  ;;  %v15387_v24 = vld [vmem:[%s15516_s13 + $0xf60] ss:$264 sps:$4 sm:$0xff]  }
 0x3f6   : > { %10491 = vmatmul.mubr.bf16.gmra.mrb[232].mxu1 %v15374_v52  ;;  %10588 = vmatmul.mubr.bf16.gmra.mrb[232].mxu0 %v15377_v34  ;;  %v15400_v14 = vld [vmem:[%s15516_s13 + $0x308] ss:$264 sps:$4 sm:$0xff]  }
 0x3f7   : > { %v18148_v0 = vadd.f32 %v13557_v23, %v9887_v20  ;;  %v9890_v19 = vadd.f32 %v13496_v30, %v17981_v57  ;;  %10498 = vmatprep.mubr.bf16.mxu1 %v15386_v12  ;;  %10595 = vmatprep.mubr.bf16.mxu0 %v15389_v13 }
 0x3f9   : > { %v18151_v7 = vadd.f32 %v13560_v25, %v9890_v19  ;;  %v13497_v29 = vpop.f32.mrb[128].mxu1  ;;  %v13561_v5 = vpop.f32.mrb[128].mxu0  ;;  %v15408_v19 = vld [vmem:[%s15516_s13 + $0x51c] ss:$264 sps:$4 sm:$0xff]  }
 0x3fa   : > { %v13498_v17 = vpop.f32.mrb[129].mxu1  ;;  %v13562_v27 = vpop.f32.mrb[129].mxu0 }
 0x3fb   : > { %v13499_v31 = vadd.f32 %v13498_v17, %v13497_v29  ;;  %v13563_v38 = vadd.f32 %v13562_v27, %v13561_v5  ;;  %v13500_v47 = vpop.f32.mrb[130].mxu1  ;;  %v13564_v53 = vpop.f32.mrb[130].mxu0  ;;  %v15411_v29 = vld [vmem:[%s15516_s13 + $0x524] ss:$264 sps:$4 sm:$0xff]  }
 0x3fc   : > { %v13501_v55 = vpop.f32.mrb[131].mxu1  ;;  %v13565_v36 = vpop.f32.mrb[131].mxu0 }
 0x3fd   : > { %v9895_v57 = vadd.f32 %v13499_v31, %v17988_v16  ;;  %v13502_v48 = vadd.f32 %v13501_v55, %v13500_v47  ;;  %v13566_v62 = vadd.f32 %v13565_v36, %v13564_v53  ;;  %v15397_v16 = vld [vmem:[%s15516_s13 + $0x100] ss:$264 sps:$4 sm:$0xff]  }
 0x3fe   : > { %10499 = vmatmul.mubr.bf16.gmra.mrb[236].mxu1 %v15384_v32  ;;  %10596 = vmatmul.mubr.bf16.gmra.mrb[236].mxu0 %v15387_v24  ;;  %v15406_v55 = vld [vmem:[%s15516_s13 + $0x518] ss:$264 sps:$4 sm:$0xff]  }
 0x3ff   : > { %v18158_v51 = vadd.f32 %v13563_v38, %v9895_v57  ;;  %v9898_v43 = vadd.f32 %v13502_v48, %v17991_v37  ;;  %10636 = vmatprep.mubr.bf16.mxu1 %v15396_v3  ;;  %10733 = vmatprep.mubr.bf16.mxu0 %v15399_v54 }
 0x401   : > { %v18161_v26 = vadd.f32 %v13566_v62, %v9898_v43  ;;  %v13503_v39 = vpop.f32.mrb[132].mxu1  ;;  %v13567_v42 = vpop.f32.mrb[132].mxu0  ;;  %v15414_v43 = vld [vmem:[%s15516_s13 + $0x72c] ss:$264 sps:$4 sm:$0xff]  }
 0x402   : > { %v13504_v8 = vpop.f32.mrb[133].mxu1  ;;  %v13568_v46 = vpop.f32.mrb[133].mxu0 }
 0x403   : > { %v13505_v4 = vadd.f32 %v13504_v8, %v13503_v39  ;;  %v13569_v61 = vadd.f32 %v13568_v46, %v13567_v42  ;;  %v13506_v21 = vpop.f32.mrb[134].mxu1  ;;  %v13570_v35 = vpop.f32.mrb[134].mxu0  ;;  %v15417_v39 = vld [vmem:[%s15516_s13 + $0x734] ss:$264 sps:$4 sm:$0xff]  }
 0x404   : > { %v13507_v15 = vpop.f32.mrb[135].mxu1  ;;  %v13571_v60 = vpop.f32.mrb[135].mxu0 }
 0x405   : > { %v9903_v37 = vadd.f32 %v13505_v4, %v18010_v6  ;;  %v13508_v1 = vadd.f32 %v13507_v15, %v13506_v21  ;;  %v13572_v52 = vadd.f32 %v13571_v60, %v13570_v35  ;;  %v15403_v6 = vld [vmem:[%s15516_s13 + $0x310] ss:$264 sps:$4 sm:$0xff]  }
 0x406   : > { %10637 = vmatmul.mubr.bf16.vlgmr.msra.gmra.mrb[240].mxu1 %v15394_v49  ;;  %10734 = vmatmul.mubr.bf16.vlgmr.msra.gmra.mrb[240].mxu0 %v15397_v16  ;;  %v15412_v15 = vld [vmem:[%s15516_s13 + $0x728] ss:$264 sps:$4 sm:$0xff]  }
 0x407   : > { %v18168_v34 = vadd.f32 %v13569_v61, %v9903_v37  ;;  %v9906_v58 = vadd.f32 %v13508_v1, %v18025_v18  ;;  %10644 = vmatprep.mubr.bf16.mxu1 %v15402_v50  ;;  %10741 = vmatprep.mubr.bf16.mxu0 %v15405_v22 }
 0x409   : > { %v18171_v23 = vadd.f32 %v13572_v52, %v9906_v58  ;;  %v13509_v9 = vpop.f32.mrb[136].mxu1  ;;  %v13573_v59 = vpop.f32.mrb[136].mxu0  ;;  %v15420_v58 = vld [vmem:[%s15516_s13 + $0x93c] ss:$264 sps:$4 sm:$0xff]  }
 0x40a   : > { %v13510_v12 = vpop.f32.mrb[137].mxu1  ;;  %v13574_v13 = vpop.f32.mrb[137].mxu0 }
 0x40b   : > { %v13511_v40 = vadd.f32 %v13510_v12, %v13509_v9  ;;  %v13575_v20 = vadd.f32 %v13574_v13, %v13573_v59  ;;  %v13512_v30 = vpop.f32.mrb[138].mxu1  ;;  %v13576_v25 = vpop.f32.mrb[138].mxu0  ;;  %v15423_v9 = vld [vmem:[%s15516_s13 + $0x944] ss:$264 sps:$4 sm:$0xff]  }
 0x40c   : > { %v13513_v5 = vpop.f32.mrb[139].mxu1  ;;  %v13577_v17 = vpop.f32.mrb[139].mxu0 }
 0x40d   : > { %v9911_v18 = vadd.f32 %v13511_v40, %v18044_v2  ;;  %v13514_v27 = vadd.f32 %v13513_v5, %v13512_v30  ;;  %v13578_v32 = vadd.f32 %v13577_v17, %v13576_v25  ;;  %v15409_v2 = vld [vmem:[%s15516_s13 + $0x520] ss:$264 sps:$4 sm:$0xff]  }
 0x40e   : > { %10645 = vmatmul.mubr.bf16.gmra.mrb[244].mxu1 %v15400_v14  ;;  %10742 = vmatmul.mubr.bf16.gmra.mrb[244].mxu0 %v15403_v6  ;;  %v15418_v5 = vld [vmem:[%s15516_s13 + $0x938] ss:$264 sps:$4 sm:$0xff]  }
 0x40f   : > { %v18178_v24 = vadd.f32 %v13575_v20, %v9911_v18  ;;  %v9914_v31 = vadd.f32 %v13514_v27, %v18053_v56  ;;  %10652 = vmatprep.mubr.bf16.mxu1 %v15408_v19  ;;  %10749 = vmatprep.mubr.bf16.mxu0 %v15411_v29 }
 0x411   : > { %v18181_v38 = vadd.f32 %v13578_v32, %v9914_v31  ;;  %v13515_v47 = vpop.f32.mrb[140].mxu1  ;;  %v13579_v53 = vpop.f32.mrb[140].mxu0  ;;  %v15426_v31 = vld [vmem:[%s15516_s13 + $0xb4c] ss:$264 sps:$4 sm:$0xff]  }
 0x412   : > { %v13516_v3 = vpop.f32.mrb[141].mxu1  ;;  %v13580_v54 = vpop.f32.mrb[141].mxu0 }
 0x413   : > { %v13517_v36 = vadd.f32 %v13516_v3, %v13515_v47  ;;  %v13581_v57 = vadd.f32 %v13580_v54, %v13579_v53  ;;  %v13518_v48 = vpop.f32.mrb[142].mxu1  ;;  %v13582_v62 = vpop.f32.mrb[142].mxu0  ;;  %v15429_v47 = vld [vmem:[%s15516_s13 + $0xb54] ss:$264 sps:$4 sm:$0xff]  }
 0x414   : > { %v13519_v42 = vpop.f32.mrb[143].mxu1  ;;  %v13583_v8 = vpop.f32.mrb[143].mxu0 }
 0x415   : > { %v9919_v56 = vadd.f32 %v13517_v36, %v18078_v41  ;;  %v13520_v46 = vadd.f32 %v13519_v42, %v13518_v48  ;;  %v13584_v49 = vadd.f32 %v13583_v8, %v13582_v62  ;;  %v15415_v41 = vld [vmem:[%s15516_s13 + $0x730] ss:$264 sps:$4 sm:$0xff]  }
 0x416   : > { %10653 = vmatmul.mubr.bf16.gmra.mrb[248].mxu1 %v15406_v55  ;;  %10750 = vmatmul.mubr.bf16.gmra.mrb[248].mxu0 %v15409_v2  ;;  %v15424_v42 = vld [vmem:[%s15516_s13 + $0xb48] ss:$264 sps:$4 sm:$0xff]  }
 0x417   : > { %v18188_v16 = vadd.f32 %v13581_v57, %v9919_v56  ;;  %v9922_v4 = vadd.f32 %v13520_v46, %v18087_v33  ;;  %10660 = vmatprep.mubr.bf16.mxu1 %v15414_v43  ;;  %10757 = vmatprep.mubr.bf16.mxu0 %v15417_v39 }
 0x419   : > { %v18191_v61 = vadd.f32 %v13584_v49, %v9922_v4  ;;  %v13601_v21 = vpop.f32.mrb[144].mxu1  ;;  %v13665_v35 = vpop.f32.mrb[144].mxu0  ;;  %v15432_v4 = vld [vmem:[%s15516_s13 + $0xd5c] ss:$264 sps:$4 sm:$0xff]  }
 0x41a   : > { %v13602_v50 = vpop.f32.mrb[145].mxu1  ;;  %v13666_v22 = vpop.f32.mrb[145].mxu0 }
 0x41b   : > { %v13603_v60 = vadd.f32 %v13602_v50, %v13601_v21  ;;  %v13667_v37 = vadd.f32 %v13666_v22, %v13665_v35  ;;  %v13604_v1 = vpop.f32.mrb[146].mxu1  ;;  %v13668_v52 = vpop.f32.mrb[146].mxu0  ;;  %v15435_v21 = vld [vmem:[%s15516_s13 + $0xd64] ss:$264 sps:$4 sm:$0xff]  }
 0x41c   : > { %v13605_v59 = vpop.f32.mrb[147].mxu1  ;;  %v13669_v12 = vpop.f32.mrb[147].mxu0 }
 0x41d   : > { %v10057_v33 = vadd.f32 %v13603_v60, %v18112_v10  ;;  %v13606_v13 = vadd.f32 %v13605_v59, %v13604_v1  ;;  %v13670_v14 = vadd.f32 %v13669_v12, %v13668_v52  ;;  %v15421_v10 = vld [vmem:[%s15516_s13 + $0x940] ss:$264 sps:$4 sm:$0xff]  }
 0x41e   : > { %10661 = vmatmul.mubr.bf16.gmra.mrb[252].mxu1 %v15412_v15  ;;  %10758 = vmatmul.mubr.bf16.gmra.mrb[252].mxu0 %v15415_v41  ;;  %v15430_v59 = vld [vmem:[%s15516_s13 + $0xd58] ss:$264 sps:$4 sm:$0xff]  }
 0x41f   : > { %v18198_v6 = vadd.f32 %v13667_v37, %v10057_v33  ;;  %v10060_v40 = vadd.f32 %v13606_v13, %v18121_v44  ;;  %10668 = vmatprep.mubr.bf16.mxu1 %v15420_v58  ;;  %10765 = vmatprep.mubr.bf16.mxu0 %v15423_v9 }
 0x421   : > { %v18201_v20 = vadd.f32 %v13670_v14, %v10060_v40  ;;  %v13607_v30 = vpop.f32.mrb[148].mxu1  ;;  %v13671_v25 = vpop.f32.mrb[148].mxu0  ;;  %v15438_v40 = vld [vmem:[%s15516_s13 + $0xf6c] ss:$264 sps:$4 sm:$0xff]  }
 0x422   : > { %v13608_v19 = vpop.f32.mrb[149].mxu1  ;;  %v13672_v29 = vpop.f32.mrb[149].mxu0 }
 0x423   : > { %v13609_v17 = vadd.f32 %v13608_v19, %v13607_v30  ;;  %v13673_v18 = vadd.f32 %v13672_v29, %v13671_v25  ;;  %v13610_v27 = vpop.f32.mrb[150].mxu1  ;;  %v13674_v32 = vpop.f32.mrb[150].mxu0  ;;  %v15441_v30 = vld [vmem:[%s15516_s13 + $0xf74] ss:$264 sps:$4 sm:$0xff]  }
 0x424   : > { %v13611_v53 = vpop.f32.mrb[151].mxu1  ;;  %v13675_v3 = vpop.f32.mrb[151].mxu0 }
 0x425   : > { %v10065_v44 = vadd.f32 %v13609_v17, %v18128_v45  ;;  %v13612_v54 = vadd.f32 %v13611_v53, %v13610_v27  ;;  %v13676_v55 = vadd.f32 %v13675_v3, %v13674_v32  ;;  %v15427_v45 = vld [vmem:[%s15516_s13 + $0xb50] ss:$264 sps:$4 sm:$0xff]  }
 0x426   : > { %10669 = vmatmul.mubr.bf16.gmra.mrb[0].mxu1 %v15418_v5  ;;  %10766 = vmatmul.mubr.bf16.gmra.mrb[0].mxu0 %v15421_v10  ;;  %v15436_v53 = vld [vmem:[%s15516_s13 + $0xf68] ss:$264 sps:$4 sm:$0xff]  }
 0x427   : > { %v18208_v2 = vadd.f32 %v13673_v18, %v10065_v44  ;;  %v10068_v36 = vadd.f32 %v13612_v54, %v18131_v11  ;;  %10676 = vmatprep.mubr.bf16.mxu1 %v15426_v31  ;;  %10773 = vmatprep.mubr.bf16.mxu0 %v15429_v47  ;;  %v15439_v3 = vld [vmem:[%s15516_s13 + $0xf70] ss:$264 sps:$4 sm:$0xff]  }
 0x429   : > { %v18211_v57 = vadd.f32 %v13676_v55, %v10068_v36  ;;  %v13613_v48 = vpop.f32.mrb[152].mxu1  ;;  %v13677_v62 = vpop.f32.mrb[152].mxu0 }
 0x42a   : > { %v13614_v43 = vpop.f32.mrb[153].mxu1  ;;  %v13678_v39 = vpop.f32.mrb[153].mxu0 }
 0x42b   : > { %v13615_v8 = vadd.f32 %v13614_v43, %v13613_v48  ;;  %v13679_v56 = vadd.f32 %v13678_v39, %v13677_v62  ;;  %v13616_v46 = vpop.f32.mrb[154].mxu1  ;;  %v13680_v49 = vpop.f32.mrb[154].mxu0 }
 0x42c   : > { %v13617_v35 = vpop.f32.mrb[155].mxu1  ;;  %v13681_v50 = vpop.f32.mrb[155].mxu0 }
 0x42d   : > { %v10073_v11 = vadd.f32 %v13615_v8, %v18138_v63  ;;  %v13618_v22 = vadd.f32 %v13617_v35, %v13616_v46  ;;  %v13682_v15 = vadd.f32 %v13681_v50, %v13680_v49  ;;  %v15433_v63 = vld [vmem:[%s15516_s13 + $0xd60] ss:$264 sps:$4 sm:$0xff]  }
 0x42e   : > { %10677 = vmatmul.mubr.bf16.gmra.mrb[4].mxu1 %v15424_v42  ;;  %10774 = vmatmul.mubr.bf16.gmra.mrb[4].mxu0 %v15427_v45 }
 0x42f   : > { %v18218_v41 = vadd.f32 %v13679_v56, %v10073_v11  ;;  %v10076_v60 = vadd.f32 %v13618_v22, %v18141_v28  ;;  %10684 = vmatprep.mubr.bf16.mxu1 %v15432_v4  ;;  %10781 = vmatprep.mubr.bf16.mxu0 %v15435_v21 }
 0x431   : > { %v18221_v37 = vadd.f32 %v13682_v15, %v10076_v60  ;;  %v13619_v1 = vpop.f32.mrb[156].mxu1  ;;  %v13683_v52 = vpop.f32.mrb[156].mxu0 }
 0x432   : > { %v13620_v58 = vpop.f32.mrb[157].mxu1  ;;  %v13684_v9 = vpop.f32.mrb[157].mxu0 }
 0x433   : > { %v13621_v12 = vadd.f32 %v13620_v58, %v13619_v1  ;;  %v13685_v33 = vadd.f32 %v13684_v9, %v13683_v52  ;;  %v13622_v13 = vpop.f32.mrb[158].mxu1  ;;  %v13686_v14 = vpop.f32.mrb[158].mxu0 }
 0x434   : > { %v13623_v25 = vpop.f32.mrb[159].mxu1  ;;  %v13687_v19 = vpop.f32.mrb[159].mxu0 }
 0x435   : > { %v10081_v28 = vadd.f32 %v13621_v12, %v18148_v0  ;;  %v13624_v29 = vadd.f32 %v13623_v25, %v13622_v13  ;;  %v13688_v5 = vadd.f32 %v13687_v19, %v13686_v14 }
 0x436   : > { %10685 = vmatmul.mubr.bf16.gmra.mrb[8].mxu1 %v15430_v59  ;;  %10782 = vmatmul.mubr.bf16.gmra.mrb[8].mxu0 %v15433_v63 }
 0x437   : > { %v18228_v10 = vadd.f32 %v13685_v33, %v10081_v28  ;;  %v10084_v17 = vadd.f32 %v13624_v29, %v18151_v7  ;;  %10692 = vmatprep.mubr.bf16.mxu1 %v15438_v40  ;;  %10789 = vmatprep.mubr.bf16.mxu0 %v15441_v30 }
 0x439   : > { %v18231_v18 = vadd.f32 %v13688_v5, %v10084_v17  ;;  %v13625_v27 = vpop.f32.mrb[160].mxu1  ;;  %v13689_v32 = vpop.f32.mrb[160].mxu0 }
 0x43a   : > { %v13626_v31 = vpop.f32.mrb[161].mxu1  ;;  %v13690_v47 = vpop.f32.mrb[161].mxu0 }
 0x43b   : > { %v13627_v44 = vadd.f32 %v13626_v31, %v13625_v27  ;;  %v13691_v0 = vadd.f32 %v13690_v47, %v13689_v32  ;;  %v13628_v54 = vpop.f32.mrb[162].mxu1  ;;  %v13692_v55 = vpop.f32.mrb[162].mxu0 }
 0x43c   : > { %v13629_v36 = vpop.f32.mrb[163].mxu1  ;;  %v13693_v48 = vpop.f32.mrb[163].mxu0 }
 0x43d   : > { %v10089_v62 = vadd.f32 %v13627_v44, %v18158_v51  ;;  %v13630_v43 = vadd.f32 %v13629_v36, %v13628_v54  ;;  %v13694_v7 = vadd.f32 %v13693_v48, %v13692_v55 }
 0x43e   : > { %10693 = vmatmul.mubr.bf16.gmra.mrb[12].mxu1 %v15436_v53  ;;  %10790 = vmatmul.mubr.bf16.gmra.mrb[12].mxu0 %v15439_v3 }
 0x43f   : > { %v18236_v39 = vadd.f32 %v13691_v0, %v10089_v62  ;;  %v10092_v42 = vadd.f32 %v13630_v43, %v18161_v26 }
 0x441   : > { %v18239_v45 = vadd.f32 %v13694_v7, %v10092_v42  ;;  %v13631_v8 = vpop.f32.mrb[164].mxu1  ;;  %v13695_v56 = vpop.f32.mrb[164].mxu0 }
 0x442   : > { %v13632_v46 = vpop.f32.mrb[165].mxu1  ;;  %v13696_v49 = vpop.f32.mrb[165].mxu0 }
 0x443   : > { %v13633_v4 = vadd.f32 %v13632_v46, %v13631_v8  ;;  %v13697_v21 = vadd.f32 %v13696_v49, %v13695_v56  ;;  %v13634_v35 = vpop.f32.mrb[166].mxu1  ;;  %v13698_v50 = vpop.f32.mrb[166].mxu0 }
 0x444   : > { %v13635_v11 = vpop.f32.mrb[167].mxu1  ;;  %v13699_v51 = vpop.f32.mrb[167].mxu0 }
 0x445   : > { %v10097_v22 = vadd.f32 %v13633_v4, %v18168_v34  ;;  %v13636_v15 = vadd.f32 %v13635_v11, %v13634_v35  ;;  %v13700_v60 = vadd.f32 %v13699_v51, %v13698_v50 }
 0x447   : > { %v18242_v1 = vadd.f32 %v13697_v21, %v10097_v22  ;;  %v10100_v26 = vadd.f32 %v13636_v15, %v18171_v23 }
 0x449   : > { %v18245_v52 = vadd.f32 %v13700_v60, %v10100_v26  ;;  %v13637_v58 = vpop.f32.mrb[168].mxu1  ;;  %v13701_v9 = vpop.f32.mrb[168].mxu0 }
 0x44a   : > { %v13638_v59 = vpop.f32.mrb[169].mxu1  ;;  %v13702_v63 = vpop.f32.mrb[169].mxu0 }
 0x44b   : > { %v13639_v12 = vadd.f32 %v13638_v59, %v13637_v58  ;;  %v13703_v33 = vadd.f32 %v13702_v63, %v13701_v9  ;;  %v13640_v13 = vpop.f32.mrb[170].mxu1  ;;  %v13704_v14 = vpop.f32.mrb[170].mxu0 }
 0x44c   : > { %v13641_v40 = vpop.f32.mrb[171].mxu1  ;;  %v13705_v30 = vpop.f32.mrb[171].mxu0 }
 0x44d   : > { %v10105_v34 = vadd.f32 %v13639_v12, %v18178_v24  ;;  %v13642_v25 = vadd.f32 %v13641_v40, %v13640_v13  ;;  %v13706_v19 = vadd.f32 %v13705_v30, %v13704_v14 }
 0x44f   : > { %v18248_v28 = vadd.f32 %v13703_v33, %v10105_v34  ;;  %v10108_v23 = vadd.f32 %v13642_v25, %v18181_v38 }
 0x451   : > { %v18251_v29 = vadd.f32 %v13706_v19, %v10108_v23  ;;  %v13643_v5 = vpop.f32.mrb[172].mxu1  ;;  %v13707_v17 = vpop.f32.mrb[172].mxu0 }
 0x452   : > { %v13644_v27 = vpop.f32.mrb[173].mxu1  ;;  %v13708_v32 = vpop.f32.mrb[173].mxu0 }
 0x453   : > { %v13645_v31 = vadd.f32 %v13644_v27, %v13643_v5  ;;  %v13709_v47 = vadd.f32 %v13708_v32, %v13707_v17  ;;  %v13646_v53 = vpop.f32.mrb[174].mxu1  ;;  %v13710_v3 = vpop.f32.mrb[174].mxu0 }
 0x454   : > { %v13647_v44 = vpop.f32.mrb[175].mxu1  ;;  %v13711_v0 = vpop.f32.mrb[175].mxu0 }
 0x455   : > { %v10113_v24 = vadd.f32 %v13645_v31, %v18188_v16  ;;  %v13648_v54 = vadd.f32 %v13647_v44, %v13646_v53  ;;  %v13712_v55 = vadd.f32 %v13711_v0, %v13710_v3 }
 0x457   : > { %v18254_v36 = vadd.f32 %v13709_v47, %v10113_v24  ;;  %v10116_v38 = vadd.f32 %v13648_v54, %v18191_v61 }
 0x459   : > { %v18257_v48 = vadd.f32 %v13712_v55, %v10116_v38  ;;  %v13729_v62 = vpop.f32.mrb[176].mxu1  ;;  %v13793_v43 = vpop.f32.mrb[176].mxu0 }
 0x45a   : > { %v13730_v7 = vpop.f32.mrb[177].mxu1  ;;  %v13794_v42 = vpop.f32.mrb[177].mxu0 }
 0x45b   : > { %v13731_v8 = vadd.f32 %v13730_v7, %v13729_v62  ;;  %v13795_v56 = vadd.f32 %v13794_v42, %v13793_v43  ;;  %v13732_v46 = vpop.f32.mrb[178].mxu1  ;;  %v13796_v49 = vpop.f32.mrb[178].mxu0 }
 0x45c   : > { %v13733_v4 = vpop.f32.mrb[179].mxu1  ;;  %v13797_v21 = vpop.f32.mrb[179].mxu0 }
 0x45d   : > { %v10251_v16 = vadd.f32 %v13731_v8, %v18198_v6  ;;  %v13734_v35 = vadd.f32 %v13733_v4, %v13732_v46  ;;  %v13798_v50 = vadd.f32 %v13797_v21, %v13796_v49 }
 0x45f   : > { %v18260_v11 = vadd.f32 %v13795_v56, %v10251_v16  ;;  %v10254_v61 = vadd.f32 %v13734_v35, %v18201_v20 }
 0x461   : > { %v18263_v51 = vadd.f32 %v13798_v50, %v10254_v61  ;;  %v13735_v22 = vpop.f32.mrb[180].mxu1  ;;  %v13799_v15 = vpop.f32.mrb[180].mxu0 }
 0x462   : > { %v13736_v60 = vpop.f32.mrb[181].mxu1  ;;  %v13800_v26 = vpop.f32.mrb[181].mxu0 }
 0x463   : > { %v13737_v58 = vadd.f32 %v13736_v60, %v13735_v22  ;;  %v13801_v9 = vadd.f32 %v13800_v26, %v13799_v15  ;;  %v13738_v59 = vpop.f32.mrb[182].mxu1  ;;  %v13802_v63 = vpop.f32.mrb[182].mxu0 }
 0x464   : > { %v13739_v12 = vpop.f32.mrb[183].mxu1  ;;  %v13803_v33 = vpop.f32.mrb[183].mxu0 }
 0x465   : > { %v10259_v6 = vadd.f32 %v13737_v58, %v18208_v2  ;;  %v13740_v13 = vadd.f32 %v13739_v12, %v13738_v59  ;;  %v13804_v14 = vadd.f32 %v13803_v33, %v13802_v63 }
 0x467   : > { %v18266_v40 = vadd.f32 %v13801_v9, %v10259_v6  ;;  %v10262_v20 = vadd.f32 %v13740_v13, %v18211_v57 }
 0x469   : > { %v18269_v30 = vadd.f32 %v13804_v14, %v10262_v20  ;;  %v13741_v34 = vpop.f32.mrb[184].mxu1  ;;  %v13805_v25 = vpop.f32.mrb[184].mxu0 }
 0x46a   : > { %v13742_v19 = vpop.f32.mrb[185].mxu1  ;;  %v13806_v23 = vpop.f32.mrb[185].mxu0 }
 0x46b   : > { %v13743_v5 = vadd.f32 %v13742_v19, %v13741_v34  ;;  %v13807_v17 = vadd.f32 %v13806_v23, %v13805_v25  ;;  %v13744_v27 = vpop.f32.mrb[186].mxu1  ;;  %v13808_v32 = vpop.f32.mrb[186].mxu0 }
 0x46c   : > { %v13745_v31 = vpop.f32.mrb[187].mxu1  ;;  %v13809_v47 = vpop.f32.mrb[187].mxu0 }
 0x46d   : > { %v10267_v2 = vadd.f32 %v13743_v5, %v18218_v41  ;;  %v13746_v53 = vadd.f32 %v13745_v31, %v13744_v27  ;;  %v13810_v3 = vadd.f32 %v13809_v47, %v13808_v32 }
 0x46f   : > { %v18272_v44 = vadd.f32 %v13807_v17, %v10267_v2  ;;  %v10270_v57 = vadd.f32 %v13746_v53, %v18221_v37 }
 0x471   : > { %v18275_v0 = vadd.f32 %v13810_v3, %v10270_v57  ;;  %v13747_v24 = vpop.f32.mrb[188].mxu1  ;;  %v13811_v54 = vpop.f32.mrb[188].mxu0 }
 0x472   : > { %v13748_v55 = vpop.f32.mrb[189].mxu1  ;;  %v13812_v38 = vpop.f32.mrb[189].mxu0 }
 0x473   : > { %v13749_v62 = vadd.f32 %v13748_v55, %v13747_v24  ;;  %v13813_v43 = vadd.f32 %v13812_v38, %v13811_v54  ;;  %v13750_v7 = vpop.f32.mrb[190].mxu1  ;;  %v13814_v42 = vpop.f32.mrb[190].mxu0 }
 0x474   : > { %v13751_v8 = vpop.f32.mrb[191].mxu1  ;;  %v13815_v56 = vpop.f32.mrb[191].mxu0 }
 0x475   : > { %v10275_v41 = vadd.f32 %v13749_v62, %v18228_v10  ;;  %v13752_v46 = vadd.f32 %v13751_v8, %v13750_v7  ;;  %v13816_v49 = vadd.f32 %v13815_v56, %v13814_v42 }
 0x477   : > { %v18278_v4 = vadd.f32 %v13813_v43, %v10275_v41  ;;  %v10278_v37 = vadd.f32 %v13752_v46, %v18231_v18 }
 0x479   : > { %v18281_v21 = vadd.f32 %v13816_v49, %v10278_v37  ;;  %v13753_v16 = vpop.f32.mrb[192].mxu1  ;;  %v13817_v35 = vpop.f32.mrb[192].mxu0 }
 0x47a   : > { %v13754_v50 = vpop.f32.mrb[193].mxu1  ;;  %v13818_v61 = vpop.f32.mrb[193].mxu0 }
 0x47b   : > { %v13755_v22 = vadd.f32 %v13754_v50, %v13753_v16  ;;  %v13819_v15 = vadd.f32 %v13818_v61, %v13817_v35  ;;  %v13756_v60 = vpop.f32.mrb[194].mxu1  ;;  %v13820_v26 = vpop.f32.mrb[194].mxu0 }
 0x47c   : > { %v13757_v58 = vpop.f32.mrb[195].mxu1  ;;  %v13821_v9 = vpop.f32.mrb[195].mxu0 }
 0x47d   : > { %v10283_v10 = vadd.f32 %v13755_v22, %v18236_v39  ;;  %v13758_v59 = vadd.f32 %v13757_v58, %v13756_v60  ;;  %v13822_v63 = vadd.f32 %v13821_v9, %v13820_v26 }
 0x47f   : > { %v18284_v12 = vadd.f32 %v13819_v15, %v10283_v10  ;;  %v10286_v18 = vadd.f32 %v13758_v59, %v18239_v45 }
 0x481   : > { %v18287_v33 = vadd.f32 %v13822_v63, %v10286_v18  ;;  %v13759_v6 = vpop.f32.mrb[196].mxu1  ;;  %v13823_v13 = vpop.f32.mrb[196].mxu0 }
 0x482   : > { %v13760_v14 = vpop.f32.mrb[197].mxu1  ;;  %v13824_v20 = vpop.f32.mrb[197].mxu0 }
 0x483   : > { %v13761_v34 = vadd.f32 %v13760_v14, %v13759_v6  ;;  %v13825_v25 = vadd.f32 %v13824_v20, %v13823_v13  ;;  %v13762_v19 = vpop.f32.mrb[198].mxu1  ;;  %v13826_v23 = vpop.f32.mrb[198].mxu0 }
 0x484   : > { %v13763_v5 = vpop.f32.mrb[199].mxu1  ;;  %v13827_v17 = vpop.f32.mrb[199].mxu0 }
 0x485   : > { %v10291_v39 = vadd.f32 %v13761_v34, %v18242_v1  ;;  %v13764_v27 = vadd.f32 %v13763_v5, %v13762_v19  ;;  %v13828_v32 = vadd.f32 %v13827_v17, %v13826_v23 }
 0x487   : > { %v18290_v31 = vadd.f32 %v13825_v25, %v10291_v39  ;;  %v10294_v45 = vadd.f32 %v13764_v27, %v18245_v52 }
 0x489   : > { %v18293_v47 = vadd.f32 %v13828_v32, %v10294_v45  ;;  %v13765_v2 = vpop.f32.mrb[200].mxu1  ;;  %v13829_v53 = vpop.f32.mrb[200].mxu0 }
 0x48a   : > { %v13766_v3 = vpop.f32.mrb[201].mxu1  ;;  %v13830_v57 = vpop.f32.mrb[201].mxu0 }
 0x48b   : > { %v13767_v24 = vadd.f32 %v13766_v3, %v13765_v2  ;;  %v13831_v54 = vadd.f32 %v13830_v57, %v13829_v53  ;;  %v13768_v55 = vpop.f32.mrb[202].mxu1  ;;  %v13832_v38 = vpop.f32.mrb[202].mxu0 }
 0x48c   : > { %v13769_v62 = vpop.f32.mrb[203].mxu1  ;;  %v13833_v43 = vpop.f32.mrb[203].mxu0 }
 0x48d   : > { %v10299_v1 = vadd.f32 %v13767_v24, %v18248_v28  ;;  %v13770_v7 = vadd.f32 %v13769_v62, %v13768_v55  ;;  %v13834_v42 = vadd.f32 %v13833_v43, %v13832_v38 }
 0x48f   : > { %v18296_v8 = vadd.f32 %v13831_v54, %v10299_v1  ;;  %v10302_v52 = vadd.f32 %v13770_v7, %v18251_v29 }
 0x491   : > { %v18299_v56 = vadd.f32 %v13834_v42, %v10302_v52  ;;  %v13771_v41 = vpop.f32.mrb[204].mxu1  ;;  %v13835_v46 = vpop.f32.mrb[204].mxu0 }
 0x492   : > { %v13772_v49 = vpop.f32.mrb[205].mxu1  ;;  %v13836_v37 = vpop.f32.mrb[205].mxu0 }
 0x493   : > { %v13773_v16 = vadd.f32 %v13772_v49, %v13771_v41  ;;  %v13837_v35 = vadd.f32 %v13836_v37, %v13835_v46  ;;  %v13774_v50 = vpop.f32.mrb[206].mxu1  ;;  %v13838_v61 = vpop.f32.mrb[206].mxu0 }
 0x494   : > { %v13775_v22 = vpop.f32.mrb[207].mxu1  ;;  %v13839_v15 = vpop.f32.mrb[207].mxu0 }
 0x495   : > { %v10307_v28 = vadd.f32 %v13773_v16, %v18254_v36  ;;  %v13776_v60 = vadd.f32 %v13775_v22, %v13774_v50  ;;  %v13840_v26 = vadd.f32 %v13839_v15, %v13838_v61 }
 0x497   : > { %v18302_v58 = vadd.f32 %v13837_v35, %v10307_v28  ;;  %v10310_v29 = vadd.f32 %v13776_v60, %v18257_v48 }
 0x499   : > { %v18305_v9 = vadd.f32 %v13840_v26, %v10310_v29  ;;  %v13857_v10 = vpop.f32.mrb[208].mxu1  ;;  %v13921_v59 = vpop.f32.mrb[208].mxu0 }
 0x49a   : > { %v13858_v63 = vpop.f32.mrb[209].mxu1  ;;  %v13922_v18 = vpop.f32.mrb[209].mxu0 }
 0x49b   : > { %v13859_v6 = vadd.f32 %v13858_v63, %v13857_v10  ;;  %v13923_v13 = vadd.f32 %v13922_v18, %v13921_v59  ;;  %v13860_v14 = vpop.f32.mrb[210].mxu1  ;;  %v13924_v20 = vpop.f32.mrb[210].mxu0 }
 0x49c   : > { %v13861_v34 = vpop.f32.mrb[211].mxu1  ;;  %v13925_v25 = vpop.f32.mrb[211].mxu0 }
 0x49d   : > { %v10445_v36 = vadd.f32 %v13859_v6, %v18260_v11  ;;  %v13862_v19 = vadd.f32 %v13861_v34, %v13860_v14  ;;  %v13926_v23 = vadd.f32 %v13925_v25, %v13924_v20 }
 0x49f   : > { %v18308_v5 = vadd.f32 %v13923_v13, %v10445_v36  ;;  %v10448_v48 = vadd.f32 %v13862_v19, %v18263_v51 }
 0x4a1   : > { %v18311_v17 = vadd.f32 %v13926_v23, %v10448_v48  ;;  %v13863_v39 = vpop.f32.mrb[212].mxu1  ;;  %v13927_v27 = vpop.f32.mrb[212].mxu0 }
 0x4a2   : > { %v13864_v32 = vpop.f32.mrb[213].mxu1  ;;  %v13928_v45 = vpop.f32.mrb[213].mxu0 }
 0x4a3   : > { %v13865_v2 = vadd.f32 %v13864_v32, %v13863_v39  ;;  %v13929_v53 = vadd.f32 %v13928_v45, %v13927_v27  ;;  %v13866_v3 = vpop.f32.mrb[214].mxu1  ;;  %v13930_v57 = vpop.f32.mrb[214].mxu0 }
 0x4a4   : > { %v13867_v24 = vpop.f32.mrb[215].mxu1  ;;  %v13931_v54 = vpop.f32.mrb[215].mxu0 }
 0x4a5   : > { %v10453_v11 = vadd.f32 %v13865_v2, %v18266_v40  ;;  %v13868_v55 = vadd.f32 %v13867_v24, %v13866_v3  ;;  %v13932_v38 = vadd.f32 %v13931_v54, %v13930_v57 }
 0x4a7   : > { %v18314_v62 = vadd.f32 %v13929_v53, %v10453_v11  ;;  %v10456_v51 = vadd.f32 %v13868_v55, %v18269_v30 }
 0x4a9   : > { %v18317_v43 = vadd.f32 %v13932_v38, %v10456_v51  ;;  %v13869_v1 = vpop.f32.mrb[216].mxu1  ;;  %v13933_v7 = vpop.f32.mrb[216].mxu0 }
 0x4aa   : > { %v13870_v42 = vpop.f32.mrb[217].mxu1  ;;  %v13934_v52 = vpop.f32.mrb[217].mxu0 }
 0x4ab   : > { %v13871_v41 = vadd.f32 %v13870_v42, %v13869_v1  ;;  %v13935_v46 = vadd.f32 %v13934_v52, %v13933_v7  ;;  %v13872_v49 = vpop.f32.mrb[218].mxu1  ;;  %v13936_v37 = vpop.f32.mrb[218].mxu0 }
 0x4ac   : > { %v13873_v16 = vpop.f32.mrb[219].mxu1  ;;  %v13937_v35 = vpop.f32.mrb[219].mxu0 }
 0x4ad   : > { %v10461_v40 = vadd.f32 %v13871_v41, %v18272_v44  ;;  %v13874_v50 = vadd.f32 %v13873_v16, %v13872_v49  ;;  %v13938_v61 = vadd.f32 %v13937_v35, %v13936_v37 }
 0x4af   : > { %v18320_v22 = vadd.f32 %v13935_v46, %v10461_v40  ;;  %v10464_v30 = vadd.f32 %v13874_v50, %v18275_v0 }
 0x4b1   : > { %v18323_v15 = vadd.f32 %v13938_v61, %v10464_v30  ;;  %v13875_v28 = vpop.f32.mrb[220].mxu1  ;;  %v13939_v60 = vpop.f32.mrb[220].mxu0 }
 0x4b2   : > { %v13876_v26 = vpop.f32.mrb[221].mxu1  ;;  %v13940_v29 = vpop.f32.mrb[221].mxu0 }
 0x4b3   : > { %v13877_v10 = vadd.f32 %v13876_v26, %v13875_v28  ;;  %v13941_v59 = vadd.f32 %v13940_v29, %v13939_v60  ;;  %v13878_v63 = vpop.f32.mrb[222].mxu1  ;;  %v13942_v18 = vpop.f32.mrb[222].mxu0 }
 0x4b4   : > { %v13879_v6 = vpop.f32.mrb[223].mxu1  ;;  %v13943_v13 = vpop.f32.mrb[223].mxu0 }
 0x4b5   : > { %v10469_v44 = vadd.f32 %v13877_v10, %v18278_v4  ;;  %v13880_v14 = vadd.f32 %v13879_v6, %v13878_v63  ;;  %v13944_v20 = vadd.f32 %v13943_v13, %v13942_v18 }
 0x4b7   : > { %v18326_v34 = vadd.f32 %v13941_v59, %v10469_v44  ;;  %v10472_v0 = vadd.f32 %v13880_v14, %v18281_v21 }
 0x4b9   : > { %v18329_v25 = vadd.f32 %v13944_v20, %v10472_v0  ;;  %v13881_v36 = vpop.f32.mrb[224].mxu1  ;;  %v13945_v19 = vpop.f32.mrb[224].mxu0 }
 0x4ba   : > { %v13882_v23 = vpop.f32.mrb[225].mxu1  ;;  %v13946_v48 = vpop.f32.mrb[225].mxu0 }
 0x4bb   : > { %v13883_v39 = vadd.f32 %v13882_v23, %v13881_v36  ;;  %v13947_v27 = vadd.f32 %v13946_v48, %v13945_v19  ;;  %v13884_v32 = vpop.f32.mrb[226].mxu1  ;;  %v13948_v45 = vpop.f32.mrb[226].mxu0 }
 0x4bc   : > { %v13885_v2 = vpop.f32.mrb[227].mxu1  ;;  %v13949_v53 = vpop.f32.mrb[227].mxu0 }
 0x4bd   : > { %v10477_v4 = vadd.f32 %v13883_v39, %v18284_v12  ;;  %v13886_v3 = vadd.f32 %v13885_v2, %v13884_v32  ;;  %v13950_v57 = vadd.f32 %v13949_v53, %v13948_v45 }
 0x4bf   : > { %v18332_v24 = vadd.f32 %v13947_v27, %v10477_v4  ;;  %v10480_v21 = vadd.f32 %v13886_v3, %v18287_v33 }
 0x4c1   : > { %v18335_v54 = vadd.f32 %v13950_v57, %v10480_v21  ;;  %v13887_v11 = vpop.f32.mrb[228].mxu1  ;;  %v13951_v55 = vpop.f32.mrb[228].mxu0 }
 0x4c2   : > { %v13888_v38 = vpop.f32.mrb[229].mxu1  ;;  %v13952_v51 = vpop.f32.mrb[229].mxu0 }
 0x4c3   : > { %v13889_v1 = vadd.f32 %v13888_v38, %v13887_v11  ;;  %v13953_v7 = vadd.f32 %v13952_v51, %v13951_v55  ;;  %v13890_v42 = vpop.f32.mrb[230].mxu1  ;;  %v13954_v52 = vpop.f32.mrb[230].mxu0 }
 0x4c4   : > { %v13891_v41 = vpop.f32.mrb[231].mxu1  ;;  %v13955_v46 = vpop.f32.mrb[231].mxu0 }
 0x4c5   : > { %v10485_v12 = vadd.f32 %v13889_v1, %v18290_v31  ;;  %v13892_v49 = vadd.f32 %v13891_v41, %v13890_v42  ;;  %v13956_v37 = vadd.f32 %v13955_v46, %v13954_v52 }
 0x4c7   : > { %v18338_v16 = vadd.f32 %v13953_v7, %v10485_v12  ;;  %v10488_v33 = vadd.f32 %v13892_v49, %v18293_v47  ;;  %v18366_v12 = vld [vmem:[%s18441_s3] ss:$0 sm:$0xff] }
 0x4c9   : > { %v18341_v35 = vadd.f32 %v13956_v37, %v10488_v33  ;;  %v13893_v40 = vpop.f32.mrb[232].mxu1  ;;  %v13957_v50 = vpop.f32.mrb[232].mxu0 }
 0x4ca   : > { %v13894_v61 = vpop.f32.mrb[233].mxu1  ;;  %v13958_v30 = vpop.f32.mrb[233].mxu0 }
 0x4cb   : > { %v13895_v28 = vadd.f32 %v13894_v61, %v13893_v40  ;;  %v13959_v60 = vadd.f32 %v13958_v30, %v13957_v50  ;;  %v13896_v26 = vpop.f32.mrb[234].mxu1  ;;  %v13960_v29 = vpop.f32.mrb[234].mxu0 }
 0x4cc   : > { %v13897_v10 = vpop.f32.mrb[235].mxu1  ;;  %v13961_v59 = vpop.f32.mrb[235].mxu0 }
 0x4cd   : > { %v10493_v31 = vadd.f32 %v13895_v28, %v18296_v8  ;;  %v13898_v63 = vadd.f32 %v13897_v10, %v13896_v26  ;;  %v13962_v18 = vadd.f32 %v13961_v59, %v13960_v29 }
 0x4cf   : > { %v18344_v6 = vadd.f32 %v13959_v60, %v10493_v31  ;;  %v10496_v47 = vadd.f32 %v13898_v63, %v18299_v56 }
 0x4d1   : > { %v18347_v13 = vadd.f32 %v13962_v18, %v10496_v47  ;;  %v13899_v44 = vpop.f32.mrb[236].mxu1  ;;  %v13963_v14 = vpop.f32.mrb[236].mxu0 }
 0x4d2   : > { %v13900_v20 = vpop.f32.mrb[237].mxu1  ;;  %v13964_v0 = vpop.f32.mrb[237].mxu0 }
 0x4d3   : > { %v13901_v36 = vadd.f32 %v13900_v20, %v13899_v44  ;;  %v13965_v19 = vadd.f32 %v13964_v0, %v13963_v14  ;;  %v13902_v23 = vpop.f32.mrb[238].mxu1  ;;  %v13966_v48 = vpop.f32.mrb[238].mxu0 }
 0x4d4   : > { %v13903_v39 = vpop.f32.mrb[239].mxu1  ;;  %v13967_v27 = vpop.f32.mrb[239].mxu0 }
 0x4d5   : > { %v10501_v8 = vadd.f32 %v13901_v36, %v18302_v58  ;;  %v13904_v32 = vadd.f32 %v13903_v39, %v13902_v23  ;;  %v13968_v45 = vadd.f32 %v13967_v27, %v13966_v48 }
 0x4d7   : > { %v18350_v2 = vadd.f32 %v13965_v19, %v10501_v8  ;;  %v10504_v56 = vadd.f32 %v13904_v32, %v18305_v9  ;;  %v18359_v9 = vld [vmem:[%s18440_s2] ss:$0 sm:$0xff] }
 0x4d9   : > { %v18353_v53 = vadd.f32 %v13968_v45, %v10504_v56  ;;  %v13985_v4 = vpop.f32.mrb[240].mxu1  ;;  %v14049_v3 = vpop.f32.mrb[240].mxu0 }
 0x4da   : > { %v13986_v57 = vpop.f32.mrb[241].mxu1  ;;  %v14050_v21 = vpop.f32.mrb[241].mxu0 }
 0x4db   : > { %v13987_v11 = vadd.f32 %v13986_v57, %v13985_v4  ;;  %v14051_v55 = vadd.f32 %v14050_v21, %v14049_v3  ;;  %v13988_v38 = vpop.f32.mrb[242].mxu1  ;;  %v14052_v51 = vpop.f32.mrb[242].mxu0 }
 0x4dc   : > { %v13989_v1 = vpop.f32.mrb[243].mxu1  ;;  %v14053_v7 = vpop.f32.mrb[243].mxu0 }
 0x4dd   : > { %v10639_v58 = vadd.f32 %v13987_v11, %v18308_v5  ;;  %v13990_v42 = vadd.f32 %v13989_v1, %v13988_v38  ;;  %v14054_v52 = vadd.f32 %v14053_v7, %v14052_v51 }
 0x4df   : > { %v10736_v41 = vadd.f32 %v14051_v55, %v10639_v58  ;;  %v10642_v46 = vadd.f32 %v13990_v42, %v18311_v17 }
 0x4e1   : > { %v10805_v49 = vmul.f32 %v18359_v9, %v10736_v41  ;;  %v10739_v37 = vadd.f32 %v14054_v52, %v10642_v46  ;;  %v13991_v5 = vpop.f32.mrb[244].mxu1  ;;  %v14055_v33 = vpop.f32.mrb[244].mxu0 }
 0x4e2   : > { %v13992_v40 = vpop.f32.mrb[245].mxu1  ;;  %v14056_v50 = vpop.f32.mrb[245].mxu0 }
 0x4e3   : > { %v10828_v17 = vadd.f32 %v18366_v12, %v10805_v49  ;;  %v10806_v61 = vmul.f32 %v18359_v9, %v10739_v37  ;;  %v13993_v30 = vadd.f32 %v13992_v40, %v13991_v5  ;;  %v14057_v28 = vadd.f32 %v14056_v50, %v14055_v33  ;;  %v13994_v60 = vpop.f32.mrb[246].mxu1  ;;  %v14058_v26 = vpop.f32.mrb[246].mxu0 }
 0x4e4   : > { %v13995_v29 = vpop.f32.mrb[247].mxu1  ;;  %v14059_v10 = vpop.f32.mrb[247].mxu0 }
 0x4e5   : > { %10844 = vst [vmem:[%s18372_s25] sm:$0xff] %v10828_v17  ;;  %v10829_v59 = vadd.f32 %v18366_v12, %v10806_v61  ;;  %v10647_v31 = vadd.f32 %v13993_v30, %v18314_v62  ;;  %v13996_v63 = vadd.f32 %v13995_v29, %v13994_v60  ;;  %v14060_v18 = vadd.f32 %v14059_v10, %v14058_v26 }
 0x4e7   : > { %10845 = vst [vmem:[%s18372_s25 + $0x8] sm:$0xff] %v10829_v59  ;;  %v10744_v47 = vadd.f32 %v14057_v28, %v10647_v31  ;;  %v10650_v44 = vadd.f32 %v13996_v63, %v18317_v43 }
 0x4e9   : > { %v10807_v14 = vmul.f32 %v18359_v9, %v10744_v47  ;;  %v10747_v20 = vadd.f32 %v14060_v18, %v10650_v44  ;;  %v13997_v0 = vpop.f32.mrb[248].mxu1  ;;  %v14061_v36 = vpop.f32.mrb[248].mxu0 }
 0x4ea   : > { %v13998_v19 = vpop.f32.mrb[249].mxu1  ;;  %v14062_v23 = vpop.f32.mrb[249].mxu0 }
 0x4eb   : > { %v10830_v48 = vadd.f32 %v18366_v12, %v10807_v14  ;;  %v10808_v39 = vmul.f32 %v18359_v9, %v10747_v20  ;;  %v13999_v62 = vadd.f32 %v13998_v19, %v13997_v0  ;;  %v14063_v27 = vadd.f32 %v14062_v23, %v14061_v36  ;;  %v14000_v8 = vpop.f32.mrb[250].mxu1  ;;  %v14064_v32 = vpop.f32.mrb[250].mxu0 }
 0x4ec   : > { %v14001_v45 = vpop.f32.mrb[251].mxu1  ;;  %v14065_v56 = vpop.f32.mrb[251].mxu0 }
 0x4ed   : > { %10846 = vst [vmem:[%s18372_s25 + $0x10] sm:$0xff] %v10830_v48  ;;  %v10831_v43 = vadd.f32 %v18366_v12, %v10808_v39  ;;  %v10655_v4 = vadd.f32 %v13999_v62, %v18320_v22  ;;  %v14002_v3 = vadd.f32 %v14001_v45, %v14000_v8  ;;  %v14066_v57 = vadd.f32 %v14065_v56, %v14064_v32 }
 0x4ef   : > { %10847 = vst [vmem:[%s18372_s25 + $0x18] sm:$0xff] %v10831_v43  ;;  %v10752_v21 = vadd.f32 %v14063_v27, %v10655_v4  ;;  %v10658_v11 = vadd.f32 %v14002_v3, %v18323_v15 }
 0x4f1   : > { %v10809_v55 = vmul.f32 %v18359_v9, %v10752_v21  ;;  %v10755_v38 = vadd.f32 %v14066_v57, %v10658_v11  ;;  %v14003_v51 = vpop.f32.mrb[252].mxu1  ;;  %v14067_v1 = vpop.f32.mrb[252].mxu0 }
 0x4f2   : > { %v14004_v7 = vpop.f32.mrb[253].mxu1  ;;  %v14068_v58 = vpop.f32.mrb[253].mxu0 }
 0x4f3   : > { %v10832_v42 = vadd.f32 %v18366_v12, %v10809_v55  ;;  %v10810_v52 = vmul.f32 %v18359_v9, %v10755_v38  ;;  %v14005_v22 = vadd.f32 %v14004_v7, %v14003_v51  ;;  %v14069_v41 = vadd.f32 %v14068_v58, %v14067_v1  ;;  %v14006_v46 = vpop.f32.mrb[254].mxu1  ;;  %v14070_v49 = vpop.f32.mrb[254].mxu0 }
 0x4f4   : > { %v14007_v37 = vpop.f32.mrb[255].mxu1  ;;  %v14071_v5 = vpop.f32.mrb[255].mxu0 }
 0x4f5   : > { %10848 = vst [vmem:[%s18372_s25 + $0x20] sm:$0xff] %v10832_v42  ;;  %v10833_v15 = vadd.f32 %v18366_v12, %v10810_v52  ;;  %v10663_v33 = vadd.f32 %v14005_v22, %v18326_v34  ;;  %v14008_v40 = vadd.f32 %v14007_v37, %v14006_v46  ;;  %v14072_v50 = vadd.f32 %v14071_v5, %v14070_v49 }
 0x4f7   : > { %10849 = vst [vmem:[%s18372_s25 + $0x28] sm:$0xff] %v10833_v15  ;;  %v10760_v17 = vadd.f32 %v14069_v41, %v10663_v33  ;;  %v10666_v61 = vadd.f32 %v14008_v40, %v18329_v25 }
 0x4f9   : > { %v10811_v30 = vmul.f32 %v18359_v9, %v10760_v17  ;;  %v10763_v28 = vadd.f32 %v14072_v50, %v10666_v61  ;;  %v14009_v60 = vpop.f32.mrb[0].mxu1  ;;  %v14073_v26 = vpop.f32.mrb[0].mxu0 }
 0x4fa   : > { %v14010_v29 = vpop.f32.mrb[1].mxu1  ;;  %v14074_v10 = vpop.f32.mrb[1].mxu0 }
 0x4fb   : > { %v10834_v59 = vadd.f32 %v18366_v12, %v10811_v30  ;;  %v10812_v31 = vmul.f32 %v18359_v9, %v10763_v28  ;;  %v14011_v34 = vadd.f32 %v14010_v29, %v14009_v60  ;;  %v14075_v63 = vadd.f32 %v14074_v10, %v14073_v26  ;;  %v14012_v18 = vpop.f32.mrb[2].mxu1  ;;  %v14076_v47 = vpop.f32.mrb[2].mxu0 }
 0x4fc   : > { %v14013_v44 = vpop.f32.mrb[3].mxu1  ;;  %v14077_v14 = vpop.f32.mrb[3].mxu0 }
 0x4fd   : > { %10850 = vst [vmem:[%s18372_s25 + $0x30] sm:$0xff] %v10834_v59  ;;  %v10835_v25 = vadd.f32 %v18366_v12, %v10812_v31  ;;  %v10671_v20 = vadd.f32 %v14011_v34, %v18332_v24  ;;  %v14014_v0 = vadd.f32 %v14013_v44, %v14012_v18  ;;  %v14078_v36 = vadd.f32 %v14077_v14, %v14076_v47 }
 0x4ff   : > { %10851 = vst [vmem:[%s18372_s25 + $0x38] sm:$0xff] %v10835_v25  ;;  %v10768_v19 = vadd.f32 %v14075_v63, %v10671_v20  ;;  %v10674_v23 = vadd.f32 %v14014_v0, %v18335_v54 }
 0x501   : > { %v10813_v48 = vmul.f32 %v18359_v9, %v10768_v19  ;;  %v10771_v39 = vadd.f32 %v14078_v36, %v10674_v23  ;;  %v14015_v62 = vpop.f32.mrb[4].mxu1  ;;  %v14079_v27 = vpop.f32.mrb[4].mxu0 }
 0x502   : > { %v14016_v8 = vpop.f32.mrb[5].mxu1  ;;  %v14080_v32 = vpop.f32.mrb[5].mxu0 }
 0x503   : > { %v10836_v45 = vadd.f32 %v18366_v12, %v10813_v48  ;;  %v10814_v56 = vmul.f32 %v18359_v9, %v10771_v39  ;;  %v14017_v24 = vadd.f32 %v14016_v8, %v14015_v62  ;;  %v14081_v43 = vadd.f32 %v14080_v32, %v14079_v27  ;;  %v14018_v4 = vpop.f32.mrb[6].mxu1  ;;  %v14082_v3 = vpop.f32.mrb[6].mxu0 }
 0x504   : > { %v14019_v57 = vpop.f32.mrb[7].mxu1  ;;  %v14083_v21 = vpop.f32.mrb[7].mxu0 }
 0x505   : > { %10852 = vst [vmem:[%s18372_s25 + $0x40] sm:$0xff] %v10836_v45  ;;  %v10837_v54 = vadd.f32 %v18366_v12, %v10814_v56  ;;  %v10679_v11 = vadd.f32 %v14017_v24, %v18338_v16  ;;  %v14020_v55 = vadd.f32 %v14019_v57, %v14018_v4  ;;  %v14084_v38 = vadd.f32 %v14083_v21, %v14082_v3 }
 0x507   : > { %10853 = vst [vmem:[%s18372_s25 + $0x48] sm:$0xff] %v10837_v54  ;;  %v10776_v51 = vadd.f32 %v14081_v43, %v10679_v11  ;;  %v10682_v1 = vadd.f32 %v14020_v55, %v18341_v35 }
 0x509   : > { %v10815_v7 = vmul.f32 %v18359_v9, %v10776_v51  ;;  %v10779_v58 = vadd.f32 %v14084_v38, %v10682_v1  ;;  %v14021_v42 = vpop.f32.mrb[8].mxu1  ;;  %v14085_v52 = vpop.f32.mrb[8].mxu0 }
 0x50a   : > { %v14022_v22 = vpop.f32.mrb[9].mxu1  ;;  %v14086_v41 = vpop.f32.mrb[9].mxu0 }
 0x50b   : > { %v10838_v46 = vadd.f32 %v18366_v12, %v10815_v7  ;;  %v10816_v49 = vmul.f32 %v18359_v9, %v10779_v58  ;;  %v14023_v16 = vadd.f32 %v14022_v22, %v14021_v42  ;;  %v14087_v37 = vadd.f32 %v14086_v41, %v14085_v52  ;;  %v14024_v5 = vpop.f32.mrb[10].mxu1  ;;  %v14088_v15 = vpop.f32.mrb[10].mxu0 }
 0x50c   : > { %v14025_v33 = vpop.f32.mrb[11].mxu1  ;;  %v14089_v40 = vpop.f32.mrb[11].mxu0 }
 0x50d   : > { %10854 = vst [vmem:[%s18372_s25 + $0x50] sm:$0xff] %v10838_v46  ;;  %v10839_v35 = vadd.f32 %v18366_v12, %v10816_v49  ;;  %v10687_v50 = vadd.f32 %v14023_v16, %v18344_v6  ;;  %v14026_v17 = vadd.f32 %v14025_v33, %v14024_v5  ;;  %v14090_v61 = vadd.f32 %v14089_v40, %v14088_v15 }
 0x50f   : > { %10855 = vst [vmem:[%s18372_s25 + $0x58] sm:$0xff] %v10839_v35  ;;  %v10784_v30 = vadd.f32 %v14087_v37, %v10687_v50  ;;  %v10690_v28 = vadd.f32 %v14026_v17, %v18347_v13 }
 0x511   : > { %v10817_v60 = vmul.f32 %v18359_v9, %v10784_v30  ;;  %v10787_v26 = vadd.f32 %v14090_v61, %v10690_v28  ;;  %v14027_v29 = vpop.f32.mrb[12].mxu1  ;;  %v14091_v10 = vpop.f32.mrb[12].mxu0 }
 0x512   : > { %v14028_v59 = vpop.f32.mrb[13].mxu1  ;;  %v14092_v31 = vpop.f32.mrb[13].mxu0 }
 0x513   : > { %v10840_v34 = vadd.f32 %v18366_v12, %v10817_v60  ;;  %v10818_v63 = vmul.f32 %v18359_v9, %v10787_v26  ;;  %v14029_v6 = vadd.f32 %v14028_v59, %v14027_v29  ;;  %v14093_v18 = vadd.f32 %v14092_v31, %v14091_v10  ;;  %v14030_v47 = vpop.f32.mrb[14].mxu1  ;;  %v14094_v44 = vpop.f32.mrb[14].mxu0 }
 0x514   : > { %v14031_v14 = vpop.f32.mrb[15].mxu1  ;;  %v14095_v13 = vpop.f32.mrb[15].mxu0 }
 0x515   : > { %10856 = vst [vmem:[%s18372_s25 + $0x60] sm:$0xff] %v10840_v34  ;;  %v10841_v25 = vadd.f32 %v18366_v12, %v10818_v63  ;;  %v10695_v20 = vadd.f32 %v14029_v6, %v18350_v2  ;;  %v14032_v0 = vadd.f32 %v14031_v14, %v14030_v47  ;;  %v14096_v36 = vadd.f32 %v14095_v13, %v14094_v44 }
 0x517   : > { %10857 = vst [vmem:[%s18372_s25 + $0x68] sm:$0xff] %v10841_v25  ;;  %v10792_v19 = vadd.f32 %v14093_v18, %v10695_v20  ;;  %v10698_v23 = vadd.f32 %v14032_v0, %v18353_v53 }
 0x519   : > { %v10819_v48 = vmul.f32 %v18359_v9, %v10792_v19  ;;  %v10795_v39 = vadd.f32 %v14096_v36, %v10698_v23 }
 0x51b   : > { %v10842_v62 = vadd.f32 %v18366_v12, %v10819_v48  ;;  %v10820_v27 = vmul.f32 %v18359_v9, %v10795_v39 }
 0x51d   : > { %10858 = vst [vmem:[%s18372_s25 + $0x70] sm:$0xff] %v10842_v62  ;;  %v10843_v8 = vadd.f32 %v18366_v12, %v10820_v27 }
 0x51f   : > { %10859 = vst [vmem:[%s18372_s25 + $0x78] sm:$0xff] %v10843_v8 }
 0x520 PF: > { %s14_s15 = sadd.s32 1, %s15448_s15  }
 0x521   : > { %p11_p4 = scmp.ge.s32.totalorder %s14_s15, 4  }
 0x523   :  { %13 = sbr.rel (!%p11_p4) target bundleno = 1 (0x1), region = 66 }

</bundles_post_ra>
